<compile_context>
chip_gen: v6e
topology: v6e:2x2x1
jax: 0.10.0
libtpu: 0.0.40
codegen_flags: <defaults>
</compile_context>

<pallas_src>
import functools
import math

import jax
import jax.numpy as jnp
from jax.experimental import pallas as pl
from jax.experimental.pallas import tpu as pltpu

LANE = 128   # TPU lane width; only the final head-output slab is padded to it.
C8 = 8       # stem-image channels padded to one sublane-packed chunk (3 -> 8)

IMAGENET_MEAN = jnp.array([0.485, 0.456, 0.406], jnp.float32)
IMAGENET_STD = jnp.array([0.229, 0.224, 0.225], jnp.float32)


# -----------------------------------------------------------------------------
# Fused Pallas kernel (one image per grid step)
# -----------------------------------------------------------------------------
def _fused_backbone_rpn_kernel(x_ref, mean_ref, bw_ref, bb_ref, rw_ref, rb_ref,
                               hw_ref, hb_ref, out_ref,
                               pad_img, pad_feat, col_b, col_r):
    # x_ref:    (1, H, W, 8)      raw image, channels zero-padded to 8 (bf16)
    # mean_ref: (1, 8)            per-channel mean, zero-padded (bf16)
    # bw_ref:   (9*8, F)          folded backbone weights, compact im2col (bf16)
    # bb_ref:   (1, F)            folded backbone bias (f32)
    # rw_ref:   (9*F, F)          RPN 3x3 conv weights, compact im2col (bf16)
    # rb_ref:   (1, F)            RPN conv bias (f32)
    # hw_ref:   (F, 128)          fused [cls | bbox] 1x1 head weights (bf16)
    # hb_ref:   (1, 128)          fused head bias (f32)
    # out_ref:  (1, H*W, 128)     lane-dense slab: [:A]=cls logits, [A:5A]=deltas
    # pad_img:  (H+2, W+2, 8)     bf16 halo-padded image scratch
    # pad_feat: (H+2, W+2, F)     bf16 halo-padded feature-map scratch
    # col_b:    (H*W, 9*8)        bf16 compact im2col scratch (backbone conv)
    # col_r:    (H*W, 9*F)        bf16 compact im2col scratch (RPN conv)
    H, W = x_ref.shape[1], x_ref.shape[2]
    C = x_ref.shape[3]
    F = pad_feat.shape[2]
    HW = H * W

    def fill_ring(pad_ref, fill_row, c):
        # Only the 1-pixel border ring is written; the interior is written
        # exactly once by the caller (no redundant full-buffer store).
        pad_ref[0:1, :, :] = jnp.broadcast_to(fill_row, (1, W + 2, c))
        pad_ref[H + 1:H + 2, :, :] = jnp.broadcast_to(fill_row, (1, W + 2, c))
        pad_ref[1:H + 1, 0:1, :] = jnp.broadcast_to(fill_row, (H, 1, c))
        pad_ref[1:H + 1, W + 1:W + 2, :] = jnp.broadcast_to(fill_row, (H, 1, c))

    def conv3x3(pad_ref, col_ref, w_ref, b_ref, c):
        # Compact im2col: per-tap column width = c (8 or 32), not 128.
        # The dx shift (sublane axis) is hoisted out of the dy loop: one
        # relayout per dx-shifted slab instead of one per (dy, dx) tap;
        # the dy slices are leading-dim slices (free).
        for dx in range(3):
            slab = pad_ref[:, dx:dx + W, :]                      # (H+2, W, c)
            for dy in range(3):
                t = dy * 3 + dx
                col_ref[:, t * c:(t + 1) * c] = slab[dy:dy + H].reshape(HW, c)
        # One MXU matmul with the compact K (72 / 288), f32 accumulation.
        return jnp.dot(col_ref[...], w_ref[...],
                       preferred_element_type=jnp.float32) + b_ref[...]

    # ---- stage 0: halo-pad the raw image in VMEM ----
    # Normalization is folded into the backbone weights, so the halo must hold
    # the raw value whose *normalized* value is zero, i.e. the per-channel mean.
    fill_ring(pad_img, mean_ref[...].reshape(1, 1, C), C)
    pad_img[1:H + 1, 1:W + 1, :] = x_ref[0]

    # ---- stage 1: backbone stand-in 3x3 conv (normalize folded in) + ReLU ----
    feat = jnp.maximum(conv3x3(pad_img, col_b, bw_ref, bb_ref, C), 0.0)  # (HW, F) f32

    # ---- stage 2: re-pad the feature map (zero halo) without touching HBM ----
    fill_ring(pad_feat, jnp.zeros((1, 1, F), pad_feat.dtype), F)
    pad_feat[1:H + 1, 1:W + 1, :] = feat.astype(pad_feat.dtype).reshape(H, W, F)

    # ---- stage 3: RPN shared 3x3 conv + ReLU ----
    t_feat = jnp.maximum(conv3x3(pad_feat, col_r, rw_ref, rb_ref, F), 0.0)

    # ---- stage 4: fused [cls | bbox] 1x1 head -> one lane-dense bf16 slab ----
    head = jnp.dot(t_feat.astype(jnp.bfloat16), hw_ref[...],
                   preferred_element_type=jnp.float32) + hb_ref[...]
    out_ref[0] = head.astype(out_ref.dtype)


def fused_backbone_rpn(image_nhwc, kp):
    N, H, W, C = image_nhwc.shape
    assert C == C8 and W % 8 == 0 and H % 8 == 0, (C, H, W)
    F = kp["rpn_conv_b"].shape[1]
    HW = H * W
    return pl.pallas_call(
        _fused_backbone_rpn_kernel,
        out_shape=jax.ShapeDtypeStruct((N, HW, LANE), jnp.bfloat16),
        grid=(N,),
        in_specs=[
            pl.BlockSpec((1, H, W, C8), lambda n: (n, 0, 0, 0)),
            pl.BlockSpec((1, C8), lambda n: (0, 0)),
            pl.BlockSpec((9 * C8, F), lambda n: (0, 0)),
            pl.BlockSpec((1, F), lambda n: (0, 0)),
            pl.BlockSpec((9 * F, F), lambda n: (0, 0)),
            pl.BlockSpec((1, F), lambda n: (0, 0)),
            pl.BlockSpec((F, LANE), lambda n: (0, 0)),
            pl.BlockSpec((1, LANE), lambda n: (0, 0)),
        ],
        out_specs=pl.BlockSpec((1, HW, LANE), lambda n: (n, 0, 0)),
        scratch_shapes=[
            pltpu.VMEM((H + 2, W + 2, C8), jnp.bfloat16),   # image halo scratch
            pltpu.VMEM((H + 2, W + 2, F), jnp.bfloat16),    # feature halo scratch
            pltpu.VMEM((HW, 9 * C8), jnp.bfloat16),         # compact im2col (backbone)
            pltpu.VMEM((HW, 9 * F), jnp.bfloat16),          # compact im2col (RPN conv)
        ],
        compiler_params=pltpu.CompilerParams(
            dimension_semantics=("parallel",),
            vmem_limit_bytes=32 * 1024 * 1024),
    )(image_nhwc, kp["mean_pad"], kp["backbone_w"], kp["backbone_b"],
      kp["rpn_conv_w"], kp["rpn_conv_b"], kp["head_w"], kp["head_b"])


# -----------------------------------------------------------------------------
# Parameter init (logical shapes) and kernel-operand preparation
# -----------------------------------------------------------------------------
def init_params(key, in_ch=3, feat_ch=32, num_anchors=3):
    ks = jax.random.split(key, 5)
    s = 0.1
    return {
        "backbone_w": jax.random.normal(ks[0], (9, in_ch, feat_ch), jnp.float32) * s,
        "backbone_b": jnp.zeros((feat_ch,), jnp.float32),
        "rpn": {
            "conv_w": jax.random.normal(ks[1], (9, feat_ch, feat_ch), jnp.float32) * s,
            "conv_b": jnp.zeros((feat_ch,), jnp.float32),
            "cls_w": jax.random.normal(ks[2], (feat_ch, num_anchors), jnp.float32) * s,
            "cls_b": jnp.zeros((num_anchors,), jnp.float32),
            "bbox_w": jax.random.normal(ks[3], (feat_ch, 4 * num_anchors), jnp.float32) * s,
            "bbox_b": jnp.zeros((4 * num_anchors,), jnp.float32),
        },
    }


def prepare_kernel_params(params, in_ch=3, feat_ch=32, num_anchors=3):
    """Fold ImageNet normalization into the backbone conv, fuse the cls/bbox
    heads into one 1x1 matmul, lay the 3x3 weights out in compact im2col order
    (tap-major, per-tap width = real channel count padded to 8/32), and cast
    MXU operands to bf16 (biases stay f32 for the f32 accumulation path)."""
    mean, std = IMAGENET_MEAN[:in_ch], IMAGENET_STD[:in_ch]

    # conv((x - mean)/std) == conv'(x) with w' = w/std and
    # b' = b - sum_{tap,ci} w[tap,ci,:] * mean[ci]/std[ci]  (exact algebra;
    # the kernel's halo holds the raw mean so the fold is exact at borders).
    bw = params["backbone_w"]                                    # (9, Cin, F)
    bb = params["backbone_b"]                                    # (F,)
    bw_folded = bw / std[None, :, None]
    bb_folded = bb - jnp.einsum("tif,i->f", bw, mean / std)

    bw_k = jnp.pad(bw_folded, ((0, 0), (0, C8 - in_ch), (0, 0)))
    bw_k = bw_k.reshape(9 * C8, feat_ch).astype(jnp.bfloat16)    # (72, F)
    bb_k = bb_folded.reshape(1, feat_ch)

    rw_k = params["rpn"]["conv_w"].reshape(9 * feat_ch, feat_ch).astype(jnp.bfloat16)
    rb_k = params["rpn"]["conv_b"].reshape(1, feat_ch)

    # fused 1x1 head: [cls (A) | bbox (4A)] along the output-channel (lane) dim.
    hw = jnp.concatenate([params["rpn"]["cls_w"], params["rpn"]["bbox_w"]], axis=1)
    hb = jnp.concatenate([params["rpn"]["cls_b"], params["rpn"]["bbox_b"]])
    hw_k = jnp.pad(hw, ((0, 0), (0, LANE - hw.shape[1]))).astype(jnp.bfloat16)
    hb_k = jnp.pad(hb, (0, LANE - hb.shape[0])).reshape(1, LANE)

    mean_pad = jnp.pad(mean, (0, C8 - in_ch)).reshape(1, C8).astype(jnp.bfloat16)

    return {
        "mean_pad": mean_pad,
        "backbone_w": bw_k, "backbone_b": bb_k,
        "rpn_conv_w": rw_k, "rpn_conv_b": rb_k,
        "head_w": hw_k, "head_b": hb_k,
    }


# -----------------------------------------------------------------------------
# RPN post-processing glue (plain JAX)
# -----------------------------------------------------------------------------
def generate_anchors(H, W, stride, size=16.0, ratios=(0.5, 1.0, 2.0)):
    ratios = jnp.asarray(ratios, jnp.float32)
    h_ratios = jnp.sqrt(ratios)
    w_ratios = 1.0 / h_ratios
    ws = w_ratios * size
    hs = h_ratios * size
    base = jnp.stack([-ws / 2, -hs / 2, ws / 2, hs / 2], axis=1)        # (A, 4)
    shift_x = jnp.arange(W, dtype=jnp.float32) * stride
    shift_y = jnp.arange(H, dtype=jnp.float32) * stride
    sy, sx = jnp.meshgrid(shift_y, shift_x, indexing="ij")
    shifts = jnp.stack([sx.reshape(-1), sy.reshape(-1),
                        sx.reshape(-1), sy.reshape(-1)], axis=1)        # (H*W, 4)
    anchors = shifts[:, None, :] + base[None, :, :]                     # (H*W, A, 4)
    return anchors.reshape(-1, 4)


def decode_boxes(deltas, anchors):
    widths = anchors[:, 2] - anchors[:, 0]
    heights = anchors[:, 3] - anchors[:, 1]
    ctr_x = anchors[:, 0] + 0.5 * widths
    ctr_y = anchors[:, 1] + 0.5 * heights
    dx, dy = deltas[..., 0], deltas[..., 1]
    dw, dh = deltas[..., 2], deltas[..., 3]
    clip = math.log(1000.0 / 16.0)
    dw = jnp.minimum(dw, clip)
    dh = jnp.minimum(dh, clip)
    pred_ctr_x = dx * widths + ctr_x
    pred_ctr_y = dy * heights + ctr_y
    pred_w = jnp.exp(dw) * widths
    pred_h = jnp.exp(dh) * heights
    return jnp.stack(
        [pred_ctr_x - 0.5 * pred_w, pred_ctr_y - 0.5 * pred_h,
         pred_ctr_x + 0.5 * pred_w, pred_ctr_y + 0.5 * pred_h], axis=-1)


def filter_proposals(boxes, logits, image_hw,
                     pre_nms_top_n=1000, post_nms_top_n=10, score_thresh=0.7):
    H_img, W_img = image_hw
    boxes = jnp.stack(
        [jnp.clip(boxes[..., 0], 0.0, W_img), jnp.clip(boxes[..., 1], 0.0, H_img),
         jnp.clip(boxes[..., 2], 0.0, W_img), jnp.clip(boxes[..., 3], 0.0, H_img)],
        axis=-1)
    scores = jax.nn.sigmoid(logits)                                     # (N, K)
    masked = jnp.where(scores >= score_thresh, scores, -jnp.inf)
    K = scores.shape[1]
    pre = min(pre_nms_top_n, K)
    top_scores, top_idx = jax.lax.top_k(masked, pre)
    top_boxes = jnp.take_along_axis(boxes, top_idx[..., None], axis=1)
    post = min(post_nms_top_n, pre)
    return top_boxes[:, :post, :], top_scores[:, :post]


# -----------------------------------------------------------------------------
# Full forward
# -----------------------------------------------------------------------------
@functools.partial(jax.jit, static_argnames=("num_anchors",))
def backbone_n_rpn_forward(kparams, image_nchw, num_anchors=3):
    N, Cin, H, W = image_nchw.shape
    x = jnp.transpose(image_nchw, (0, 2, 3, 1))                         # NCHW -> NHWC
    # Channel-pad the stem input only to 8 (not 128) and cast to bf16: the MXU
    # path consumes bf16 anyway, so this is lossless vs the fused kernel and
    # cuts the image DMA bytes / VMEM double-buffer ~32x vs 128-lane f32.
    x = jnp.pad(x, ((0, 0), (0, 0), (0, 0), (0, C8 - Cin))).astype(jnp.bfloat16)

    out = fused_backbone_rpn(x, kparams)                                # (N, H*W, 128) bf16

    A = num_anchors
    Hf, Wf = H, W                                                       # stride-1 stand-in backbone
    logits = out[:, :, :A].astype(jnp.float32).reshape(N, Hf * Wf * A)  # (N, K)
    deltas = out[:, :, A:5 * A].astype(jnp.float32).reshape(N, Hf * Wf * A, 4)

    anchors = generate_anchors(Hf, Wf, stride=H / Hf)
    boxes = decode_boxes(deltas, anchors)
    proposals, prop_scores = filter_proposals(
        boxes, logits, (float(H), float(W)),
        pre_nms_top_n=1000, post_nms_top_n=10, score_thresh=0.7)

    proposal_losses = {}   # eval mode (targets=None) -> empty losses, as in torchvision
    return (proposals, prop_scores), proposal_losses


if __name__ == "__main__":
    key = jax.random.PRNGKey(0)
    pkey, xkey = jax.random.split(key)

    # Small, module-consistent shapes: batch=2, 3-channel image, 16x16 spatial.
    image = jax.random.uniform(xkey, (2, 3, 16, 16), jnp.float32)        # NCHW like PyTorch

    params = init_params(pkey, in_ch=3, feat_ch=32, num_anchors=3)
    kparams = prepare_kernel_params(params, in_ch=3, feat_ch=32, num_anchors=3)

    (proposals, scores), losses = backbone_n_rpn_forward(kparams, image, num_anchors=3)
    jax.block_until_ready(proposals)
    jax.block_until_ready(scores)

    assert proposals.shape == (2, 10, 4), proposals.shape
    assert scores.shape == (2, 10), scores.shape
    assert losses == {}
    print("KERNEL_OK")
</pallas_src>

<mosaic_0001>
module attributes {stable_mosaic.version = 11 : i64} {
  func.func @_fused_backbone_rpn_kernel(%arg0: i32, %arg1: memref<1x16x16x8xbf16, #tpu.memory_space<vmem>>, %arg2: memref<1x8xbf16, #tpu.memory_space<vmem>>, %arg3: memref<72x32xbf16, #tpu.memory_space<vmem>>, %arg4: memref<1x32xf32, #tpu.memory_space<vmem>>, %arg5: memref<288x32xbf16, #tpu.memory_space<vmem>>, %arg6: memref<1x32xf32, #tpu.memory_space<vmem>>, %arg7: memref<32x128xbf16, #tpu.memory_space<vmem>>, %arg8: memref<1x128xf32, #tpu.memory_space<vmem>>, %arg9: memref<1x256x128xbf16, #tpu.memory_space<vmem>>, %arg10: memref<18x18x8xbf16, #tpu.memory_space<vmem>>, %arg11: memref<18x18x32xbf16, #tpu.memory_space<vmem>>, %arg12: memref<256x72xbf16, #tpu.memory_space<vmem>>, %arg13: memref<256x288xbf16, #tpu.memory_space<vmem>>) attributes {dimension_semantics = [#tpu.dimension_semantics<parallel>], iteration_bounds = array<i64: 2>, scalar_prefetch = 0 : i64, scratch_operands = 4 : i64, tpu.core_type = #tpu.core_type<tc>, window_params = [{transform_indices = @transform_0, window_bounds = array<i64: 1, 16, 16, 8>}, {pipeline_mode = #tpu.pipeline_mode<synchronous>, transform_indices = @transform_1, window_bounds = array<i64: 1, 8>}, {pipeline_mode = #tpu.pipeline_mode<synchronous>, transform_indices = @transform_2, window_bounds = array<i64: 72, 32>}, {pipeline_mode = #tpu.pipeline_mode<synchronous>, transform_indices = @transform_3, window_bounds = array<i64: 1, 32>}, {pipeline_mode = #tpu.pipeline_mode<synchronous>, transform_indices = @transform_4, window_bounds = array<i64: 288, 32>}, {pipeline_mode = #tpu.pipeline_mode<synchronous>, transform_indices = @transform_5, window_bounds = array<i64: 1, 32>}, {pipeline_mode = #tpu.pipeline_mode<synchronous>, transform_indices = @transform_6, window_bounds = array<i64: 32, 128>}, {pipeline_mode = #tpu.pipeline_mode<synchronous>, transform_indices = @transform_7, window_bounds = array<i64: 1, 128>}, {transform_indices = @transform_8, window_bounds = array<i64: 1, 256, 128>}]} {
    %c0 = arith.constant 0 : index
    %c0_0 = arith.constant 0 : index
    %0 = vector.load %arg2[%c0, %c0_0] : memref<1x8xbf16, #tpu.memory_space<vmem>>, vector<1x8xbf16>
    %1 = vector.shape_cast %0 : vector<1x8xbf16> to vector<1x1x8xbf16>
    %2 = vector.shape_cast %1 : vector<1x1x8xbf16> to vector<1x1x8xbf16>
    %3 = vector.broadcast %2 : vector<1x1x8xbf16> to vector<1x18x8xbf16>
    %c0_1 = arith.constant 0 : index
    %c0_2 = arith.constant 0 : index
    %c0_3 = arith.constant 0 : index
    %4 = vector.load %arg10[%c0_1, %c0_2, %c0_3] : memref<18x18x8xbf16, #tpu.memory_space<vmem>>, vector<1x18x8xbf16>
    tpu.vector_store %arg10[%c0_1, %c0_2, %c0_3], %3 {strides = array<i32>} : memref<18x18x8xbf16, #tpu.memory_space<vmem>>, vector<1x18x8xbf16>,
    %5 = vector.shape_cast %1 : vector<1x1x8xbf16> to vector<1x1x8xbf16>
    %6 = vector.broadcast %5 : vector<1x1x8xbf16> to vector<1x18x8xbf16>
    %c17 = arith.constant 17 : index
    %c0_4 = arith.constant 0 : index
    %c0_5 = arith.constant 0 : index
    %7 = vector.load %arg10[%c17, %c0_4, %c0_5] : memref<18x18x8xbf16, #tpu.memory_space<vmem>>, vector<1x18x8xbf16>
    tpu.vector_store %arg10[%c17, %c0_4, %c0_5], %6 {strides = array<i32>} : memref<18x18x8xbf16, #tpu.memory_space<vmem>>, vector<1x18x8xbf16>,
    %8 = vector.shape_cast %1 : vector<1x1x8xbf16> to vector<1x1x8xbf16>
    %9 = vector.broadcast %8 : vector<1x1x8xbf16> to vector<16x1x8xbf16>
    %c1 = arith.constant 1 : index
    %c0_6 = arith.constant 0 : index
    %c0_7 = arith.constant 0 : index
    %10 = vector.load %arg10[%c1, %c0_6, %c0_7] : memref<18x18x8xbf16, #tpu.memory_space<vmem>>, vector<16x1x8xbf16>
    tpu.vector_store %arg10[%c1, %c0_6, %c0_7], %9 {strides = array<i32>} : memref<18x18x8xbf16, #tpu.memory_space<vmem>>, vector<16x1x8xbf16>,
    %11 = vector.shape_cast %1 : vector<1x1x8xbf16> to vector<1x1x8xbf16>
    %12 = vector.broadcast %11 : vector<1x1x8xbf16> to vector<16x1x8xbf16>
    %c1_8 = arith.constant 1 : index
    %c17_9 = arith.constant 17 : index
    %c0_10 = arith.constant 0 : index
    %13 = vector.load %arg10[%c1_8, %c17_9, %c0_10] : memref<18x18x8xbf16, #tpu.memory_space<vmem>>, vector<16x1x8xbf16>
    tpu.vector_store %arg10[%c1_8, %c17_9, %c0_10], %12 {strides = array<i32>} : memref<18x18x8xbf16, #tpu.memory_space<vmem>>, vector<16x1x8xbf16>,
    %c0_11 = arith.constant 0 : index
    %c0_12 = arith.constant 0 : index
    %c0_13 = arith.constant 0 : index
    %c0_14 = arith.constant 0 : index
    %14 = vector.load %arg1[%c0_11, %c0_12, %c0_13, %c0_14] : memref<1x16x16x8xbf16, #tpu.memory_space<vmem>>, vector<1x16x16x8xbf16>
    %15 = vector.shape_cast %14 : vector<1x16x16x8xbf16> to vector<16x16x8xbf16>
    %c1_15 = arith.constant 1 : index
    %c1_16 = arith.constant 1 : index
    %c0_17 = arith.constant 0 : index
    %16 = vector.load %arg10[%c1_15, %c1_16, %c0_17] : memref<18x18x8xbf16, #tpu.memory_space<vmem>>, vector<16x16x8xbf16>
    tpu.vector_store %arg10[%c1_15, %c1_16, %c0_17], %15 {strides = array<i32>} : memref<18x18x8xbf16, #tpu.memory_space<vmem>>, vector<16x16x8xbf16>,
    %c0_18 = arith.constant 0 : index
    %c0_19 = arith.constant 0 : index
    %c0_20 = arith.constant 0 : index
    %17 = vector.load %arg10[%c0_18, %c0_19, %c0_20] : memref<18x18x8xbf16, #tpu.memory_space<vmem>>, vector<18x16x8xbf16>
    %18 = vector.extract_strided_slice %17 {offsets = [0, 0, 0], sizes = [16, 16, 8], strides = [1, 1, 1]} : vector<18x16x8xbf16> to vector<16x16x8xbf16>
    %19 = vector.shape_cast %18 : vector<16x16x8xbf16> to vector<256x8xbf16>
    %c0_21 = arith.constant 0 : index
    %c0_22 = arith.constant 0 : index
    %20 = vector.load %arg12[%c0_21, %c0_22] : memref<256x72xbf16, #tpu.memory_space<vmem>>, vector<256x8xbf16>
    tpu.vector_store %arg12[%c0_21, %c0_22], %19 {strides = array<i32>} : memref<256x72xbf16, #tpu.memory_space<vmem>>, vector<256x8xbf16>,
    %21 = vector.extract_strided_slice %17 {offsets = [1, 0, 0], sizes = [16, 16, 8], strides = [1, 1, 1]} : vector<18x16x8xbf16> to vector<16x16x8xbf16>
    %22 = vector.shape_cast %21 : vector<16x16x8xbf16> to vector<256x8xbf16>
    %c0_23 = arith.constant 0 : index
    %c24 = arith.constant 24 : index
    %23 = vector.load %arg12[%c0_23, %c24] : memref<256x72xbf16, #tpu.memory_space<vmem>>, vector<256x8xbf16>
    tpu.vector_store %arg12[%c0_23, %c24], %22 {strides = array<i32>} : memref<256x72xbf16, #tpu.memory_space<vmem>>, vector<256x8xbf16>,
    %24 = vector.extract_strided_slice %17 {offsets = [2, 0, 0], sizes = [16, 16, 8], strides = [1, 1, 1]} : vector<18x16x8xbf16> to vector<16x16x8xbf16>
    %25 = vector.shape_cast %24 : vector<16x16x8xbf16> to vector<256x8xbf16>
    %c0_24 = arith.constant 0 : index
    %c48 = arith.constant 48 : index
    %26 = vector.load %arg12[%c0_24, %c48] : memref<256x72xbf16, #tpu.memory_space<vmem>>, vector<256x8xbf16>
    tpu.vector_store %arg12[%c0_24, %c48], %25 {strides = array<i32>} : memref<256x72xbf16, #tpu.memory_space<vmem>>, vector<256x8xbf16>,
    %c0_25 = arith.constant 0 : index
    %c1_26 = arith.constant 1 : index
    %c0_27 = arith.constant 0 : index
    %27 = vector.load %arg10[%c0_25, %c1_26, %c0_27] : memref<18x18x8xbf16, #tpu.memory_space<vmem>>, vector<18x16x8xbf16>
    %28 = vector.extract_strided_slice %27 {offsets = [0, 0, 0], sizes = [16, 16, 8], strides = [1, 1, 1]} : vector<18x16x8xbf16> to vector<16x16x8xbf16>
    %29 = vector.shape_cast %28 : vector<16x16x8xbf16> to vector<256x8xbf16>
    %c0_28 = arith.constant 0 : index
    %c8 = arith.constant 8 : index
    %30 = vector.load %arg12[%c0_28, %c8] : memref<256x72xbf16, #tpu.memory_space<vmem>>, vector<256x8xbf16>
    tpu.vector_store %arg12[%c0_28, %c8], %29 {strides = array<i32>} : memref<256x72xbf16, #tpu.memory_space<vmem>>, vector<256x8xbf16>,
    %31 = vector.extract_strided_slice %27 {offsets = [1, 0, 0], sizes = [16, 16, 8], strides = [1, 1, 1]} : vector<18x16x8xbf16> to vector<16x16x8xbf16>
    %32 = vector.shape_cast %31 : vector<16x16x8xbf16> to vector<256x8xbf16>
    %c0_29 = arith.constant 0 : index
    %c32 = arith.constant 32 : index
    %33 = vector.load %arg12[%c0_29, %c32] : memref<256x72xbf16, #tpu.memory_space<vmem>>, vector<256x8xbf16>
    tpu.vector_store %arg12[%c0_29, %c32], %32 {strides = array<i32>} : memref<256x72xbf16, #tpu.memory_space<vmem>>, vector<256x8xbf16>,
    %34 = vector.extract_strided_slice %27 {offsets = [2, 0, 0], sizes = [16, 16, 8], strides = [1, 1, 1]} : vector<18x16x8xbf16> to vector<16x16x8xbf16>
    %35 = vector.shape_cast %34 : vector<16x16x8xbf16> to vector<256x8xbf16>
    %c0_30 = arith.constant 0 : index
    %c56 = arith.constant 56 : index
    %36 = vector.load %arg12[%c0_30, %c56] : memref<256x72xbf16, #tpu.memory_space<vmem>>, vector<256x8xbf16>
    tpu.vector_store %arg12[%c0_30, %c56], %35 {strides = array<i32>} : memref<256x72xbf16, #tpu.memory_space<vmem>>, vector<256x8xbf16>,
    %c0_31 = arith.constant 0 : index
    %c2 = arith.constant 2 : index
    %c0_32 = arith.constant 0 : index
    %37 = vector.load %arg10[%c0_31, %c2, %c0_32] : memref<18x18x8xbf16, #tpu.memory_space<vmem>>, vector<18x16x8xbf16>
    %38 = vector.extract_strided_slice %37 {offsets = [0, 0, 0], sizes = [16, 16, 8], strides = [1, 1, 1]} : vector<18x16x8xbf16> to vector<16x16x8xbf16>
    %39 = vector.shape_cast %38 : vector<16x16x8xbf16> to vector<256x8xbf16>
    %c0_33 = arith.constant 0 : index
    %c16 = arith.constant 16 : index
    %40 = vector.load %arg12[%c0_33, %c16] : memref<256x72xbf16, #tpu.memory_space<vmem>>, vector<256x8xbf16>
    tpu.vector_store %arg12[%c0_33, %c16], %39 {strides = array<i32>} : memref<256x72xbf16, #tpu.memory_space<vmem>>, vector<256x8xbf16>,
    %41 = vector.extract_strided_slice %37 {offsets = [1, 0, 0], sizes = [16, 16, 8], strides = [1, 1, 1]} : vector<18x16x8xbf16> to vector<16x16x8xbf16>
    %42 = vector.shape_cast %41 : vector<16x16x8xbf16> to vector<256x8xbf16>
    %c0_34 = arith.constant 0 : index
    %c40 = arith.constant 40 : index
    %43 = vector.load %arg12[%c0_34, %c40] : memref<256x72xbf16, #tpu.memory_space<vmem>>, vector<256x8xbf16>
    tpu.vector_store %arg12[%c0_34, %c40], %42 {strides = array<i32>} : memref<256x72xbf16, #tpu.memory_space<vmem>>, vector<256x8xbf16>,
    %44 = vector.extract_strided_slice %37 {offsets = [2, 0, 0], sizes = [16, 16, 8], strides = [1, 1, 1]} : vector<18x16x8xbf16> to vector<16x16x8xbf16>
    %45 = vector.shape_cast %44 : vector<16x16x8xbf16> to vector<256x8xbf16>
    %c0_35 = arith.constant 0 : index
    %c64 = arith.constant 64 : index
    %46 = vector.load %arg12[%c0_35, %c64] : memref<256x72xbf16, #tpu.memory_space<vmem>>, vector<256x8xbf16>
    tpu.vector_store %arg12[%c0_35, %c64], %45 {strides = array<i32>} : memref<256x72xbf16, #tpu.memory_space<vmem>>, vector<256x8xbf16>,
    %c0_36 = arith.constant 0 : index
    %c0_37 = arith.constant 0 : index
    %47 = vector.load %arg12[%c0_36, %c0_37] : memref<256x72xbf16, #tpu.memory_space<vmem>>, vector<256x72xbf16>
    %c0_38 = arith.constant 0 : index
    %c0_39 = arith.constant 0 : index
    %48 = vector.load %arg3[%c0_38, %c0_39] : memref<72x32xbf16, #tpu.memory_space<vmem>>, vector<72x32xbf16>
    %cst = arith.constant dense<0.000000e+00> : vector<256x32xf32>
    %49 = tpu.matmul %47, %48, %cst {dimension_numbers = #tpu.dot_dimension_numbers<[1], [0], [0], [1], [0, 0, 1, 1], [], []>} : vector<256x72xbf16>, vector<72x32xbf16>, vector<256x32xf32> -> vector<256x32xf32>
    %c0_40 = arith.constant 0 : index
    %c0_41 = arith.constant 0 : index
    %50 = vector.load %arg4[%c0_40, %c0_41] : memref<1x32xf32, #tpu.memory_space<vmem>>, vector<1x32xf32>
    %51 = vector.broadcast %50 : vector<1x32xf32> to vector<256x32xf32>
    %52 = arith.addf %49, %51 : vector<256x32xf32>
    %cst_42 = arith.constant 0.000000e+00 : f32
    %53 = vector.broadcast %cst_42 : f32 to vector<256x32xf32>
    %54 = arith.maximumf %52, %53 : vector<256x32xf32>
    %cst_43 = arith.constant 0.000000e+00 : bf16
    %55 = vector.broadcast %cst_43 : bf16 to vector<1x1x32xbf16>
    %56 = vector.shape_cast %55 : vector<1x1x32xbf16> to vector<1x1x32xbf16>
    %57 = vector.broadcast %56 : vector<1x1x32xbf16> to vector<1x18x32xbf16>
    %c0_44 = arith.constant 0 : index
    %c0_45 = arith.constant 0 : index
    %c0_46 = arith.constant 0 : index
    %58 = vector.load %arg11[%c0_44, %c0_45, %c0_46] : memref<18x18x32xbf16, #tpu.memory_space<vmem>>, vector<1x18x32xbf16>
    tpu.vector_store %arg11[%c0_44, %c0_45, %c0_46], %57 {strides = array<i32>} : memref<18x18x32xbf16, #tpu.memory_space<vmem>>, vector<1x18x32xbf16>,
    %59 = vector.shape_cast %55 : vector<1x1x32xbf16> to vector<1x1x32xbf16>
    %60 = vector.broadcast %59 : vector<1x1x32xbf16> to vector<1x18x32xbf16>
    %c17_47 = arith.constant 17 : index
    %c0_48 = arith.constant 0 : index
    %c0_49 = arith.constant 0 : index
    %61 = vector.load %arg11[%c17_47, %c0_48, %c0_49] : memref<18x18x32xbf16, #tpu.memory_space<vmem>>, vector<1x18x32xbf16>
    tpu.vector_store %arg11[%c17_47, %c0_48, %c0_49], %60 {strides = array<i32>} : memref<18x18x32xbf16, #tpu.memory_space<vmem>>, vector<1x18x32xbf16>,
    %62 = vector.shape_cast %55 : vector<1x1x32xbf16> to vector<1x1x32xbf16>
    %63 = vector.broadcast %62 : vector<1x1x32xbf16> to vector<16x1x32xbf16>
    %c1_50 = arith.constant 1 : index
    %c0_51 = arith.constant 0 : index
    %c0_52 = arith.constant 0 : index
    %64 = vector.load %arg11[%c1_50, %c0_51, %c0_52] : memref<18x18x32xbf16, #tpu.memory_space<vmem>>, vector<16x1x32xbf16>
    tpu.vector_store %arg11[%c1_50, %c0_51, %c0_52], %63 {strides = array<i32>} : memref<18x18x32xbf16, #tpu.memory_space<vmem>>, vector<16x1x32xbf16>,
    %65 = vector.shape_cast %55 : vector<1x1x32xbf16> to vector<1x1x32xbf16>
    %66 = vector.broadcast %65 : vector<1x1x32xbf16> to vector<16x1x32xbf16>
    %c1_53 = arith.constant 1 : index
    %c17_54 = arith.constant 17 : index
    %c0_55 = arith.constant 0 : index
    %67 = vector.load %arg11[%c1_53, %c17_54, %c0_55] : memref<18x18x32xbf16, #tpu.memory_space<vmem>>, vector<16x1x32xbf16>
    tpu.vector_store %arg11[%c1_53, %c17_54, %c0_55], %66 {strides = array<i32>} : memref<18x18x32xbf16, #tpu.memory_space<vmem>>, vector<16x1x32xbf16>,
    %68 = arith.truncf %54 : vector<256x32xf32> to vector<256x32xbf16>
    %69 = vector.shape_cast %68 : vector<256x32xbf16> to vector<16x16x32xbf16>
    %c1_56 = arith.constant 1 : index
    %c1_57 = arith.constant 1 : index
    %c0_58 = arith.constant 0 : index
    %70 = vector.load %arg11[%c1_56, %c1_57, %c0_58] : memref<18x18x32xbf16, #tpu.memory_space<vmem>>, vector<16x16x32xbf16>
    tpu.vector_store %arg11[%c1_56, %c1_57, %c0_58], %69 {strides = array<i32>} : memref<18x18x32xbf16, #tpu.memory_space<vmem>>, vector<16x16x32xbf16>,
    %c0_59 = arith.constant 0 : index
    %c0_60 = arith.constant 0 : index
    %c0_61 = arith.constant 0 : index
    %71 = vector.load %arg11[%c0_59, %c0_60, %c0_61] : memref<18x18x32xbf16, #tpu.memory_space<vmem>>, vector<18x16x32xbf16>
    %72 = vector.extract_strided_slice %71 {offsets = [0, 0, 0], sizes = [16, 16, 32], strides = [1, 1, 1]} : vector<18x16x32xbf16> to vector<16x16x32xbf16>
    %73 = vector.shape_cast %72 : vector<16x16x32xbf16> to vector<256x32xbf16>
    %c0_62 = arith.constant 0 : index
    %c0_63 = arith.constant 0 : index
    %74 = vector.load %arg13[%c0_62, %c0_63] : memref<256x288xbf16, #tpu.memory_space<vmem>>, vector<256x32xbf16>
    tpu.vector_store %arg13[%c0_62, %c0_63], %73 {strides = array<i32>} : memref<256x288xbf16, #tpu.memory_space<vmem>>, vector<256x32xbf16>,
    %75 = vector.extract_strided_slice %71 {offsets = [1, 0, 0], sizes = [16, 16, 32], strides = [1, 1, 1]} : vector<18x16x32xbf16> to vector<16x16x32xbf16>
    %76 = vector.shape_cast %75 : vector<16x16x32xbf16> to vector<256x32xbf16>
    %c0_64 = arith.constant 0 : index
    %c96 = arith.constant 96 : index
    %77 = vector.load %arg13[%c0_64, %c96] : memref<256x288xbf16, #tpu.memory_space<vmem>>, vector<256x32xbf16>
    tpu.vector_store %arg13[%c0_64, %c96], %76 {strides = array<i32>} : memref<256x288xbf16, #tpu.memory_space<vmem>>, vector<256x32xbf16>,
    %78 = vector.extract_strided_slice %71 {offsets = [2, 0, 0], sizes = [16, 16, 32], strides = [1, 1, 1]} : vector<18x16x32xbf16> to vector<16x16x32xbf16>
    %79 = vector.shape_cast %78 : vector<16x16x32xbf16> to vector<256x32xbf16>
    %c0_65 = arith.constant 0 : index
    %c192 = arith.constant 192 : index
    %80 = vector.load %arg13[%c0_65, %c192] : memref<256x288xbf16, #tpu.memory_space<vmem>>, vector<256x32xbf16>
    tpu.vector_store %arg13[%c0_65, %c192], %79 {strides = array<i32>} : memref<256x288xbf16, #tpu.memory_space<vmem>>, vector<256x32xbf16>,
    %c0_66 = arith.constant 0 : index
    %c1_67 = arith.constant 1 : index
    %c0_68 = arith.constant 0 : index
    %81 = vector.load %arg11[%c0_66, %c1_67, %c0_68] : memref<18x18x32xbf16, #tpu.memory_space<vmem>>, vector<18x16x32xbf16>
    %82 = vector.extract_strided_slice %81 {offsets = [0, 0, 0], sizes = [16, 16, 32], strides = [1, 1, 1]} : vector<18x16x32xbf16> to vector<16x16x32xbf16>
    %83 = vector.shape_cast %82 : vector<16x16x32xbf16> to vector<256x32xbf16>
    %c0_69 = arith.constant 0 : index
    %c32_70 = arith.constant 32 : index
    %84 = vector.load %arg13[%c0_69, %c32_70] : memref<256x288xbf16, #tpu.memory_space<vmem>>, vector<256x32xbf16>
    tpu.vector_store %arg13[%c0_69, %c32_70], %83 {strides = array<i32>} : memref<256x288xbf16, #tpu.memory_space<vmem>>, vector<256x32xbf16>,
    %85 = vector.extract_strided_slice %81 {offsets = [1, 0, 0], sizes = [16, 16, 32], strides = [1, 1, 1]} : vector<18x16x32xbf16> to vector<16x16x32xbf16>
    %86 = vector.shape_cast %85 : vector<16x16x32xbf16> to vector<256x32xbf16>
    %c0_71 = arith.constant 0 : index
    %c128 = arith.constant 128 : index
    %87 = vector.load %arg13[%c0_71, %c128] : memref<256x288xbf16, #tpu.memory_space<vmem>>, vector<256x32xbf16>
    tpu.vector_store %arg13[%c0_71, %c128], %86 {strides = array<i32>} : memref<256x288xbf16, #tpu.memory_space<vmem>>, vector<256x32xbf16>,
    %88 = vector.extract_strided_slice %81 {offsets = [2, 0, 0], sizes = [16, 16, 32], strides = [1, 1, 1]} : vector<18x16x32xbf16> to vector<16x16x32xbf16>
    %89 = vector.shape_cast %88 : vector<16x16x32xbf16> to vector<256x32xbf16>
    %c0_72 = arith.constant 0 : index
    %c224 = arith.constant 224 : index
    %90 = vector.load %arg13[%c0_72, %c224] : memref<256x288xbf16, #tpu.memory_space<vmem>>, vector<256x32xbf16>
    tpu.vector_store %arg13[%c0_72, %c224], %89 {strides = array<i32>} : memref<256x288xbf16, #tpu.memory_space<vmem>>, vector<256x32xbf16>,
    %c0_73 = arith.constant 0 : index
    %c2_74 = arith.constant 2 : index
    %c0_75 = arith.constant 0 : index
    %91 = vector.load %arg11[%c0_73, %c2_74, %c0_75] : memref<18x18x32xbf16, #tpu.memory_space<vmem>>, vector<18x16x32xbf16>
    %92 = vector.extract_strided_slice %91 {offsets = [0, 0, 0], sizes = [16, 16, 32], strides = [1, 1, 1]} : vector<18x16x32xbf16> to vector<16x16x32xbf16>
    %93 = vector.shape_cast %92 : vector<16x16x32xbf16> to vector<256x32xbf16>
    %c0_76 = arith.constant 0 : index
    %c64_77 = arith.constant 64 : index
    %94 = vector.load %arg13[%c0_76, %c64_77] : memref<256x288xbf16, #tpu.memory_space<vmem>>, vector<256x32xbf16>
    tpu.vector_store %arg13[%c0_76, %c64_77], %93 {strides = array<i32>} : memref<256x288xbf16, #tpu.memory_space<vmem>>, vector<256x32xbf16>,
    %95 = vector.extract_strided_slice %91 {offsets = [1, 0, 0], sizes = [16, 16, 32], strides = [1, 1, 1]} : vector<18x16x32xbf16> to vector<16x16x32xbf16>
    %96 = vector.shape_cast %95 : vector<16x16x32xbf16> to vector<256x32xbf16>
    %c0_78 = arith.constant 0 : index
    %c160 = arith.constant 160 : index
    %97 = vector.load %arg13[%c0_78, %c160] : memref<256x288xbf16, #tpu.memory_space<vmem>>, vector<256x32xbf16>
    tpu.vector_store %arg13[%c0_78, %c160], %96 {strides = array<i32>} : memref<256x288xbf16, #tpu.memory_space<vmem>>, vector<256x32xbf16>,
    %98 = vector.extract_strided_slice %91 {offsets = [2, 0, 0], sizes = [16, 16, 32], strides = [1, 1, 1]} : vector<18x16x32xbf16> to vector<16x16x32xbf16>
    %99 = vector.shape_cast %98 : vector<16x16x32xbf16> to vector<256x32xbf16>
    %c0_79 = arith.constant 0 : index
    %c256 = arith.constant 256 : index
    %100 = vector.load %arg13[%c0_79, %c256] : memref<256x288xbf16, #tpu.memory_space<vmem>>, vector<256x32xbf16>
    tpu.vector_store %arg13[%c0_79, %c256], %99 {strides = array<i32>} : memref<256x288xbf16, #tpu.memory_space<vmem>>, vector<256x32xbf16>,
    %c0_80 = arith.constant 0 : index
    %c0_81 = arith.constant 0 : index
    %101 = vector.load %arg13[%c0_80, %c0_81] : memref<256x288xbf16, #tpu.memory_space<vmem>>, vector<256x288xbf16>
    %c0_82 = arith.constant 0 : index
    %c0_83 = arith.constant 0 : index
    %102 = vector.load %arg5[%c0_82, %c0_83] : memref<288x32xbf16, #tpu.memory_space<vmem>>, vector<288x32xbf16>
    %cst_84 = arith.constant dense<0.000000e+00> : vector<256x32xf32>
    %103 = tpu.matmul %101, %102, %cst_84 {dimension_numbers = #tpu.dot_dimension_numbers<[1], [0], [0], [1], [0, 0, 1, 1], [], []>} : vector<256x288xbf16>, vector<288x32xbf16>, vector<256x32xf32> -> vector<256x32xf32>
    %c0_85 = arith.constant 0 : index
    %c0_86 = arith.constant 0 : index
    %104 = vector.load %arg6[%c0_85, %c0_86] : memref<1x32xf32, #tpu.memory_space<vmem>>, vector<1x32xf32>
    %105 = vector.broadcast %104 : vector<1x32xf32> to vector<256x32xf32>
    %106 = arith.addf %103, %105 : vector<256x32xf32>
    %cst_87 = arith.constant 0.000000e+00 : f32
    %107 = vector.broadcast %cst_87 : f32 to vector<256x32xf32>
    %108 = arith.maximumf %106, %107 : vector<256x32xf32>
    %109 = arith.truncf %108 : vector<256x32xf32> to vector<256x32xbf16>
    %c0_88 = arith.constant 0 : index
    %c0_89 = arith.constant 0 : index
    %110 = vector.load %arg7[%c0_88, %c0_89] : memref<32x128xbf16, #tpu.memory_space<vmem>>, vector<32x128xbf16>
    %cst_90 = arith.constant dense<0.000000e+00> : vector<256x128xf32>
    %111 = tpu.matmul %109, %110, %cst_90 {dimension_numbers = #tpu.dot_dimension_numbers<[1], [0], [0], [1], [0, 0, 1, 1], [], []>} : vector<256x32xbf16>, vector<32x128xbf16>, vector<256x128xf32> -> vector<256x128xf32>
    %c0_91 = arith.constant 0 : index
    %c0_92 = arith.constant 0 : index
    %112 = vector.load %arg8[%c0_91, %c0_92] : memref<1x128xf32, #tpu.memory_space<vmem>>, vector<1x128xf32>
    %113 = vector.broadcast %112 : vector<1x128xf32> to vector<256x128xf32>
    %114 = arith.addf %111, %113 : vector<256x128xf32>
    %115 = arith.truncf %114 : vector<256x128xf32> to vector<256x128xbf16>
    %c0_93 = arith.constant 0 : index
    %c0_94 = arith.constant 0 : index
    %c0_95 = arith.constant 0 : index
    %116 = vector.load %arg9[%c0_93, %c0_94, %c0_95] : memref<1x256x128xbf16, #tpu.memory_space<vmem>>, vector<1x256x128xbf16>
    %117 = vector.shape_cast %116 : vector<1x256x128xbf16> to vector<256x128xbf16>
    %118 = vector.shape_cast %115 : vector<256x128xbf16> to vector<1x256x128xbf16>
    tpu.vector_store %arg9[%c0_93, %c0_94, %c0_95], %118 {strides = array<i32>} : memref<1x256x128xbf16, #tpu.memory_space<vmem>>, vector<1x256x128xbf16>,
    return
  }
  func.func @transform_0(%arg0: i32) -> (i32, i32, i32, i32) {
    %c0_i32 = arith.constant 0 : i32
    %c0_i32_0 = arith.constant 0 : i32
    %c0_i32_1 = arith.constant 0 : i32
    %c0_i32_2 = arith.constant 0 : i32
    return %arg0, %c0_i32, %c0_i32_0, %c0_i32_1 : i32, i32, i32, i32
  }
  func.func @transform_1(%arg0: i32) -> (i32, i32) {
    %c0_i32 = arith.constant 0 : i32
    %c0_i32_0 = arith.constant 0 : i32
    %c0_i32_1 = arith.constant 0 : i32
    return %c0_i32, %c0_i32_0 : i32, i32
  }
  func.func @transform_2(%arg0: i32) -> (i32, i32) {
    %c0_i32 = arith.constant 0 : i32
    %c0_i32_0 = arith.constant 0 : i32
    %c0_i32_1 = arith.constant 0 : i32
    return %c0_i32, %c0_i32_0 : i32, i32
  }
  func.func @transform_3(%arg0: i32) -> (i32, i32) {
    %c0_i32 = arith.constant 0 : i32
    %c0_i32_0 = arith.constant 0 : i32
    %c0_i32_1 = arith.constant 0 : i32
    return %c0_i32, %c0_i32_0 : i32, i32
  }
  func.func @transform_4(%arg0: i32) -> (i32, i32) {
    %c0_i32 = arith.constant 0 : i32
    %c0_i32_0 = arith.constant 0 : i32
    %c0_i32_1 = arith.constant 0 : i32
    return %c0_i32, %c0_i32_0 : i32, i32
  }
  func.func @transform_5(%arg0: i32) -> (i32, i32) {
    %c0_i32 = arith.constant 0 : i32
    %c0_i32_0 = arith.constant 0 : i32
    %c0_i32_1 = arith.constant 0 : i32
    return %c0_i32, %c0_i32_0 : i32, i32
  }
  func.func @transform_6(%arg0: i32) -> (i32, i32) {
    %c0_i32 = arith.constant 0 : i32
    %c0_i32_0 = arith.constant 0 : i32
    %c0_i32_1 = arith.constant 0 : i32
    return %c0_i32, %c0_i32_0 : i32, i32
  }
  func.func @transform_7(%arg0: i32) -> (i32, i32) {
    %c0_i32 = arith.constant 0 : i32
    %c0_i32_0 = arith.constant 0 : i32
    %c0_i32_1 = arith.constant 0 : i32
    return %c0_i32, %c0_i32_0 : i32, i32
  }
  func.func @transform_8(%arg0: i32) -> (i32, i32, i32) {
    %c0_i32 = arith.constant 0 : i32
    %c0_i32_0 = arith.constant 0 : i32
    %c0_i32_1 = arith.constant 0 : i32
    return %arg0, %c0_i32, %c0_i32_0 : i32, i32, i32
  }
}

</mosaic_0001>

<bundles_post_ra>
// kernel: backbone_n_rpn_forward.1
= control target key start
LH: loop header
LB: loop body
LE: loop exit
PB: predicated region body
PF: predicated region fallthrough
CT: control target
= control target key end

     0   :  { %s7749_s27 = smov 0   ;;  %s10911_s0 = inlined_call_operand.vmem [shape: bf16[2,16,16,8], index: 0, kind: input, shape index: {}]   ;;  %s10912_s1 = inlined_call_operand.vmem [shape: bf16[1,8], index: 1, kind: input, shape index: {}]   ;;  %s10913_s2 = inlined_call_operand.vmem [shape: bf16[72,32], index: 2, kind: input, shape index: {}]   ;;  %s10914_s3 = inlined_call_operand.vmem [shape: f32[1,32], index: 3, kind: input, shape index: {}]   ;;  %s10915_s4 = inlined_call_operand.vmem [shape: bf16[288,32], index: 4, kind: input, shape index: {}]   ;;  %s10916_s5 = inlined_call_operand.vmem [shape: f32[1,32], index: 5, kind: input, shape index: {}]   ;;  %s10917_s6 = inlined_call_operand.vmem [shape: bf16[32,128], index: 6, kind: input, shape index: {}]   ;;  %s10918_s7 = inlined_call_operand.vmem [shape: f32[1,128], index: 7, kind: input, shape index: {}]   ;;  %s10919_s8 = inlined_call_operand.vmem [shape: bf16[2,256,128], index: 8, kind: output, shape index: {}]  }
   0x1 LB: > { %s6859_s28 = sadd.s32 4294967295, %s7691_s27   ;;  %p6863_p0 = scmp.ge.s32.totalorder %s7691_s27, 1  ;;  %s7691_s27 = sphi %s7749_s27, %s18_s27  }
   0x2   : > { %p262_p1 = scmp.lt.s32.totalorder %s7691_s27, 3 }
   0x4   : > { %p263_p2 = pnand %p6863_p0, %p262_p1 }
   0x5   : > { %p296_p3 = scmp.lt.s32.totalorder (!%p263_p2), %s6859_s28, 1  ;;  %s7694_s13 = smov (!%p263_p2), 24  }
   0x6   : > { %266 = sbr.rel (%p263_p2) target bundleno = 1498 (0x5da), region = 52  ;;  %s7695_s14 = smov (!%p263_p2), 48  }
   0x7   : > { %s7696_s15 = smov (!%p263_p2), 8   ;;  %s7697_s16 = smov (!%p263_p2), 32  }
   0x8   : > { %s7698_s17 = smov (!%p263_p2), 56   ;;  %s7699_s18 = smov (!%p263_p2), 16  }
   0x9   : > { %s7700_s21 = smov (!%p263_p2), 40   ;;  %s7701_s26 = smov (!%p263_p2), 64  }
   0xa   : > { %s7703_s29 = smov (!%p263_p2), 96  }
   0xb   : > { %v7760_v0 = vld [vmem:[%s10912_s1] sm:$0x1]  ;;  %vm322_vm0 = vcmask 57344   ;;  %v311_v1 = vlaneseq  ;;  %vm10921_vm1 = vsmask.f32 256  ;;  %s11045_s28 = smov (!%p296_p3, %s6859_s28), 1 }
   0xc   : > { %v335_v2 = vld [vmem:[#allocation2 + $0x18] sm:$0x1]  ;;  %vm7766_vm2 = vmand %vm322_vm0, %vm10921_vm1  ;;  %v332_v4 = vld [vmem:[#allocation2 + $0xc] sm:$0x1]  ;;  %v309_v5 = vpack.i.b16 %v7760_v0, %v7760_v0  ;;  %s7111_s9 = sshll.u32 %s11045_s28, 7  ;;  %vm319_vm3 = vcmask 60416  }
   0xd   : > { %v312_v6 = vshrl.u32 %v311_v1, 7  ;;  %v336_v7 = vsel %vm7766_vm2, %v7760_v0, %v335_v2  ;;  %v333_v8 = vsel %vm7766_vm2, %v7760_v0, %v332_v4  ;;  %v338_v9 = vld [vmem:[#allocation2 + $0x24] sm:$0x1]  ;;  %v7693_v12 = vmov 1935823168   ;;  %s7787_s12 = scalar_lea.vmem %s10911_s0, %s7111_s9  ;;  %s10835_s25 = scalar_lea.vmem %s10919_s8, %s7111_s9 }
   0xe   : > { %337 = vst [vmem:[#allocation2 + $0x18] sm:$0x1] %v336_v7  ;;  %334 = vst [vmem:[#allocation2 + $0xc] sm:$0x1] %v333_v8  ;;  %v339_v10 = vsel %vm7766_vm2, %v7760_v0, %v338_v9  ;;  %v382_v13 = vunpack.c.l.s4 %v7693_v12  ;;  %vm10920_vm4 = vsmask.f32 7938 }
   0xf   : > { %v313_v11 = vsub.s32 0, %v312_v6  ;;  %vm481_vm5 = vsmask.f32 4368  ;;  %340 = vst [vmem:[#allocation2 + $0x24] sm:$0x1] %v339_v10  ;;  %vm7797_vm6 = vmand %vm319_vm3, %vm10920_vm4  ;;  %vm2255_vm12 = vcmask 1042432  }
  0x10   : > { %v451_v14 = vld [vmem:[%s7787_s12 + $0x8] sm:$0xf]  ;;  %v449_v15 = vld [vmem:[%s7787_s12] sm:$0xf]  ;;  %v452_v16 = vld [vmem:[%s7787_s12 + $0xc] sm:$0xf]  ;;  %v383_v18 = vunpack.c.0.s8 %v382_v13 }
  0x11   : > { %v314_v17 = vrot.slane %v309_v5, %v313_v11  ;;  %v501_v19 = vshrl.u32 %v451_v14, 16  ;;  %v504_v20 = vshll.u32 %v451_v14, 16  ;;  %v484_v21 = vshrl.u32 %v449_v15, 16  ;;  %v450_v23 = vld [vmem:[%s7787_s12 + $0x4] sm:$0xf]  ;;  %vm7807_vm7 = vmor %vm10921_vm1, %vm481_vm5 }
  0x12   : > { %v487_v22 = vshll.u32 %v449_v15, 16  ;;  %v509_v24 = vshrl.u32 %v452_v16, 16  ;;  %v512_v25 = vshll.u32 %v452_v16, 16  ;;  %v492_v26 = vshrl.u32 %v450_v23, 16  ;;  %v453_v28 = vld [vmem:[%s7787_s12 + $0x10] sm:$0xf]  ;;  %vm7850_vm8 = vmand %vm322_vm0, %vm10920_vm4 }
  0x13   : > { %v495_v27 = vshll.u32 %v450_v23, 16  ;;  %v503_v29 = vrot.slane %v501_v19, 7  ;;  %v486_v30 = vrot.slane %v484_v21, 7  ;;  %v454_v31 = vld [vmem:[%s7787_s12 + $0x14] sm:$0xf]  ;;  %v518_v32 = vshrl.u32 %v453_v28, 16 }
  0x14   : > { %v521_v33 = vshll.u32 %v453_v28, 16  ;;  %v7801_v35 = vrot.slane %v509_v24, 7  ;;  %v7803_v36 = vrot.slane %v492_v26, 7  ;;  %v526_v37 = vshrl.u32 %v454_v31, 16  ;;  %v7820_v52 = vld [vmem:[%s7787_s12 + $0x18] sm:$0xf] }
  0x15   : > { %v529_v38 = vshll.u32 %v454_v31, 16  ;;  %v506_v39 = vor.u32 %v504_v20, %v503_v29  ;;  %v812_v40 = vld [vmem:[#allocation2 + $0x18] sm:$0xf]  ;;  %v489_v41 = vor.u32 %v487_v22, %v486_v30  ;;  %v805_v42 = vld [vmem:[#allocation2 + $0xc] sm:$0xf]  ;;  %v507_v44 = vrot.slane %v503_v29, 4 }
  0x16   : > { %v490_v45 = vrot.slane %v486_v30, 4  ;;  %v514_v46 = vor.u32 %v512_v25, %v7801_v35  ;;  %v497_v47 = vor.u32 %v495_v27, %v7803_v36  ;;  %v520_v50 = vrot.slane %v518_v32, 7  ;;  %v819_v55 = vld [vmem:[#allocation2 + $0x24] sm:$0xf]  ;;  %v456_v58 = vld [vmem:[%s7787_s12 + $0x1c] sm:$0xf] }
  0x17   : > { %v813_v48 = vsel %vm7797_vm6, %v506_v39, %v812_v40  ;;  %v806_v49 = vsel %vm7797_vm6, %v489_v41, %v805_v42  ;;  %v7817_v51 = vrot.slane %v526_v37, 7  ;;  %v6868_v56 = vcombine.low %v314_v17, %v314_v17  ;;  %v341_v62 = vld [vmem:[#allocation2 + $0x30] sm:$0x1]  ;;  %v401_v5 = vld [vmem:[#allocation2 + $0x14] sm:$0x1] }
  0x18   : > { %814 = vst [vmem:[#allocation2 + $0x18] sm:$0xf] %v813_v48  ;;  %807 = vst [vmem:[#allocation2 + $0xc] sm:$0xf] %v806_v49  ;;  %v515_v53 = vsel %vm7807_vm7, %v507_v44, %v514_v46  ;;  %v498_v54 = vsel %vm7807_vm7, %v490_v45, %v497_v47  ;;  %v386_v57 = vsub.s32 %v383_v18, %v312_v6  ;;  %v524_v59 = vrot.slane %v520_v50, 4 }
  0x19   : > { %815 = vst.msk [vmem:[#allocation2 + $0x1c] sm:$0xf] %vm319_vm3, %v515_v53  ;;  %808 = vst.msk [vmem:[#allocation2 + $0x10] sm:$0xf] %vm319_vm3, %v498_v54  ;;  %v531_v60 = vor.u32 %v529_v38, %v7817_v51  ;;  %v523_v61 = vor.u32 %v521_v33, %v520_v50  ;;  %v535_v1 = vshrl.u32 %v7820_v52, 16  ;;  %v543_v8 = vshrl.u32 %v456_v58, 16 }
  0x1a   : > { %321 = vst.msk [vmem:[#allocation2 + $0x4] sm:$0xf] %vm319_vm3, %v6868_v56  ;;  %v387_v63 = vrot.slane %v7760_v0, %v386_v57  ;;  %320 = vst.msk [vmem:[#allocation2] sm:$0xf] %vm319_vm3, %v6868_v56  ;;  %v404_v6 = vld [vmem:[#allocation2 + $0x20] sm:$0x1]  ;;  %v342_v12 = vsel %vm7766_vm2, %v7760_v0, %v341_v62 }
  0x1b   : > { %323 = vst.msk [vmem:[#allocation2 + $0x8] sm:$0x1] %vm322_vm0, %v6868_v56  ;;  %327 = vst.msk [vmem:[#allocation2 + $0xd4] sm:$0x1] %vm322_vm0, %v6868_v56  ;;  %v532_v2 = vsel %vm7807_vm7, %v524_v59, %v531_v60  ;;  %v820_v4 = vsel %vm7797_vm6, %v523_v61, %v819_v55  ;;  %v407_v7 = vld [vmem:[#allocation2 + $0x2c] sm:$0x1] }
  0x1c   : > { %325 = vst.msk [vmem:[#allocation2 + $0xcc] sm:$0xf] %vm319_vm3, %v6868_v56  ;;  %326 = vst.msk [vmem:[#allocation2 + $0xd0] sm:$0xf] %vm319_vm3, %v6868_v56  ;;  %v546_v9 = vshll.u32 %v456_v58, 16  ;;  %v394_v10 = vrot.slane %v387_v63, %v386_v57  ;;  %v7843_v11 = vrot.slane %v535_v1, 7 }
  0x1d   : > { %822 = vst.msk [vmem:[#allocation2 + $0x28] sm:$0xf] %vm319_vm3, %v532_v2  ;;  %821 = vst [vmem:[#allocation2 + $0x24] sm:$0xf] %v820_v4  ;;  %v344_v13 = vld [vmem:[#allocation2 + $0x3c] sm:$0x1] }
  0x1e   : > { %v347_v14 = vld [vmem:[#allocation2 + $0x48] sm:$0x1]  ;;  %v7854_v16 = vrot.slane %v543_v8, 7  ;;  %343 = vst [vmem:[#allocation2 + $0x30] sm:$0x1] %v342_v12  ;;  %v7856_v19 = vshll.u32 %v394_v10, 16  ;;  %v345_v25 = vsel %vm7766_vm2, %v7760_v0, %v344_v13 }
  0x1f   : > { %v410_v17 = vld [vmem:[#allocation2 + $0x38] sm:$0x1]  ;;  %v350_v18 = vld [vmem:[#allocation2 + $0x54] sm:$0x1]  ;;  %vm1331_vm9 = vsmask.f32 3328  ;;  %v348_v26 = vsel %vm7766_vm2, %v7760_v0, %v347_v14 }
  0x20   : > { %v541_v20 = vrot.slane %v7843_v11, 4  ;;  %v413_v21 = vld [vmem:[#allocation2 + $0x44] sm:$0x1]  ;;  %v7859_v22 = vld [vmem:[#allocation2 + $0x18] sm:$0xf]  ;;  %v548_v24 = vor.u32 %v546_v9, %v7854_v16  ;;  %v351_v27 = vsel %vm7766_vm2, %v7760_v0, %v350_v18  ;;  %v402_v30 = vsel %vm7850_vm8, %v7856_v19, %v401_v5 }
  0x21   : > { %v919_v23 = vld [vmem:[#allocation2 + $0xc] sm:$0xf]  ;;  %1021 = vrot.lane.b32.xlu1 %v7859_v22, %s7694_s13  ;;  %957 = vst.msk [vmem:[#allocation4 + $0x10] sm:$0xf] %vm319_vm3, %v7859_v22  ;;  %v922_v28 = vld [vmem:[#allocation2 + $0x1c] sm:$0xf]  ;;  %v405_v32 = vsel %vm7850_vm8, %v7856_v19, %v404_v6  ;;  %v408_v33 = vsel %vm7850_vm8, %v7856_v19, %v407_v7  ;;  %v411_v41 = vsel %vm7850_vm8, %v7856_v19, %v410_v17 }
  0x22   : > { %1017 = vrot.lane.b32.xlu0 %v919_v23, %s7694_s13  ;;  %955 = vst.msk [vmem:[#allocation4 + $0x8] sm:$0xf] %vm319_vm3, %v919_v23  ;;  %v920_v29 = vld [vmem:[#allocation2 + $0x10] sm:$0xf]  ;;  %v1280_v31 = vld [vmem:[#allocation2 + $0xc] sm:$0xf]  ;;  %v549_v40 = vsel %vm7807_vm7, %v541_v20, %v548_v24  ;;  %v414_v42 = vsel %vm7850_vm8, %v7856_v19, %v413_v21 }
  0x23   : > { %346 = vst [vmem:[#allocation2 + $0x3c] sm:$0x1] %v345_v25  ;;  %349 = vst [vmem:[#allocation2 + $0x48] sm:$0x1] %v348_v26  ;;  %v1278_v37 = vld [vmem:[#allocation2 + $0x4] sm:$0xf] }
  0x24   : > { %352 = vst [vmem:[#allocation2 + $0x54] sm:$0x1] %v351_v27  ;;  %958 = vst.msk [vmem:[#allocation4 + $0x14] sm:$0xf] %vm319_vm3, %v922_v28  ;;  %v1279_v38 = vld [vmem:[#allocation2 + $0x8] sm:$0x1] }
  0x25   : > { %956 = vst.msk [vmem:[#allocation4 + $0xc] sm:$0xf] %vm319_vm3, %v920_v29  ;;  %v1277_v39 = vld [vmem:[#allocation2] sm:$0xf]  ;;  %403 = vst [vmem:[#allocation2 + $0x14] sm:$0x1] %v402_v30  ;;  %1023 = vrot.lane.b32.xlu1 %v922_v28, %s7694_s13 }
  0x26   : > { %406 = vst [vmem:[#allocation2 + $0x20] sm:$0x1] %v405_v32  ;;  %409 = vst [vmem:[#allocation2 + $0x2c] sm:$0x1] %v408_v33  ;;  %v1344_v44 = vshll.u32 %v1278_v37, 16  ;;  %v1348_v45 = vshrl.u32 %v1278_v37, 16  ;;  %1019 = vrot.lane.b32.xlu0 %v920_v29, %s7694_s13 }
  0x27   : > { %v1335_v46 = vshrl.u32 %v1277_v39, 16  ;;  %v1281_v47 = vld [vmem:[#allocation2 + $0x10] sm:$0xf]  ;;  %829 = vst.msk [vmem:[#allocation2 + $0x34] sm:$0xf] %vm319_vm3, %v549_v40  ;;  %v1354_v50 = vshll.u32 %v1279_v38, 16 }
  0x28   : > { %412 = vst [vmem:[#allocation2 + $0x38] sm:$0x1] %v411_v41  ;;  %415 = vst [vmem:[#allocation2 + $0x44] sm:$0x1] %v414_v42  ;;  %v7897_v48 = vld [vmem:[#allocation2 + $0x28] sm:$0xf] }
  0x29   : > { %v7899_v49 = vld [vmem:[#allocation2 + $0x24] sm:$0xf]  ;;  %v1338_v53 = vshll.u32 %v1277_v39, 16  ;;  %960 = vst.msk [vmem:[#allocation4 + $0x1c] sm:$0xf] %vm319_vm3, %v7897_v48  ;;  %v1346_v54 = vrot.slane %v1344_v44, 5  ;;  %1150 = vrot.lane.b32.xlu1 %v922_v28, %s7695_s14 }
  0x2a   : > { %959 = vst.msk [vmem:[#allocation4 + $0x18] sm:$0xf] %vm319_vm3, %v7899_v49  ;;  %vm1332_vm10 = vsmask.f32 7440  ;;  %v1350_v55 = vrot.slane %v1348_v45, 4  ;;  %v1337_v56 = vrot.slane %v1335_v46, 4  ;;  %1148 = vrot.lane.b32.xlu0 %v7859_v22, %s7695_s14 }
  0x2b   : > { %v516_v57 = vrot.slane %v7801_v35, 4  ;;  %v499_v58 = vrot.slane %v7803_v36, 4  ;;  %v1340_v59 = vrot.slane %v1338_v53, 5  ;;  %v1359_v60 = vshrl.u32 %v1280_v31, 16  ;;  %v1283_v2 = vld [vmem:[#allocation2 + $0x18] sm:$0xf]  ;;  %vm7915_vm11 = vmor %vm1331_vm9, %vm1332_vm10 }
  0x2c   : > { %v1351_v61 = vor.u32 %v1350_v55, %v1346_v54  ;;  %v1368_v62 = vshll.u32 %v1281_v47, 16  ;;  %v1372_v63 = vshrl.u32 %v1281_v47, 16  ;;  %v1362_v1 = vshll.u32 %v1280_v31, 16  ;;  %v809_v36 = vld [vmem:[#allocation2 + $0x14] sm:$0x1] }
  0x2d   : > { %v533_v4 = vrot.slane %v7817_v51, 4  ;;  %v1356_v5 = vrot.slane %v1354_v50, 5  ;;  %v1341_v6 = vor.u32 %v1340_v59, %v1337_v56  ;;  %v1361_v7 = vrot.slane %v1359_v60, 4  ;;  %v816_v9 = vld [vmem:[#allocation2 + $0x20] sm:$0x1]  ;;  %1154 = vrot.lane.b32.xlu1 %v7897_v48, %s7695_s14 }
  0x2e   : > { %v1352_v35 = vrot.slane %v1351_v61, 4  ;;  %v1364_v8 = vrot.slane %v1362_v1, 5  ;;  %v810_v12 = vsel %vm7766_vm2, %v499_v58, %v809_v36  ;;  %v817_v13 = vsel %vm7766_vm2, %v516_v57, %v816_v9  ;;  %v1284_v14 = vld [vmem:[#allocation2 + $0x1c] sm:$0xf]  ;;  %v823_v18 = vld [vmem:[#allocation2 + $0x2c] sm:$0x1]  ;;  %1152 = vrot.lane.b32.xlu0 %v7899_v49, %s7695_s14 }
  0x2f   : > { %v1342_v51 = vrot.slane %v1341_v6, 4  ;;  %v1383_v17 = vshrl.u32 %v1283_v2, 16  ;;  %811 = vst [vmem:[#allocation2 + $0x14] sm:$0x1] %v810_v12  ;;  %v1370_v20 = vrot.slane %v1368_v62, 5  ;;  %v1374_v21 = vrot.slane %v1372_v63, 4 }
  0x30   : > { %v1365_v22 = vor.u32 %v1364_v8, %v1361_v7  ;;  %818 = vst [vmem:[#allocation2 + $0x20] sm:$0x1] %v817_v13  ;;  %v1386_v23 = vshll.u32 %v1283_v2, 16  ;;  %v457_v24 = vld [vmem:[%s7787_s12 + $0x20] sm:$0xf]  ;;  %v1357_v25 = vsel %vm7915_vm11, %v1352_v35, %v1356_v5  ;;  %v1392_v26 = vshll.u32 %v1284_v14, 16 }
  0x31   : > { %v1396_v27 = vshrl.u32 %v1284_v14, 16  ;;  %v824_v28 = vsel %vm7766_vm2, %v533_v4, %v823_v18  ;;  %v1347_v29 = vsel %vm7915_vm11, %v1342_v51, %v1346_v54  ;;  %v1385_v31 = vrot.slane %v1383_v17, 4  ;;  %v1286_v37 = vld [vmem:[#allocation2 + $0x24] sm:$0xf]  ;;  %v7934_v39 = vld [vmem:[#allocation2 + $0x34] sm:$0xf]  ;;  %1720 = vrot.lane.b32.xlu1 %v1357_v25, %s7696_s15 }
  0x32   : > { %v1366_v30 = vrot.slane %v1365_v22, 4  ;;  %v1388_v32 = vrot.slane %v1386_v23, 5  ;;  %825 = vst [vmem:[#allocation2 + $0x2c] sm:$0x1] %v824_v28  ;;  %v1375_v33 = vor.u32 %v1374_v21, %v1370_v20  ;;  %v552_v38 = vshrl.u32 %v457_v24, 16  ;;  %1718 = vrot.lane.b32.xlu0 %v1347_v29, %s7696_s15 }
  0x33   : > { %v1394_v40 = vrot.slane %v1392_v26, 5  ;;  %v1398_v41 = vrot.slane %v1396_v27, 4  ;;  %v1287_v42 = vld [vmem:[#allocation2 + $0x28] sm:$0xf]  ;;  %v538_v44 = vshll.u32 %v7820_v52, 16  ;;  %v1407_v53 = vshrl.u32 %v1286_v37, 16 }
  0x34   : > { %962 = vst.msk [vmem:[#allocation4 + $0x24] sm:$0xf] %vm319_vm3, %v7934_v39  ;;  %v1371_v46 = vsel %vm7915_vm11, %v1366_v30, %v1370_v20  ;;  %v1389_v50 = vor.u32 %v1388_v32, %v1385_v31  ;;  %v1410_v54 = vshll.u32 %v1286_v37, 16  ;;  %v1376_v55 = vrot.slane %v1375_v33, 4  ;;  %v458_v61 = vld [vmem:[%s7787_s12 + $0x24] sm:$0xf] }
  0x35   : > { %v554_v57 = vrot.slane %v552_v38, 7  ;;  %v555_v58 = vshll.u32 %v457_v24, 16  ;;  %v1416_v59 = vshll.u32 %v1287_v42, 16  ;;  %v1420_v60 = vshrl.u32 %v1287_v42, 16  ;;  %v826_v6 = vld [vmem:[#allocation2 + $0x30] sm:$0xf] }
  0x36   : > { %v1282_v45 = vld [vmem:[#allocation2 + $0x14] sm:$0x1]  ;;  %1722 = vrot.lane.b32.xlu0 %v1371_v46, %s7696_s15  ;;  %v1399_v52 = vor.u32 %v1398_v41, %v1394_v40  ;;  %v540_v1 = vor.u32 %v538_v44, %v7843_v11  ;;  %v1390_v2 = vrot.slane %v1389_v50, 4  ;;  %v1409_v4 = vrot.slane %v1407_v53, 4  ;;  %v833_v12 = vld [vmem:[#allocation2 + $0x3c] sm:$0xf] }
  0x37   : > { %v1285_v47 = vld [vmem:[#allocation2 + $0x20] sm:$0x1]  ;;  %v1378_v56 = vshll.u32 %v1282_v45, 16  ;;  %v1412_v5 = vrot.slane %v1410_v54, 5  ;;  %v560_v35 = vshrl.u32 %v458_v61, 16  ;;  %v563_v36 = vshll.u32 %v458_v61, 16 }
  0x38   : > { %v1402_v63 = vshll.u32 %v1285_v47, 16  ;;  %v557_v8 = vor.u32 %v555_v58, %v554_v57  ;;  %v1418_v9 = vrot.slane %v1416_v59, 5  ;;  %v1422_v51 = vrot.slane %v1420_v60, 4  ;;  %v830_v13 = vld [vmem:[#allocation2 + $0x38] sm:$0x1] }
  0x39   : > { %v1380_v62 = vrot.slane %v1378_v56, 5  ;;  %v1400_v11 = vrot.slane %v1399_v52, 4  ;;  %v550_v17 = vrot.slane %v7854_v16, 4  ;;  %v827_v18 = vsel %vm7797_vm6, %v540_v1, %v826_v6  ;;  %v917_v20 = vld [vmem:[#allocation2] sm:$0xf] }
  0x3a   : > { %1871 = vrot.lane.b32.xlu0 %v1371_v46, %s7697_s16  ;;  %v1404_v14 = vrot.slane %v1402_v63, 5  ;;  %v7955_v21 = vsel %vm7915_vm11, %v1390_v2, %v1394_v40  ;;  %v1288_v22 = vld [vmem:[#allocation2 + $0x2c] sm:$0x1]  ;;  %v1413_v23 = vor.u32 %v1412_v5, %v1409_v4  ;;  %828 = vst [vmem:[#allocation2 + $0x30] sm:$0xf] %v827_v18  ;;  %v558_v25 = vrot.slane %v554_v57, 4 }
  0x3b   : > { %v1381_v7 = vsel %vm7915_vm11, %v1376_v55, %v1380_v62  ;;  %953 = vst.msk [vmem:[#allocation4] sm:$0xf] %vm319_vm3, %v917_v20  ;;  %v918_v24 = vld [vmem:[#allocation2 + $0x4] sm:$0xf]  ;;  %v562_v26 = vrot.slane %v560_v35, 7  ;;  %v834_v27 = vsel %vm7797_vm6, %v557_v8, %v833_v12  ;;  %v831_v16 = vsel %vm7766_vm2, %v550_v17, %v830_v13 }
  0x3c   : > { %1724 = vrot.lane.b32.xlu1 %v1381_v7, %s7696_s15  ;;  %954 = vst.msk [vmem:[#allocation4 + $0x4] sm:$0xf] %vm319_vm3, %v918_v24  ;;  %v459_v28 = vld [vmem:[%s7787_s12 + $0x28] sm:$0xf]  ;;  %v1423_v29 = vor.u32 %v1422_v51, %v1418_v9  ;;  %835 = vst [vmem:[#allocation2 + $0x3c] sm:$0xf] %v834_v27  ;;  %v7967_v31 = vsel %vm7915_vm11, %v1400_v11, %v1404_v14 }
  0x3d   : > { %832 = vst [vmem:[#allocation2 + $0x38] sm:$0x1] %v831_v16  ;;  %v837_v30 = vld [vmem:[#allocation2 + $0x44] sm:$0x1]  ;;  %v1426_v32 = vshll.u32 %v1288_v22, 16  ;;  %v565_v38 = vor.u32 %v563_v36, %v562_v26  ;;  %v567_v40 = vrot.slane %v562_v26, 4 }
  0x3e   : > { %1875 = vrot.lane.b32.xlu0 %v7955_v21, %s7697_s16  ;;  %v2154_v33 = vld [vmem:[#allocation2 + $0x4] sm:$0xf]  ;;  %v2153_v37 = vld [vmem:[#allocation2] sm:$0xe]  ;;  %v1414_v41 = vrot.slane %v1413_v23, 4  ;;  %v569_v42 = vshrl.u32 %v459_v28, 16 }
  0x3f   : > { %v416_v44 = vld [vmem:[#allocation2 + $0x50] sm:$0x1]  ;;  %v419_v45 = vld [vmem:[#allocation2 + $0x5c] sm:$0x1]  ;;  %vm2256_vm13 = vcmask 1046532   ;;  %v566_v46 = vsel %vm7807_vm7, %v558_v25, %v565_v38  ;;  %v838_v47 = vsel %vm7766_vm2, %v567_v40, %v837_v30  ;;  %v572_v50 = vshll.u32 %v459_v28, 16 }
  0x40   : > { %1873 = vrot.lane.b32.xlu1 %v1381_v7, %s7697_s16  ;;  %v2260_v53 = vrot.slane %v2154_v33, 5  ;;  %836 = vst.msk [vmem:[#allocation2 + $0x40] sm:$0xf] %vm319_vm3, %v566_v46  ;;  %839 = vst [vmem:[#allocation2 + $0x44] sm:$0x1] %v838_v47  ;;  %v571_v55 = vrot.slane %v569_v42, 7  ;;  %v417_v60 = vsel %vm7850_vm8, %v7856_v19, %v416_v44  ;;  %v420_v61 = vsel %vm7850_vm8, %v7856_v19, %v419_v45 }
  0x41   : > { %v460_v54 = vld [vmem:[%s7787_s12 + $0x2c] sm:$0xf]  ;;  %v1424_v56 = vrot.slane %v1423_v29, 4  ;;  %v1428_v57 = vrot.slane %v1426_v32, 5  ;;  %v2155_v58 = vld [vmem:[#allocation2 + $0x8] sm:$0x1]  ;;  %v7991_v62 = vsel %vm7915_vm11, %v1414_v41, %v1418_v9  ;;  %vm7997_vm14 = vmor %vm2255_vm12, %vm2256_vm13 }
  0x42   : > { %2024 = vrot.lane.b32.xlu0 %v7955_v21, %s7698_s17  ;;  %v7981_v59 = vld [vmem:[#allocation2 + $0x30] sm:$0xf]  ;;  %v6869_v52 = vrot.slane %v2153_v37, 9  ;;  %418 = vst [vmem:[#allocation2 + $0x50] sm:$0x1] %v417_v60  ;;  %v574_v5 = vor.u32 %v572_v50, %v571_v55  ;;  %v2262_v6 = vrot.slane %v2260_v53, 4 }
  0x43   : > { %v2157_v63 = vld [vmem:[#allocation2 + $0x10] sm:$0xf]  ;;  %961 = vst.msk [vmem:[#allocation4 + $0x20] sm:$0xf] %vm319_vm3, %v7981_v59  ;;  %421 = vst [vmem:[#allocation2 + $0x5c] sm:$0x1] %v420_v61  ;;  %v8009_v35 = vsel %vm7915_vm11, %v1424_v56, %v1428_v57 }
  0x44   : > { %1877 = vrot.lane.b32.xlu1 %v7967_v31, %s7697_s16  ;;  %v2156_v2 = vld [vmem:[#allocation2 + $0xc] sm:$0xe]  ;;  %v8001_v4 = vld [vmem:[#allocation2 + $0x3c] sm:$0xf]  ;;  %v840_v7 = vld [vmem:[#allocation2 + $0x48] sm:$0xf]  ;;  %v2261_v51 = vsel %vm7997_vm14, %v6869_v52, %v2260_v53 }
  0x45   : > { %963 = vst.msk [vmem:[#allocation4 + $0x28] sm:$0xf] %vm319_vm3, %v8001_v4  ;;  %v2263_v36 = vrot.slane %v2155_v58, 5  ;;  %v2267_v8 = vrot.slane %v2157_v63, 5  ;;  %v577_v9 = vshrl.u32 %v460_v54, 16  ;;  %v6870_v13 = vrot.slane %v2156_v2, 9 }
  0x46   : > { %2028 = vrot.lane.b32.xlu0 %v7991_v62, %s7698_s17  ;;  %v2158_v12 = vld [vmem:[#allocation2 + $0x14] sm:$0x1]  ;;  %v841_v14 = vsel %vm7797_vm6, %v574_v5, %v840_v7  ;;  %v580_v17 = vshll.u32 %v460_v54, 16  ;;  %v2160_v23 = vld [vmem:[#allocation2 + $0x1c] sm:$0xf]  ;;  %v575_v26 = vrot.slane %v571_v55, 4 }
  0x47   : > { %v8015_v11 = vld [vmem:[#allocation2 + $0x40] sm:$0xf]  ;;  %842 = vst [vmem:[#allocation2 + $0x48] sm:$0xf] %v841_v14  ;;  %v2264_v18 = vsel %vm7997_vm14, %v2262_v6, %v2263_v36  ;;  %v2269_v20 = vrot.slane %v2267_v8, 4  ;;  %v2270_v22 = vrot.slane %v2158_v12, 5  ;;  %v2268_v25 = vsel %vm7997_vm14, %v6870_v13, %v2267_v8 }
  0x48   : > { %2026 = vrot.lane.b32.xlu1 %v7967_v31, %s7698_s17  ;;  %964 = vst.msk [vmem:[#allocation4 + $0x2c] sm:$0xf] %vm319_vm3, %v8015_v11  ;;  %v579_v24 = vrot.slane %v577_v9, 7  ;;  %v461_v27 = vld [vmem:[%s7787_s12 + $0x30] sm:$0xf]  ;;  %v2274_v30 = vrot.slane %v2160_v23, 5 }
  0x49   : > { %v2161_v16 = vld [vmem:[#allocation2 + $0x20] sm:$0x1]  ;;  %v2159_v28 = vld [vmem:[#allocation2 + $0x18] sm:$0xe]  ;;  %v462_v29 = vld [vmem:[%s7787_s12 + $0x34] sm:$0xf]  ;;  %v2271_v37 = vsel %vm7997_vm14, %v2269_v20, %v2270_v22 }
  0x4a   : > { %2370 = vrot.lane.b32.xlu0 %v2261_v51, %s7699_s18  ;;  %v582_v32 = vor.u32 %v580_v17, %v579_v24  ;;  %v584_v33 = vrot.slane %v579_v24, 4  ;;  %v586_v38 = vshrl.u32 %v461_v27, 16  ;;  %v589_v40 = vshll.u32 %v461_v27, 16  ;;  %v844_v41 = vld [vmem:[#allocation2 + $0x50] sm:$0x1]  ;;  %v7587_v63 = vld [vmem:[%s10913_s2 + $0x18] sm:$0xff]  }
  0x4b   : > { %v6871_v42 = vrot.slane %v2159_v28, 9  ;;  %v594_v45 = vshrl.u32 %v462_v29, 16  ;;  %v597_v46 = vshll.u32 %v462_v29, 16  ;;  %v2277_v47 = vrot.slane %v2161_v16, 5  ;;  %v7586_v54 = vld [vmem:[%s10913_s2 + $0x20] ss:$0 sps:$4 sm:$0xff]  }
  0x4c   : > { %2030 = vrot.lane.b32.xlu1 %v8009_v35, %s7698_s17  ;;  %v583_v44 = vsel %vm7807_vm7, %v575_v26, %v582_v32  ;;  %v588_v53 = vrot.slane %v586_v38, 7  ;;  %v2276_v55 = vrot.slane %v2274_v30, 4  ;;  %v847_v57 = vld [vmem:[#allocation2 + $0x54] sm:$0xf]  ;;  %v845_v58 = vsel %vm7766_vm2, %v584_v33, %v844_v41  ;;  %v851_v52 = vld [vmem:[#allocation2 + $0x5c] sm:$0x1] }
  0x4d   : > { %843 = vst.msk [vmem:[#allocation2 + $0x4c] sm:$0xf] %vm319_vm3, %v583_v44  ;;  %v596_v56 = vrot.slane %v594_v45, 7  ;;  %846 = vst [vmem:[#allocation2 + $0x50] sm:$0x1] %v845_v58  ;;  %v8053_v2 = vsel %vm7997_vm14, %v6871_v42, %v2274_v30  ;;  %vm2981_vm15 = vcmask 1043456  }
  0x4e   : > { %2374 = vrot.lane.b32.xlu0 %v2268_v25, %s7699_s18  ;;  %v8037_v50 = vld [vmem:[#allocation2 + $0x48] sm:$0xf]  ;;  %v592_v60 = vrot.slane %v588_v53, 4  ;;  %v591_v61 = vor.u32 %v589_v40, %v588_v53  ;;  %7565 = vmatprep.subr.msk.bf16.mxu0 %vm2981_vm15, %v7586_v54  ;;  %v2983_v36 = vsel %vm2981_vm15, %v7586_v54, 0  ;;  %v8064_v51 = vsel %vm7997_vm14, %v2276_v55, %v2277_v47  ;;  %v7588_v12 = vld [vmem:[%s10913_s2 + $0x10] sm:$0xff]   ;;  %v7591_v38 = vld [vmem:[%s10913_s2] sm:$0xff]  }
  0x4f   : > { %965 = vst.msk [vmem:[#allocation4 + $0x30] sm:$0xf] %vm319_vm3, %v8037_v50  ;;  %v599_v5 = vor.u32 %v597_v46, %v596_v56  ;;  %v601_v6 = vrot.slane %v596_v56, 4  ;;  %7566 = vmatprep.subr.msk.bf16.mxu1 %vm2981_vm15, %v7586_v54  ;;  %7442 = vmatpush3.bf16.msra.mxu0 %v2983_v36  ;;  %v353_v13 = vld [vmem:[#allocation2 + $0x60] sm:$0x1]  ;;  %v7589_v23 = vld [vmem:[%s10913_s2 + $0x8] sm:$0xff]  }
  0x50   : > { %2372 = vrot.lane.b32.xlu1 %v2264_v18, %s7699_s18  ;;  %v848_v7 = vsel %vm7797_vm6, %v591_v61, %v847_v57  ;;  %7443 = vmatprep.subr.bf16.mxu0 %v7587_v63  ;;  %v2163_v14 = vld [vmem:[#allocation2 + $0x28] sm:$0xf]  ;;  %v354_v18 = vsel %vm7766_vm2, %v7760_v0, %v353_v13  ;;  %v2162_v20 = vld [vmem:[#allocation2 + $0x24] sm:$0xe]  ;;  %v463_v24 = vld [vmem:[%s7787_s12 + $0x38] sm:$0xf] }
  0x51   : > { %v600_v8 = vsel %vm7807_vm7, %v592_v60, %v599_v5  ;;  %849 = vst [vmem:[#allocation2 + $0x54] sm:$0xf] %v848_v7  ;;  %v852_v9 = vsel %vm7766_vm2, %v601_v6, %v851_v52  ;;  %7560 = vmatpush3.bf16.msra.mxu1 %v2983_v36  ;;  %355 = vst [vmem:[#allocation2 + $0x60] sm:$0x1] %v354_v18  ;;  %v2281_v22 = vrot.slane %v2163_v14, 5  ;;  %v6872_v26 = vrot.slane %v2162_v20, 9 }
  0x52   : > { %2509 = vrot.lane.b32.xlu0 %v2268_v25, %s7700_s21  ;;  %850 = vst.msk [vmem:[#allocation2 + $0x58] sm:$0xf] %vm319_vm3, %v600_v8  ;;  %853 = vst [vmem:[#allocation2 + $0x5c] sm:$0x1] %v852_v9  ;;  %7556 = vmatprep.subr.bf16.mxu1 %v7587_v63  ;;  %v2164_v25 = vld [vmem:[#allocation2 + $0x2c] sm:$0x1] }
  0x53   : > { %7444 = vmatpush3.bf16.msra.mxu0 %v7587_v63  ;;  %v1290_v27 = vld [vmem:[#allocation2 + $0x34] sm:$0xf]  ;;  %v603_v16 = vshrl.u32 %v463_v24, 16  ;;  %v2283_v30 = vrot.slane %v2281_v22, 4  ;;  %v2284_v32 = vrot.slane %v2164_v25, 5  ;;  %v8104_v40 = vsel %vm7997_vm14, %v6872_v26, %v2281_v22 }
  0x54   : > { %2376 = vrot.lane.b32.xlu1 %v2271_v37, %s7699_s18  ;;  %v8072_v17 = vld [vmem:[#allocation2 + $0x4c] sm:$0xf]  ;;  %7445 = vmatprep.subr.bf16.mxu0 %v7588_v12  ;;  %v1440_v33 = vshll.u32 %v1290_v27, 16  ;;  %v1444_v41 = vshrl.u32 %v1290_v27, 16  ;;  %v464_v42 = vld [vmem:[%s7787_s12 + $0x3c] sm:$0xf] }
  0x55   : > { %966 = vst.msk [vmem:[#allocation4 + $0x34] sm:$0xf] %vm319_vm3, %v8072_v17  ;;  %7561 = vmatpush3.bf16.msra.mxu1 %v7587_v63  ;;  %v606_v44 = vshll.u32 %v463_v24, 16  ;;  %v8111_v47 = vsel %vm7997_vm14, %v2283_v30, %v2284_v32  ;;  %v611_v54 = vshrl.u32 %v464_v42, 16  ;;  %v465_v56 = vld [vmem:[%s7787_s12 + $0x40] sm:$0xf] }
  0x56   : > { %2513 = vrot.lane.b32.xlu0 %v8053_v2, %s7700_s21  ;;  %7557 = vmatprep.subr.bf16.mxu1 %v7588_v12  ;;  %v8115_v53 = vrot.slane %v1440_v33, 5  ;;  %v8118_v57 = vrot.slane %v1444_v41, 4  ;;  %v466_v61 = vld [vmem:[%s7787_s12 + $0x44] sm:$0xf]  ;;  %v620_v63 = vshrl.u32 %v465_v56, 16  ;;  %v623_v14 = vshll.u32 %v465_v56, 16 }
  0x57   : > { %7446 = vmatpush3.bf16.msra.mxu0 %v7588_v12  ;;  %v613_v52 = vrot.slane %v611_v54, 7  ;;  %v356_v5 = vld [vmem:[#allocation2 + $0x6c] sm:$0x1]  ;;  %v628_v8 = vshrl.u32 %v466_v61, 16  ;;  %v631_v13 = vshll.u32 %v466_v61, 16  ;;  %vm10923_vm0 = vcmask 257216  }
  0x58   : > { %2511 = vrot.lane.b32.xlu1 %v2271_v37, %s7700_s21  ;;  %v8087_v28 = vld [vmem:[#allocation2 + $0x54] sm:$0xf]  ;;  %v1289_v37 = vld [vmem:[#allocation2 + $0x30] sm:$0xf]  ;;  %7447 = vmatprep.subr.bf16.mxu0 %v7589_v23  ;;  %v854_v55 = vld [vmem:[#allocation2 + $0x60] sm:$0xf]  ;;  %v357_v20 = vsel %vm7766_vm2, %v7760_v0, %v356_v5 }
  0x59   : > { %v8091_v29 = vld [vmem:[#allocation2 + $0x58] sm:$0xf]  ;;  %967 = vst.msk [vmem:[#allocation4 + $0x38] sm:$0xf] %vm319_vm3, %v8087_v28  ;;  %7562 = vmatpush3.bf16.msra.mxu1 %v7588_v12  ;;  %v1431_v45 = vshrl.u32 %v1289_v37, 16  ;;  %v1434_v46 = vshll.u32 %v1289_v37, 16 }
  0x5a   : > { %2648 = vrot.lane.b32.xlu0 %v8053_v2, %s7701_s26  ;;  %968 = vst.msk [vmem:[#allocation4 + $0x3c] sm:$0xf] %vm319_vm3, %v8091_v29  ;;  %7558 = vmatprep.subr.bf16.mxu1 %v7589_v23  ;;  %v622_v12 = vrot.slane %v620_v63, 7  ;;  %v8127_v18 = vrot.slane %v628_v8, 7  ;;  %358 = vst [vmem:[#allocation2 + $0x6c] sm:$0x1] %v357_v20 }
  0x5b   : > { %7448 = vmatpush3.bf16.msra.mxu0 %v7589_v23  ;;  %v1433_v6 = vrot.slane %v1431_v45, 4  ;;  %v1436_v7 = vrot.slane %v1434_v46, 5  ;;  %v422_v26 = vld [vmem:[#allocation2 + $0x68] sm:$0x1]  ;;  %v1292_v27 = vld [vmem:[#allocation2 + $0x3c] sm:$0xf] }
  0x5c   : > { %2515 = vrot.lane.b32.xlu1 %v8064_v51, %s7700_s21  ;;  %7449 = vmatprep.subr.bf16.mxu0 %v7591_v38  ;;  %v626_v24 = vrot.slane %v622_v12, 4  ;;  %v633_v25 = vor.u32 %v631_v13, %v8127_v18  ;;  %v423_v0 = vsel %vm7850_vm8, %v7856_v19, %v422_v26  ;;  %v625_v30 = vor.u32 %v623_v14, %v622_v12  ;;  %v1293_v46 = vld [vmem:[#allocation2 + $0x40] sm:$0xf] }
  0x5d   : > { %7563 = vmatpush3.bf16.msra.mxu1 %v7589_v23  ;;  %v618_v23 = vrot.slane %v613_v52, 4  ;;  %424 = vst [vmem:[#allocation2 + $0x68] sm:$0x1] %v423_v0  ;;  %v1455_v33 = vshrl.u32 %v1292_v27, 16  ;;  %v1458_v37 = vshll.u32 %v1292_v27, 16  ;;  %v1437_v45 = vor.u32 %v1436_v7, %v1433_v6 }
  0x5e   : > { %1025 = vrot.lane.b32.xlu0 %v7899_v49, %s7694_s13  ;;  %v605_v49 = vrot.slane %v603_v16, 7  ;;  %7559 = vmatprep.subr.bf16.mxu1 %v7591_v38  ;;  %v634_v16 = vsel %vm7807_vm7, %v626_v24, %v633_v25  ;;  %v635_v63 = vrot.slane %v8127_v18, 4  ;;  %v2166_v24 = vld [vmem:[#allocation2 + $0x34] sm:$0xf]  ;;  %v2165_v25 = vld [vmem:[#allocation2 + $0x30] sm:$0xe] }
  0x5f   : > { %7450 = vmatpush3.bf16.msra.mxu0 %v7591_v38  ;;  %864 = vst.msk [vmem:[#allocation2 + $0x70] sm:$0xf] %vm319_vm3, %v634_v16  ;;  %v1457_v61 = vrot.slane %v1455_v33, 4  ;;  %v2288_v26 = vrot.slane %v2166_v24, 5  ;;  %v2167_v0 = vld [vmem:[#allocation2 + $0x38] sm:$0x1] }
  0x60   : > { %2650 = vrot.lane.b32.xlu1 %v8064_v51, %s7701_s26  ;;  %v609_v58 = vrot.slane %v605_v49, 4  ;;  %v608_v60 = vor.u32 %v606_v44, %v605_v49  ;;  %v6873_v27 = vrot.slane %v2165_v25, 9  ;;  %vm10925_vm5 = vcmask 454016  }
  0x61   : > { %7564 = vmatpush3.bf16.msra.mxu1 %v7591_v38  ;;  %v2290_v16 = vrot.slane %v2288_v26, 4  ;;  %vm1814_vm9 = vcmask 126016   ;;  %vm1967_vm10 = vcmask 322816   ;;  %vm2120_vm12 = vcmask 519616  }
  0x62   : > { %2652 = vrot.lane.b32.xlu0 %v8104_v40, %s7701_s26  ;;  %v855_v36 = vsel %vm7797_vm6, %v608_v60, %v854_v55  ;;  %v1438_v60 = vrot.slane %v1437_v45, 4  ;;  %vm2466_vm13 = vcmask 191616   ;;  %vm10927_vm15 = vcmask 388416  }
  0x63   : > { %856 = vst [vmem:[#allocation2 + $0x60] sm:$0xf] %v855_v36  ;;  %vm10924_vm4 = vcmask 585216   ;;  %vm10922_vm1 = vcmask 588800  }
  0x64   : > { %1027 = vrot.lane.b32.xlu1 %v7897_v48, %s7694_s13  ;;  %v614_v48 = vshll.u32 %v464_v42, 16  ;;  %v425_v42 = vld [vmem:[#allocation2 + $0x74] sm:$0x1]  ;;  %v858_v49 = vld [vmem:[#allocation2 + $0x68] sm:$0x1]  ;;  %v8191_v8 = vsel %vm7915_vm11, %v1438_v60, %v8115_v53 }
  0x65   : > { %v426_v44 = vsel %vm7850_vm8, %v7856_v19, %v425_v42  ;;  %v859_v55 = vsel %vm7766_vm2, %v618_v23, %v858_v49  ;;  %v2170_v42 = vld [vmem:[#allocation2 + $0x44] sm:$0x1] }
  0x66   : > { %1029 = vrot.lane.b32.xlu0 %v7981_v59, %s7694_s13  ;;  %v616_v9 = vor.u32 %v614_v48, %v613_v52  ;;  %v8167_v54 = vld [vmem:[#allocation2 + $0x70] sm:$0xf]  ;;  %427 = vst [vmem:[#allocation2 + $0x74] sm:$0x1] %v426_v44  ;;  %860 = vst [vmem:[#allocation2 + $0x68] sm:$0x1] %v859_v55 }
  0x67   : > { %972 = vst.msk [vmem:[#allocation4 + $0x4c] sm:$0xf] %vm319_vm3, %v8167_v54  ;;  %v1468_v48 = vshrl.u32 %v1293_v46, 16  ;;  %v1460_v52 = vrot.slane %v1458_v37, 5  ;;  %v2168_v37 = vld [vmem:[#allocation2 + $0x3c] sm:$0xe] }
  0x68   : > { %2654 = vrot.lane.b32.xlu1 %v8111_v47, %s7701_s26  ;;  %v617_v22 = vsel %vm7807_vm7, %v609_v58, %v616_v9  ;;  %v1464_v58 = vshll.u32 %v1293_v46, 16  ;;  %v1294_v9 = vld [vmem:[#allocation2 + $0x44] sm:$0x1]  ;;  %v6874_v49 = vrot.slane %v2168_v37, 9  ;;  %v467_v55 = vld [vmem:[%s7787_s12 + $0x48] sm:$0xf] }
  0x69   : > { %857 = vst.msk [vmem:[#allocation2 + $0x64] sm:$0xf] %vm319_vm3, %v617_v22  ;;  %v1470_v7 = vrot.slane %v1468_v48, 4  ;;  %v1461_v12 = vor.u32 %v1460_v52, %v1457_v61  ;;  %v1474_v18 = vshll.u32 %v1294_v9, 16  ;;  %v637_v48 = vshrl.u32 %v467_v55, 16 }
  0x6a   : > { %1156 = vrot.lane.b32.xlu0 %v7981_v59, %s7695_s14  ;;  %v8148_v32 = vld [vmem:[#allocation2 + $0x60] sm:$0xf]  ;;  %v861_v59 = vld [vmem:[#allocation2 + $0x6c] sm:$0xf]  ;;  %v1466_v6 = vrot.slane %v1464_v58, 5  ;;  %v2298_v58 = vrot.slane %v2170_v42, 5 }
  0x6b   : > { %969 = vst.msk [vmem:[#allocation4 + $0x40] sm:$0xf] %vm319_vm3, %v8148_v32  ;;  %v862_v41 = vsel %vm7797_vm6, %v625_v30, %v861_v59  ;;  %v1476_v22 = vrot.slane %v1474_v18, 5  ;;  %v8233_v30 = vsel %vm7997_vm14, %v6873_v27, %v2288_v26  ;;  %v469_v26 = vld [vmem:[%s7787_s12 + $0x50] sm:$0xf] }
  0x6c   : > { %1031 = vrot.lane.b32.xlu1 %v7934_v39, %s7694_s13  ;;  %863 = vst [vmem:[#allocation2 + $0x6c] sm:$0xf] %v862_v41  ;;  %v1471_v14 = vor.u32 %v1470_v7, %v1466_v6  ;;  %v654_v27 = vshrl.u32 %v469_v26, 16 }
  0x6d   : > { %v865_v36 = vld [vmem:[#allocation2 + $0x74] sm:$0x1] }
  0x6e   : > { %1160 = vrot.lane.b32.xlu0 %v8001_v4, %s7695_s14  ;;  %v866_v13 = vsel %vm7766_vm2, %v635_v63, %v865_v36  ;;  %v1472_v20 = vrot.slane %v1471_v14, 4 }
  0x6f   : > { %867 = vst [vmem:[#allocation2 + $0x74] sm:$0x1] %v866_v13 }
  0x70   : > { %1158 = vrot.lane.b32.xlu1 %v7934_v39, %s7695_s14  ;;  %v8154_v38 = vld [vmem:[#allocation2 + $0x64] sm:$0xf]  ;;  %v1291_v39 = vld [vmem:[#allocation2 + $0x38] sm:$0x1]  ;;  %v8215_v23 = vsel %vm7915_vm11, %v1472_v20, %v1476_v22 }
  0x71   : > { %970 = vst.msk [vmem:[#allocation4 + $0x44] sm:$0xf] %vm319_vm3, %v8154_v38  ;;  %v1450_v56 = vshll.u32 %v1291_v39, 16  ;;  %v359_v39 = vld [vmem:[#allocation2 + $0x78] sm:$0x1] }
  0x72   : > { %1726 = vrot.lane.b32.xlu0 %v7955_v21, %s7696_s15  ;;  %v1447_v21 = vor.u32 %v8118_v57, %v8115_v53  ;;  %v1462_v53 = vrot.slane %v1461_v12, 4  ;;  %v362_v12 = vld [vmem:[#allocation2 + $0x84] sm:$0x1] }
  0x73   : > { %v8180_v5 = vld [vmem:[#allocation2 + $0x6c] sm:$0xf]  ;;  %v1452_v57 = vrot.slane %v1450_v56, 5 }
  0x74   : > { %1162 = vrot.lane.b32.xlu1 %v8015_v11, %s7695_s14  ;;  %971 = vst.msk [vmem:[#allocation4 + $0x48] sm:$0xf] %vm319_vm3, %v8180_v5 }
  0x76   : > { %1730 = vrot.lane.b32.xlu0 %v7991_v62, %s7696_s15 }
  0x78   : > { %1728 = vrot.lane.b32.xlu1 %v7967_v31, %s7696_s15  ;;  %v1448_v31 = vrot.slane %v1447_v21, 4  ;;  %v468_v21 = vld [vmem:[%s7787_s12 + $0x4c] sm:$0xf] }
  0x79   : > { %v645_v60 = vshrl.u32 %v468_v21, 16  ;;  %v648_v7 = vshll.u32 %v468_v21, 16 }
  0x7a   : > { %1879 = vrot.lane.b32.xlu0 %v7991_v62, %s7697_s16  ;;  %v8199_v62 = vsel %vm7915_vm11, %v1448_v31, %v1452_v57  ;;  %v639_v31 = vrot.slane %v637_v48, 7  ;;  %v640_v57 = vshll.u32 %v467_v55, 16 }
  0x7c   : > { %1732 = vrot.lane.b32.xlu1 %v8009_v35, %s7696_s15  ;;  %v643_v9 = vrot.slane %v639_v31, 4  ;;  %v642_v14 = vor.u32 %v640_v57, %v639_v31 }
  0x7e   : > { %1883 = vrot.lane.b32.xlu0 %v8191_v8, %s7697_s16 }
  0x80   : > { %1881 = vrot.lane.b32.xlu1 %v8009_v35, %s7697_s16  ;;  %v8209_v35 = vsel %vm7915_vm11, %v1462_v53, %v1466_v6  ;;  %v8265_v6 = vrot.slane %v645_v60, 7  ;;  %v1296_v60 = vld [vmem:[#allocation2 + $0x4c] sm:$0xf] }
  0x81   : > { %v1492_v57 = vshrl.u32 %v1296_v60, 16 }
  0x82   : > { %2032 = vrot.lane.b32.xlu0 %v8191_v8, %s7698_s17  ;;  %v650_v13 = vor.u32 %v648_v7, %v8265_v6 }
  0x84   : > { %1885 = vrot.lane.b32.xlu1 %v8199_v62, %s7697_s16  ;;  %v651_v24 = vsel %vm7807_vm7, %v643_v9, %v650_v13  ;;  %v652_v13 = vrot.slane %v8265_v6, 4 }
  0x85   : > { %871 = vst.msk [vmem:[#allocation2 + $0x7c] sm:$0xf] %vm319_vm3, %v651_v24 }
  0x86   : > { %2036 = vrot.lane.b32.xlu0 %v8209_v35, %s7698_s17 }
  0x88   : > { %2034 = vrot.lane.b32.xlu1 %v8199_v62, %s7698_s17 }
  0x8a   : > { %2378 = vrot.lane.b32.xlu0 %v8053_v2, %s7699_s18  ;;  %v2291_v2 = vrot.slane %v2167_v0, 5  ;;  %v470_v0 = vld [vmem:[%s7787_s12 + $0x54] sm:$0xf] }
  0x8c   : > { %2038 = vrot.lane.b32.xlu1 %v8215_v23, %s7698_s17  ;;  %v8310_v55 = vld [vmem:[#allocation2 + $0x7c] sm:$0xf] }
  0x8d   : > { %974 = vst.msk [vmem:[#allocation4 + $0x54] sm:$0xf] %vm319_vm3, %v8310_v55 }
  0x8e   : > { %2382 = vrot.lane.b32.xlu0 %v8104_v40, %s7699_s18 }
  0x90   : > { %2380 = vrot.lane.b32.xlu1 %v8064_v51, %s7699_s18  ;;  %v2169_v51 = vld [vmem:[#allocation2 + $0x40] sm:$0xf] }
  0x91   : > { %v2295_v41 = vrot.slane %v2169_v51, 5 }
  0x92   : > { %2517 = vrot.lane.b32.xlu0 %v8104_v40, %s7700_s21  ;;  %v8241_v40 = vsel %vm7997_vm14, %v2290_v16, %v2291_v2  ;;  %v662_v16 = vshrl.u32 %v470_v0, 16 }
  0x93   : > { %v1022_v59 = vpop.permute.xlu1 %1021  ;;  %v2297_v56 = vrot.slane %v2295_v41, 4  ;;  %v8263_v61 = vsel %vm7997_vm14, %v6874_v49, %v2295_v41  ;;  %v665_v41 = vshll.u32 %v470_v0, 16  ;;  %v1297_v0 = vld [vmem:[#allocation2 + $0x50] sm:$0x1] }
  0x94   : > { %2384 = vrot.lane.b32.xlu1 %v8111_v47, %s7699_s18  ;;  %v1018_v33 = vpop.permute.xlu0 %1017  ;;  %1116 = vst.msk [vmem:[#allocation4 + $0x8] sm:$0xf] %vm10923_vm0, %v1022_v59  ;;  %v656_v59 = vrot.slane %v654_v27, 7  ;;  %v8294_v37 = vrot.slane %v662_v16, 7  ;;  %v1299_v16 = vld [vmem:[#allocation2 + $0x58] sm:$0xf] }
  0x95   : > { %1114 = vst.msk [vmem:[#allocation4] sm:$0xf] %vm10923_vm0, %v1018_v33  ;;  %v8273_v36 = vsel %vm7997_vm14, %v2297_v56, %v2298_v58  ;;  %v657_v33 = vshll.u32 %v469_v26, 16  ;;  %v428_v56 = vld [vmem:[#allocation2 + $0x80] sm:$0x1] }
  0x96   : > { %2521 = vrot.lane.b32.xlu0 %v8233_v30, %s7700_s21  ;;  %v429_v58 = vsel %vm7850_vm8, %v7856_v19, %v428_v56 }
  0x97   : > { %v1024_v45 = vpop.permute.xlu1 %1023  ;;  %v659_v42 = vor.u32 %v657_v33, %v656_v59  ;;  %430 = vst [vmem:[#allocation2 + $0x80] sm:$0x1] %v429_v58 }
  0x98   : > { %2519 = vrot.lane.b32.xlu1 %v8111_v47, %s7700_s21  ;;  %v8248_v47 = vld [vmem:[%s10912_s1] sm:$0x1]  ;;  %v1020_v46 = vpop.permute.xlu0 %1019  ;;  %1117 = vst.msk [vmem:[#allocation4 + $0xc] sm:$0xf] %vm10923_vm0, %v1024_v45  ;;  %v1295_v45 = vld [vmem:[#allocation2 + $0x48] sm:$0xf] }
  0x99   : > { %v360_v44 = vsel %vm7766_vm2, %v8248_v47, %v359_v39  ;;  %1115 = vst.msk [vmem:[#allocation4 + $0x4] sm:$0xf] %vm10923_vm0, %v1020_v46  ;;  %v363_v53 = vsel %vm7766_vm2, %v8248_v47, %v362_v12  ;;  %v667_v39 = vor.u32 %v665_v41, %v8294_v37  ;;  %v1498_v41 = vshll.u32 %v1297_v0, 16 }
  0x9a   : > { %361 = vst [vmem:[#allocation2 + $0x78] sm:$0x1] %v360_v44  ;;  %2656 = vrot.lane.b32.xlu0 %v8233_v30, %s7701_s26  ;;  %364 = vst [vmem:[#allocation2 + $0x84] sm:$0x1] %v363_v53 }
  0x9b   : > { %v1151_v52 = vpop.permute.xlu1 %1150  ;;  %v1500_v56 = vrot.slane %v1498_v41, 5 }
  0x9c   : > { %2523 = vrot.lane.b32.xlu1 %v8241_v40, %s7700_s21  ;;  %v1149_v63 = vpop.permute.xlu0 %1148  ;;  %1246 = vst.msk [vmem:[#allocation4 + $0x4] sm:$0xf] %vm10925_vm5, %v1151_v52  ;;  %v1479_v52 = vshrl.u32 %v1295_v45, 16 }
  0x9d   : > { %1245 = vst.msk [vmem:[#allocation4] sm:$0xf] %vm10925_vm5, %v1149_v63  ;;  %v1482_v63 = vshll.u32 %v1295_v45, 16 }
  0x9e   : > { %2660 = vrot.lane.b32.xlu0 %v8263_v61, %s7701_s26  ;;  %v1481_v9 = vrot.slane %v1479_v52, 4  ;;  %v872_v24 = vld [vmem:[#allocation2 + $0x80] sm:$0x1] }
  0x9f   : > { %v1155_v20 = vpop.permute.xlu1 %1154  ;;  %v1484_v12 = vrot.slane %v1482_v63, 5  ;;  %v1300_v63 = vld [vmem:[#allocation2 + $0x5c] sm:$0x1] }
  0xa0   : > { %2658 = vrot.lane.b32.xlu1 %v8241_v40, %s7701_s26  ;;  %v1153_v22 = vpop.permute.xlu0 %1152  ;;  %1248 = vst.msk [vmem:[#allocation4 + $0xc] sm:$0xf] %vm10925_vm5, %v1155_v20 }
  0xa1   : > { %v868_v18 = vld [vmem:[#allocation2 + $0x78] sm:$0xf]  ;;  %1247 = vst.msk [vmem:[#allocation4 + $0x8] sm:$0xf] %vm10925_vm5, %v1153_v22  ;;  %v875_v49 = vld [vmem:[#allocation2 + $0x84] sm:$0xf]  ;;  %v1485_v27 = vor.u32 %v1484_v12, %v1481_v9 }
  0xa2   : > { %v869_v25 = vsel %vm7797_vm6, %v642_v14, %v868_v18  ;;  %1033 = vrot.lane.b32.xlu0 %v8001_v4, %s7694_s13  ;;  %v660_v4 = vrot.slane %v656_v59, 4  ;;  %v1298_v18 = vld [vmem:[#allocation2 + $0x54] sm:$0xf]  ;;  %v1494_v22 = vrot.slane %v1492_v57, 4  ;;  %v873_v59 = vsel %vm7766_vm2, %v652_v13, %v872_v24 }
  0xa3   : > { %870 = vst [vmem:[#allocation2 + $0x78] sm:$0xf] %v869_v25  ;;  %v1721_v2 = vpop.permute.xlu1 %1720  ;;  %874 = vst [vmem:[#allocation2 + $0x80] sm:$0x1] %v873_v59  ;;  %v1522_v9 = vshll.u32 %v1300_v63, 16 }
  0xa4   : > { %2662 = vrot.lane.b32.xlu1 %v8273_v36, %s7701_s26  ;;  %v1719_v51 = vpop.permute.xlu0 %1718  ;;  %1816 = vst.msk [vmem:[#allocation4 + $0x4] sm:$0xf] %vm1814_vm9, %v1721_v2  ;;  %v668_v46 = vsel %vm7807_vm7, %v660_v4, %v667_v39  ;;  %v1503_v2 = vshrl.u32 %v1298_v18, 16  ;;  %v1512_v4 = vshll.u32 %v1299_v16, 16  ;;  %v1516_v39 = vshrl.u32 %v1299_v16, 16 }
  0xa5   : > { %1815 = vst.msk [vmem:[#allocation4] sm:$0xf] %vm1814_vm9, %v1719_v51  ;;  %v1506_v51 = vshll.u32 %v1298_v18, 16  ;;  %v1524_v18 = vrot.slane %v1522_v9, 5 }
  0xa6   : > { %1037 = vrot.lane.b32.xlu0 %v8037_v50, %s7694_s13  ;;  %878 = vst.msk [vmem:[#allocation2 + $0x88] sm:$0xf] %vm319_vm3, %v668_v46  ;;  %v669_v46 = vrot.slane %v8294_v37, 4  ;;  %v1514_v58 = vrot.slane %v1512_v4, 5 }
  0xa7   : > { %v1508_v45 = vrot.slane %v1506_v51, 5 }
  0xa8   : > { %1035 = vrot.lane.b32.xlu1 %v8015_v11, %s7694_s13  ;;  %v1723_v44 = vpop.permute.xlu0 %1722  ;;  %v876_v11 = vsel %vm7797_vm6, %v659_v42, %v875_v49  ;;  %v1486_v49 = vrot.slane %v1485_v27, 4  ;;  %v2172_v27 = vld [vmem:[#allocation2 + $0x4c] sm:$0xf] }
  0xa9   : > { %1817 = vst.msk [vmem:[#allocation4 + $0x8] sm:$0xf] %vm1814_vm9, %v1723_v44  ;;  %877 = vst [vmem:[#allocation2 + $0x84] sm:$0xf] %v876_v11  ;;  %v1505_v44 = vrot.slane %v1503_v2, 4  ;;  %v2302_v51 = vrot.slane %v2172_v27, 5 }
  0xaa   : > { %v8312_v21 = vld [vmem:[#allocation2 + $0x78] sm:$0xf]  ;;  %1164 = vrot.lane.b32.xlu0 %v8037_v50, %s7695_s14  ;;  %v1488_v50 = vshll.u32 %v1296_v60, 16  ;;  %v2171_v2 = vld [vmem:[#allocation2 + $0x48] sm:$0xe] }
  0xab   : > { %973 = vst.msk [vmem:[#allocation4 + $0x50] sm:$0xf] %vm319_vm3, %v8312_v21 }
  0xac   : > { %1039 = vrot.lane.b32.xlu1 %v8072_v17, %s7694_s13  ;;  %v1872_v31 = vpop.permute.xlu0 %1871  ;;  %v1490_v6 = vrot.slane %v1488_v50, 5 }
  0xad   : > { %1968 = vst.msk [vmem:[#allocation4] sm:$0xf] %vm1967_vm10, %v1872_v31  ;;  %v8332_v53 = vld [vmem:[#allocation2 + $0x88] sm:$0xf]  ;;  %v1509_v31 = vor.u32 %v1508_v45, %v1505_v44  ;;  %v2174_v44 = vld [vmem:[#allocation2 + $0x54] sm:$0xe] }
  0xae   : > { %v1725_v48 = vpop.permute.xlu1 %1724  ;;  %1168 = vrot.lane.b32.xlu0 %v8087_v28, %s7695_s14  ;;  %976 = vst.msk [vmem:[#allocation4 + $0x5c] sm:$0xf] %vm319_vm3, %v8332_v53  ;;  %v1495_v33 = vor.u32 %v1494_v22, %v1490_v6  ;;  %v8365_v37 = vsel %vm7915_vm11, %v1486_v49, %v1490_v6 }
  0xaf   : > { %1818 = vst.msk [vmem:[#allocation4 + $0xc] sm:$0xf] %vm1814_vm9, %v1725_v48  ;;  %v1518_v48 = vrot.slane %v1516_v39, 4  ;;  %v1510_v13 = vrot.slane %v1509_v31, 4 }
  0xb0   : > { %1166 = vrot.lane.b32.xlu1 %v8072_v17, %s7695_s14  ;;  %v1876_v14 = vpop.permute.xlu0 %1875  ;;  %v8334_v20 = vld [vmem:[#allocation2 + $0x84] sm:$0xf]  ;;  %v431_v17 = vld [vmem:[#allocation2 + $0x8c] sm:$0x1] }
  0xb1   : > { %1970 = vst.msk [vmem:[#allocation4 + $0x8] sm:$0xf] %vm1967_vm10, %v1876_v14  ;;  %v432_v25 = vsel %vm7850_vm8, %v7856_v19, %v431_v17  ;;  %v8387_v6 = vsel %vm7915_vm11, %v1510_v13, %v1514_v58 }
  0xb2   : > { %v1874_v7 = vpop.permute.xlu1 %1873  ;;  %975 = vst.msk [vmem:[#allocation4 + $0x58] sm:$0xf] %vm319_vm3, %v8334_v20  ;;  %1734 = vrot.lane.b32.xlu0 %v8191_v8, %s7696_s15  ;;  %433 = vst [vmem:[#allocation2 + $0x8c] sm:$0x1] %v432_v25 }
  0xb3   : > { %1969 = vst.msk [vmem:[#allocation4 + $0x4] sm:$0xf] %vm1967_vm10, %v1874_v7  ;;  %v1519_v7 = vor.u32 %v1518_v48, %v1514_v58  ;;  %v6876_v58 = vrot.slane %v2174_v44, 9 }
  0xb4   : > { %1170 = vrot.lane.b32.xlu1 %v8091_v29, %s7695_s14  ;;  %v2025_v8 = vpop.permute.xlu0 %2024 }
  0xb5   : > { %2121 = vst.msk [vmem:[#allocation4] sm:$0xf] %vm2120_vm12, %v2025_v8  ;;  %v2173_v8 = vld [vmem:[#allocation2 + $0x50] sm:$0x1] }
  0xb6   : > { %v1878_v26 = vpop.permute.xlu1 %1877  ;;  %1738 = vrot.lane.b32.xlu0 %v8209_v35, %s7696_s15  ;;  %v2305_v41 = vrot.slane %v2173_v8, 5 }
  0xb7   : > { %1971 = vst.msk [vmem:[#allocation4 + $0xc] sm:$0xf] %vm1967_vm10, %v1878_v26 }
  0xb8   : > { %1736 = vrot.lane.b32.xlu1 %v8199_v62, %s7696_s15  ;;  %v2029_v11 = vpop.permute.xlu0 %2028  ;;  %v1496_v62 = vrot.slane %v1495_v33, 4  ;;  %v6875_v33 = vrot.slane %v2171_v2, 9 }
  0xb9   : > { %2123 = vst.msk [vmem:[#allocation4 + $0x8] sm:$0xf] %vm2120_vm12, %v2029_v11  ;;  %v879_v60 = vld [vmem:[#allocation2 + $0x8c] sm:$0x1] }
  0xba   : > { %v2027_v42 = vpop.permute.xlu1 %2026  ;;  %1887 = vrot.lane.b32.xlu0 %v8209_v35, %s7697_s16  ;;  %v880_v50 = vsel %vm7766_vm2, %v669_v46, %v879_v60  ;;  %v8375_v35 = vsel %vm7915_vm11, %v1496_v62, %v1500_v56  ;;  %v8419_v39 = vsel %vm7997_vm14, %v6875_v33, %v2302_v51  ;;  %v365_v46 = vld [vmem:[#allocation2 + $0x90] sm:$0x1]  ;;  %v2176_v56 = vld [vmem:[#allocation2 + $0x5c] sm:$0x1]  ;;  %v471_v60 = vld [vmem:[%s7787_s12 + $0x58] sm:$0xf] }
  0xbb   : > { %2122 = vst.msk [vmem:[#allocation4 + $0x4] sm:$0xf] %vm2120_vm12, %v2027_v42  ;;  %881 = vst [vmem:[#allocation2 + $0x8c] sm:$0x1] %v880_v50  ;;  %v2175_v42 = vld [vmem:[#allocation2 + $0x58] sm:$0xf] }
  0xbc   : > { %1740 = vrot.lane.b32.xlu1 %v8215_v23, %s7696_s15  ;;  %v2371_v57 = vpop.permute.xlu0 %2370  ;;  %v2309_v45 = vrot.slane %v2175_v42, 5  ;;  %v2312_v31 = vrot.slane %v2176_v56, 5  ;;  %v671_v50 = vshrl.u32 %v471_v60, 16 }
  0xbd   : > { %2467 = vst.msk [vmem:[#allocation4] sm:$0xf] %vm2466_vm13, %v2371_v57 }
  0xbe   : > { %v2031_v52 = vpop.permute.xlu1 %2030  ;;  %1891 = vrot.lane.b32.xlu0 %v8365_v37, %s7697_s16  ;;  %v2311_v63 = vrot.slane %v2309_v45, 4  ;;  %v8445_v9 = vsel %vm7997_vm14, %v6876_v58, %v2309_v45  ;;  %v673_v13 = vrot.slane %v671_v50, 7  ;;  %v434_v50 = vld [vmem:[#allocation2 + $0x98] sm:$0x1] }
  0xbf   : > { %2124 = vst.msk [vmem:[#allocation4 + $0xc] sm:$0xf] %vm2120_vm12, %v2031_v52  ;;  %v472_v52 = vld [vmem:[%s7787_s12 + $0x5c] sm:$0xf] }
  0xc0   : > { %1889 = vrot.lane.b32.xlu1 %v8215_v23, %s7697_s16  ;;  %v2375_v14 = vpop.permute.xlu0 %2374  ;;  %v1520_v23 = vrot.slane %v1519_v7, 4  ;;  %v679_v57 = vshrl.u32 %v472_v52, 16 }
  0xc1   : > { %2469 = vst.msk [vmem:[#allocation4 + $0x8] sm:$0xf] %vm2466_vm13, %v2375_v14  ;;  %v674_v14 = vshll.u32 %v471_v60, 16  ;;  %v1301_v60 = vld [vmem:[#allocation2 + $0x60] sm:$0xf] }
  0xc2   : > { %v2373_v12 = vpop.permute.xlu1 %2372  ;;  %2040 = vrot.lane.b32.xlu0 %v8365_v37, %s7698_s17  ;;  %v8395_v24 = vsel %vm7915_vm11, %v1520_v23, %v1524_v18  ;;  %v8448_v23 = vrot.slane %v679_v57, 7  ;;  %v682_v18 = vshll.u32 %v472_v52, 16  ;;  %v435_v57 = vsel %vm7850_vm8, %v7856_v19, %v434_v50 }
  0xc3   : > { %2468 = vst.msk [vmem:[#allocation4 + $0x4] sm:$0xf] %vm2466_vm13, %v2373_v12  ;;  %436 = vst [vmem:[#allocation2 + $0x98] sm:$0x1] %v435_v57 }
  0xc4   : > { %1893 = vrot.lane.b32.xlu1 %v8375_v35, %s7697_s16  ;;  %v2510_v22 = vpop.permute.xlu0 %2509  ;;  %v684_v27 = vor.u32 %v682_v18, %v8448_v23 }
  0xc5   : > { %2606 = vst.msk [vmem:[#allocation4] sm:$0xf] %vm10927_vm15, %v2510_v22  ;;  %v677_v22 = vrot.slane %v673_v13, 4 }
  0xc6   : > { %v2377_v17 = vpop.permute.xlu1 %2376  ;;  %2044 = vrot.lane.b32.xlu0 %v8387_v6, %s7698_s17 }
  0xc7   : > { %2470 = vst.msk [vmem:[#allocation4 + $0xc] sm:$0xf] %vm2466_vm13, %v2377_v17  ;;  %v8455_v17 = vsel %vm7997_vm14, %v2311_v63, %v2312_v31  ;;  %v685_v8 = vsel %vm7807_vm7, %v677_v22, %v684_v27  ;;  %v686_v27 = vrot.slane %v8448_v23, 4 }
  0xc8   : > { %2042 = vrot.lane.b32.xlu1 %v8375_v35, %s7698_s17  ;;  %v2514_v26 = vpop.permute.xlu0 %2513  ;;  %885 = vst.msk [vmem:[#allocation2 + $0x94] sm:$0xf] %vm319_vm3, %v685_v8 }
  0xc9   : > { %2608 = vst.msk [vmem:[#allocation4 + $0x8] sm:$0xf] %vm10927_vm15, %v2514_v26 }
  0xca   : > { %v2512_v25 = vpop.permute.xlu1 %2511  ;;  %2386 = vrot.lane.b32.xlu0 %v8233_v30, %s7699_s18 }
  0xcb   : > { %2607 = vst.msk [vmem:[#allocation4 + $0x4] sm:$0xf] %vm10927_vm15, %v2512_v25  ;;  %v368_v25 = vld [vmem:[#allocation2 + $0x9c] sm:$0x1] }
  0xcc   : > { %2046 = vrot.lane.b32.xlu1 %v8395_v24, %s7698_s17  ;;  %v2649_v16 = vpop.permute.xlu0 %2648 }
  0xcd   : > { %2745 = vst.msk [vmem:[#allocation4] sm:$0xf] %vm10924_vm4, %v2649_v16  ;;  %v676_v16 = vor.u32 %v674_v14, %v673_v13  ;;  %v1527_v13 = vshrl.u32 %v1301_v60, 16  ;;  %v1530_v14 = vshll.u32 %v1301_v60, 16 }
  0xce   : > { %v2516_v0 = vpop.permute.xlu1 %2515  ;;  %2390 = vrot.lane.b32.xlu0 %v8263_v61, %s7699_s18 }
  0xcf   : > { %2609 = vst.msk [vmem:[#allocation4 + $0xc] sm:$0xf] %vm10927_vm15, %v2516_v0  ;;  %v8494_v63 = vld [vmem:[#allocation2 + $0x94] sm:$0xf] }
  0xd0   : > { %2388 = vrot.lane.b32.xlu1 %v8241_v40, %s7699_s18  ;;  %v1026_v30 = vpop.permute.xlu0 %1025  ;;  %v2304_v40 = vrot.slane %v2302_v51, 4  ;;  %v369_v51 = vsel %vm7766_vm2, %v8248_v47, %v368_v25  ;;  %978 = vst.msk [vmem:[#allocation4 + $0x64] sm:$0xf] %vm319_vm3, %v8494_v63 }
  0xd1   : > { %1118 = vst.msk [vmem:[#allocation4 + $0x10] sm:$0xf] %vm10923_vm0, %v1026_v30  ;;  %370 = vst [vmem:[#allocation2 + $0x9c] sm:$0x1] %v369_v51  ;;  %v473_v30 = vld [vmem:[%s7787_s12 + $0x60] sm:$0xf] }
  0xd2   : > { %v2651_v59 = vpop.permute.xlu1 %2650  ;;  %2525 = vrot.lane.b32.xlu0 %v8263_v61, %s7700_s21  ;;  %v8427_v61 = vsel %vm7997_vm14, %v2304_v40, %v2305_v41  ;;  %v474_v40 = vld [vmem:[%s7787_s12 + $0x64] sm:$0xf]  ;;  %v688_v41 = vshrl.u32 %v473_v30, 16  ;;  %v691_v45 = vshll.u32 %v473_v30, 16 }
  0xd3   : > { %2746 = vst.msk [vmem:[#allocation4 + $0x4] sm:$0xf] %vm10924_vm4, %v2651_v59 }
  0xd4   : > { %2392 = vrot.lane.b32.xlu1 %v8273_v36, %s7699_s18  ;;  %v2653_v49 = vpop.permute.xlu0 %2652  ;;  %v690_v44 = vrot.slane %v688_v41, 7  ;;  %v1303_v41 = vld [vmem:[#allocation2 + $0x68] sm:$0x1] }
  0xd5   : > { %2747 = vst.msk [vmem:[#allocation4 + $0x8] sm:$0xf] %vm10924_vm4, %v2653_v49 }
  0xd6   : > { %v1028_v4 = vpop.permute.xlu1 %1027  ;;  %2529 = vrot.lane.b32.xlu0 %v8419_v39, %s7700_s21  ;;  %v693_v56 = vor.u32 %v691_v45, %v690_v44 }
  0xd7   : > { %1119 = vst.msk [vmem:[#allocation4 + $0x14] sm:$0xf] %vm10923_vm0, %v1028_v4  ;;  %v696_v4 = vshrl.u32 %v474_v40, 16 }
  0xd8   : > { %2527 = vrot.lane.b32.xlu1 %v8273_v36, %s7700_s21  ;;  %v366_v36 = vsel %vm7766_vm2, %v8248_v47, %v365_v46  ;;  %v1030_v48 = vpop.permute.xlu0 %1029 }
  0xd9   : > { %367 = vst [vmem:[#allocation2 + $0x90] sm:$0x1] %v366_v36  ;;  %1120 = vst.msk [vmem:[#allocation4 + $0x18] sm:$0xf] %vm10923_vm0, %v1030_v48  ;;  %v8478_v46 = vrot.slane %v696_v4, 7 }
  0xda   : > { %v2655_v11 = vpop.permute.xlu1 %2654  ;;  %v7590_v62 = vld [vmem:[#allocation4] sm:$0xff]   ;;  %2664 = vrot.lane.b32.xlu0 %v8419_v39, %s7701_s26  ;;  %v889_v36 = vld [vmem:[#allocation2 + $0x9c] sm:$0xf] }
  0xdb   : > { %2748 = vst.msk [vmem:[#allocation4 + $0xc] sm:$0xf] %vm10924_vm4, %v2655_v11  ;;  %7451 = vmatprep.mubr.msk.bf16.mxu0 %vm10922_vm1, %v7590_v62  ;;  %v699_v11 = vshll.u32 %v474_v40, 16 }
  0xdc   : > { %2531 = vrot.lane.b32.xlu1 %v8427_v61, %s7700_s21  ;;  %v1157_v12 = vpop.permute.xlu0 %1156 }
  0xdd   : > { %1249 = vst.msk [vmem:[#allocation4 + $0x10] sm:$0xf] %vm10925_vm5, %v1157_v12  ;;  %v701_v62 = vor.u32 %v699_v11, %v8478_v46  ;;  %v1302_v12 = vld [vmem:[#allocation2 + $0x64] sm:$0xf] }
  0xde   : > { %v1032_v7 = vpop.permute.xlu1 %1031  ;;  %2668 = vrot.lane.b32.xlu0 %v8445_v9, %s7701_s26  ;;  %v1540_v22 = vshrl.u32 %v1302_v12, 16 }
  0xdf   : > { %1121 = vst.msk [vmem:[#allocation4 + $0x1c] sm:$0xf] %vm10923_vm0, %v1032_v7 }
  0xe0   : > { %2666 = vrot.lane.b32.xlu1 %v8427_v61, %s7701_s26  ;;  %v882_v2 = vld [vmem:[#allocation2 + $0x90] sm:$0xf]  ;;  %v1161_v59 = vpop.permute.xlu0 %1160  ;;  %v1542_v8 = vrot.slane %v1540_v22, 4 }
  0xe1   : > { %1251 = vst.msk [vmem:[#allocation4 + $0x18] sm:$0xf] %vm10925_vm5, %v1161_v59  ;;  %v883_v33 = vsel %vm7797_vm6, %v676_v16, %v882_v2  ;;  %v1304_v2 = vld [vmem:[#allocation2 + $0x6c] sm:$0xf] }
  0xe2   : > { %v1159_v26 = vpop.permute.xlu1 %1158  ;;  %v7592_v0 = vld [vmem:[#allocation4 + $0x8] sm:$0xff]   ;;  %1041 = vrot.lane.b32.xlu0 %v8087_v28, %s7694_s13  ;;  %884 = vst [vmem:[#allocation2 + $0x90] sm:$0xf] %v883_v33  ;;  %v694_v28 = vrot.slane %v690_v44, 4  ;;  %v1554_v44 = vshll.u32 %v1304_v2, 16 }
  0xe3   : > { %1250 = vst.msk [vmem:[#allocation4 + $0x14] sm:$0xf] %vm10925_vm5, %v1159_v26  ;;  %7452 = vmatmul.mubr.msk.bf16.vlgmr.msra.gmra.mxu0 %vm10922_vm1, %v7592_v0  ;;  %v1529_v26 = vrot.slane %v1527_v13, 4  ;;  %v1532_v0 = vrot.slane %v1530_v14, 5  ;;  %v886_v33 = vld [vmem:[#allocation2 + $0x98] sm:$0x1] }
  0xe4   : > { %2670 = vrot.lane.b32.xlu1 %v8455_v17, %s7701_s26  ;;  %v1727_v49 = vpop.permute.xlu0 %1726  ;;  %v702_v52 = vsel %vm7807_vm7, %v694_v28, %v701_v62  ;;  %v887_v45 = vsel %vm7766_vm2, %v686_v27, %v886_v33  ;;  %v1546_v28 = vshll.u32 %v1303_v41, 16  ;;  %v1556_v60 = vrot.slane %v1554_v44, 5  ;;  %v1306_v14 = vld [vmem:[#allocation2 + $0x74] sm:$0x1] }
  0xe5   : > { %1819 = vst.msk [vmem:[#allocation4 + $0x10] sm:$0xf] %vm1814_vm9, %v1727_v49  ;;  %v1533_v4 = vor.u32 %v1532_v0, %v1529_v26  ;;  %v1551_v49 = vshrl.u32 %v1304_v2, 16  ;;  %888 = vst [vmem:[#allocation2 + $0x98] sm:$0x1] %v887_v45  ;;  %v1570_v26 = vshll.u32 %v1306_v14, 16 }
  0xe6   : > { %v1163_v42 = vpop.permute.xlu1 %1162  ;;  %1045 = vrot.lane.b32.xlu0 %v8148_v32, %s7694_s13  ;;  %892 = vst.msk [vmem:[#allocation2 + $0xa0] sm:$0xf] %vm319_vm3, %v702_v52  ;;  %v703_v52 = vrot.slane %v8478_v46, 4  ;;  %v1548_v50 = vrot.slane %v1546_v28, 5  ;;  %v475_v14 = vld [vmem:[%s7787_s12 + $0x68] sm:$0xf] }
  0xe7   : > { %1252 = vst.msk [vmem:[#allocation4 + $0x1c] sm:$0xf] %vm10925_vm5, %v1163_v42  ;;  %v1305_v42 = vld [vmem:[#allocation2 + $0x70] sm:$0xf]  ;;  %v1572_v2 = vrot.slane %v1570_v26, 5  ;;  %v705_v26 = vshrl.u32 %v475_v14, 16 }
  0xe8   : > { %1043 = vrot.lane.b32.xlu1 %v8091_v29, %s7694_s13  ;;  %v1731_v48 = vpop.permute.xlu0 %1730  ;;  %v890_v29 = vsel %vm7797_vm6, %v693_v56, %v889_v36  ;;  %v1560_v62 = vshll.u32 %v1305_v42, 16  ;;  %v1564_v56 = vshrl.u32 %v1305_v42, 16  ;;  %v1534_v36 = vrot.slane %v1533_v4, 4  ;;  %v2178_v4 = vld [vmem:[#allocation2 + $0x64] sm:$0xf] }
  0xe9   : > { %1821 = vst.msk [vmem:[#allocation4 + $0x18] sm:$0xf] %vm1814_vm9, %v1731_v48  ;;  %v8496_v31 = vld [vmem:[#allocation2 + $0x90] sm:$0xf]  ;;  %891 = vst [vmem:[#allocation2 + $0x9c] sm:$0xf] %v890_v29 }
  0xea   : > { %v1729_v58 = vpop.permute.xlu1 %1728  ;;  %1172 = vrot.lane.b32.xlu0 %v8148_v32, %s7695_s14  ;;  %977 = vst.msk [vmem:[#allocation4 + $0x60] sm:$0xf] %vm319_vm3, %v8496_v31  ;;  %v1536_v32 = vshll.u32 %v1302_v12, 16  ;;  %v1553_v48 = vrot.slane %v1551_v49, 4  ;;  %v1562_v57 = vrot.slane %v1560_v62, 5  ;;  %v2316_v44 = vrot.slane %v2178_v4, 5 }
  0xeb   : > { %1820 = vst.msk [vmem:[#allocation4 + $0x14] sm:$0xf] %vm1814_vm9, %v1729_v58  ;;  %v2177_v49 = vld [vmem:[#allocation2 + $0x60] sm:$0xe]  ;;  %v374_v4 = vld [vmem:[#allocation2 + $0xb4] sm:$0x1] }
  0xec   : > { %1047 = vrot.lane.b32.xlu1 %v8154_v38, %s7694_s13  ;;  %v1880_v18 = vpop.permute.xlu0 %1879  ;;  %v1538_v23 = vrot.slane %v1536_v32, 5 }
  0xed   : > { %1972 = vst.msk [vmem:[#allocation4 + $0x10] sm:$0xf] %vm1967_vm10, %v1880_v18  ;;  %v8516_v51 = vld [vmem:[#allocation2 + $0xa0] sm:$0xf]  ;;  %v1557_v18 = vor.u32 %v1556_v60, %v1553_v48  ;;  %v2180_v48 = vld [vmem:[#allocation2 + $0x6c] sm:$0xe] }
  0xee   : > { %v1733_v7 = vpop.permute.xlu1 %1732  ;;  %1176 = vrot.lane.b32.xlu0 %v8180_v5, %s7695_s14  ;;  %980 = vst.msk [vmem:[#allocation4 + $0x6c] sm:$0xf] %vm319_vm3, %v8516_v51  ;;  %v1543_v11 = vor.u32 %v1542_v8, %v1538_v23  ;;  %v8549_v46 = vsel %vm7915_vm11, %v1534_v36, %v1538_v23  ;;  %v2182_v60 = vld [vmem:[#allocation2 + $0x74] sm:$0x1] }
  0xef   : > { %1822 = vst.msk [vmem:[#allocation4 + $0x1c] sm:$0xf] %vm1814_vm9, %v1733_v7  ;;  %v1566_v7 = vrot.slane %v1564_v56, 4  ;;  %v1558_v27 = vrot.slane %v1557_v18, 4  ;;  %v476_v18 = vld [vmem:[%s7787_s12 + $0x6c] sm:$0xf] }
  0xf0   : > { %1174 = vrot.lane.b32.xlu1 %v8154_v38, %s7695_s14  ;;  %v1884_v16 = vpop.permute.xlu0 %1883  ;;  %v8518_v59 = vld [vmem:[#allocation2 + $0x9c] sm:$0xf]  ;;  %v437_v38 = vld [vmem:[#allocation2 + $0xa4] sm:$0x1] }
  0xf1   : > { %1974 = vst.msk [vmem:[#allocation4 + $0x18] sm:$0xf] %vm1967_vm10, %v1884_v16  ;;  %v438_v30 = vsel %vm7850_vm8, %v7856_v19, %v437_v38  ;;  %v8571_v23 = vsel %vm7915_vm11, %v1558_v27, %v1562_v57  ;;  %v713_v27 = vshrl.u32 %v476_v18, 16 }
  0xf2   : > { %v1882_v25 = vpop.permute.xlu1 %1881  ;;  %979 = vst.msk [vmem:[#allocation4 + $0x68] sm:$0xf] %vm319_vm3, %v8518_v59  ;;  %1742 = vrot.lane.b32.xlu0 %v8365_v37, %s7696_s15  ;;  %439 = vst [vmem:[#allocation2 + $0xa4] sm:$0x1] %v438_v30 }
  0xf3   : > { %1973 = vst.msk [vmem:[#allocation4 + $0x14] sm:$0xf] %vm1967_vm10, %v1882_v25  ;;  %v1567_v25 = vor.u32 %v1566_v7, %v1562_v57  ;;  %v371_v57 = vld [vmem:[#allocation2 + $0xa8] sm:$0x1] }
  0xf4   : > { %1178 = vrot.lane.b32.xlu1 %v8167_v54, %s7695_s14  ;;  %v2033_v37 = vpop.permute.xlu0 %2032  ;;  %v372_v7 = vsel %vm7766_vm2, %v8248_v47, %v371_v57 }
  0xf5   : > { %2125 = vst.msk [vmem:[#allocation4 + $0x10] sm:$0xf] %vm2120_vm12, %v2033_v37  ;;  %v2179_v37 = vld [vmem:[#allocation2 + $0x68] sm:$0x1]  ;;  %373 = vst [vmem:[#allocation2 + $0xa8] sm:$0x1] %v372_v7 }
  0xf6   : > { %v1886_v40 = vpop.permute.xlu1 %1885  ;;  %1746 = vrot.lane.b32.xlu0 %v8387_v6, %s7696_s15  ;;  %v2319_v28 = vrot.slane %v2179_v37, 5 }
  0xf7   : > { %1975 = vst.msk [vmem:[#allocation4 + $0x1c] sm:$0xf] %vm1967_vm10, %v1886_v40 }
  0xf8   : > { %1744 = vrot.lane.b32.xlu1 %v8375_v35, %s7696_s15  ;;  %v2037_v29 = vpop.permute.xlu0 %2036  ;;  %v1544_v35 = vrot.slane %v1543_v11, 4  ;;  %v6877_v11 = vrot.slane %v2177_v49, 9 }
  0xf9   : > { %2127 = vst.msk [vmem:[#allocation4 + $0x18] sm:$0xf] %vm2120_vm12, %v2037_v29  ;;  %v893_v12 = vld [vmem:[#allocation2 + $0xa4] sm:$0x1] }
  0xfa   : > { %v2035_v58 = vpop.permute.xlu1 %2034  ;;  %1895 = vrot.lane.b32.xlu0 %v8387_v6, %s7697_s16  ;;  %v894_v32 = vsel %vm7766_vm2, %v703_v52, %v893_v12  ;;  %v8559_v6 = vsel %vm7915_vm11, %v1544_v35, %v1548_v50  ;;  %v8603_v56 = vsel %vm7997_vm14, %v6877_v11, %v2316_v44  ;;  %v6878_v50 = vrot.slane %v2180_v48, 9  ;;  %v477_v11 = vld [vmem:[%s7787_s12 + $0x70] sm:$0xf] }
  0xfb   : > { %2126 = vst.msk [vmem:[#allocation4 + $0x14] sm:$0xf] %vm2120_vm12, %v2035_v58  ;;  %895 = vst [vmem:[#allocation2 + $0xa4] sm:$0x1] %v894_v32  ;;  %v2181_v58 = vld [vmem:[#allocation2 + $0x70] sm:$0xf] }
  0xfc   : > { %1748 = vrot.lane.b32.xlu1 %v8395_v24, %s7696_s15  ;;  %v2379_v22 = vpop.permute.xlu0 %2378  ;;  %v2323_v52 = vrot.slane %v2181_v58, 5  ;;  %v896_v49 = vld [vmem:[#allocation2 + $0xa8] sm:$0xf] }
  0xfd   : > { %2471 = vst.msk [vmem:[#allocation4 + $0x10] sm:$0xf] %vm2466_vm13, %v2379_v22 }
  0xfe   : > { %v2039_v13 = vpop.permute.xlu1 %2038  ;;  %1899 = vrot.lane.b32.xlu0 %v8549_v46, %s7697_s16  ;;  %v2325_v12 = vrot.slane %v2323_v52, 4 }
  0xff   : > { %2128 = vst.msk [vmem:[#allocation4 + $0x1c] sm:$0xf] %vm2120_vm12, %v2039_v13  ;;  %v2326_v13 = vrot.slane %v2182_v60, 5 }
 0x100   : > { %1897 = vrot.lane.b32.xlu1 %v8395_v24, %s7697_s16  ;;  %v2383_v16 = vpop.permute.xlu0 %2382  ;;  %v1568_v24 = vrot.slane %v1567_v25, 4  ;;  %v8629_v25 = vsel %vm7997_vm14, %v6878_v50, %v2323_v52  ;;  %v725_v52 = vshll.u32 %v477_v11, 16 }
 0x101   : > { %2473 = vst.msk [vmem:[#allocation4 + $0x18] sm:$0xf] %vm2466_vm13, %v2383_v16  ;;  %v707_v16 = vrot.slane %v705_v26, 7 }
 0x102   : > { %v2381_v0 = vpop.permute.xlu1 %2380  ;;  %2048 = vrot.lane.b32.xlu0 %v8549_v46, %s7698_s17  ;;  %v8579_v33 = vsel %vm7915_vm11, %v1568_v24, %v1572_v2  ;;  %v708_v24 = vshll.u32 %v475_v14, 16  ;;  %v8638_v2 = vsel %vm7997_vm14, %v2325_v12, %v2326_v13 }
 0x103   : > { %2472 = vst.msk [vmem:[#allocation4 + $0x14] sm:$0xf] %vm2466_vm13, %v2381_v0 }
 0x104   : > { %1901 = vrot.lane.b32.xlu1 %v8559_v6, %s7697_s16  ;;  %v2518_v8 = vpop.permute.xlu0 %2517 }
 0x105   : > { %2610 = vst.msk [vmem:[#allocation4 + $0x10] sm:$0xf] %vm10927_vm15, %v2518_v8 }
 0x106   : > { %v2385_v38 = vpop.permute.xlu1 %2384  ;;  %2052 = vrot.lane.b32.xlu0 %v8571_v23, %s7698_s17 }
 0x107   : > { %2474 = vst.msk [vmem:[#allocation4 + $0x1c] sm:$0xf] %vm2466_vm13, %v2385_v38  ;;  %v8642_v38 = vrot.slane %v713_v27, 7 }
 0x108   : > { %2050 = vrot.lane.b32.xlu1 %v8559_v6, %s7698_s17  ;;  %v2522_v40 = vpop.permute.xlu0 %2521 }
 0x109   : > { %2612 = vst.msk [vmem:[#allocation4 + $0x18] sm:$0xf] %vm10927_vm15, %v2522_v40  ;;  %v716_v40 = vshll.u32 %v476_v18, 16  ;;  %v3242_v18 = vld [vmem:[#allocation3 + $0x20] sm:$0x1] }
 0x10a   : > { %v2520_v30 = vpop.permute.xlu1 %2519  ;;  %2394 = vrot.lane.b32.xlu0 %v8419_v39, %s7699_s18 }
 0x10b   : > { %2611 = vst.msk [vmem:[#allocation4 + $0x14] sm:$0xf] %vm10927_vm15, %v2520_v30  ;;  %v711_v30 = vrot.slane %v707_v16, 4 }
 0x10c   : > { %2054 = vrot.lane.b32.xlu1 %v8579_v33, %s7698_s17  ;;  %v2657_v42 = vpop.permute.xlu0 %2656 }
 0x10d   : > { %2749 = vst.msk [vmem:[#allocation4 + $0x10] sm:$0xf] %vm10924_vm4, %v2657_v42 }
 0x10e   : > { %v2524_v41 = vpop.permute.xlu1 %2523  ;;  %2398 = vrot.lane.b32.xlu0 %v8445_v9, %s7699_s18 }
 0x10f   : > { %2613 = vst.msk [vmem:[#allocation4 + $0x1c] sm:$0xf] %vm10927_vm15, %v2524_v41  ;;  %v710_v41 = vor.u32 %v708_v24, %v707_v16  ;;  %v1308_v16 = vld [vmem:[#allocation2 + $0x7c] sm:$0xf] }
 0x110   : > { %2396 = vrot.lane.b32.xlu1 %v8427_v61, %s7699_s18  ;;  %v2661_v39 = vpop.permute.xlu0 %2660  ;;  %v2318_v61 = vrot.slane %v2316_v44, 4  ;;  %v375_v44 = vsel %vm7766_vm2, %v8248_v47, %v374_v4  ;;  %v3239_v4 = vld [vmem:[#allocation3 + $0x14] sm:$0x1] }
 0x111   : > { %2751 = vst.msk [vmem:[#allocation4 + $0x18] sm:$0xf] %vm10924_vm4, %v2661_v39  ;;  %v897_v37 = vsel %vm7797_vm6, %v710_v41, %v896_v49  ;;  %376 = vst [vmem:[#allocation2 + $0xb4] sm:$0x1] %v375_v44  ;;  %v478_v39 = vld [vmem:[%s7787_s12 + $0x74] sm:$0xf] }
 0x112   : > { %v2659_v45 = vpop.permute.xlu1 %2658  ;;  %2533 = vrot.lane.b32.xlu0 %v8445_v9, %s7700_s21  ;;  %v8611_v9 = vsel %vm7997_vm14, %v2318_v61, %v2319_v28  ;;  %898 = vst [vmem:[#allocation2 + $0xa8] sm:$0xf] %v897_v37  ;;  %v722_v28 = vshrl.u32 %v477_v11, 16  ;;  %v733_v50 = vshll.u32 %v478_v39, 16  ;;  %v1588_v37 = vshrl.u32 %v1308_v16, 16 }
 0x113   : > { %2750 = vst.msk [vmem:[#allocation4 + $0x14] sm:$0xf] %vm10924_vm4, %v2659_v45  ;;  %v718_v45 = vor.u32 %v716_v40, %v8642_v38 }
 0x114   : > { %2400 = vrot.lane.b32.xlu1 %v8455_v17, %s7699_s18  ;;  %v1034_v36 = vpop.permute.xlu0 %1033  ;;  %v724_v60 = vrot.slane %v722_v28, 7  ;;  %v1310_v28 = vld [vmem:[#allocation2 + $0x84] sm:$0xf] }
 0x115   : > { %1122 = vst.msk [vmem:[#allocation4 + $0x20] sm:$0xf] %vm10923_vm0, %v1034_v36  ;;  %v719_v47 = vsel %vm7807_vm7, %v711_v30, %v718_v45  ;;  %v1584_v45 = vshll.u32 %v1308_v16, 16 }
 0x116   : > { %v2663_v62 = vpop.permute.xlu1 %2662  ;;  %2537 = vrot.lane.b32.xlu0 %v8603_v56, %s7700_s21  ;;  %899 = vst.msk [vmem:[#allocation2 + $0xac] sm:$0xf] %vm319_vm3, %v719_v47  ;;  %v728_v7 = vrot.slane %v724_v60, 4  ;;  %v727_v12 = vor.u32 %v725_v52, %v724_v60  ;;  %v720_v60 = vrot.slane %v8642_v38, 4 }
 0x117   : > { %2752 = vst.msk [vmem:[#allocation4 + $0x1c] sm:$0xf] %vm10924_vm4, %v2663_v62  ;;  %v730_v62 = vshrl.u32 %v478_v39, 16 }
 0x118   : > { %2535 = vrot.lane.b32.xlu1 %v8455_v17, %s7700_s21  ;;  %v1038_v17 = vpop.permute.xlu0 %1037 }
 0x119   : > { %1124 = vst.msk [vmem:[#allocation4 + $0x28] sm:$0xf] %vm10923_vm0, %v1038_v17  ;;  %v1307_v17 = vld [vmem:[#allocation2 + $0x78] sm:$0xf] }
 0x11a   : > { %v1036_v29 = vpop.permute.xlu1 %1035  ;;  %v7593_v35 = vld [vmem:[#allocation4 + $0x10] sm:$0xff]   ;;  %2672 = vrot.lane.b32.xlu0 %v8603_v56, %s7701_s26  ;;  %v1575_v40 = vshrl.u32 %v1307_v17, 16  ;;  %v1578_v41 = vshll.u32 %v1307_v17, 16  ;;  %v1602_v17 = vshll.u32 %v1310_v28, 16 }
 0x11b   : > { %1123 = vst.msk [vmem:[#allocation4 + $0x24] sm:$0xf] %vm10923_vm0, %v1036_v29  ;;  %7455 = vmatprep.mubr.msk.bf16.mxu0 %vm10922_vm1, %v7593_v35  ;;  %v8673_v29 = vrot.slane %v730_v62, 7  ;;  %v3190_v35 = vld [vmem:[#allocation3 + $0xc] sm:$0x1]  ;;  %v1586_v62 = vrot.slane %v1584_v45, 5 }
 0x11c   : > { %2539 = vrot.lane.b32.xlu1 %v8611_v9, %s7700_s21  ;;  %v1165_v0 = vpop.permute.xlu0 %1164  ;;  %v1577_v39 = vrot.slane %v1575_v40, 4 }
 0x11d   : > { %1253 = vst.msk [vmem:[#allocation4 + $0x20] sm:$0xf] %vm10925_vm5, %v1165_v0  ;;  %v8692_v0 = vld [vmem:[#allocation2 + $0xa8] sm:$0xf] }
 0x11e   : > { %v1040_v32 = vpop.permute.xlu1 %1039  ;;  %v7594_v22 = vld [vmem:[#allocation4 + $0x18] sm:$0xff]   ;;  %2676 = vrot.lane.b32.xlu0 %v8629_v25, %s7701_s26  ;;  %981 = vst.msk [vmem:[#allocation4 + $0x70] sm:$0xf] %vm319_vm3, %v8692_v0 }
 0x11f   : > { %1125 = vst.msk [vmem:[#allocation4 + $0x2c] sm:$0xf] %vm10923_vm0, %v1040_v32  ;;  %7456 = vmatmul.mubr.msk.bf16.gmra.mxu0 %vm10922_vm1, %v7594_v22  ;;  %vm10926_vm1 = vcmask 253952   ;;  %vm10940_vm0 = vsmask.f32 256  ;;  %v735_v32 = vor.u32 %v733_v50, %v8673_v29 }
 0x120   : > { %2674 = vrot.lane.b32.xlu1 %v8611_v9, %s7701_s26  ;;  %v1169_v42 = vpop.permute.xlu0 %1168  ;;  %vm8663_vm4 = vmand %vm10926_vm1, %vm10940_vm0  ;;  %vm10943_vm0 = vsmask.f32 7938  ;;  %v903_v22 = vld [vmem:[#allocation2 + $0xb4] sm:$0xf] }
 0x121   : > { %1255 = vst.msk [vmem:[#allocation4 + $0x28] sm:$0xf] %vm10925_vm5, %v1169_v42  ;;  %v904_v27 = vsel %vm7797_vm6, %v727_v12, %v903_v22  ;;  %v736_v24 = vsel %vm7807_vm7, %v728_v7, %v735_v32  ;;  %v8702_v42 = vld [vmem:[#allocation2 + $0xac] sm:$0xf]  ;;  %v443_v7 = vld [vmem:[#allocation2 + $0xbc] sm:$0x1] }
 0x122   : > { %v1167_v8 = vpop.permute.xlu1 %1166  ;;  %1049 = vrot.lane.b32.xlu0 %v8180_v5, %s7694_s13  ;;  %v3193_v5 = vld [vmem:[#allocation3 + $0x18] sm:$0x1]  ;;  %905 = vst [vmem:[#allocation2 + $0xb4] sm:$0xf] %v904_v27  ;;  %906 = vst.msk [vmem:[#allocation2 + $0xb8] sm:$0xf] %vm319_vm3, %v736_v24  ;;  %v444_v12 = vsel %vm7850_vm8, %v7856_v19, %v443_v7 }
 0x123   : > { %1254 = vst.msk [vmem:[#allocation4 + $0x24] sm:$0xf] %vm10925_vm5, %v1167_v8  ;;  %v3194_v48 = vsel %vm8663_vm4, 0, %v3193_v5  ;;  %v440_v8 = vld [vmem:[#allocation2 + $0xb0] sm:$0x1]  ;;  %v1604_v24 = vrot.slane %v1602_v17, 5 }
 0x124   : > { %2678 = vrot.lane.b32.xlu1 %v8638_v2, %s7701_s26  ;;  %v1735_v58 = vpop.permute.xlu0 %1734  ;;  %3195 = vst [vmem:[#allocation3 + $0x18] sm:$0x1] %v3194_v48  ;;  %982 = vst.msk [vmem:[#allocation4 + $0x74] sm:$0xf] %vm319_vm3, %v8702_v42  ;;  %v1311_v48 = vld [vmem:[#allocation2 + $0x88] sm:$0xf] }
 0x125   : > { %1823 = vst.msk [vmem:[#allocation4 + $0x20] sm:$0xf] %vm1814_vm9, %v1735_v58  ;;  %v1590_v58 = vrot.slane %v1588_v37, 4  ;;  %445 = vst [vmem:[#allocation2 + $0xbc] sm:$0x1] %v444_v12  ;;  %v1608_v32 = vshll.u32 %v1311_v48, 16 }
 0x126   : > { %v1171_v61 = vpop.permute.xlu1 %1170  ;;  %1053 = vrot.lane.b32.xlu0 %v8312_v21, %s7694_s13  ;;  %v1612_v22 = vshrl.u32 %v1311_v48, 16 }
 0x127   : > { %1256 = vst.msk [vmem:[#allocation4 + $0x2c] sm:$0xf] %vm10925_vm5, %v1171_v61  ;;  %vm8682_vm5 = vmand %vm10926_vm1, %vm10943_vm0  ;;  %v1580_v61 = vrot.slane %v1578_v41, 5  ;;  %v1610_v40 = vrot.slane %v1608_v32, 5  ;;  %vm10946_vm0 = vcmask 585216  }
 0x128   : > { %1051 = vrot.lane.b32.xlu1 %v8167_v54, %s7694_s13  ;;  %v3191_v54 = vsel %vm8663_vm4, 0, %v3190_v35  ;;  %v1739_v13 = vpop.permute.xlu0 %1738  ;;  %v3243_v26 = vsel %vm8682_vm5, 0, %v3242_v18  ;;  %v3240_v44 = vsel %vm8682_vm5, 0, %v3239_v4  ;;  %v1614_v41 = vrot.slane %v1612_v22, 4  ;;  %vm10947_vm1 = vmmov %vm10946_vm0 }
 0x129   : > { %3192 = vst [vmem:[#allocation3 + $0xc] sm:$0x1] %v3191_v54  ;;  %1825 = vst.msk [vmem:[#allocation4 + $0x28] sm:$0xf] %vm1814_vm9, %v1739_v13  ;;  %v8722_v5 = vld [vmem:[#allocation2 + $0xb4] sm:$0xf]  ;;  %v1581_v50 = vor.u32 %v1580_v61, %v1577_v39  ;;  %v1591_v13 = vor.u32 %v1590_v58, %v1586_v62 }
 0x12a   : > { %v1737_v57 = vpop.permute.xlu1 %1736  ;;  %1180 = vrot.lane.b32.xlu0 %v8312_v21, %s7695_s14  ;;  %3244 = vst [vmem:[#allocation3 + $0x20] sm:$0x1] %v3243_v26  ;;  %v441_v21 = vsel %vm7850_vm8, %v7856_v19, %v440_v8  ;;  %3241 = vst [vmem:[#allocation3 + $0x14] sm:$0x1] %v3240_v44  ;;  %v8727_v52 = vld [vmem:[#allocation2 + $0xb8] sm:$0xf]  ;;  %v1615_v39 = vor.u32 %v1614_v41, %v1610_v40 }
 0x12b   : > { %1824 = vst.msk [vmem:[#allocation4 + $0x24] sm:$0xf] %vm1814_vm9, %v1737_v57  ;;  %442 = vst [vmem:[#allocation2 + $0xb0] sm:$0x1] %v441_v21  ;;  %v1599_v57 = vshrl.u32 %v1310_v28, 16  ;;  %v1582_v27 = vrot.slane %v1581_v50, 4 }
 0x12c   : > { %1055 = vrot.lane.b32.xlu1 %v8310_v55, %s7694_s13  ;;  %v1888_v49 = vpop.permute.xlu0 %1887  ;;  %983 = vst.msk [vmem:[#allocation4 + $0x78] sm:$0xf] %vm319_vm3, %v8722_v5  ;;  %984 = vst.msk [vmem:[#allocation4 + $0x7c] sm:$0xf] %vm319_vm3, %v8727_v52  ;;  %v737_v4 = vrot.slane %v8673_v29, 4 }
 0x12d   : > { %1976 = vst.msk [vmem:[#allocation4 + $0x20] sm:$0xf] %vm1967_vm10, %v1888_v49  ;;  %v1601_v16 = vrot.slane %v1599_v57, 4  ;;  %v8753_v49 = vsel %vm7915_vm11, %v1582_v27, %v1586_v62  ;;  %v1312_v44 = vld [vmem:[#allocation2 + $0x8c] sm:$0x1] }
 0x12e   : > { %v1741_v30 = vpop.permute.xlu1 %1740  ;;  %1184 = vrot.lane.b32.xlu0 %v8334_v20, %s7695_s14  ;;  %v1618_v61 = vshll.u32 %v1312_v44, 16  ;;  %v2187_v27 = vld [vmem:[#allocation2 + $0x88] sm:$0xf] }
 0x12f   : > { %1826 = vst.msk [vmem:[#allocation4 + $0x2c] sm:$0xf] %vm1814_vm9, %v1741_v30  ;;  %v1605_v45 = vor.u32 %v1604_v24, %v1601_v16  ;;  %v2186_v24 = vld [vmem:[#allocation2 + $0x84] sm:$0xe] }
 0x130   : > { %1182 = vrot.lane.b32.xlu1 %v8310_v55, %s7695_s14  ;;  %v1892_v47 = vpop.permute.xlu0 %1891  ;;  %v1309_v55 = vld [vmem:[#allocation2 + $0x80] sm:$0x1]  ;;  %v1620_v62 = vrot.slane %v1618_v61, 5  ;;  %v6880_v41 = vrot.slane %v2186_v24, 9 }
 0x131   : > { %1978 = vst.msk [vmem:[#allocation4 + $0x28] sm:$0xf] %vm1967_vm10, %v1892_v47  ;;  %v1594_v18 = vshll.u32 %v1309_v55, 16  ;;  %v1606_v28 = vrot.slane %v1605_v45, 4  ;;  %v1616_v55 = vrot.slane %v1615_v39, 4 }
 0x132   : > { %v1890_v11 = vpop.permute.xlu1 %1889  ;;  %1750 = vrot.lane.b32.xlu0 %v8549_v46, %s7696_s15  ;;  %v900_v54 = vld [vmem:[#allocation2 + $0xb0] sm:$0x1] }
 0x133   : > { %1977 = vst.msk [vmem:[#allocation4 + $0x24] sm:$0xf] %vm1967_vm10, %v1890_v11  ;;  %v901_v38 = vsel %vm7766_vm2, %v720_v60, %v900_v54  ;;  %v1596_v30 = vrot.slane %v1594_v18, 5  ;;  %v907_v11 = vld [vmem:[#allocation2 + $0xbc] sm:$0x1]  ;;  %v8775_v48 = vsel %vm7915_vm11, %v1606_v28, %v1610_v40 }
 0x134   : > { %1186 = vrot.lane.b32.xlu1 %v8332_v53, %s7695_s14  ;;  %v2041_v46 = vpop.permute.xlu0 %2040  ;;  %902 = vst [vmem:[#allocation2 + $0xb0] sm:$0x1] %v901_v38  ;;  %v2184_v54 = vld [vmem:[#allocation2 + $0x7c] sm:$0xf]  ;;  %v2188_v40 = vld [vmem:[#allocation2 + $0x8c] sm:$0x1] }
 0x135   : > { %2129 = vst.msk [vmem:[#allocation4 + $0x20] sm:$0xf] %vm2120_vm12, %v2041_v46  ;;  %v2183_v46 = vld [vmem:[#allocation2 + $0x78] sm:$0xe]  ;;  %v2330_v38 = vrot.slane %v2184_v54, 5 }
 0x136   : > { %v1894_v35 = vpop.permute.xlu1 %1893  ;;  %1754 = vrot.lane.b32.xlu0 %v8571_v23, %s7696_s15  ;;  %v6879_v18 = vrot.slane %v2183_v46, 9  ;;  %v3199_v46 = vld [vmem:[#allocation3 + $0x30] sm:$0x1] }
 0x137   : > { %1979 = vst.msk [vmem:[#allocation4 + $0x2c] sm:$0xf] %vm1967_vm10, %v1894_v35  ;;  %v8783_v35 = vsel %vm7915_vm11, %v1616_v55, %v1620_v62 }
 0x138   : > { %1752 = vrot.lane.b32.xlu1 %v8559_v6, %s7696_s15  ;;  %v2045_v8 = vpop.permute.xlu0 %2044  ;;  %v1592_v6 = vrot.slane %v1591_v13, 4  ;;  %v2185_v13 = vld [vmem:[#allocation2 + $0x80] sm:$0x1] }
 0x139   : > { %2131 = vst.msk [vmem:[#allocation4 + $0x28] sm:$0xf] %vm2120_vm12, %v2045_v8  ;;  %v2333_v32 = vrot.slane %v2185_v13, 5  ;;  %v2337_v8 = vrot.slane %v2187_v27, 5  ;;  %v3200_v13 = vsel %vm8663_vm4, 0, %v3199_v46 }
 0x13a   : > { %v2043_v26 = vpop.permute.xlu1 %2042  ;;  %1903 = vrot.lane.b32.xlu0 %v8571_v23, %s7697_s16  ;;  %v908_v23 = vsel %vm7766_vm2, %v737_v4, %v907_v11  ;;  %v8763_v29 = vsel %vm7915_vm11, %v1592_v6, %v1596_v30  ;;  %v479_v11 = vld [vmem:[%s7787_s12 + $0x78] sm:$0xf]  ;;  %3201 = vst [vmem:[#allocation3 + $0x30] sm:$0x1] %v3200_v13 }
 0x13b   : > { %2130 = vst.msk [vmem:[#allocation4 + $0x24] sm:$0xf] %vm2120_vm12, %v2043_v26  ;;  %909 = vst [vmem:[#allocation2 + $0xbc] sm:$0x1] %v908_v23  ;;  %v8807_v26 = vsel %vm7997_vm14, %v6879_v18, %v2330_v38  ;;  %v2339_v45 = vrot.slane %v2337_v8, 4  ;;  %v739_v28 = vshrl.u32 %v479_v11, 16 }
 0x13c   : > { %1756 = vrot.lane.b32.xlu1 %v8579_v33, %s7696_s15  ;;  %v2387_v37 = vpop.permute.xlu0 %2386  ;;  %v480_v23 = vld [vmem:[%s7787_s12 + $0x7c] sm:$0xf] }
 0x13d   : > { %2475 = vst.msk [vmem:[#allocation4 + $0x20] sm:$0xf] %vm2466_vm13, %v2387_v37  ;;  %v2340_v37 = vrot.slane %v2188_v40, 5  ;;  %v741_v62 = vrot.slane %v739_v28, 7  ;;  %v446_v40 = vld [vmem:[#allocation2 + $0xc8] sm:$0x1] }
 0x13e   : > { %v2047_v21 = vpop.permute.xlu1 %2046  ;;  %1907 = vrot.lane.b32.xlu0 %v8753_v49, %s7697_s16 }
 0x13f   : > { %2132 = vst.msk [vmem:[#allocation4 + $0x2c] sm:$0xf] %vm2120_vm12, %v2047_v21  ;;  %v7680_v21 = vld [vmem:[%s10912_s1] sm:$0x1]  ;;  %v745_v54 = vrot.slane %v741_v62, 4 }
 0x140   : > { %1905 = vrot.lane.b32.xlu1 %v8579_v33, %s7697_s16  ;;  %v2391_v33 = vpop.permute.xlu0 %2390 }
 0x141   : > { %2477 = vst.msk [vmem:[#allocation4 + $0x28] sm:$0xf] %vm2466_vm13, %v2391_v33  ;;  %v747_v33 = vshrl.u32 %v480_v23, 16 }
 0x142   : > { %v2389_v47 = vpop.permute.xlu1 %2388  ;;  %2056 = vrot.lane.b32.xlu0 %v8753_v49, %s7698_s17 }
 0x143   : > { %2476 = vst.msk [vmem:[#allocation4 + $0x24] sm:$0xf] %vm2466_vm13, %v2389_v47  ;;  %v8835_v47 = vsel %vm7997_vm14, %v6880_v41, %v2337_v8  ;;  %v3245_v8 = vld [vmem:[#allocation3 + $0x2c] sm:$0x1] }
 0x144   : > { %1909 = vrot.lane.b32.xlu1 %v8763_v29, %s7697_s16  ;;  %v2526_v60 = vpop.permute.xlu0 %2525 }
 0x145   : > { %2614 = vst.msk [vmem:[#allocation4 + $0x20] sm:$0xf] %vm10927_vm15, %v2526_v60  ;;  %v8842_v60 = vrot.slane %v747_v33, 7 }
 0x146   : > { %v2393_v58 = vpop.permute.xlu1 %2392  ;;  %2060 = vrot.lane.b32.xlu0 %v8775_v48, %s7698_s17 }
 0x147   : > { %2478 = vst.msk [vmem:[#allocation4 + $0x2c] sm:$0xf] %vm2466_vm13, %v2393_v58  ;;  %v742_v58 = vshll.u32 %v479_v11, 16  ;;  %v754_v33 = vrot.slane %v8842_v60, 4 }
 0x148   : > { %2058 = vrot.lane.b32.xlu1 %v8763_v29, %s7698_s17  ;;  %v2530_v57 = vpop.permute.xlu0 %2529 }
 0x149   : > { %2616 = vst.msk [vmem:[#allocation4 + $0x28] sm:$0xf] %vm10927_vm15, %v2530_v57  ;;  %v750_v57 = vshll.u32 %v480_v23, 16 }
 0x14a   : > { %v2528_v50 = vpop.permute.xlu1 %2527  ;;  %2402 = vrot.lane.b32.xlu0 %v8603_v56, %s7699_s18 }
 0x14b   : > { %2615 = vst.msk [vmem:[#allocation4 + $0x24] sm:$0xf] %vm10927_vm15, %v2528_v50  ;;  %v8846_v50 = vsel %vm7997_vm14, %v2339_v45, %v2340_v37 }
 0x14c   : > { %2062 = vrot.lane.b32.xlu1 %v8783_v35, %s7698_s17  ;;  %v2665_v7 = vpop.permute.xlu0 %2664 }
 0x14d   : > { %2753 = vst.msk [vmem:[#allocation4 + $0x20] sm:$0xf] %vm10946_vm0, %v2665_v7 }
 0x14e   : > { %v2532_v17 = vpop.permute.xlu1 %2531  ;;  %2406 = vrot.lane.b32.xlu0 %v8629_v25, %s7699_s18 }
 0x14f   : > { %2617 = vst.msk [vmem:[#allocation4 + $0x2c] sm:$0xf] %vm10927_vm15, %v2532_v17  ;;  %vm10948_vm15 = vmmov %vm10946_vm0 }
 0x150   : > { %2404 = vrot.lane.b32.xlu1 %v8611_v9, %s7699_s18  ;;  %v2669_v56 = vpop.permute.xlu0 %2668  ;;  %v2332_v9 = vrot.slane %v2330_v38, 4  ;;  %v752_v38 = vor.u32 %v750_v57, %v8842_v60 }
 0x151   : > { %2755 = vst.msk [vmem:[#allocation4 + $0x28] sm:$0xf] %vm10948_vm15, %v2669_v56 }
 0x152   : > { %v2667_v12 = vpop.permute.xlu1 %2666  ;;  %2541 = vrot.lane.b32.xlu0 %v8629_v25, %s7700_s21  ;;  %v8815_v25 = vsel %vm7997_vm14, %v2332_v9, %v2333_v32  ;;  %v753_v56 = vsel %vm7807_vm7, %v745_v54, %v752_v38 }
 0x153   : > { %2754 = vst.msk [vmem:[#allocation4 + $0x24] sm:$0xf] %vm10947_vm1, %v2667_v12  ;;  %vm10949_vm1 = vcmask 257216   ;;  %v744_v12 = vor.u32 %v742_v58, %v741_v62  ;;  %v1317_v58 = vld [vmem:[#allocation2 + $0xa0] sm:$0xf] }
 0x154   : > { %2408 = vrot.lane.b32.xlu1 %v8638_v2, %s7699_s18  ;;  %v1042_v16 = vpop.permute.xlu0 %1041  ;;  %vm10950_vm15 = vmmov %vm10949_vm1  ;;  %913 = vst.msk [vmem:[#allocation2 + $0xc4] sm:$0xf] %vm319_vm3, %v753_v56  ;;  %v1656_v38 = vshll.u32 %v1317_v58, 16 }
 0x155   : > { %1126 = vst.msk [vmem:[#allocation4 + $0x30] sm:$0xf] %vm10949_vm1, %v1042_v16 }
 0x156   : > { %v2671_v22 = vpop.permute.xlu1 %2670  ;;  %2545 = vrot.lane.b32.xlu0 %v8807_v26, %s7700_s21 }
 0x157   : > { %2756 = vst.msk [vmem:[#allocation4 + $0x2c] sm:$0xf] %vm10946_vm0, %v2671_v22  ;;  %vm10951_vm0 = vcmask 588800   ;;  %v3196_v22 = vld [vmem:[#allocation3 + $0x24] sm:$0x1] }
 0x158   : > { %2543 = vrot.lane.b32.xlu1 %v8638_v2, %s7700_s21  ;;  %v1046_v4 = vpop.permute.xlu0 %1045  ;;  %v377_v2 = vld [vmem:[#allocation2 + $0xc0] sm:$0x1]  ;;  %v3197_v16 = vsel %vm8663_vm4, 0, %v3196_v22  ;;  %v1658_v22 = vrot.slane %v1656_v38, 5  ;;  %v2194_v38 = vld [vmem:[#allocation2 + $0xa4] sm:$0x1] }
 0x159   : > { %1128 = vst.msk [vmem:[#allocation4 + $0x38] sm:$0xf] %vm10949_vm1, %v1046_v4  ;;  %v378_v44 = vsel %vm7766_vm2, %v7680_v21, %v377_v2  ;;  %3198 = vst [vmem:[#allocation3 + $0x24] sm:$0x1] %v3197_v16  ;;  %v1314_v4 = vld [vmem:[#allocation2 + $0x94] sm:$0xf] }
 0x15a   : > { %v1044_v6 = vpop.permute.xlu1 %1043  ;;  %v7595_v30 = vld [vmem:[#allocation4 + $0x20] sm:$0xff]   ;;  %2680 = vrot.lane.b32.xlu0 %v8807_v26, %s7701_s26  ;;  %379 = vst [vmem:[#allocation2 + $0xc0] sm:$0x1] %v378_v44  ;;  %v447_v44 = vsel %vm7850_vm8, %v7856_v19, %v446_v40  ;;  %v1636_v37 = vshrl.u32 %v1314_v4, 16  ;;  %v1316_v19 = vld [vmem:[#allocation2 + $0x9c] sm:$0xf] }
 0x15b   : > { %1127 = vst.msk [vmem:[#allocation4 + $0x34] sm:$0xf] %vm10950_vm15, %v1044_v6  ;;  %7459 = vmatprep.mubr.msk.bf16.mxu0 %vm10951_vm0, %v7595_v30  ;;  %vm10952_vm15 = vmmov %vm10949_vm1  ;;  %vm10953_vm1 = vcmask 454016   ;;  %v1313_v30 = vld [vmem:[#allocation2 + $0x90] sm:$0xf]  ;;  %v1647_v57 = vshrl.u32 %v1316_v19, 16 }
 0x15c   : > { %2547 = vrot.lane.b32.xlu1 %v8815_v25, %s7700_s21  ;;  %v1173_v55 = vpop.permute.xlu0 %1172  ;;  %v1623_v2 = vshrl.u32 %v1313_v30, 16  ;;  %v1626_v21 = vshll.u32 %v1313_v30, 16  ;;  %448 = vst [vmem:[#allocation2 + $0xc8] sm:$0x1] %v447_v44  ;;  %v1638_v28 = vrot.slane %v1636_v37, 4 }
 0x15d   : > { %1257 = vst.msk [vmem:[#allocation4 + $0x30] sm:$0xf] %vm10953_vm1, %v1173_v55  ;;  %v1649_v56 = vrot.slane %v1647_v57, 4 }
 0x15e   : > { %v1048_v39 = vpop.permute.xlu1 %1047  ;;  %v7596_v61 = vld [vmem:[#allocation4 + $0x28] sm:$0xff]   ;;  %2684 = vrot.lane.b32.xlu0 %v8835_v47, %s7701_s26  ;;  %v1625_v23 = vrot.slane %v1623_v2, 4 }
 0x15f   : > { %1129 = vst.msk [vmem:[#allocation4 + $0x3c] sm:$0xf] %vm10952_vm15, %v1048_v39  ;;  %7460 = vmatmul.mubr.msk.bf16.gmra.mxu0 %vm10951_vm0, %v7596_v61  ;;  %vm10954_vm15 = vmmov %vm10953_vm1  ;;  %v1628_v39 = vrot.slane %v1626_v21, 5  ;;  %v7603_v21 = vld [vmem:[%s10915_s4 + $0x80] sm:$0xff]  }
 0x160   : > { %2682 = vrot.lane.b32.xlu1 %v8815_v25, %s7701_s26  ;;  %v1177_v7 = vpop.permute.xlu0 %1176  ;;  %vm10955_vm0 = vmmov %vm10953_vm1 }
 0x161   : > { %1259 = vst.msk [vmem:[#allocation4 + $0x38] sm:$0xf] %vm10955_vm0, %v1177_v7  ;;  %v910_v18 = vld [vmem:[#allocation2 + $0xc0] sm:$0xf]  ;;  %vm10956_vm1 = vmmov %vm10955_vm0  ;;  %v1629_v62 = vor.u32 %v1628_v39, %v1625_v23 }
 0x162   : > { %v1175_v17 = vpop.permute.xlu1 %1174  ;;  %1057 = vrot.lane.b32.xlu0 %v8334_v20, %s7694_s13  ;;  %v911_v9 = vsel %vm7797_vm6, %v744_v12, %v910_v18  ;;  %v3248_v20 = vld [vmem:[#allocation3 + $0x38] sm:$0x1]  ;;  %v1660_v12 = vshrl.u32 %v1317_v58, 16 }
 0x163   : > { %1258 = vst.msk [vmem:[#allocation4 + $0x34] sm:$0xf] %vm10954_vm15, %v1175_v17  ;;  %912 = vst [vmem:[#allocation2 + $0xc0] sm:$0xf] %v911_v9  ;;  %v3249_v34 = vsel %vm8682_vm5, 0, %v3248_v20  ;;  %v1650_v17 = vshll.u32 %v1316_v19, 16 }
 0x164   : > { %2686 = vrot.lane.b32.xlu1 %v8846_v50, %s7701_s26  ;;  %v1743_v27 = vpop.permute.xlu0 %1742  ;;  %3250 = vst [vmem:[#allocation3 + $0x38] sm:$0x1] %v3249_v34  ;;  %v914_v54 = vld [vmem:[#allocation2 + $0xc8] sm:$0x1]  ;;  %v1630_v18 = vrot.slane %v1629_v62, 4  ;;  %vm10961_vm15 = vcmask 585216  }
 0x165   : > { %1827 = vst.msk [vmem:[#allocation4 + $0x30] sm:$0xf] %vm1814_vm9, %v1743_v27  ;;  %v915_v46 = vsel %vm7766_vm2, %v754_v33, %v914_v54  ;;  %v1652_v9 = vrot.slane %v1650_v17, 5  ;;  %v1662_v27 = vrot.slane %v1660_v12, 4  ;;  %v1318_v34 = vld [vmem:[#allocation2 + $0xa4] sm:$0x1]  ;;  %vm10962_vm0 = vmmov %vm10961_vm15 }
 0x166   : > { %v1179_v32 = vpop.permute.xlu1 %1178  ;;  %1061 = vrot.lane.b32.xlu0 %v8496_v31, %s7694_s13  ;;  %916 = vst [vmem:[#allocation2 + $0xc8] sm:$0x1] %v915_v46  ;;  %v1666_v30 = vshll.u32 %v1318_v34, 16  ;;  %vm10957_vm2 = vcmask 388416   ;;  %v2191_v33 = vld [vmem:[#allocation2 + $0x98] sm:$0x1] }
 0x167   : > { %1260 = vst.msk [vmem:[#allocation4 + $0x3c] sm:$0xf] %vm10956_vm1, %v1179_v32  ;;  %vm10958_vm3 = vmmov %vm10957_vm2  ;;  %v2347_v62 = vrot.slane %v2191_v33, 5  ;;  %v2193_v17 = vld [vmem:[#allocation2 + $0xa0] sm:$0xf] }
 0x168   : > { %1059 = vrot.lane.b32.xlu1 %v8332_v53, %s7694_s13  ;;  %v1747_v6 = vpop.permute.xlu0 %1746  ;;  %v3246_v53 = vsel %vm8682_vm5, 0, %v3245_v8  ;;  %v1668_v2 = vrot.slane %v1666_v30, 5  ;;  %vm10959_vm6 = vmmov %vm10957_vm2  ;;  %v2351_v46 = vrot.slane %v2193_v17, 5 }
 0x169   : > { %1829 = vst.msk [vmem:[#allocation4 + $0x38] sm:$0xf] %vm1814_vm9, %v1747_v6  ;;  %3247 = vst [vmem:[#allocation3 + $0x2c] sm:$0x1] %v3246_v53  ;;  %v1663_v6 = vor.u32 %v1662_v27, %v1658_v22  ;;  %v7602_v53 = vld [vmem:[%s10915_s4 + $0x88] sm:$0xff]  }
 0x16a   : > { %v1745_v24 = vpop.permute.xlu1 %1744  ;;  %1188 = vrot.lane.b32.xlu0 %v8496_v31, %s7695_s14  ;;  %v1632_v31 = vshll.u32 %v1314_v4, 16  ;;  %7483 = vmatprep.subr.bf16.mxu0 %v7602_v53  ;;  %vm10960_vm8 = vmmov %vm10957_vm2 }
 0x16b   : > { %1828 = vst.msk [vmem:[#allocation4 + $0x34] sm:$0xf] %vm1814_vm9, %v1745_v24  ;;  %v1653_v24 = vor.u32 %v1652_v9, %v1649_v56  ;;  %7484 = vmatpush3.bf16.msra.mxu0 %v7602_v53  ;;  %v1664_v4 = vrot.slane %v1663_v6, 4  ;;  %vm10963_vm1 = vmmov %vm10962_vm0 }
 0x16c   : > { %1063 = vrot.lane.b32.xlu1 %v8494_v63, %s7694_s13  ;;  %v1896_v45 = vpop.permute.xlu0 %1895  ;;  %v1634_v61 = vrot.slane %v1632_v31, 5  ;;  %7485 = vmatprep.subr.bf16.mxu0 %v7603_v21 }
 0x16d   : > { %1980 = vst.msk [vmem:[#allocation4 + $0x30] sm:$0xf] %vm1967_vm10, %v1896_v45  ;;  %v8948_v37 = vsel %vm7915_vm11, %v1664_v4, %v1668_v2 }
 0x16e   : > { %v1749_v41 = vpop.permute.xlu1 %1748  ;;  %1192 = vrot.lane.b32.xlu0 %v8518_v59, %s7695_s14  ;;  %v8914_v20 = vsel %vm7915_vm11, %v1630_v18, %v1634_v61  ;;  %v2354_v18 = vrot.slane %v2194_v38, 5  ;;  %v3712_v38 = vld [vmem:[#allocation3 + $0x18] sm:$0xf] }
 0x16f   : > { %1830 = vst.msk [vmem:[#allocation4 + $0x3c] sm:$0xf] %vm1814_vm9, %v1749_v41  ;;  %v1654_v41 = vrot.slane %v1653_v24, 4  ;;  %7486 = vmatpush3.bf16.msra.mxu0 %v7603_v21  ;;  %v3205_v24 = vld [vmem:[#allocation3 + $0x48] sm:$0x1] }
 0x170   : > { %1190 = vrot.lane.b32.xlu1 %v8494_v63, %s7695_s14  ;;  %v1900_v15 = vpop.permute.xlu0 %1899  ;;  %v1315_v63 = vld [vmem:[#allocation2 + $0x98] sm:$0x1]  ;;  %v3206_v6 = vsel %vm8663_vm4, 0, %v3205_v24 }
 0x171   : > { %1982 = vst.msk [vmem:[#allocation4 + $0x38] sm:$0xf] %vm1967_vm10, %v1900_v15  ;;  %v1642_v60 = vshll.u32 %v1315_v63, 16  ;;  %v8940_v45 = vsel %vm7915_vm11, %v1654_v41, %v1658_v22  ;;  %v2190_v15 = vld [vmem:[#allocation2 + $0x94] sm:$0xf] }
 0x172   : > { %v1898_v11 = vpop.permute.xlu1 %1897  ;;  %1758 = vrot.lane.b32.xlu0 %v8753_v49, %s7696_s15  ;;  %v1639_v49 = vor.u32 %v1638_v28, %v1634_v61  ;;  %v2189_v63 = vld [vmem:[#allocation2 + $0x90] sm:$0xe]  ;;  %v2344_v61 = vrot.slane %v2190_v15, 5  ;;  %3207 = vst [vmem:[#allocation3 + $0x48] sm:$0x1] %v3206_v6 }
 0x173   : > { %1981 = vst.msk [vmem:[#allocation4 + $0x34] sm:$0xf] %vm1967_vm10, %v1898_v11  ;;  %v1644_v32 = vrot.slane %v1642_v60, 5  ;;  %v3202_v41 = vld [vmem:[#allocation3 + $0x3c] sm:$0x1] }
 0x174   : > { %1194 = vrot.lane.b32.xlu1 %v8516_v51, %s7695_s14  ;;  %v2049_v7 = vpop.permute.xlu0 %2048  ;;  %v3203_v21 = vsel %vm8663_vm4, 0, %v3202_v41  ;;  %v3716_v41 = vld [vmem:[#allocation3 + $0x20] sm:$0x1] }
 0x175   : > { %2133 = vst.msk [vmem:[#allocation4 + $0x30] sm:$0xf] %vm2120_vm12, %v2049_v7  ;;  %v2192_v7 = vld [vmem:[#allocation2 + $0x9c] sm:$0xe]  ;;  %3204 = vst [vmem:[#allocation3 + $0x3c] sm:$0x1] %v3203_v21 }
 0x176   : > { %v1902_v55 = vpop.permute.xlu1 %1901  ;;  %1762 = vrot.lane.b32.xlu0 %v8775_v48, %s7696_s15  ;;  %v6882_v12 = vrot.slane %v2192_v7, 9  ;;  %v1322_v21 = vld [vmem:[#allocation2 + $0xb4] sm:$0xf] }
 0x177   : > { %1983 = vst.msk [vmem:[#allocation4 + $0x3c] sm:$0xf] %vm1967_vm10, %v1902_v55  ;;  %v6881_v55 = vrot.slane %v2189_v63, 9 }
 0x178   : > { %1760 = vrot.lane.b32.xlu1 %v8763_v29, %s7696_s15  ;;  %v2053_v3 = vpop.permute.xlu0 %2052  ;;  %v1640_v29 = vrot.slane %v1639_v49, 4 }
 0x179   : > { %2135 = vst.msk [vmem:[#allocation4 + $0x38] sm:$0xf] %vm2120_vm12, %v2053_v3  ;;  %v8972_v57 = vsel %vm7997_vm14, %v6881_v55, %v2344_v61  ;;  %v8993_v3 = vsel %vm7997_vm14, %v6882_v12, %v2351_v46 }
 0x17a   : > { %v2051_v13 = vpop.permute.xlu1 %2050  ;;  %1911 = vrot.lane.b32.xlu0 %v8775_v48, %s7697_s16  ;;  %v8922_v48 = vsel %vm7915_vm11, %v1640_v29, %v1644_v32  ;;  %v7702_v32 = vmov 0  }
 0x17b   : > { %2134 = vst.msk [vmem:[#allocation4 + $0x34] sm:$0xf] %vm2120_vm12, %v2051_v13 }
 0x17c   : > { %1764 = vrot.lane.b32.xlu1 %v8783_v35, %s7696_s15  ;;  %v2395_v8 = vpop.permute.xlu0 %2394 }
 0x17d   : > { %2479 = vst.msk [vmem:[#allocation4 + $0x30] sm:$0xf] %vm2466_vm13, %v2395_v8 }
 0x17e   : > { %v2055_v16 = vpop.permute.xlu1 %2054  ;;  %1915 = vrot.lane.b32.xlu0 %v8914_v20, %s7697_s16 }
 0x17f   : > { %2136 = vst.msk [vmem:[#allocation4 + $0x3c] sm:$0xf] %vm2120_vm12, %v2055_v16  ;;  %v9015_v16 = vld [vmem:[%s10914_s3] ss:$0 sm:$0xff] }
 0x180   : > { %1913 = vrot.lane.b32.xlu1 %v8783_v35, %s7697_s16  ;;  %v2399_v35 = vpop.permute.xlu0 %2398 }
 0x181   : > { %2481 = vst.msk [vmem:[#allocation4 + $0x38] sm:$0xf] %vm2466_vm13, %v2399_v35 }
 0x182   : > { %v2397_v40 = vpop.permute.xlu1 %2396  ;;  %2064 = vrot.lane.b32.xlu0 %v8914_v20, %s7698_s17 }
 0x183   : > { %2480 = vst.msk [vmem:[#allocation4 + $0x34] sm:$0xf] %vm2466_vm13, %v2397_v40 }
 0x184   : > { %1917 = vrot.lane.b32.xlu1 %v8922_v48, %s7697_s16  ;;  %v2534_v31 = vpop.permute.xlu0 %2533 }
 0x185   : > { %2618 = vst.msk [vmem:[#allocation4 + $0x30] sm:$0xf] %vm10957_vm2, %v2534_v31  ;;  %vm10964_vm2 = vmmov %vm10962_vm0 }
 0x186   : > { %v2401_v44 = vpop.permute.xlu1 %2400  ;;  %2068 = vrot.lane.b32.xlu0 %v8940_v45, %s7698_s17 }
 0x187   : > { %2482 = vst.msk [vmem:[#allocation4 + $0x3c] sm:$0xf] %vm2466_vm13, %v2401_v44 }
 0x188   : > { %2066 = vrot.lane.b32.xlu1 %v8922_v48, %s7698_s17  ;;  %v2538_v23 = vpop.permute.xlu0 %2537 }
 0x189   : > { %2620 = vst.msk [vmem:[#allocation4 + $0x38] sm:$0xf] %vm10959_vm6, %v2538_v23 }
 0x18a   : > { %v2536_v11 = vpop.permute.xlu1 %2535  ;;  %2410 = vrot.lane.b32.xlu0 %v8807_v26, %s7699_s18 }
 0x18b   : > { %2619 = vst.msk [vmem:[#allocation4 + $0x34] sm:$0xf] %vm10958_vm3, %v2536_v11  ;;  %vm10965_vm3 = vcmask 257216  }
 0x18c   : > { %2070 = vrot.lane.b32.xlu1 %v8948_v37, %s7698_s17  ;;  %v2673_v19 = vpop.permute.xlu0 %2672  ;;  %vm10966_vm6 = vmmov %vm10965_vm3 }
 0x18d   : > { %2757 = vst.msk [vmem:[#allocation4 + $0x30] sm:$0xf] %vm10961_vm15, %v2673_v19  ;;  %vm10968_vm15 = vmmov %vm10965_vm3 }
 0x18e   : > { %v2540_v39 = vpop.permute.xlu1 %2539  ;;  %2414 = vrot.lane.b32.xlu0 %v8835_v47, %s7699_s18 }
 0x18f   : > { %2621 = vst.msk [vmem:[#allocation4 + $0x3c] sm:$0xf] %vm10960_vm8, %v2540_v39  ;;  %vm10967_vm8 = vcmask 588800   ;;  %v1319_v39 = vld [vmem:[#allocation2 + $0xa8] sm:$0xf] }
 0x190   : > { %2412 = vrot.lane.b32.xlu1 %v8815_v25, %s7699_s18  ;;  %v2677_v26 = vpop.permute.xlu0 %2676  ;;  %v2346_v25 = vrot.slane %v2344_v61, 4 }
 0x191   : > { %2759 = vst.msk [vmem:[#allocation4 + $0x38] sm:$0xf] %vm10963_vm1, %v2677_v26  ;;  %vm3178_vm1 = vcmask 257024   ;;  %v1320_v26 = vld [vmem:[#allocation2 + $0xac] sm:$0xf] }
 0x192   : > { %v2675_v28 = vpop.permute.xlu1 %2674  ;;  %2549 = vrot.lane.b32.xlu0 %v8835_v47, %s7700_s21  ;;  %v8980_v47 = vsel %vm7997_vm14, %v2346_v25, %v2347_v62  ;;  %3180 = vst.msk [vmem:[#allocation3 + $0x4] sm:$0xf] %vm3178_vm1, %v7702_v32  ;;  %3184 = vst.msk [vmem:[#allocation3 + $0xcc] sm:$0xf] %vm3178_vm1, %v7702_v32  ;;  %v1671_v62 = vshrl.u32 %v1319_v39, 16 }
 0x193   : > { %2758 = vst.msk [vmem:[#allocation4 + $0x34] sm:$0xf] %vm10962_vm0, %v2675_v28  ;;  %vm10969_vm0 = vmmov %vm10965_vm3 }
 0x194   : > { %2416 = vrot.lane.b32.xlu1 %v8846_v50, %s7699_s18  ;;  %v1050_v54 = vpop.permute.xlu0 %1049  ;;  %3185 = vst.msk [vmem:[#allocation3 + $0xd0] sm:$0xf] %vm3178_vm1, %v7702_v32  ;;  %3179 = vst.msk [vmem:[#allocation3] sm:$0xf] %vm3178_vm1, %v7702_v32  ;;  %v1673_v24 = vrot.slane %v1671_v62, 4 }
 0x195   : > { %1130 = vst.msk [vmem:[#allocation4 + $0x40] sm:$0xf] %vm10965_vm3, %v1050_v54  ;;  %vm10971_vm3 = vcmask 454016  }
 0x196   : > { %v2679_v58 = vpop.permute.xlu1 %2678  ;;  %2553 = vrot.lane.b32.xlu0 %v8972_v57, %s7700_s21 }
 0x197   : > { %2760 = vst.msk [vmem:[#allocation4 + $0x3c] sm:$0xf] %vm10964_vm2, %v2679_v58  ;;  %vm10970_vm2 = vmmov %vm10967_vm8  ;;  %v1674_v58 = vshll.u32 %v1319_v39, 16 }
 0x198   : > { %2551 = vrot.lane.b32.xlu1 %v8846_v50, %s7700_s21  ;;  %v1054_v13 = vpop.permute.xlu0 %1053  ;;  %v2353_v50 = vrot.slane %v2351_v46, 4 }
 0x199   : > { %1132 = vst.msk [vmem:[#allocation4 + $0x48] sm:$0xf] %vm10968_vm15, %v1054_v13  ;;  %vm10974_vm15 = vmmov %vm10971_vm3 }
 0x19a   : > { %v1052_v49 = vpop.permute.xlu1 %1051  ;;  %v7597_v60 = vld [vmem:[#allocation4 + $0x30] sm:$0xff]   ;;  %2688 = vrot.lane.b32.xlu0 %v8972_v57, %s7701_s26  ;;  %v9008_v22 = vsel %vm7997_vm14, %v2353_v50, %v2354_v18  ;;  %v1680_v50 = vshll.u32 %v1320_v26, 16  ;;  %v1684_v18 = vshrl.u32 %v1320_v26, 16 }
 0x19b   : > { %1131 = vst.msk [vmem:[#allocation4 + $0x44] sm:$0xf] %vm10966_vm6, %v1052_v49  ;;  %7463 = vmatprep.mubr.msk.bf16.mxu0 %vm10967_vm8, %v7597_v60  ;;  %vm10972_vm6 = vcmask 253952  }
 0x19c   : > { %2555 = vrot.lane.b32.xlu1 %v8980_v47, %s7700_s21  ;;  %v1181_v29 = vpop.permute.xlu0 %1180  ;;  %3182 = vst.msk [vmem:[#allocation3 + $0x8] sm:$0x1] %vm10972_vm6, %v7702_v32  ;;  %vm10973_vm8 = vmmov %vm10972_vm6 }
 0x19d   : > { %1261 = vst.msk [vmem:[#allocation4 + $0x40] sm:$0xf] %vm10971_vm3, %v1181_v29 }
 0x19e   : > { %v1056_v56 = vpop.permute.xlu1 %1055  ;;  %v7598_v9 = vld [vmem:[#allocation4 + $0x38] sm:$0xff]   ;;  %3186 = vst.msk [vmem:[#allocation3 + $0xd4] sm:$0x1] %vm10973_vm8, %v7702_v32  ;;  %2692 = vrot.lane.b32.xlu0 %v8993_v3, %s7701_s26  ;;  %vm10980_vm8 = vcmask 388416  }
 0x19f   : > { %1133 = vst.msk [vmem:[#allocation4 + $0x4c] sm:$0xf] %vm10969_vm0, %v1056_v56  ;;  %7464 = vmatmul.mubr.msk.bf16.gmra.mxu0 %vm10970_vm2, %v7598_v9  ;;  %vm10975_vm0 = vmmov %vm10971_vm3  ;;  %vm10977_vm3 = vsmask.f32 7938 }
 0x1a0   : > { %2690 = vrot.lane.b32.xlu1 %v8980_v47, %s7701_s26  ;;  %v1185_v34 = vpop.permute.xlu0 %1184  ;;  %vm10976_vm2 = vmmov %vm10975_vm0 }
 0x1a1   : > { %1263 = vst.msk [vmem:[#allocation4 + $0x48] sm:$0xf] %vm10975_vm0, %v1185_v34  ;;  %vm9049_vm6 = vmand %vm3178_vm1, %vm10977_vm3 }
 0x1a2   : > { %v1183_v27 = vpop.permute.xlu1 %1182  ;;  %1065 = vrot.lane.b32.xlu0 %v8518_v59, %s7694_s13  ;;  %v3254_v59 = vld [vmem:[#allocation3 + $0x50] sm:$0x1]  ;;  %vm10981_vm0 = vmmov %vm10980_vm8 }
 0x1a3   : > { %1262 = vst.msk [vmem:[#allocation4 + $0x44] sm:$0xf] %vm10974_vm15, %v1183_v27  ;;  %v7453_v8 = vpop.f32.mrf.mxu0  ;;  %v3255_v15 = vsel %vm8682_vm5, 0, %v3254_v59  ;;  %vm5993_vm15 = vcmask 261120   ;;  %vm10983_vm3 = vmmov %vm10981_vm0 }
 0x1a4   : > { %2694 = vrot.lane.b32.xlu1 %v9008_v22, %s7701_s26  ;;  %v3028_v30 = vadd.f32 %v7453_v8, %v9015_v16  ;;  %v1751_v2 = vpop.permute.xlu0 %1750  ;;  %3256 = vst [vmem:[#allocation3 + $0x50] sm:$0x1] %v3255_v15  ;;  %v1676_v8 = vrot.slane %v1674_v58, 5 }
 0x1a5   : > { %v3019_v40 = vpop.f32.mrf.mxu0  ;;  %1831 = vst.msk [vmem:[#allocation4 + $0x40] sm:$0xf] %vm1814_vm9, %v1751_v2  ;;  %v9061_v2 = vrot.slane %v1680_v50, 5 }
 0x1a6   : > { %v1187_v53 = vpop.permute.xlu1 %1186  ;;  %v3148_v35 = vmax.f32 %v3028_v30, 0.0  ;;  %v3020_v4 = vadd.f32 %v9015_v16, %v3019_v40  ;;  %1069 = vrot.lane.b32.xlu0 %v8692_v0, %s7694_s13 }
 0x1a7   : > { %1264 = vst.msk [vmem:[#allocation4 + $0x4c] sm:$0xf] %vm10976_vm2, %v1187_v53  ;;  %v7454_v44 = vpop.f32.mrf.mxu0  ;;  %vm10982_vm2 = vmmov %vm10981_vm0 }
 0x1a8   : > { %1067 = vrot.lane.b32.xlu1 %v8516_v51, %s7694_s13  ;;  %v7115_v31 = vpack.c.bf16 %v3148_v35, %v3148_v35  ;;  %v3146_v11 = vmax.f32 %v3020_v4, 0.0  ;;  %v3031_v23 = vadd.f32 %v7454_v44, %v9015_v16  ;;  %v3251_v51 = vld [vmem:[#allocation3 + $0x44] sm:$0x1]  ;;  %v1755_v55 = vpop.permute.xlu0 %1754 }
 0x1a9   : > { %v3022_v63 = vpop.f32.mrf.mxu0  ;;  %1833 = vst.msk [vmem:[#allocation4 + $0x48] sm:$0xf] %vm1814_vm9, %v1755_v55  ;;  %v3252_v17 = vsel %vm8682_vm5, 0, %v3251_v51  ;;  %v1695_v55 = vshrl.u32 %v1322_v21, 16 }
 0x1aa   : > { %v1753_v19 = vpop.permute.xlu1 %1752  ;;  %v3401_v61 = vshrl.u32 %v7115_v31, 16  ;;  %v7113_v28 = vpack.c.bf16 %v3146_v11, %v3146_v11  ;;  %v3149_v33 = vmax.f32 %v3031_v23, 0.0  ;;  %v3023_v25 = vadd.f32 %v9015_v16, %v3022_v63  ;;  %1196 = vrot.lane.b32.xlu0 %v8692_v0, %s7695_s14  ;;  %3253 = vst [vmem:[#allocation3 + $0x44] sm:$0x1] %v3252_v17  ;;  %v3705_v0 = vld [vmem:[#allocation3 + $0xc] sm:$0xf] }
 0x1ab   : > { %1832 = vst.msk [vmem:[#allocation4 + $0x44] sm:$0xf] %vm1814_vm9, %v1753_v19  ;;  %v3404_v7 = vshll.u32 %v7115_v31, 16  ;;  %v1321_v19 = vld [vmem:[#allocation2 + $0xb0] sm:$0x1]  ;;  %v1698_v17 = vshll.u32 %v1322_v21, 16 }
 0x1ac   : > { %1071 = vrot.lane.b32.xlu1 %v8702_v42, %s7694_s13  ;;  %v3403_v54 = vrot.slane %v3401_v61, 7  ;;  %v3384_v46 = vshrl.u32 %v7113_v28, 16  ;;  %v7116_v49 = vpack.c.bf16 %v3149_v33, %v3149_v33  ;;  %v3147_v12 = vmax.f32 %v3023_v25, 0.0  ;;  %v1904_v27 = vpop.permute.xlu0 %1903  ;;  %v3709_v61 = vld [vmem:[#allocation3 + $0x14] sm:$0x1] }
 0x1ad   : > { %v3387_v29 = vshll.u32 %v7113_v28, 16  ;;  %1984 = vst.msk [vmem:[#allocation4 + $0x40] sm:$0xf] %vm1967_vm10, %v1904_v27  ;;  %v1677_v28 = vor.u32 %v1676_v8, %v1673_v24  ;;  %v1323_v33 = vld [vmem:[#allocation2 + $0xb8] sm:$0xf] }
 0x1ae   : > { %v1757_v13 = vpop.permute.xlu1 %1756  ;;  %v3406_v56 = vor.u32 %v3404_v7, %v3403_v54  ;;  %v3386_v9 = vrot.slane %v3384_v46, 7  ;;  %v3409_v32 = vshrl.u32 %v7116_v49, 16  ;;  %v7114_v34 = vpack.c.bf16 %v3147_v12, %v3147_v12  ;;  %1200 = vrot.lane.b32.xlu0 %v8722_v5, %s7695_s14 }
 0x1af   : > { %1834 = vst.msk [vmem:[#allocation4 + $0x4c] sm:$0xf] %vm1814_vm9, %v1757_v13  ;;  %v3412_v40 = vshll.u32 %v7116_v49, 16  ;;  %v3407_v44 = vrot.slane %v3403_v54, 4  ;;  %v1690_v46 = vshll.u32 %v1321_v19, 16  ;;  %v1708_v12 = vshrl.u32 %v1323_v33, 16 }
 0x1b0   : > { %1198 = vrot.lane.b32.xlu1 %v8702_v42, %s7695_s14  ;;  %v3713_v6 = vsel %vm9049_vm6, %v3406_v56, %v3712_v38  ;;  %v3389_v30 = vor.u32 %v3387_v29, %v3386_v9  ;;  %v3411_v53 = vrot.slane %v3409_v32, 7  ;;  %v3392_v35 = vshrl.u32 %v7114_v34, 16  ;;  %v1908_v23 = vpop.permute.xlu0 %1907 }
 0x1b1   : > { %3714 = vst [vmem:[#allocation3 + $0x18] sm:$0xf] %v3713_v6  ;;  %v1686_v42 = vrot.slane %v1684_v18, 4  ;;  %v3395_v15 = vshll.u32 %v7114_v34, 16  ;;  %1986 = vst.msk [vmem:[#allocation4 + $0x48] sm:$0xf] %vm1967_vm10, %v1908_v23 }
 0x1b2   : > { %v1906_v4 = vpop.permute.xlu1 %1905  ;;  %v3706_v59 = vsel %vm9049_vm6, %v3389_v30, %v3705_v0  ;;  %v3414_v31 = vor.u32 %v3412_v40, %v3411_v53  ;;  %v3416_v11 = vrot.slane %v3411_v53, 4  ;;  %v3394_v39 = vrot.slane %v3392_v35, 7  ;;  %1766 = vrot.lane.b32.xlu0 %v8914_v20, %s7696_s15 }
 0x1b3   : > { %1985 = vst.msk [vmem:[#allocation4 + $0x44] sm:$0xf] %vm1967_vm10, %v1906_v4  ;;  %3707 = vst [vmem:[#allocation3 + $0xc] sm:$0xf] %v3706_v59  ;;  %v3390_v26 = vrot.slane %v3386_v9, 4  ;;  %v1687_v7 = vor.u32 %v1686_v42, %v9061_v2  ;;  %v1704_v38 = vshll.u32 %v1323_v33, 16 }
 0x1b4   : > { %1202 = vrot.lane.b32.xlu1 %v8727_v52, %s7695_s14  ;;  %v3415_v63 = vsel %vm7807_vm7, %v3407_v44, %v3414_v31  ;;  %v3717_v51 = vsel %vm8663_vm4, %v3416_v11, %v3716_v41  ;;  %v3397_v25 = vor.u32 %v3395_v15, %v3394_v39  ;;  %v3399_v62 = vrot.slane %v3394_v39, 4  ;;  %v2057_v54 = vpop.permute.xlu0 %2056  ;;  %v1324_v4 = vld [vmem:[#allocation2 + $0xbc] sm:$0x1] }
 0x1b5   : > { %3715 = vst.msk [vmem:[#allocation3 + $0x1c] sm:$0xf] %vm3178_vm1, %v3415_v63  ;;  %3718 = vst [vmem:[#allocation3 + $0x20] sm:$0x1] %v3717_v51  ;;  %v1678_v18 = vrot.slane %v1677_v28, 4  ;;  %v1697_v56 = vrot.slane %v1695_v55, 4 }
 0x1b6   : > { %v1910_v58 = vpop.permute.xlu1 %1909  ;;  %v3398_v20 = vsel %vm7807_vm7, %v3390_v26, %v3397_v25  ;;  %v3710_v49 = vsel %vm8663_vm4, %v3399_v62, %v3709_v61  ;;  %2137 = vst.msk [vmem:[#allocation4 + $0x40] sm:$0xf] %vm2120_vm12, %v2057_v54  ;;  %1770 = vrot.lane.b32.xlu0 %v8940_v45, %s7696_s15  ;;  %v1700_v9 = vrot.slane %v1698_v17, 5  ;;  %v1688_v27 = vrot.slane %v1687_v7, 4  ;;  %v2196_v17 = vld [vmem:[#allocation2 + $0xac] sm:$0xf] }
 0x1b7   : > { %1987 = vst.msk [vmem:[#allocation4 + $0x4c] sm:$0xf] %vm1967_vm10, %v1910_v58  ;;  %3711 = vst [vmem:[#allocation3 + $0x14] sm:$0x1] %v3710_v49  ;;  %v1692_v0 = vrot.slane %v1690_v46, 5  ;;  %v1706_v34 = vrot.slane %v1704_v38, 5  ;;  %v9107_v35 = vsel %vm7915_vm11, %v1678_v18, %v9061_v2 }
 0x1b8   : > { %1768 = vrot.lane.b32.xlu1 %v8922_v48, %s7696_s15  ;;  %3708 = vst.msk [vmem:[#allocation3 + $0x10] sm:$0xf] %vm3178_vm1, %v3398_v20  ;;  %v9088_v13 = vld [vmem:[#allocation3 + $0x18] sm:$0xf]  ;;  %v2061_v29 = vpop.permute.xlu0 %2060  ;;  %v1710_v24 = vrot.slane %v1708_v12, 4  ;;  %v1701_v42 = vor.u32 %v1700_v9, %v1697_v56  ;;  %v1714_v23 = vshll.u32 %v1324_v4, 16 }
 0x1b9   : > { %3857 = vst.msk [vmem:[#allocation5 + $0x30] sm:$0xf] %vm3178_vm1, %v9088_v13  ;;  %v4990_v48 = vld [vmem:[#allocation3 + $0x18] sm:$0xe]  ;;  %v9123_v31 = vsel %vm7915_vm11, %v1688_v27, %v1692_v0  ;;  %v2195_v7 = vld [vmem:[#allocation2 + $0xa8] sm:$0xe] }
 0x1ba   : > { %v2059_v50 = vpop.permute.xlu1 %2058  ;;  %v9093_v32 = vld [vmem:[#allocation3 + $0xc] sm:$0xf]  ;;  %2139 = vst.msk [vmem:[#allocation4 + $0x48] sm:$0xf] %vm2120_vm12, %v2061_v29  ;;  %1919 = vrot.lane.b32.xlu0 %v8940_v45, %s7697_s16  ;;  %v6959_v53 = vrot.slane %v4990_v48, 9  ;;  %v1711_v11 = vor.u32 %v1710_v24, %v1706_v34  ;;  %v1702_v39 = vrot.slane %v1701_v42, 4 }
 0x1bb   : > { %2138 = vst.msk [vmem:[#allocation4 + $0x44] sm:$0xf] %vm2120_vm12, %v2059_v50  ;;  %v1716_v51 = vrot.slane %v1714_v23, 5  ;;  %v2358_v46 = vrot.slane %v2196_v17, 5  ;;  %v2197_v49 = vld [vmem:[#allocation2 + $0xb0] sm:$0x1] }
 0x1bc   : > { %1772 = vrot.lane.b32.xlu1 %v8948_v37, %s7696_s15  ;;  %3855 = vst.msk [vmem:[#allocation5 + $0x18] sm:$0xf] %vm3178_vm1, %v9093_v32  ;;  %v4991_v8 = vld [vmem:[#allocation3 + $0x1c] sm:$0xf]  ;;  %v4992_v6 = vld [vmem:[#allocation3 + $0x20] sm:$0x1]  ;;  %v2403_v21 = vpop.permute.xlu0 %2402  ;;  %v9145_v28 = vsel %vm7915_vm11, %v1702_v39, %v1706_v34 }
 0x1bd   : > { %v9102_v30 = vld [vmem:[#allocation3 + $0x1c] sm:$0xf]  ;;  %v5102_v40 = vrot.slane %v4991_v8, 5  ;;  %v5105_v45 = vrot.slane %v4992_v6, 5  ;;  %2483 = vst.msk [vmem:[#allocation4 + $0x40] sm:$0xf] %vm2466_vm13, %v2403_v21 }
 0x1be   : > { %v2063_v41 = vpop.permute.xlu1 %2062  ;;  %3858 = vst.msk [vmem:[#allocation5 + $0x3c] sm:$0xf] %vm3178_vm1, %v9102_v30  ;;  %1923 = vrot.lane.b32.xlu0 %v9107_v35, %s7697_s16  ;;  %v1712_v63 = vrot.slane %v1711_v11, 4  ;;  %v6883_v38 = vrot.slane %v2195_v7, 9  ;;  %v2361_v12 = vrot.slane %v2197_v49, 5 }
 0x1bf   : > { %2140 = vst.msk [vmem:[#allocation4 + $0x4c] sm:$0xf] %vm2120_vm12, %v2063_v41  ;;  %v5104_v44 = vrot.slane %v5102_v40, 4  ;;  %v9117_v59 = vsel %vm7997_vm14, %v6959_v53, %v5102_v40  ;;  %v9119_v2 = vld [vmem:[#allocation3 + $0x10] sm:$0xf] }
 0x1c0   : > { %1921 = vrot.lane.b32.xlu1 %v8948_v37, %s7697_s16  ;;  %5506 = vst.msk [vmem:[#allocation5 + $0x8] sm:$0xf] %vm3178_vm1, %v9117_v59  ;;  %3856 = vst.msk [vmem:[#allocation5 + $0x24] sm:$0xf] %vm3178_vm1, %v9119_v2  ;;  %v2407_v19 = vpop.permute.xlu0 %2406  ;;  %v9153_v55 = vsel %vm7915_vm11, %v1712_v63, %v1716_v51  ;;  %v9178_v18 = vsel %vm7997_vm14, %v6883_v38, %v2358_v46  ;;  %v2199_v56 = vld [vmem:[#allocation2 + $0xb8] sm:$0xf] }
 0x1c1   : > { %v9133_v15 = vsel %vm7997_vm14, %v5104_v44, %v5105_v45  ;;  %2485 = vst.msk [vmem:[#allocation4 + $0x48] sm:$0xf] %vm2466_vm13, %v2407_v19  ;;  %v2198_v48 = vld [vmem:[#allocation2 + $0xb4] sm:$0xe]  ;;  %v2365_v29 = vrot.slane %v2199_v56, 5 }
 0x1c2   : > { %v2405_v37 = vpop.permute.xlu1 %2404  ;;  %5507 = vst.msk [vmem:[#allocation5 + $0x14] sm:$0xf] %vm3178_vm1, %v9133_v15  ;;  %2072 = vrot.lane.b32.xlu0 %v9107_v35, %s7698_s17  ;;  %v2200_v34 = vld [vmem:[#allocation2 + $0xbc] sm:$0x1]  ;;  %v6884_v24 = vrot.slane %v2198_v48, 9 }
 0x1c3   : > { %2484 = vst.msk [vmem:[#allocation4 + $0x44] sm:$0xf] %vm2466_vm13, %v2405_v37  ;;  %v2368_v6 = vrot.slane %v2200_v34, 5  ;;  %v3211_v19 = vld [vmem:[#allocation3 + $0x60] sm:$0x1] }
 0x1c4   : > { %1925 = vrot.lane.b32.xlu1 %v9123_v31, %s7697_s16  ;;  %v2542_v33 = vpop.permute.xlu0 %2541  ;;  %v9199_v41 = vsel %vm7997_vm14, %v6884_v24, %v2365_v29  ;;  %v3212_v51 = vsel %vm8663_vm4, 0, %v3211_v19  ;;  %v950_v38 = vld [vmem:[#allocation2 + $0xc4] sm:$0xf]  ;;  %v3726_v56 = vld [vmem:[#allocation3 + $0x30] sm:$0xf] }
 0x1c5   : > { %2622 = vst.msk [vmem:[#allocation4 + $0x40] sm:$0xf] %vm10980_vm8, %v2542_v33  ;;  %vm10984_vm8 = vcmask 585216   ;;  %3213 = vst [vmem:[#allocation3 + $0x60] sm:$0x1] %v3212_v51 }
 0x1c6   : > { %v2409_v61 = vpop.permute.xlu1 %2408  ;;  %2076 = vrot.lane.b32.xlu0 %v9145_v28, %s7698_s17  ;;  %v3208_v24 = vld [vmem:[#allocation3 + $0x54] sm:$0x1] }
 0x1c7   : > { %2486 = vst.msk [vmem:[#allocation4 + $0x4c] sm:$0xf] %vm2466_vm13, %v2409_v61  ;;  %v951_v19 = vld [vmem:[#allocation2 + $0xcc] sm:$0xf] }
 0x1c8   : > { %2074 = vrot.lane.b32.xlu1 %v9123_v31, %s7698_s17  ;;  %v2546_v62 = vpop.permute.xlu0 %2545 }
 0x1c9   : > { %v7599_v25 = vld [vmem:[#allocation5 + $0x8] ss:$12 sps:$4 sm:$0xff]   ;;  %2624 = vst.msk [vmem:[#allocation4 + $0x48] sm:$0xf] %vm10982_vm2, %v2546_v62 }
 0x1ca   : > { %v2544_v26 = vpop.permute.xlu1 %2543  ;;  %7487 = vmatprep.mubr.msk.bf16.mxu0 %vm5993_vm15, %v7599_v25  ;;  %2418 = vrot.lane.b32.xlu0 %v8972_v57, %s7699_s18 }
 0x1cb   : > { %2623 = vst.msk [vmem:[#allocation4 + $0x44] sm:$0xf] %vm10981_vm0, %v2544_v26  ;;  %vm10985_vm0 = vmmov %vm10984_vm8 }
 0x1cc   : > { %2078 = vrot.lane.b32.xlu1 %v9153_v55, %s7698_s17  ;;  %v2681_v54 = vpop.permute.xlu0 %2680  ;;  %vm10986_vm2 = vmmov %vm10985_vm0 }
 0x1cd   : > { %2761 = vst.msk [vmem:[#allocation4 + $0x40] sm:$0xf] %vm10984_vm8, %v2681_v54  ;;  %vm10988_vm8 = vcmask 257216  }
 0x1ce   : > { %v2548_v58 = vpop.permute.xlu1 %2547  ;;  %2422 = vrot.lane.b32.xlu0 %v8993_v3, %s7699_s18 }
 0x1cf   : > { %2625 = vst.msk [vmem:[#allocation4 + $0x4c] sm:$0xf] %vm10983_vm3, %v2548_v58  ;;  %vm10987_vm3 = vmmov %vm10985_vm0  ;;  %v949_v58 = vld [vmem:[#allocation2 + $0xc0] sm:$0xf] }
 0x1d0   : > { %2420 = vrot.lane.b32.xlu1 %v8980_v47, %s7699_s18  ;;  %v2685_v57 = vpop.permute.xlu0 %2684  ;;  %v2360_v47 = vrot.slane %v2358_v46, 4 }
 0x1d1   : > { %2763 = vst.msk [vmem:[#allocation4 + $0x48] sm:$0xf] %vm10986_vm2, %v2685_v57  ;;  %vm10990_vm2 = vcmask 588800  }
 0x1d2   : > { %v2683_v20 = vpop.permute.xlu1 %2682  ;;  %2557 = vrot.lane.b32.xlu0 %v8993_v3, %s7700_s21  ;;  %v9186_v3 = vsel %vm7997_vm14, %v2360_v47, %v2361_v12 }
 0x1d3   : > { %2762 = vst.msk [vmem:[#allocation4 + $0x44] sm:$0xf] %vm10985_vm0, %v2683_v20  ;;  %vm10989_vm0 = vmmov %vm10988_vm8  ;;  %v1325_v20 = vld [vmem:[#allocation2 + $0xc0] sm:$0xf] }
 0x1d4   : > { %2424 = vrot.lane.b32.xlu1 %v9008_v22, %s7699_s18  ;;  %v1058_v9 = vpop.permute.xlu0 %1057 }
 0x1d5   : > { %1134 = vst.msk [vmem:[#allocation4 + $0x50] sm:$0xf] %vm10988_vm8, %v1058_v9  ;;  %vm10992_vm8 = vmmov %vm10989_vm0 }
 0x1d6   : > { %v2687_v50 = vpop.permute.xlu1 %2686  ;;  %2561 = vrot.lane.b32.xlu0 %v9178_v18, %s7700_s21 }
 0x1d7   : > { %2764 = vst.msk [vmem:[#allocation4 + $0x4c] sm:$0xf] %vm10987_vm3, %v2687_v50  ;;  %vm10991_vm3 = vmmov %vm10989_vm0  ;;  %v9229_v50 = vld [vmem:[#allocation2 + $0xc4] sm:$0xf] }
 0x1d8   : > { %2559 = vrot.lane.b32.xlu1 %v9008_v22, %s7700_s21  ;;  %v1062_v8 = vpop.permute.xlu0 %1061  ;;  %v2367_v22 = vrot.slane %v2365_v29, 4  ;;  %v1848_v29 = vshrl.u32 %v1325_v20, 16 }
 0x1d9   : > { %1136 = vst.msk [vmem:[#allocation4 + $0x58] sm:$0xf] %vm10991_vm3, %v1062_v8  ;;  %v3719_v8 = vld [vmem:[#allocation3 + $0x24] sm:$0xf] }
 0x1da   : > { %v1060_v27 = vpop.permute.xlu1 %1059  ;;  %v7600_v0 = vld [vmem:[#allocation4 + $0x40] sm:$0xff]   ;;  %2696 = vrot.lane.b32.xlu0 %v9178_v18, %s7701_s26  ;;  %v9209_v44 = vsel %vm7997_vm14, %v2367_v22, %v2368_v6  ;;  %v1857_v6 = vshll.u32 %v9229_v50, 16  ;;  %v1850_v51 = vrot.slane %v1848_v29, 4 }
 0x1db   : > { %1135 = vst.msk [vmem:[#allocation4 + $0x54] sm:$0xf] %vm10989_vm0, %v1060_v27  ;;  %7467 = vmatprep.mubr.msk.bf16.mxu1 %vm10990_vm2, %v7600_v0  ;;  %vm10993_vm0 = vmmov %vm10990_vm2  ;;  %vm10994_vm2 = vcmask 454016  }
 0x1dc   : > { %2563 = vrot.lane.b32.xlu1 %v9186_v3, %s7700_s21  ;;  %v1189_v4 = vpop.permute.xlu0 %1188  ;;  %vm10995_vm3 = vmmov %vm10994_vm2 }
 0x1dd   : > { %1265 = vst.msk [vmem:[#allocation4 + $0x50] sm:$0xf] %vm10994_vm2, %v1189_v4 }
 0x1de   : > { %v1064_v53 = vpop.permute.xlu1 %1063  ;;  %v7601_v40 = vld [vmem:[#allocation4 + $0x48] sm:$0xff]   ;;  %2700 = vrot.lane.b32.xlu0 %v9199_v41, %s7701_s26 }
 0x1df   : > { %1137 = vst.msk [vmem:[#allocation4 + $0x5c] sm:$0xf] %vm10992_vm8, %v1064_v53  ;;  %v7457_v42 = vpop.f32.mrf.mxu0  ;;  %7468 = vmatmul.mubr.msk.bf16.vlgmr.msra.gmra.mxu1 %vm10993_vm0, %v7601_v40  ;;  %vm10996_vm8 = vmmov %vm10994_vm2  ;;  %v1851_v53 = vshll.u32 %v1325_v20, 16  ;;  %v3209_v40 = vsel %vm8663_vm4, 0, %v3208_v24  ;;  %v1329_v24 = vld [vmem:[#allocation2 + $0xd0] sm:$0xf] }
 0x1e0   : > { %2698 = vrot.lane.b32.xlu1 %v9186_v3, %s7701_s26  ;;  %v3044_v21 = vadd.f32 %v7457_v42, %v9015_v16  ;;  %v1193_v39 = vpop.permute.xlu0 %1192  ;;  %vm10997_vm0 = vmmov %vm10994_vm2  ;;  %3210 = vst [vmem:[#allocation3 + $0x54] sm:$0x1] %v3209_v40  ;;  %vm10998_vm2 = vcmask 388416  }
 0x1e1   : > { %v3035_v11 = vpop.f32.mrf.mxu0  ;;  %1267 = vst.msk [vmem:[#allocation4 + $0x58] sm:$0xf] %vm10996_vm8, %v1193_v39  ;;  %vm11000_vm8 = vmmov %vm10998_vm2 }
 0x1e2   : > { %v1191_v45 = vpop.permute.xlu1 %1190  ;;  %v3152_v23 = vmax.f32 %v3044_v21, 0.0  ;;  %v3036_v37 = vadd.f32 %v9015_v16, %v3035_v11  ;;  %1073 = vrot.lane.b32.xlu0 %v8722_v5, %s7694_s13  ;;  %v3730_v11 = vld [vmem:[#allocation3 + $0x38] sm:$0x1] }
 0x1e3   : > { %1266 = vst.msk [vmem:[#allocation4 + $0x54] sm:$0xf] %vm10995_vm3, %v1191_v45  ;;  %v7458_v63 = vpop.f32.mrf.mxu0  ;;  %vm10999_vm3 = vmmov %vm10998_vm2 }
 0x1e4   : > { %2702 = vrot.lane.b32.xlu1 %v9209_v44, %s7701_s26  ;;  %v7119_v61 = vpack.c.bf16 %v3152_v23, %v3152_v23  ;;  %v3150_v33 = vmax.f32 %v3036_v37, 0.0  ;;  %v3047_v26 = vadd.f32 %v7458_v63, %v9015_v16  ;;  %v1759_v46 = vpop.permute.xlu0 %1758  ;;  %v3260_v23 = vld [vmem:[#allocation3 + $0x68] sm:$0x1]  ;;  %v1861_v63 = vshrl.u32 %v9229_v50, 16 }
 0x1e5   : > { %v3038_v62 = vpop.f32.mrf.mxu0  ;;  %1835 = vst.msk [vmem:[#allocation4 + $0x50] sm:$0xf] %vm1814_vm9, %v1759_v46  ;;  %v1853_v46 = vrot.slane %v1851_v53, 5 }
 0x1e6   : > { %v1195_v25 = vpop.permute.xlu1 %1194  ;;  %v3435_v17 = vshrl.u32 %v7119_v61, 16  ;;  %v7117_v54 = vpack.c.bf16 %v3150_v33, %v3150_v33  ;;  %v3153_v7 = vmax.f32 %v3047_v26, 0.0  ;;  %v3039_v49 = vadd.f32 %v9015_v16, %v3038_v62  ;;  %1077 = vrot.lane.b32.xlu0 %v949_v58, %s7694_s13 }
 0x1e7   : > { %1268 = vst.msk [vmem:[#allocation4 + $0x5c] sm:$0xf] %vm10997_vm0, %v1195_v25  ;;  %v3438_v57 = vshll.u32 %v7119_v61, 16  ;;  %v3261_v61 = vsel %vm8682_vm5, 0, %v3260_v23  ;;  %v1863_v29 = vrot.slane %v1861_v63, 4  ;;  %v2014_v23 = vshrl.u32 %v1329_v24, 16  ;;  %vm11001_vm0 = vmmov %vm10998_vm2 }
 0x1e8   : > { %1075 = vrot.lane.b32.xlu1 %v8727_v52, %s7694_s13  ;;  %v3437_v5 = vrot.slane %v3435_v17, 7  ;;  %v3418_v47 = vshrl.u32 %v7117_v54, 16  ;;  %v7120_v12 = vpack.c.bf16 %v3153_v7, %v3153_v7  ;;  %v3151_v9 = vmax.f32 %v3039_v49, 0.0  ;;  %v1763_v52 = vpop.permute.xlu0 %1762  ;;  %3262 = vst [vmem:[#allocation3 + $0x68] sm:$0x1] %v3261_v61 }
 0x1e9   : > { %v3421_v0 = vshll.u32 %v7117_v54, 16  ;;  %1837 = vst.msk [vmem:[#allocation4 + $0x58] sm:$0xf] %vm1814_vm9, %v1763_v52  ;;  %v3257_v17 = vld [vmem:[#allocation3 + $0x5c] sm:$0x1]  ;;  %v1854_v52 = vor.u32 %v1853_v46, %v1850_v51 }
 0x1ea   : > { %v1761_v48 = vpop.permute.xlu1 %1760  ;;  %v3440_v27 = vor.u32 %v3438_v57, %v3437_v5  ;;  %v3420_v16 = vrot.slane %v3418_v47, 7  ;;  %v3443_v34 = vshrl.u32 %v7120_v12, 16  ;;  %v7118_v22 = vpack.c.bf16 %v3151_v9, %v3151_v9  ;;  %1204 = vrot.lane.b32.xlu0 %v949_v58, %s7695_s14  ;;  %v3723_v57 = vld [vmem:[#allocation3 + $0x2c] sm:$0x1]  ;;  %v952_v47 = vld [vmem:[#allocation2 + $0xd0] sm:$0xf] }
 0x1eb   : > { %1836 = vst.msk [vmem:[#allocation4 + $0x54] sm:$0xf] %vm1814_vm9, %v1761_v48  ;;  %v3446_v45 = vshll.u32 %v7120_v12, 16  ;;  %v3441_v33 = vrot.slane %v3437_v5, 4  ;;  %v3258_v20 = vsel %vm8682_vm5, 0, %v3257_v17  ;;  %v1859_v48 = vrot.slane %v1857_v6, 5 }
 0x1ec   : > { %1079 = vrot.lane.b32.xlu1 %v950_v38, %s7694_s13  ;;  %v3727_v4 = vsel %vm9049_vm6, %v3440_v27, %v3726_v56  ;;  %v3423_v42 = vor.u32 %v3421_v0, %v3420_v16  ;;  %v3445_v21 = vrot.slane %v3443_v34, 7  ;;  %v3426_v37 = vshrl.u32 %v7118_v22, 16  ;;  %v1912_v58 = vpop.permute.xlu0 %1911  ;;  %3259 = vst [vmem:[#allocation3 + $0x5c] sm:$0x1] %v3258_v20  ;;  %v1328_v27 = vld [vmem:[#allocation2 + $0xcc] sm:$0xf] }
 0x1ed   : > { %3728 = vst [vmem:[#allocation3 + $0x30] sm:$0xf] %v3727_v4  ;;  %v3429_v7 = vshll.u32 %v7118_v22, 16  ;;  %1988 = vst.msk [vmem:[#allocation4 + $0x50] sm:$0xf] %vm1967_vm10, %v1912_v58  ;;  %v3424_v12 = vrot.slane %v3420_v16, 4 }
 0x1ee   : > { %v1765_v39 = vpop.permute.xlu1 %1764  ;;  %v3720_v26 = vsel %vm9049_vm6, %v3423_v42, %v3719_v8  ;;  %v3448_v25 = vor.u32 %v3446_v45, %v3445_v21  ;;  %v3450_v62 = vrot.slane %v3445_v21, 4  ;;  %v3428_v54 = vrot.slane %v3426_v37, 7  ;;  %1208 = vrot.lane.b32.xlu0 %v951_v19, %s7695_s14  ;;  %v1327_v16 = vld [vmem:[#allocation2 + $0xc8] sm:$0x1] }
 0x1ef   : > { %1838 = vst.msk [vmem:[#allocation4 + $0x5c] sm:$0xf] %vm1814_vm9, %v1765_v39  ;;  %3721 = vst [vmem:[#allocation3 + $0x24] sm:$0xf] %v3720_v26  ;;  %v2001_v6 = vshrl.u32 %v1328_v27, 16  ;;  %v2004_v53 = vshll.u32 %v1328_v27, 16  ;;  %v1864_v42 = vor.u32 %v1863_v29, %v1859_v48 }
 0x1f0   : > { %1206 = vrot.lane.b32.xlu1 %v950_v38, %s7695_s14  ;;  %v3449_v49 = vsel %vm7807_vm7, %v3441_v33, %v3448_v25  ;;  %v3731_v5 = vsel %vm8663_vm4, %v3450_v62, %v3730_v11  ;;  %v3431_v38 = vor.u32 %v3429_v7, %v3428_v54  ;;  %v3433_v50 = vrot.slane %v3428_v54, 4  ;;  %v1916_v9 = vpop.permute.xlu0 %1915 }
 0x1f1   : > { %3729 = vst.msk [vmem:[#allocation3 + $0x34] sm:$0xf] %vm3178_vm1, %v3449_v49  ;;  %3732 = vst [vmem:[#allocation3 + $0x38] sm:$0x1] %v3731_v5  ;;  %v1867_v21 = vshll.u32 %v1327_v16, 16  ;;  %v2010_v11 = vshll.u32 %v1329_v24, 16 }
 0x1f2   : > { %v1914_v56 = vpop.permute.xlu1 %1913  ;;  %v3432_v0 = vsel %vm7807_vm7, %v3424_v12, %v3431_v38  ;;  %v3724_v34 = vsel %vm8663_vm4, %v3433_v50, %v3723_v57  ;;  %1990 = vst.msk [vmem:[#allocation4 + $0x58] sm:$0xf] %vm1967_vm10, %v1916_v9  ;;  %1774 = vrot.lane.b32.xlu0 %v9107_v35, %s7696_s15  ;;  %v1855_v35 = vrot.slane %v1854_v52, 4  ;;  %v2006_v26 = vrot.slane %v2004_v53, 5 }
 0x1f3   : > { %1989 = vst.msk [vmem:[#allocation4 + $0x54] sm:$0xf] %vm1967_vm10, %v1914_v56  ;;  %3725 = vst [vmem:[#allocation3 + $0x2c] sm:$0x1] %v3724_v34  ;;  %v1865_v62 = vrot.slane %v1864_v42, 4  ;;  %v1869_v58 = vrot.slane %v1867_v21, 5 }
 0x1f4   : > { %1210 = vrot.lane.b32.xlu1 %v952_v47, %s7695_s14  ;;  %3722 = vst.msk [vmem:[#allocation3 + $0x28] sm:$0xf] %vm3178_vm1, %v3432_v0  ;;  %v9266_v8 = vld [vmem:[#allocation3 + $0x30] sm:$0xf]  ;;  %v2065_v4 = vpop.permute.xlu0 %2064  ;;  %v2012_v57 = vrot.slane %v2010_v11, 5  ;;  %v2016_v47 = vrot.slane %v2014_v23, 4  ;;  %v1860_v50 = vsel %vm7915_vm11, %v1855_v35, %v1859_v48 }
 0x1f5   : > { %3861 = vst.msk [vmem:[#allocation5 + $0x60] sm:$0xf] %vm3178_vm1, %v9266_v8  ;;  %v4996_v40 = vld [vmem:[#allocation3 + $0x30] sm:$0xe]  ;;  %v1330_v56 = vld [vmem:[#allocation2 + $0xd4] sm:$0x1]  ;;  %v1870_v16 = vsel %vm7915_vm11, %v1865_v62, %v1869_v58 }
 0x1f6   : > { %v1918_v22 = vpop.permute.xlu1 %1917  ;;  %v9271_v45 = vld [vmem:[#allocation3 + $0x24] sm:$0xf]  ;;  %2141 = vst.msk [vmem:[#allocation4 + $0x50] sm:$0xf] %vm2120_vm12, %v2065_v4  ;;  %1778 = vrot.lane.b32.xlu0 %v9145_v28, %s7696_s15  ;;  %v6961_v63 = vrot.slane %v4996_v40, 9  ;;  %v2017_v52 = vor.u32 %v2016_v47, %v2012_v57  ;;  %v2020_v24 = vshll.u32 %v1330_v56, 16 }
 0x1f7   : > { %1991 = vst.msk [vmem:[#allocation4 + $0x5c] sm:$0xf] %vm1967_vm10, %v1918_v22  ;;  %v4993_v51 = vld [vmem:[#allocation3 + $0x24] sm:$0xe] }
 0x1f8   : > { %1776 = vrot.lane.b32.xlu1 %v9123_v31, %s7696_s15  ;;  %3859 = vst.msk [vmem:[#allocation5 + $0x48] sm:$0xf] %vm3178_vm1, %v9271_v45  ;;  %v4997_v37 = vld [vmem:[#allocation3 + $0x34] sm:$0xf]  ;;  %v4998_v39 = vld [vmem:[#allocation3 + $0x38] sm:$0x1]  ;;  %v2069_v25 = vpop.permute.xlu0 %2068 }
 0x1f9   : > { %v9280_v19 = vld [vmem:[#allocation3 + $0x34] sm:$0xf]  ;;  %v5116_v61 = vrot.slane %v4997_v37, 5  ;;  %v2003_v31 = vrot.slane %v2001_v6, 4  ;;  %v5119_v54 = vrot.slane %v4998_v39, 5  ;;  %v6960_v49 = vrot.slane %v4993_v51, 9 }
 0x1fa   : > { %v2067_v33 = vpop.permute.xlu1 %2066  ;;  %3862 = vst.msk [vmem:[#allocation5 + $0x6c] sm:$0xf] %vm3178_vm1, %v9280_v19  ;;  %v4995_v46 = vld [vmem:[#allocation3 + $0x2c] sm:$0x1]  ;;  %1927 = vrot.lane.b32.xlu0 %v9145_v28, %s7697_s16  ;;  %v2018_v53 = vrot.slane %v2017_v52, 4  ;;  %v2022_v40 = vrot.slane %v2020_v24, 5 }
 0x1fb   : > { %2142 = vst.msk [vmem:[#allocation4 + $0x54] sm:$0xf] %vm2120_vm12, %v2067_v33  ;;  %v5118_v17 = vrot.slane %v5116_v61, 4  ;;  %v4994_v7 = vld [vmem:[#allocation3 + $0x28] sm:$0xf]  ;;  %v9290_v20 = vsel %vm7997_vm14, %v6961_v63, %v5116_v61  ;;  %v2007_v9 = vor.u32 %v2006_v26, %v2003_v31  ;;  %v5112_v0 = vrot.slane %v4995_v46, 5 }
 0x1fc   : > { %1780 = vrot.lane.b32.xlu1 %v9153_v55, %s7696_s15  ;;  %2143 = vst.msk [vmem:[#allocation4 + $0x58] sm:$0xf] %vm2120_vm12, %v2069_v25  ;;  %v5109_v5 = vrot.slane %v4994_v7, 5  ;;  %v9296_v12 = vld [vmem:[#allocation3 + $0x28] sm:$0xf]  ;;  %v2411_v34 = vpop.permute.xlu0 %2410  ;;  %v2023_v35 = vsel %vm7915_vm11, %v2018_v53, %v2022_v40  ;;  %v7615_v40 = vld [vmem:[%s10915_s4 + $0x38] sm:$0xff]  }
 0x1fd   : > { %5510 = vst.msk [vmem:[#allocation5 + $0x38] sm:$0xf] %vm3178_vm1, %v9290_v20  ;;  %v9302_v29 = vsel %vm7997_vm14, %v5118_v17, %v5119_v54  ;;  %3860 = vst.msk [vmem:[#allocation5 + $0x54] sm:$0xf] %vm3178_vm1, %v9296_v12  ;;  %v2008_v6 = vrot.slane %v2007_v9, 4 }
 0x1fe   : > { %v2071_v38 = vpop.permute.xlu1 %2070  ;;  %v9308_v28 = vsel %vm7997_vm14, %v6960_v49, %v5109_v5  ;;  %v5111_v27 = vrot.slane %v5109_v5, 4  ;;  %5511 = vst.msk [vmem:[#allocation5 + $0x44] sm:$0xf] %vm3178_vm1, %v9302_v29  ;;  %1931 = vrot.lane.b32.xlu0 %v1860_v50, %s7697_s16  ;;  %v2202_v51 = vld [vmem:[#allocation2 + $0xc4] sm:$0xf] }
 0x1ff   : > { %2144 = vst.msk [vmem:[#allocation4 + $0x5c] sm:$0xf] %vm2120_vm12, %v2071_v38  ;;  %v2013_v42 = vsel %vm7915_vm11, %v2008_v6, %v2012_v57  ;;  %v2201_v33 = vld [vmem:[#allocation2 + $0xc0] sm:$0xe]  ;;  %v2504_v31 = vrot.slane %v2202_v51, 5 }
 0x200   : > { %5508 = vst.msk [vmem:[#allocation5 + $0x20] sm:$0xf] %vm3178_vm1, %v9308_v28  ;;  %1929 = vrot.lane.b32.xlu1 %v9153_v55, %s7697_s16  ;;  %v9320_v48 = vsel %vm7997_vm14, %v5111_v27, %v5112_v0  ;;  %v2415_v55 = vpop.permute.xlu0 %2414  ;;  %v2203_v25 = vld [vmem:[#allocation2 + $0xc8] sm:$0x1]  ;;  %v6885_v62 = vrot.slane %v2201_v33, 9 }
 0x201   : > { %2487 = vst.msk [vmem:[#allocation4 + $0x50] sm:$0xf] %vm2466_vm13, %v2411_v34  ;;  %2489 = vst.msk [vmem:[#allocation4 + $0x58] sm:$0xf] %vm2466_vm13, %v2415_v55  ;;  %v4178_v58 = vld [vmem:[#allocation3 + $0x4] sm:$0xf] }
 0x202   : > { %5509 = vst.msk [vmem:[#allocation5 + $0x2c] sm:$0xf] %vm3178_vm1, %v9320_v48  ;;  %v2413_v22 = vpop.permute.xlu1 %2412  ;;  %2080 = vrot.lane.b32.xlu0 %v1860_v50, %s7698_s17  ;;  %v4177_v17 = vld [vmem:[#allocation3] sm:$0xf]  ;;  %v2507_v54 = vrot.slane %v2203_v25, 5  ;;  %v2505_v46 = vsel %vm7997_vm14, %v6885_v62, %v2504_v31  ;;  %v4241_v5 = vshll.u32 %v4178_v58, 16 }
 0x203   : > { %2488 = vst.msk [vmem:[#allocation4 + $0x54] sm:$0xf] %vm2466_vm13, %v2413_v22  ;;  %v2205_v49 = vld [vmem:[#allocation2 + $0xd0] sm:$0xf]  ;;  %v4245_v57 = vshrl.u32 %v4178_v58, 16  ;;  %v4232_v50 = vshrl.u32 %v4177_v17, 16 }
 0x204   : > { %1933 = vrot.lane.b32.xlu1 %v1870_v16, %s7697_s16  ;;  %v2550_v21 = vpop.permute.xlu0 %2549  ;;  %v2204_v38 = vld [vmem:[#allocation2 + $0xcc] sm:$0xe]  ;;  %v4235_v56 = vshll.u32 %v4177_v17, 16  ;;  %v2206_v27 = vld [vmem:[#allocation2 + $0xd4] sm:$0x1]  ;;  %v2643_v0 = vrot.slane %v2205_v49, 5 }
 0x205   : > { %2626 = vst.msk [vmem:[#allocation4 + $0x50] sm:$0xf] %vm10998_vm2, %v2550_v21  ;;  %v7605_v37 = vld [vmem:[#allocation5 + $0x38] ss:$12 sps:$4 sm:$0xff]   ;;  %vm11002_vm2 = vcmask 585216   ;;  %v6886_v52 = vrot.slane %v2204_v38, 9 }
 0x206   : > { %v2417_v4 = vpop.permute.xlu1 %2416  ;;  %2084 = vrot.lane.b32.xlu0 %v2013_v42, %s7698_s17  ;;  %v9370_v24 = vrot.slane %v4241_v5, 5  ;;  %v4247_v22 = vrot.slane %v4245_v57, 4  ;;  %v4179_v6 = vld [vmem:[#allocation3 + $0x8] sm:$0x1]  ;;  %v4234_v55 = vrot.slane %v4232_v50, 4  ;;  %v4237_v53 = vrot.slane %v4235_v56, 5 }
 0x207   : > { %2490 = vst.msk [vmem:[#allocation4 + $0x5c] sm:$0xf] %vm2466_vm13, %v2417_v4  ;;  %v7617_v4 = vld [vmem:[%s10915_s4 + $0x70] sm:$0xff]   ;;  %v3818_v42 = vld [vmem:[#allocation3 + $0x4] sm:$0xf]  ;;  %v2645_v21 = vrot.slane %v2643_v0, 4 }
 0x208   : > { %2082 = vrot.lane.b32.xlu1 %v1870_v16, %s7698_s17  ;;  %v2554_v39 = vpop.permute.xlu0 %2553  ;;  %3854 = vst.msk [vmem:[#allocation5 + $0xc] sm:$0xf] %vm3178_vm1, %v3818_v42  ;;  %v4238_v33 = vor.u32 %v4237_v53, %v4234_v55  ;;  %v7618_v25 = vld [vmem:[%s10915_s4 + $0x30] sm:$0xff]   ;;  %v9398_v17 = vld [vmem:[%s10914_s3] ss:$0 sm:$0xff]  ;;  %v7620_v53 = vld [vmem:[%s10915_s4 + $0x68] sm:$0xff]  }
 0x209   : > { %v7604_v11 = vld [vmem:[#allocation5 + $0x20] ss:$12 sps:$4 sm:$0xff]   ;;  %2628 = vst.msk [vmem:[#allocation4 + $0x58] sm:$0xf] %vm11000_vm8, %v2554_v39  ;;  %vm11004_vm8 = vmmov %vm11002_vm2  ;;  %v2644_v39 = vsel %vm7997_vm14, %v6886_v52, %v2643_v0 }
 0x20a   : > { %v2552_v23 = vpop.permute.xlu1 %2551  ;;  %7488 = vmatmul.mubr.msk.bf16.vlgmr.msra.gmra.mxu0 %vm5993_vm15, %v7604_v11  ;;  %2426 = vrot.lane.b32.xlu0 %v9178_v18, %s7699_s18  ;;  %v4183_v11 = vld [vmem:[#allocation3 + $0x18] sm:$0xf] }
 0x20b   : > { %2627 = vst.msk [vmem:[#allocation4 + $0x54] sm:$0xf] %vm10999_vm3, %v2552_v23  ;;  %7491 = vmatprep.mubr.msk.bf16.mxu0 %vm5993_vm15, %v7605_v37  ;;  %vm11003_vm3 = vmmov %vm11002_vm2  ;;  %v4283_v58 = vshll.u32 %v4183_v11, 16 }
 0x20c   : > { %2086 = vrot.lane.b32.xlu1 %v2023_v35, %s7698_s17  ;;  %v2689_v61 = vpop.permute.xlu0 %2688  ;;  %v2646_v35 = vrot.slane %v2206_v27, 5  ;;  %v3217_v27 = vld [vmem:[#allocation3 + $0x78] sm:$0x1] }
 0x20d   : > { %2765 = vst.msk [vmem:[#allocation4 + $0x50] sm:$0xf] %vm11002_vm2, %v2689_v61  ;;  %v4251_v61 = vshll.u32 %v4179_v6, 16 }
 0x20e   : > { %v2556_v63 = vpop.permute.xlu1 %2555  ;;  %2430 = vrot.lane.b32.xlu0 %v9199_v41, %s7699_s18 }
 0x20f   : > { %2629 = vst.msk [vmem:[#allocation4 + $0x5c] sm:$0xf] %vm11001_vm0, %v2556_v63  ;;  %vm11005_vm0 = vmmov %vm11002_vm2  ;;  %vm11006_vm2 = vcmask 257216   ;;  %v4248_v63 = vor.u32 %v4247_v22, %v9370_v24  ;;  %v3218_v22 = vsel %vm8663_vm4, 0, %v3217_v27 }
 0x210   : > { %2428 = vrot.lane.b32.xlu1 %v9186_v3, %s7699_s18  ;;  %v2693_v18 = vpop.permute.xlu0 %2692  ;;  %v2506_v3 = vrot.slane %v2504_v31, 4  ;;  %v4184_v31 = vld [vmem:[#allocation3 + $0x1c] sm:$0xf]  ;;  %3219 = vst [vmem:[#allocation3 + $0x78] sm:$0x1] %v3218_v22 }
 0x211   : > { %2767 = vst.msk [vmem:[#allocation4 + $0x58] sm:$0xf] %vm11004_vm8, %v2693_v18  ;;  %vm11008_vm8 = vcmask 588800   ;;  %v4280_v18 = vshrl.u32 %v4183_v11, 16  ;;  %v9406_v5 = vrot.slane %v4248_v63, 4  ;;  %v4289_v57 = vshll.u32 %v4184_v31, 16 }
 0x212   : > { %v2691_v26 = vpop.permute.xlu1 %2690  ;;  %2565 = vrot.lane.b32.xlu0 %v9199_v41, %s7700_s21  ;;  %v7614_v41 = vld [vmem:[%s10915_s4 + $0x78] sm:$0xff]   ;;  %v2508_v9 = vsel %vm7997_vm14, %v2506_v3, %v2507_v54  ;;  %v2647_v54 = vsel %vm7997_vm14, %v2645_v21, %v2646_v35  ;;  %v7621_v35 = vld [vmem:[%s10915_s4 + $0x28] sm:$0xff]   ;;  %v3214_v22 = vld [vmem:[#allocation3 + $0x6c] sm:$0x1] }
 0x213   : > { %2766 = vst.msk [vmem:[#allocation4 + $0x54] sm:$0xf] %vm11003_vm3, %v2691_v26  ;;  %7293 = vmatprep.subr.bf16.mxu1 %v7614_v41  ;;  %vm11007_vm3 = vmmov %vm11006_vm2  ;;  %v3817_v26 = vld [vmem:[#allocation3] sm:$0xf]  ;;  %v9410_v41 = vrot.slane %v4251_v61, 5  ;;  %v9425_v42 = vrot.slane %v4289_v57, 5 }
 0x214   : > { %2432 = vrot.lane.b32.xlu1 %v9209_v44, %s7699_s18  ;;  %v1066_v47 = vpop.permute.xlu0 %1065  ;;  %7294 = vmatpush3.bf16.msra.mxu1 %v7615_v40  ;;  %3853 = vst.msk [vmem:[#allocation5] sm:$0xf] %vm3178_vm1, %v3817_v26  ;;  %v4984_v61 = vld [vmem:[#allocation3] sm:$0xe] }
 0x215   : > { %1138 = vst.msk [vmem:[#allocation4 + $0x60] sm:$0xf] %vm11006_vm2, %v1066_v47  ;;  %7295 = vmatprep.subr.bf16.mxu1 %v7617_v4  ;;  %v4293_v47 = vshrl.u32 %v4184_v31, 16  ;;  %v4254_v63 = vsel %vm7915_vm11, %v9406_v5, %v9410_v41  ;;  %v4181_v5 = vld [vmem:[#allocation3 + $0x10] sm:$0xf] }
 0x216   : > { %v2695_v7 = vpop.permute.xlu1 %2694  ;;  %2569 = vrot.lane.b32.xlu0 %v2505_v46, %s7700_s21 }
 0x217   : > { %2768 = vst.msk [vmem:[#allocation4 + $0x5c] sm:$0xf] %vm11005_vm0, %v2695_v7  ;;  %vm11009_vm0 = vmmov %vm11006_vm2  ;;  %v9404_v7 = vld [vmem:[#allocation3 + $0x4] sm:$0xf]  ;;  %v4295_v21 = vrot.slane %v4293_v47, 4 }
 0x218   : > { %2567 = vrot.lane.b32.xlu1 %v9209_v44, %s7700_s21  ;;  %v1070_v44 = vpop.permute.xlu0 %1069  ;;  %vm11010_vm2 = vmmov %vm11009_vm0  ;;  %7296 = vmatpush3.bf16.msra.mxu1 %v7618_v25  ;;  %v5088_v52 = vrot.slane %v9404_v7, 5 }
 0x219   : > { %1140 = vst.msk [vmem:[#allocation4 + $0x68] sm:$0xf] %vm11009_vm0, %v1070_v44  ;;  %7297 = vmatprep.subr.bf16.mxu1 %v7620_v53 }
 0x21a   : > { %v1068_v34 = vpop.permute.xlu1 %1067  ;;  %v7606_v16 = vld [vmem:[#allocation4 + $0x50] sm:$0xff]   ;;  %2704 = vrot.lane.b32.xlu0 %v2505_v46, %s7701_s26 }
 0x21b   : > { %1139 = vst.msk [vmem:[#allocation4 + $0x64] sm:$0xf] %vm11007_vm3, %v1068_v34  ;;  %7471 = vmatprep.mubr.msk.bf16.mxu1 %vm11008_vm8, %v7606_v16  ;;  %vm11011_vm3 = vmmov %vm11008_vm8  ;;  %vm11012_vm8 = vcmask 454016   ;;  %v4282_v34 = vrot.slane %v4280_v18, 4  ;;  %v4285_v16 = vrot.slane %v4283_v58, 5 }
 0x21c   : > { %2571 = vrot.lane.b32.xlu1 %v2508_v9, %s7700_s21  ;;  %v1197_v51 = vpop.permute.xlu0 %1196  ;;  %vm11013_vm0 = vmmov %vm11012_vm8  ;;  %7298 = vmatpush3.bf16.msra.mxu1 %v7621_v35 }
 0x21d   : > { %1269 = vst.msk [vmem:[#allocation4 + $0x60] sm:$0xf] %vm11012_vm8, %v1197_v51  ;;  %v9435_v51 = vld [vmem:[#allocation3 + $0x8] sm:$0x1]  ;;  %v4286_v25 = vor.u32 %v4285_v16, %v4282_v34  ;;  %vm11016_vm8 = vcmask 388416  }
 0x21e   : > { %v1072_v23 = vpop.permute.xlu1 %1071  ;;  %v7607_v37 = vld [vmem:[#allocation4 + $0x58] sm:$0xff]   ;;  %2708 = vrot.lane.b32.xlu0 %v2644_v39, %s7701_s26 }
 0x21f   : > { %1141 = vst.msk [vmem:[#allocation4 + $0x6c] sm:$0xf] %vm11010_vm2, %v1072_v23  ;;  %v7461_v62 = vpop.f32.mrf.mxu0  ;;  %7472 = vmatmul.mubr.msk.bf16.gmra.mxu1 %vm11011_vm3, %v7607_v37  ;;  %vm11014_vm2 = vmmov %vm11013_vm0  ;;  %v4287_v53 = vrot.slane %v4286_v25, 4  ;;  %v7625_v25 = vld [vmem:[%s10915_s4 + $0x18] sm:$0xff]  }
 0x220   : > { %2706 = vrot.lane.b32.xlu1 %v2508_v9, %s7701_s26  ;;  %v3060_v3 = vadd.f32 %v9398_v17, %v7461_v62  ;;  %v1201_v56 = vpop.permute.xlu0 %1200  ;;  %v9412_v9 = vrot.slane %v4238_v33, 4  ;;  %vm11015_vm3 = vmmov %vm11013_vm0  ;;  %v3740_v33 = vld [vmem:[#allocation3 + $0x48] sm:$0xf]  ;;  %v9447_v62 = vrot.slane %v5088_v52, 4 }
 0x221   : > { %v3051_v49 = vpop.f32.mrf.mxu0  ;;  %1271 = vst.msk [vmem:[#allocation4 + $0x68] sm:$0xf] %vm11014_vm2, %v1201_v56  ;;  %v6957_v56 = vrot.slane %v4984_v61, 9 }
 0x222   : > { %v1199_v46 = vpop.permute.xlu1 %1198  ;;  %v3156_v38 = vmax.f32 %v3060_v3, 0.0  ;;  %v3052_v50 = vadd.f32 %v9398_v17, %v3051_v49  ;;  %4048 = vrot.lane.b32.xlu0 %v9088_v13, %s7701_s26  ;;  %v4244_v26 = vsel %vm7915_vm11, %v9412_v9, %v9370_v24  ;;  %v7622_v24 = vld [vmem:[%s10915_s4 + $0x60] sm:$0xff]   ;;  %v3733_v49 = vld [vmem:[#allocation3 + $0x3c] sm:$0xf] }
 0x223   : > { %1270 = vst.msk [vmem:[#allocation4 + $0x64] sm:$0xf] %vm11013_vm0, %v1199_v46  ;;  %v7462_v0 = vpop.f32.mrf.mxu0  ;;  %v9453_v46 = vld [vmem:[#allocation3 + $0x20] sm:$0x1]  ;;  %v7623_v9 = vld [vmem:[%s10915_s4 + $0x20] sm:$0xff]   ;;  %7299 = vmatprep.subr.bf16.mxu1 %v7622_v24  ;;  %vm11017_vm0 = vmmov %vm11016_vm8 }
 0x224   : > { %2710 = vrot.lane.b32.xlu1 %v2647_v54, %s7701_s26  ;;  %v7123_v44 = vpack.c.bf16 %v3156_v38, %v3156_v38  ;;  %v3154_v6 = vmax.f32 %v3052_v50, 0.0  ;;  %v3063_v55 = vadd.f32 %v9398_v17, %v7462_v0  ;;  %v1767_v39 = vpop.permute.xlu0 %1766  ;;  %v4296_v38 = vor.u32 %v4295_v21, %v9425_v42  ;;  %7300 = vmatpush3.bf16.msra.mxu1 %v7623_v9  ;;  %v3263_v24 = vld [vmem:[#allocation3 + $0x74] sm:$0x1]  ;;  %vm11018_vm2 = vmmov %vm11017_vm0 }
 0x225   : > { %v3054_v4 = vpop.f32.mrf.mxu0  ;;  %1839 = vst.msk [vmem:[#allocation4 + $0x60] sm:$0xf] %vm1814_vm9, %v1767_v39  ;;  %v5091_v50 = vrot.slane %v9435_v51, 5  ;;  %v7628_v51 = vld [vmem:[%s10915_s4 + $0x48] sm:$0xff]  }
 0x226   : > { %v1203_v40 = vpop.permute.xlu1 %1202  ;;  %v3469_v11 = vshrl.u32 %v7123_v44, 16  ;;  %v7121_v23 = vpack.c.bf16 %v3154_v6, %v3154_v6  ;;  %v3157_v37 = vmax.f32 %v3063_v55, 0.0  ;;  %v3055_v31 = vadd.f32 %v9398_v17, %v3054_v4  ;;  %3917 = vrot.lane.b32.xlu0 %v9093_v32, %s7703_s29 }
 0x227   : > { %1272 = vst.msk [vmem:[#allocation4 + $0x6c] sm:$0xf] %vm11015_vm3, %v1203_v40  ;;  %v3472_v58 = vshll.u32 %v7123_v44, 16  ;;  %v3744_v44 = vld [vmem:[#allocation3 + $0x50] sm:$0x1]  ;;  %v4299_v55 = vshll.u32 %v9453_v46, 16  ;;  %vm11019_vm3 = vmmov %vm11017_vm0 }
 0x228   : > { %4050 = vrot.lane.b32.xlu1 %v9102_v30, %s7701_s26  ;;  %v9449_v18 = vrot.slane %v3469_v11, 7  ;;  %v3452_v3 = vshrl.u32 %v7121_v23, 16  ;;  %v7124_v54 = vpack.c.bf16 %v3157_v37, %v3157_v37  ;;  %v3155_v57 = vmax.f32 %v3055_v31, 0.0  ;;  %v1771_v16 = vpop.permute.xlu0 %1770  ;;  %v9484_v31 = vld [vmem:[#allocation3 + $0xc] sm:$0xf] }
 0x229   : > { %v3455_v0 = vshll.u32 %v7121_v23, 16  ;;  %1841 = vst.msk [vmem:[#allocation4 + $0x68] sm:$0xf] %vm1814_vm9, %v1771_v16  ;;  %v3215_v40 = vsel %vm8663_vm4, 0, %v3214_v22  ;;  %v7624_v23 = vld [vmem:[%s10915_s4 + $0x58] sm:$0xff]   ;;  %v4297_v61 = vrot.slane %v4296_v38, 4 }
 0x22a   : > { %v1769_v47 = vpop.permute.xlu1 %1768  ;;  %v3474_v32 = vor.u32 %v3472_v58, %v9449_v18  ;;  %v9464_v27 = vrot.slane %v3452_v3, 7  ;;  %v3477_v34 = vshrl.u32 %v7124_v54, 16  ;;  %v7122_v6 = vpack.c.bf16 %v3155_v57, %v3155_v57  ;;  %4615 = vrot.lane.b32.xlu0 %v4244_v26, %s7697_s16  ;;  %3216 = vst [vmem:[#allocation3 + $0x6c] sm:$0x1] %v3215_v40  ;;  %7301 = vmatprep.subr.bf16.mxu1 %v7624_v23  ;;  %v3737_v38 = vld [vmem:[#allocation3 + $0x44] sm:$0x1] }
 0x22b   : > { %1840 = vst.msk [vmem:[#allocation4 + $0x64] sm:$0xf] %vm1814_vm9, %v1769_v47  ;;  %v3480_v11 = vshll.u32 %v7124_v54, 16  ;;  %v3475_v58 = vrot.slane %v9449_v18, 4  ;;  %v9507_v18 = vsel %vm7915_vm11, %v4287_v53, %v9425_v42  ;;  %7302 = vmatpush3.bf16.msra.mxu1 %v7625_v25  ;;  %v4256_v41 = vshrl.u32 %v9484_v31, 16  ;;  %v7626_v42 = vld [vmem:[%s10915_s4 + $0x50] sm:$0xff]  }
 0x22c   : > { %3919 = vrot.lane.b32.xlu1 %v9119_v2, %s7703_s29  ;;  %v3741_v4 = vsel %vm9049_vm6, %v3474_v32, %v3740_v33  ;;  %v3457_v21 = vor.u32 %v3455_v0, %v9464_v27  ;;  %v3479_v35 = vrot.slane %v3477_v34, 7  ;;  %v3266_v2 = vld [vmem:[#allocation3 + $0x80] sm:$0x1]  ;;  %v3460_v37 = vshrl.u32 %v7122_v6, 16  ;;  %v1920_v7 = vpop.permute.xlu0 %1919  ;;  %v4186_v53 = vld [vmem:[#allocation3 + $0x24] sm:$0xf]  ;;  %7303 = vmatprep.subr.bf16.mxu1 %v7626_v42 }
 0x22d   : > { %3742 = vst [vmem:[#allocation3 + $0x48] sm:$0xf] %v3741_v4  ;;  %v5089_v33 = vsel %vm7997_vm14, %v6957_v56, %v5088_v52  ;;  %v3267_v26 = vsel %vm8682_vm5, 0, %v3266_v2  ;;  %v9495_v52 = vld [vmem:[#allocation3 + $0x10] sm:$0xf]  ;;  %v3463_v47 = vshll.u32 %v7122_v6, 16 }
 0x22e   : > { %v1773_v39 = vpop.permute.xlu1 %1772  ;;  %v3734_v3 = vsel %vm9049_vm6, %v3457_v21, %v3733_v49  ;;  %v3482_v54 = vor.u32 %v3480_v11, %v3479_v35  ;;  %v3484_v46 = vrot.slane %v3479_v35, 4  ;;  %3268 = vst [vmem:[#allocation3 + $0x80] sm:$0x1] %v3267_v26  ;;  %v3462_v57 = vrot.slane %v3460_v37, 7  ;;  %1992 = vst.msk [vmem:[#allocation4 + $0x60] sm:$0xf] %vm1967_vm10, %v1920_v7  ;;  %4856 = vrot.lane.b32.xlu0 %v9507_v18, %s7703_s29 }
 0x22f   : > { %1842 = vst.msk [vmem:[#allocation4 + $0x6c] sm:$0xf] %vm1814_vm9, %v1773_v39  ;;  %3735 = vst [vmem:[#allocation3 + $0x3c] sm:$0xf] %v3734_v3  ;;  %v3264_v49 = vsel %vm8682_vm5, 0, %v3263_v24  ;;  %v4301_v32 = vrot.slane %v4299_v55, 5  ;;  %v5092_v11 = vsel %vm7997_vm14, %v9447_v62, %v5091_v50 }
 0x230   : > { %4617 = vrot.lane.b32.xlu1 %v4254_v63, %s7697_s16  ;;  %v3483_v56 = vsel %vm7807_vm7, %v3475_v58, %v3482_v54  ;;  %v3745_v9 = vsel %vm8663_vm4, %v3484_v46, %v3744_v44  ;;  %3265 = vst [vmem:[#allocation3 + $0x74] sm:$0x1] %v3264_v49  ;;  %v3458_v63 = vrot.slane %v9464_v27, 4  ;;  %v3465_v0 = vor.u32 %v3463_v47, %v3462_v57  ;;  %v4987_v44 = vld [vmem:[#allocation3 + $0xc] sm:$0xe]  ;;  %v7627_v6 = vld [vmem:[%s10915_s4 + $0x10] sm:$0xff]   ;;  %v1924_v27 = vpop.permute.xlu0 %1923 }
 0x231   : > { %3743 = vst.msk [vmem:[#allocation3 + $0x4c] sm:$0xf] %vm3178_vm1, %v3483_v56  ;;  %3746 = vst [vmem:[#allocation3 + $0x50] sm:$0x1] %v3745_v9  ;;  %v3467_v34 = vrot.slane %v3462_v57, 4  ;;  %v5095_v22 = vrot.slane %v9495_v52, 5  ;;  %v9530_v55 = vsel %vm7915_vm11, %v4297_v61, %v4301_v32  ;;  %7304 = vmatpush3.bf16.msra.mxu1 %v7627_v6 }
 0x232   : > { %v1922_v16 = vpop.permute.xlu1 %1921  ;;  %v3466_v40 = vsel %vm7807_vm7, %v3458_v63, %v3465_v0  ;;  %1994 = vst.msk [vmem:[#allocation4 + $0x68] sm:$0xf] %vm1967_vm10, %v1924_v27  ;;  %v4265_v21 = vshll.u32 %v4181_v5, 16  ;;  %v4259_v35 = vshll.u32 %v9484_v31, 16  ;;  %5198 = vrot.lane.b32.xlu0 %v5089_v33, %s7701_s26  ;;  %v4989_v2 = vld [vmem:[#allocation3 + $0x14] sm:$0x1]  ;;  %7305 = vmatprep.subr.bf16.mxu1 %v7628_v51 }
 0x233   : > { %1993 = vst.msk [vmem:[#allocation4 + $0x64] sm:$0xf] %vm1967_vm10, %v1922_v16  ;;  %v3738_v4 = vsel %vm8663_vm4, %v3467_v34, %v3737_v38  ;;  %v6958_v23 = vrot.slane %v4987_v44, 9  ;;  %v9547_v37 = vrot.slane %v4256_v41, 4  ;;  %v5097_v31 = vrot.slane %v5095_v22, 4  ;;  %v7629_v16 = vld [vmem:[%s10915_s4 + $0x8] sm:$0xff]  }
 0x234   : > { %4858 = vrot.lane.b32.xlu1 %v9530_v55, %s7703_s29  ;;  %3736 = vst.msk [vmem:[#allocation3 + $0x40] sm:$0xf] %vm3178_vm1, %v3466_v40  ;;  %3739 = vst [vmem:[#allocation3 + $0x44] sm:$0x1] %v3738_v4  ;;  %v9549_v39 = vld [vmem:[#allocation3 + $0x48] sm:$0xf]  ;;  %v2073_v50 = vpop.permute.xlu0 %2072 }
 0x235   : > { %v4269_v26 = vshrl.u32 %v4181_v5, 16  ;;  %v4304_v25 = vshrl.u32 %v4186_v53, 16  ;;  %v4307_v58 = vshll.u32 %v4186_v53, 16  ;;  %3865 = vst.msk [vmem:[#allocation5 + $0x90] sm:$0xf] %vm3178_vm1, %v9549_v39  ;;  %v5098_v54 = vrot.slane %v4989_v2, 5  ;;  %7306 = vmatpush3.bf16.msra.mxu1 %v7629_v16 }
 0x236   : > { %v1926_v61 = vpop.permute.xlu1 %1925  ;;  %v5002_v62 = vld [vmem:[#allocation3 + $0x48] sm:$0xe]  ;;  %v9557_v3 = vld [vmem:[#allocation3 + $0x3c] sm:$0xf]  ;;  %2145 = vst.msk [vmem:[#allocation4 + $0x60] sm:$0xf] %vm2120_vm12, %v2073_v50  ;;  %v9563_v46 = vsel %vm7997_vm14, %v6958_v23, %v5095_v22 }
 0x237   : > { %1995 = vst.msk [vmem:[#allocation4 + $0x6c] sm:$0xf] %vm1967_vm10, %v1926_v61  ;;  %v4187_v33 = vld [vmem:[#allocation3 + $0x28] sm:$0xf]  ;;  %v9565_v7 = vrot.slane %v4265_v21, 5  ;;  %v4261_v52 = vrot.slane %v4259_v35, 5  ;;  %5336 = vrot.lane.b32.xlu0 %v9563_v46, %s7697_s16  ;;  %v9578_v41 = vsel %vm7997_vm14, %v5097_v31, %v5098_v54 }
 0x238   : > { %5200 = vrot.lane.b32.xlu1 %v5092_v11, %s7701_s26  ;;  %3863 = vst.msk [vmem:[#allocation5 + $0x78] sm:$0xf] %vm3178_vm1, %v9557_v3  ;;  %v5003_v24 = vld [vmem:[#allocation3 + $0x4c] sm:$0xf]  ;;  %v5004_v57 = vld [vmem:[#allocation3 + $0x50] sm:$0x1]  ;;  %v2077_v42 = vpop.permute.xlu0 %2076 }
 0x239   : > { %v9571_v47 = vld [vmem:[#allocation3 + $0x4c] sm:$0xf]  ;;  %v6963_v38 = vrot.slane %v5002_v62, 9  ;;  %v4999_v49 = vld [vmem:[#allocation3 + $0x3c] sm:$0xe]  ;;  %v5130_v56 = vrot.slane %v5003_v24, 5  ;;  %v4262_v53 = vor.u32 %v4261_v52, %v9547_v37 }
 0x23a   : > { %v2075_v9 = vpop.permute.xlu1 %2074  ;;  %v4271_v32 = vrot.slane %v4269_v26, 4  ;;  %v4313_v5 = vshll.u32 %v4187_v33, 16  ;;  %3866 = vst.msk [vmem:[#allocation5 + $0x9c] sm:$0xf] %vm3178_vm1, %v9571_v47  ;;  %v4317_v63 = vshrl.u32 %v4187_v33, 16  ;;  %v4306_v0 = vrot.slane %v4304_v25, 4 }
 0x23b   : > { %2146 = vst.msk [vmem:[#allocation4 + $0x64] sm:$0xf] %vm2120_vm12, %v2075_v9  ;;  %v4309_v34 = vrot.slane %v4307_v58, 5  ;;  %v5132_v22 = vrot.slane %v5130_v56, 4  ;;  %v5133_v44 = vrot.slane %v5004_v57, 5  ;;  %v9589_v40 = vsel %vm7997_vm14, %v6963_v38, %v5130_v56  ;;  %4052 = vrot.lane.b32.xlu0 %v9271_v45, %s7701_s26  ;;  %v7630_v31 = vld [vmem:[%s10915_s4 + $0x40] sm:$0xff]  }
 0x23c   : > { %v5000_v6 = vld [vmem:[#allocation3 + $0x40] sm:$0xf]  ;;  %v5001_v27 = vld [vmem:[#allocation3 + $0x44] sm:$0x1]  ;;  %5338 = vrot.lane.b32.xlu1 %v9578_v41, %s7697_s16  ;;  %2147 = vst.msk [vmem:[#allocation4 + $0x68] sm:$0xf] %vm2120_vm12, %v2077_v42  ;;  %v4272_v23 = vor.u32 %v4271_v32, %v9565_v7  ;;  %v2419_v58 = vpop.permute.xlu0 %2418  ;;  %7307 = vmatprep.subr.bf16.mxu1 %v7630_v31 }
 0x23d   : > { %v6962_v4 = vrot.slane %v4999_v49, 9  ;;  %v5123_v21 = vrot.slane %v5000_v6, 5  ;;  %5514 = vst.msk [vmem:[#allocation5 + $0x68] sm:$0xf] %vm3178_vm1, %v9589_v40  ;;  %v9595_v35 = vld [vmem:[#allocation3 + $0x40] sm:$0xf]  ;;  %v9600_v61 = vsel %vm7997_vm14, %v5132_v22, %v5133_v44  ;;  %v4310_v54 = vor.u32 %v4309_v34, %v4306_v0 }
 0x23e   : > { %v2079_v11 = vpop.permute.xlu1 %2078  ;;  %v4182_v2 = vld [vmem:[#allocation3 + $0x14] sm:$0x1]  ;;  %v4315_v37 = vrot.slane %v4313_v5, 5  ;;  %3864 = vst.msk [vmem:[#allocation5 + $0x84] sm:$0xf] %vm3178_vm1, %v9595_v35  ;;  %v5126_v25 = vrot.slane %v5001_v27, 5 }
 0x23f   : > { %v5125_v26 = vrot.slane %v5123_v21, 4  ;;  %2148 = vst.msk [vmem:[#allocation4 + $0x6c] sm:$0xf] %vm2120_vm12, %v2079_v11  ;;  %v9610_v51 = vsel %vm7997_vm14, %v6962_v4, %v5123_v21  ;;  %v4319_v62 = vrot.slane %v4317_v63, 4  ;;  %v7631_v50 = vld [vmem:[%s10915_s4] sm:$0xff]   ;;  %v4263_v33 = vrot.slane %v4262_v53, 4  ;;  %3921 = vrot.lane.b32.xlu0 %v9088_v13, %s7703_s29 }
 0x240   : > { %5515 = vst.msk [vmem:[#allocation5 + $0x74] sm:$0xf] %vm3178_vm1, %v9600_v61  ;;  %4054 = vrot.lane.b32.xlu1 %v9296_v12, %s7701_s26  ;;  %5512 = vst.msk [vmem:[#allocation5 + $0x50] sm:$0xf] %vm3178_vm1, %v9610_v51  ;;  %v4275_v52 = vshll.u32 %v4182_v2, 16  ;;  %7308 = vmatpush3.bf16.msra.mxu1 %v7631_v50  ;;  %v2423_v49 = vpop.permute.xlu0 %2422  ;;  %v4273_v56 = vrot.slane %v4272_v23, 4 }
 0x241   : > { %2491 = vst.msk [vmem:[#allocation4 + $0x60] sm:$0xf] %vm2466_vm13, %v2419_v58  ;;  %v9626_v24 = vsel %vm7997_vm14, %v5125_v26, %v5126_v25  ;;  %v4188_v38 = vld [vmem:[#allocation3 + $0x2c] sm:$0x1]  ;;  %v4320_v9 = vor.u32 %v4319_v62, %v4315_v37  ;;  %2493 = vst.msk [vmem:[#allocation4 + $0x68] sm:$0xf] %vm2466_vm13, %v2423_v49  ;;  %v9637_v13 = vsel %vm7915_vm11, %v4263_v33, %v9565_v7 }
 0x242   : > { %v2421_v57 = vpop.permute.xlu1 %2420  ;;  %5513 = vst.msk [vmem:[#allocation5 + $0x5c] sm:$0xf] %vm3178_vm1, %v9626_v24  ;;  %v4311_v32 = vrot.slane %v4310_v54, 4  ;;  %v4277_v5 = vrot.slane %v4275_v52, 5  ;;  %v4323_v42 = vshll.u32 %v4188_v38, 16 }
 0x243   : > { %2492 = vst.msk [vmem:[#allocation4 + $0x64] sm:$0xf] %vm2466_vm13, %v2421_v57  ;;  %4619 = vrot.lane.b32.xlu0 %v9637_v13, %s7697_s16  ;;  %v4321_v34 = vrot.slane %v4320_v9, 4  ;;  %v4189_v4 = vld [vmem:[#allocation3 + $0x30] sm:$0xf] }
 0x244   : > { %3923 = vrot.lane.b32.xlu1 %v9102_v30, %s7703_s29  ;;  %v9644_v0 = vsel %vm7915_vm11, %v4273_v56, %v4277_v5  ;;  %v2558_v30 = vpop.permute.xlu0 %2557  ;;  %v9651_v7 = vsel %vm7915_vm11, %v4311_v32, %v4315_v37  ;;  %v4325_v22 = vrot.slane %v4323_v42, 5  ;;  %v4190_v2 = vld [vmem:[#allocation3 + $0x34] sm:$0xf]  ;;  %v4328_v23 = vshrl.u32 %v4189_v4, 16  ;;  %v4191_v49 = vld [vmem:[#allocation3 + $0x38] sm:$0x1] }
 0x245   : > { %2630 = vst.msk [vmem:[#allocation4 + $0x60] sm:$0xf] %vm11016_vm8, %v2558_v30  ;;  %vm11020_vm8 = vcmask 585216   ;;  %v4331_v37 = vshll.u32 %v4189_v4, 16  ;;  %v4337_v26 = vshll.u32 %v4190_v2, 16  ;;  %v4341_v25 = vshrl.u32 %v4190_v2, 16 }
 0x246   : > { %v2425_v63 = vpop.permute.xlu1 %2424  ;;  %v9659_v27 = vsel %vm7915_vm11, %v4321_v34, %v4325_v22  ;;  %v4347_v5 = vshll.u32 %v4191_v49, 16  ;;  %v3223_v2 = vld [vmem:[#allocation3 + $0x90] sm:$0x1] }
 0x247   : > { %2494 = vst.msk [vmem:[#allocation4 + $0x6c] sm:$0xf] %vm2466_vm13, %v2425_v63  ;;  %4860 = vrot.lane.b32.xlu0 %v9651_v7, %s7703_s29  ;;  %v7609_v6 = vld [vmem:[#allocation5 + $0x68] ss:$12 sps:$4 sm:$0xff]   ;;  %v4333_v58 = vrot.slane %v4331_v37, 5  ;;  %v4339_v33 = vrot.slane %v4337_v26, 5 }
 0x248   : > { %4621 = vrot.lane.b32.xlu1 %v9644_v0, %s7697_s16  ;;  %v2562_v53 = vpop.permute.xlu0 %2561  ;;  %v4343_v54 = vrot.slane %v4341_v25, 4  ;;  %v4349_v22 = vrot.slane %v4347_v5, 5  ;;  %v3224_v37 = vsel %vm8663_vm4, 0, %v3223_v2  ;;  %v4192_v25 = vld [vmem:[#allocation3 + $0x3c] sm:$0xf] }
 0x249   : > { %v7608_v16 = vld [vmem:[#allocation5 + $0x50] ss:$12 sps:$4 sm:$0xff]   ;;  %2632 = vst.msk [vmem:[#allocation4 + $0x68] sm:$0xf] %vm11018_vm2, %v2562_v53  ;;  %3225 = vst [vmem:[#allocation3 + $0x90] sm:$0x1] %v3224_v37 }
 0x24a   : > { %v2560_v44 = vpop.permute.xlu1 %2559  ;;  %7492 = vmatmul.mubr.msk.bf16.gmra.mxu0 %vm5993_vm15, %v7608_v16  ;;  %v4344_v9 = vor.u32 %v4343_v54, %v4339_v33  ;;  %v3754_v5 = vld [vmem:[#allocation3 + $0x60] sm:$0xf] }
 0x24b   : > { %2631 = vst.msk [vmem:[#allocation4 + $0x64] sm:$0xf] %vm11017_vm0, %v2560_v44  ;;  %7495 = vmatprep.mubr.msk.bf16.mxu0 %vm5993_vm15, %v7609_v6  ;;  %5202 = vrot.lane.b32.xlu0 %v9563_v46, %s7701_s26  ;;  %vm11021_vm0 = vmmov %vm11020_vm8 }
 0x24c   : > { %4862 = vrot.lane.b32.xlu1 %v9659_v27, %s7703_s29  ;;  %v2697_v11 = vpop.permute.xlu0 %2696  ;;  %vm11022_vm2 = vmmov %vm11021_vm0  ;;  %v4345_v30 = vrot.slane %v4344_v9, 4 }
 0x24d   : > { %2769 = vst.msk [vmem:[#allocation4 + $0x60] sm:$0xf] %vm11020_vm8, %v2697_v11  ;;  %vm11024_vm8 = vcmask 257216  }
 0x24e   : > { %v2564_v21 = vpop.permute.xlu1 %2563 }
 0x24f   : > { %2633 = vst.msk [vmem:[#allocation4 + $0x6c] sm:$0xf] %vm11019_vm3, %v2564_v21  ;;  %5340 = vrot.lane.b32.xlu0 %v9117_v59, %s7697_s16  ;;  %vm11023_vm3 = vmmov %vm11021_vm0  ;;  %v9708_v21 = vsel %vm7915_vm11, %v4345_v30, %v4349_v22 }
 0x250   : > { %5204 = vrot.lane.b32.xlu1 %v9578_v41, %s7701_s26  ;;  %v2701_v46 = vpop.permute.xlu0 %2700  ;;  %v4330_v41 = vrot.slane %v4328_v23, 4 }
 0x251   : > { %2771 = vst.msk [vmem:[#allocation4 + $0x68] sm:$0xf] %vm11022_vm2, %v2701_v46  ;;  %vm11026_vm2 = vcmask 588800  }
 0x252   : > { %v2699_v31 = vpop.permute.xlu1 %2698  ;;  %v4334_v52 = vor.u32 %v4333_v58, %v4330_v41 }
 0x253   : > { %2770 = vst.msk [vmem:[#allocation4 + $0x64] sm:$0xf] %vm11021_vm0, %v2699_v31  ;;  %4056 = vrot.lane.b32.xlu0 %v9266_v8, %s7701_s26  ;;  %vm11025_vm0 = vmmov %vm11024_vm8 }
 0x254   : > { %5342 = vrot.lane.b32.xlu1 %v9133_v15, %s7697_s16  ;;  %v1074_v50 = vpop.permute.xlu0 %1073  ;;  %v4335_v32 = vrot.slane %v4334_v52, 4  ;;  %v4193_v52 = vld [vmem:[#allocation3 + $0x40] sm:$0xf] }
 0x255   : > { %1142 = vst.msk [vmem:[#allocation4 + $0x70] sm:$0xf] %vm11024_vm8, %v1074_v50  ;;  %vm11028_vm8 = vmmov %vm11025_vm0  ;;  %v4365_v30 = vshrl.u32 %v4193_v52, 16 }
 0x256   : > { %v2703_v62 = vpop.permute.xlu1 %2702 }
 0x257   : > { %2772 = vst.msk [vmem:[#allocation4 + $0x6c] sm:$0xf] %vm11023_vm3, %v2703_v62  ;;  %3925 = vrot.lane.b32.xlu0 %v9271_v45, %s7703_s29  ;;  %vm11027_vm3 = vmmov %vm11025_vm0 }
 0x258   : > { %4058 = vrot.lane.b32.xlu1 %v9280_v19, %s7701_s26  ;;  %v1078_v56 = vpop.permute.xlu0 %1077 }
 0x259   : > { %1144 = vst.msk [vmem:[#allocation4 + $0x78] sm:$0xf] %vm11027_vm3, %v1078_v56 }
 0x25a   : > { %v1076_v57 = vpop.permute.xlu1 %1075  ;;  %v7610_v38 = vld [vmem:[#allocation4 + $0x60] sm:$0xff]  }
 0x25b   : > { %1143 = vst.msk [vmem:[#allocation4 + $0x74] sm:$0xf] %vm11025_vm0, %v1076_v57  ;;  %7475 = vmatprep.mubr.msk.bf16.mxu1 %vm11026_vm2, %v7610_v38  ;;  %4623 = vrot.lane.b32.xlu0 %v9507_v18, %s7697_s16  ;;  %vm11029_vm0 = vmmov %vm11026_vm2  ;;  %vm11030_vm2 = vcmask 454016   ;;  %v4352_v38 = vshrl.u32 %v4192_v25, 16 }
 0x25c   : > { %3927 = vrot.lane.b32.xlu1 %v9296_v12, %s7703_s29  ;;  %v1205_v63 = vpop.permute.xlu0 %1204  ;;  %v9699_v12 = vsel %vm7915_vm11, %v4335_v32, %v4339_v33  ;;  %vm11031_vm3 = vmmov %vm11030_vm2 }
 0x25d   : > { %1273 = vst.msk [vmem:[#allocation4 + $0x70] sm:$0xf] %vm11030_vm2, %v1205_v63  ;;  %v4361_v63 = vshll.u32 %v4193_v52, 16 }
 0x25e   : > { %v1080_v45 = vpop.permute.xlu1 %1079  ;;  %v7611_v42 = vld [vmem:[#allocation4 + $0x68] sm:$0xff]  }
 0x25f   : > { %1145 = vst.msk [vmem:[#allocation4 + $0x7c] sm:$0xf] %vm11028_vm8, %v1080_v45  ;;  %v7465_v34 = vpop.f32.mrf.mxu0  ;;  %7476 = vmatmul.mubr.msk.bf16.gmra.mxu1 %vm11029_vm0, %v7611_v42  ;;  %4864 = vrot.lane.b32.xlu0 %v9699_v12, %s7703_s29  ;;  %vm11032_vm8 = vmmov %vm11030_vm2 }
 0x260   : > { %4625 = vrot.lane.b32.xlu1 %v9530_v55, %s7697_s16  ;;  %v3076_v16 = vadd.f32 %v9398_v17, %v7465_v34  ;;  %v1209_v11 = vpop.permute.xlu0 %1208  ;;  %vm11033_vm0 = vmmov %vm11030_vm2  ;;  %vm11038_vm2 = vcmask 585216  }
 0x261   : > { %v3067_v6 = vpop.f32.mrf.mxu0  ;;  %1275 = vst.msk [vmem:[#allocation4 + $0x78] sm:$0xf] %vm11032_vm8, %v1209_v11  ;;  %vm11040_vm8 = vmmov %vm11038_vm2 }
 0x262   : > { %v1207_v44 = vpop.permute.xlu1 %1206  ;;  %v3160_v53 = vmax.f32 %v3076_v16, 0.0  ;;  %v3068_v4 = vadd.f32 %v9398_v17, %v3067_v6  ;;  %v3747_v6 = vld [vmem:[#allocation3 + $0x54] sm:$0xf] }
 0x263   : > { %1274 = vst.msk [vmem:[#allocation4 + $0x74] sm:$0xf] %vm11031_vm3, %v1207_v44  ;;  %v7466_v23 = vpop.f32.mrf.mxu0  ;;  %5206 = vrot.lane.b32.xlu0 %v9117_v59, %s7701_s26  ;;  %v4355_v59 = vshll.u32 %v4192_v25, 16  ;;  %v3220_v44 = vld [vmem:[#allocation3 + $0x84] sm:$0x1]  ;;  %vm11039_vm3 = vmmov %vm11038_vm2 }
 0x264   : > { %4866 = vrot.lane.b32.xlu1 %v9708_v21, %s7703_s29  ;;  %v7127_v31 = vpack.c.bf16 %v3160_v53, %v3160_v53  ;;  %v3158_v46 = vmax.f32 %v3068_v4, 0.0  ;;  %v3079_v26 = vadd.f32 %v9398_v17, %v7466_v23  ;;  %v1775_v54 = vpop.permute.xlu0 %1774  ;;  %v4354_v4 = vrot.slane %v4352_v38, 4  ;;  %v3758_v25 = vld [vmem:[#allocation3 + $0x68] sm:$0x1] }
 0x265   : > { %v3070_v58 = vpop.f32.mrf.mxu0  ;;  %1843 = vst.msk [vmem:[#allocation4 + $0x70] sm:$0xf] %vm1814_vm9, %v1775_v54  ;;  %v4357_v11 = vrot.slane %v4355_v59, 5  ;;  %v3221_v2 = vsel %vm8663_vm4, 0, %v3220_v44 }
 0x266   : > { %v1211_v41 = vpop.permute.xlu1 %1210  ;;  %v3503_v62 = vshrl.u32 %v7127_v31, 16  ;;  %v7125_v50 = vpack.c.bf16 %v3158_v46, %v3158_v46  ;;  %v3161_v33 = vmax.f32 %v3079_v26, 0.0  ;;  %v3071_v57 = vadd.f32 %v9398_v17, %v3070_v58  ;;  %3222 = vst [vmem:[#allocation3 + $0x84] sm:$0x1] %v3221_v2  ;;  %v3272_v26 = vld [vmem:[#allocation3 + $0x98] sm:$0x1] }
 0x267   : > { %1276 = vst.msk [vmem:[#allocation4 + $0x7c] sm:$0xf] %vm11033_vm0, %v1211_v41  ;;  %v3506_v56 = vshll.u32 %v7127_v31, 16  ;;  %5344 = vrot.lane.b32.xlu0 %v9308_v28, %s7697_s16  ;;  %vm4144_vm0 = vcmask 781824  }
 0x268   : > { %5208 = vrot.lane.b32.xlu1 %v9133_v15, %s7701_s26  ;;  %v3505_v49 = vrot.slane %v3503_v62, 7  ;;  %v3486_v9 = vshrl.u32 %v7125_v50, 16  ;;  %v7128_v32 = vpack.c.bf16 %v3161_v33, %v3161_v33  ;;  %v3159_v45 = vmax.f32 %v3071_v57, 0.0  ;;  %v1779_v22 = vpop.permute.xlu0 %1778 }
 0x269   : > { %v3489_v16 = vshll.u32 %v7125_v50, 16  ;;  %1845 = vst.msk [vmem:[#allocation4 + $0x78] sm:$0xf] %vm1814_vm9, %v1779_v22  ;;  %v4363_v62 = vrot.slane %v4361_v63, 5  ;;  %v4367_v50 = vrot.slane %v4365_v30, 4  ;;  %v3273_v33 = vsel %vm8682_vm5, 0, %v3272_v26 }
 0x26a   : > { %v1777_v42 = vpop.permute.xlu1 %1776  ;;  %v3508_v17 = vor.u32 %v3506_v56, %v3505_v49  ;;  %v3488_v34 = vrot.slane %v3486_v9, 7  ;;  %v3511_v15 = vshrl.u32 %v7128_v32, 16  ;;  %v7126_v53 = vpack.c.bf16 %v3159_v45, %v3159_v45  ;;  %3274 = vst [vmem:[#allocation3 + $0x98] sm:$0x1] %v3273_v33  ;;  %v3269_v56 = vld [vmem:[#allocation3 + $0x8c] sm:$0x1] }
 0x26b   : > { %1844 = vst.msk [vmem:[#allocation4 + $0x74] sm:$0xf] %vm1814_vm9, %v1777_v42  ;;  %v3514_v46 = vshll.u32 %v7128_v32, 16  ;;  %4060 = vrot.lane.b32.xlu0 %v9557_v3, %s7701_s26  ;;  %v3509_v54 = vrot.slane %v3505_v49, 4  ;;  %v3270_v49 = vsel %vm8682_vm5, 0, %v3269_v56 }
 0x26c   : > { %5346 = vrot.lane.b32.xlu1 %v9320_v48, %s7697_s16  ;;  %v3755_v23 = vsel %vm9049_vm6, %v3508_v17, %v3754_v5  ;;  %v3491_v37 = vor.u32 %v3489_v16, %v3488_v34  ;;  %v3513_v31 = vrot.slane %v3511_v15, 7  ;;  %v3494_v41 = vshrl.u32 %v7126_v53, 16  ;;  %v1928_v59 = vpop.permute.xlu0 %1927  ;;  %v3751_v63 = vld [vmem:[#allocation3 + $0x5c] sm:$0x1]  ;;  %v4194_v30 = vld [vmem:[#allocation3 + $0x44] sm:$0x1] }
 0x26d   : > { %3756 = vst [vmem:[#allocation3 + $0x60] sm:$0xf] %v3755_v23  ;;  %v3497_v32 = vshll.u32 %v7126_v53, 16  ;;  %1996 = vst.msk [vmem:[#allocation4 + $0x70] sm:$0xf] %vm1967_vm10, %v1928_v59  ;;  %v4358_v5 = vor.u32 %v4357_v11, %v4354_v4  ;;  %v3492_v17 = vrot.slane %v3488_v34, 4 }
 0x26e   : > { %v1781_v58 = vpop.permute.xlu1 %1780  ;;  %v3748_v52 = vsel %vm9049_vm6, %v3491_v37, %v3747_v6  ;;  %v3516_v57 = vor.u32 %v3514_v46, %v3513_v31  ;;  %v3518_v38 = vrot.slane %v3513_v31, 4  ;;  %v3496_v9 = vrot.slane %v3494_v41, 7  ;;  %3271 = vst [vmem:[#allocation3 + $0x8c] sm:$0x1] %v3270_v49 }
 0x26f   : > { %1846 = vst.msk [vmem:[#allocation4 + $0x7c] sm:$0xf] %vm1814_vm9, %v1781_v58  ;;  %3749 = vst [vmem:[#allocation3 + $0x54] sm:$0xf] %v3748_v52  ;;  %3929 = vrot.lane.b32.xlu0 %v9266_v8, %s7703_s29  ;;  %v4368_v6 = vor.u32 %v4367_v50, %v4363_v62  ;;  %v4371_v8 = vshll.u32 %v4194_v30, 16  ;;  %v4359_v34 = vrot.slane %v4358_v5, 4 }
 0x270   : > { %4062 = vrot.lane.b32.xlu1 %v9595_v35, %s7701_s26  ;;  %v3517_v45 = vsel %vm7807_vm7, %v3509_v54, %v3516_v57  ;;  %v3759_v42 = vsel %vm8663_vm4, %v3518_v38, %v3758_v25  ;;  %v3499_v16 = vor.u32 %v3497_v32, %v3496_v9  ;;  %v3501_v15 = vrot.slane %v3496_v9, 4  ;;  %v1932_v44 = vpop.permute.xlu0 %1931 }
 0x271   : > { %3757 = vst.msk [vmem:[#allocation3 + $0x64] sm:$0xf] %vm3178_vm1, %v3517_v45  ;;  %3760 = vst [vmem:[#allocation3 + $0x68] sm:$0x1] %v3759_v42  ;;  %v4369_v37 = vrot.slane %v4368_v6, 4  ;;  %v4373_v46 = vrot.slane %v4371_v8, 5  ;;  %v9775_v26 = vsel %vm7915_vm11, %v4359_v34, %v4363_v62 }
 0x272   : > { %v1930_v22 = vpop.permute.xlu1 %1929  ;;  %v3500_v53 = vsel %vm7807_vm7, %v3492_v17, %v3499_v16  ;;  %v3752_v4 = vsel %vm8663_vm4, %v3501_v15, %v3751_v63  ;;  %1998 = vst.msk [vmem:[#allocation4 + $0x78] sm:$0xf] %vm1967_vm10, %v1932_v44  ;;  %v4195_v45 = vld [vmem:[#allocation3 + $0x48] sm:$0xf]  ;;  %vm11034_vm9 = vcmask 388416  }
 0x273   : > { %1997 = vst.msk [vmem:[#allocation4 + $0x74] sm:$0xf] %vm1967_vm10, %v1930_v22  ;;  %3753 = vst [vmem:[#allocation3 + $0x5c] sm:$0x1] %v3752_v4  ;;  %4627 = vrot.lane.b32.xlu0 %v9651_v7, %s7697_s16  ;;  %v9788_v62 = vsel %vm7915_vm11, %v4369_v37, %v4373_v46  ;;  %v4196_v22 = vld [vmem:[#allocation3 + $0x4c] sm:$0xf] }
 0x274   : > { %3931 = vrot.lane.b32.xlu1 %v9280_v19, %s7703_s29  ;;  %3750 = vst.msk [vmem:[#allocation3 + $0x58] sm:$0xf] %vm3178_vm1, %v3500_v53  ;;  %v9763_v11 = vld [vmem:[#allocation3 + $0x60] sm:$0xf]  ;;  %v2081_v19 = vpop.permute.xlu0 %2080  ;;  %v4376_v44 = vshrl.u32 %v4195_v45, 16  ;;  %v4379_v6 = vshll.u32 %v4195_v45, 16 }
 0x275   : > { %3869 = vst.msk [vmem:[#allocation5 + $0xc0] sm:$0xf] %vm3178_vm1, %v9763_v11  ;;  %v5008_v23 = vld [vmem:[#allocation3 + $0x60] sm:$0xe]  ;;  %v4385_v8 = vshll.u32 %v4196_v22, 16  ;;  %v4389_v34 = vshrl.u32 %v4196_v22, 16 }
 0x276   : > { %v1934_v2 = vpop.permute.xlu1 %1933  ;;  %v9768_v31 = vld [vmem:[#allocation3 + $0x54] sm:$0xf]  ;;  %2149 = vst.msk [vmem:[#allocation4 + $0x70] sm:$0xf] %vm2120_vm12, %v2081_v19  ;;  %v6965_v50 = vrot.slane %v5008_v23, 9  ;;  %v4381_v23 = vrot.slane %v4379_v6, 5 }
 0x277   : > { %1999 = vst.msk [vmem:[#allocation4 + $0x7c] sm:$0xf] %vm1967_vm10, %v1934_v2  ;;  %4868 = vrot.lane.b32.xlu0 %v9775_v26, %s7703_s29  ;;  %v5005_v33 = vld [vmem:[#allocation3 + $0x54] sm:$0xe]  ;;  %v4378_v2 = vrot.slane %v4376_v44, 4  ;;  %v4387_v46 = vrot.slane %v4385_v8, 5  ;;  %vm11035_vm10 = vmmov %vm11034_vm9 }
 0x278   : > { %4629 = vrot.lane.b32.xlu1 %v9659_v27, %s7697_s16  ;;  %3867 = vst.msk [vmem:[#allocation5 + $0xa8] sm:$0xf] %vm3178_vm1, %v9768_v31  ;;  %v5009_v25 = vld [vmem:[#allocation3 + $0x64] sm:$0xf]  ;;  %v5010_v41 = vld [vmem:[#allocation3 + $0x68] sm:$0x1]  ;;  %v2085_v57 = vpop.permute.xlu0 %2084 }
 0x279   : > { %v9781_v58 = vld [vmem:[#allocation3 + $0x64] sm:$0xf]  ;;  %v5144_v54 = vrot.slane %v5009_v25, 5  ;;  %v5147_v59 = vrot.slane %v5010_v41, 5  ;;  %2151 = vst.msk [vmem:[#allocation4 + $0x78] sm:$0xf] %vm2120_vm12, %v2085_v57  ;;  %v4382_v41 = vor.u32 %v4381_v23, %v4378_v2 }
 0x27a   : > { %v2083_v52 = vpop.permute.xlu1 %2082  ;;  %3870 = vst.msk [vmem:[#allocation5 + $0xcc] sm:$0xf] %vm3178_vm1, %v9781_v58  ;;  %v5007_v9 = vld [vmem:[#allocation3 + $0x5c] sm:$0x1]  ;;  %v6964_v5 = vrot.slane %v5005_v33, 9  ;;  %v4391_v25 = vrot.slane %v4389_v34, 4 }
 0x27b   : > { %2150 = vst.msk [vmem:[#allocation4 + $0x74] sm:$0xf] %vm2120_vm12, %v2083_v52  ;;  %v5146_v38 = vrot.slane %v5144_v54, 4  ;;  %v5006_v56 = vld [vmem:[#allocation3 + $0x58] sm:$0xf]  ;;  %v9795_v32 = vsel %vm7997_vm14, %v6965_v50, %v5144_v54  ;;  %5210 = vrot.lane.b32.xlu0 %v9308_v28, %s7701_s26  ;;  %v5140_v16 = vrot.slane %v5007_v9, 5 }
 0x27c   : > { %4870 = vrot.lane.b32.xlu1 %v9788_v62, %s7703_s29  ;;  %v5137_v49 = vrot.slane %v5006_v56, 5  ;;  %5518 = vst.msk [vmem:[#allocation5 + $0x98] sm:$0xf] %vm3178_vm1, %v9795_v32  ;;  %v9801_v42 = vld [vmem:[#allocation3 + $0x58] sm:$0xf]  ;;  %v2427_v15 = vpop.permute.xlu0 %2426 }
 0x27d   : > { %v9805_v30 = vsel %vm7997_vm14, %v5146_v38, %v5147_v59  ;;  %3868 = vst.msk [vmem:[#allocation5 + $0xb4] sm:$0xf] %vm3178_vm1, %v9801_v42  ;;  %v4197_v52 = vld [vmem:[#allocation3 + $0x50] sm:$0x1]  ;;  %v4392_v38 = vor.u32 %v4391_v25, %v4387_v46  ;;  %v4383_v59 = vrot.slane %v4382_v41, 4 }
 0x27e   : > { %v2087_v63 = vpop.permute.xlu1 %2086  ;;  %v5139_v17 = vrot.slane %v5137_v49, 4  ;;  %v9812_v28 = vsel %vm7997_vm14, %v6964_v5, %v5137_v49  ;;  %5519 = vst.msk [vmem:[#allocation5 + $0xa4] sm:$0xf] %vm3178_vm1, %v9805_v30  ;;  %v4199_v44 = vld [vmem:[#allocation3 + $0x58] sm:$0xf] }
 0x27f   : > { %2152 = vst.msk [vmem:[#allocation4 + $0x7c] sm:$0xf] %vm2120_vm12, %v2087_v63  ;;  %5348 = vrot.lane.b32.xlu0 %v9290_v20, %s7697_s16  ;;  %vm11036_vm12 = vmmov %vm11034_vm9  ;;  %v4393_v5 = vrot.slane %v4392_v38, 4  ;;  %v4409_v8 = vshll.u32 %v4199_v44, 16  ;;  %v4413_v34 = vshrl.u32 %v4199_v44, 16 }
 0x280   : > { %5212 = vrot.lane.b32.xlu1 %v9320_v48, %s7701_s26  ;;  %2495 = vst.msk [vmem:[#allocation4 + $0x70] sm:$0xf] %vm2466_vm13, %v2427_v15  ;;  %v9825_v53 = vsel %vm7997_vm14, %v5139_v17, %v5140_v16  ;;  %v2431_v48 = vpop.permute.xlu0 %2430  ;;  %v4198_v16 = vld [vmem:[#allocation3 + $0x54] sm:$0xf] }
 0x281   : > { %5516 = vst.msk [vmem:[#allocation5 + $0x80] sm:$0xf] %vm3178_vm1, %v9812_v28  ;;  %5517 = vst.msk [vmem:[#allocation5 + $0x8c] sm:$0xf] %vm3178_vm1, %v9825_v53  ;;  %v4400_v6 = vshrl.u32 %v4198_v16, 16 }
 0x282   : > { %v2429_v4 = vpop.permute.xlu1 %2428  ;;  %2497 = vst.msk [vmem:[#allocation4 + $0x78] sm:$0xf] %vm2466_vm13, %v2431_v48 }
 0x283   : > { %2496 = vst.msk [vmem:[#allocation4 + $0x74] sm:$0xf] %vm2466_vm13, %v2429_v4  ;;  %4064 = vrot.lane.b32.xlu0 %v9549_v39, %s7701_s26  ;;  %v4403_v4 = vshll.u32 %v4198_v16, 16 }
 0x284   : > { %5350 = vrot.lane.b32.xlu1 %v9302_v29, %s7697_s16  ;;  %v2566_v37 = vpop.permute.xlu0 %2565 }
 0x285   : > { %2634 = vst.msk [vmem:[#allocation4 + $0x70] sm:$0xf] %vm11034_vm9, %v2566_v37  ;;  %v7613_v54 = vld [vmem:[#allocation5 + $0x98] ss:$12 sps:$4 sm:$0xff]   ;;  %v4411_v37 = vrot.slane %v4409_v8, 5 }
 0x286   : > { %v2433_v19 = vpop.permute.xlu1 %2432 }
 0x287   : > { %2498 = vst.msk [vmem:[#allocation4 + $0x7c] sm:$0xf] %vm2466_vm13, %v2433_v19  ;;  %3933 = vrot.lane.b32.xlu0 %v9557_v3, %s7703_s29  ;;  %v4395_v3 = vshll.u32 %v4197_v52, 16  ;;  %vm11037_vm13 = vmmov %vm11034_vm9 }
 0x288   : > { %4066 = vrot.lane.b32.xlu1 %v9571_v47, %s7701_s26  ;;  %v7612_v50 = vld [vmem:[#allocation5 + $0x80] ss:$12 sps:$4 sm:$0xff]   ;;  %v2570_v57 = vpop.permute.xlu0 %2569  ;;  %vm11041_vm9 = vmmov %vm11038_vm2 }
 0x289   : > { %7496 = vmatmul.mubr.msk.bf16.gmra.mxu0 %vm5993_vm15, %v7612_v50  ;;  %2636 = vst.msk [vmem:[#allocation4 + $0x78] sm:$0xf] %vm11036_vm12, %v2570_v57  ;;  %v4397_v49 = vrot.slane %v4395_v3, 5  ;;  %vm11042_vm12 = vcmask 588800   ;;  %v9894_v50 = vld [vmem:[%s10914_s3] ss:$0 sm:$0xff] }
 0x28a   : > { %v2568_v33 = vpop.permute.xlu1 %2567  ;;  %7499 = vmatprep.mubr.msk.bf16.mxu0 %vm5993_vm15, %v7613_v54  ;;  %v4200_v54 = vld [vmem:[#allocation3 + $0x5c] sm:$0x1] }
 0x28b   : > { %2635 = vst.msk [vmem:[#allocation4 + $0x74] sm:$0xf] %vm11035_vm10, %v2568_v33  ;;  %4631 = vrot.lane.b32.xlu0 %v9699_v12, %s7697_s16  ;;  %v9862_v63 = vsel %vm7915_vm11, %v4393_v5, %v4397_v49  ;;  %vm4013_vm10 = vcmask 1044224   ;;  %v4419_v49 = vshll.u32 %v4200_v54, 16 }
 0x28c   : > { %3935 = vrot.lane.b32.xlu1 %v9595_v35, %s7703_s29  ;;  %v2705_v9 = vpop.permute.xlu0 %2704  ;;  %v9855_v35 = vsel %vm7915_vm11, %v4383_v59, %v4387_v46  ;;  %v4415_v46 = vrot.slane %v4413_v34, 4 }
 0x28d   : > { %2773 = vst.msk [vmem:[#allocation4 + $0x70] sm:$0xf] %vm11038_vm2, %v2705_v9  ;;  %vm11043_vm2 = vmmov %vm11042_vm12  ;;  %v3229_v9 = vld [vmem:[#allocation3 + $0xa8] sm:$0x1]  ;;  %v4421_v34 = vrot.slane %v4419_v49, 5 }
 0x28e   : > { %v2572_v56 = vpop.permute.xlu1 %2571  ;;  %v4416_v38 = vor.u32 %v4415_v46, %v4411_v37  ;;  %v3768_v46 = vld [vmem:[#allocation3 + $0x78] sm:$0xf] }
 0x28f   : > { %2637 = vst.msk [vmem:[#allocation4 + $0x7c] sm:$0xf] %vm11037_vm13, %v2572_v56  ;;  %4872 = vrot.lane.b32.xlu0 %v9855_v35, %s7703_s29  ;;  %vm4711_vm13 = vcmask 519424  }
 0x290   : > { %4633 = vrot.lane.b32.xlu1 %v9708_v21, %s7697_s16  ;;  %v2709_v17 = vpop.permute.xlu0 %2708 }
 0x291   : > { %2775 = vst.msk [vmem:[#allocation4 + $0x78] sm:$0xf] %vm11040_vm8, %v2709_v17 }
 0x292   : > { %v2707_v45 = vpop.permute.xlu1 %2706 }
 0x293   : > { %2774 = vst.msk [vmem:[#allocation4 + $0x74] sm:$0xf] %vm11039_vm3, %v2707_v45  ;;  %5214 = vrot.lane.b32.xlu0 %v9290_v20, %s7701_s26 }
 0x294   : > { %4874 = vrot.lane.b32.xlu1 %v9862_v63, %s7703_s29  ;;  %v4049_v22 = vpop.permute.xlu0 %4048 }
 0x295   : > { %4145 = vst.msk [vmem:[#allocation5 + $0x4] sm:$0xf] %vm4144_vm0, %v4049_v22 }
 0x296   : > { %v2711_v15 = vpop.permute.xlu1 %2710  ;;  %4800 = vst.msk [vmem:[#allocation5 + $0x4] sm:$0xf] %vm3178_vm1, %v9637_v13  ;;  %v4405_v13 = vrot.slane %v4403_v4, 5 }
 0x297   : > { %2776 = vst.msk [vmem:[#allocation4 + $0x7c] sm:$0xf] %vm11041_vm9, %v2711_v15  ;;  %5352 = vrot.lane.b32.xlu0 %v9610_v51, %s7697_s16 }
 0x298   : > { %5216 = vrot.lane.b32.xlu1 %v9302_v29, %s7701_s26  ;;  %v3918_v2 = vpop.permute.xlu0 %3917  ;;  %v4402_v29 = vrot.slane %v4400_v6, 4  ;;  %v4417_v6 = vrot.slane %v4416_v38, 4  ;;  %v4201_v38 = vld [vmem:[#allocation3 + $0x60] sm:$0xf] }
 0x299   : > { %4014 = vst.msk [vmem:[#allocation5] sm:$0xf] %vm4013_vm10, %v3918_v2 }
 0x29a   : > { %v4051_v20 = vpop.permute.xlu1 %4050  ;;  %v7616_v48 = vld [vmem:[#allocation4 + $0x70] sm:$0xff]   ;;  %v4406_v41 = vor.u32 %v4405_v13, %v4402_v29 }
 0x29b   : > { %4146 = vst.msk [vmem:[#allocation5 + $0x10] sm:$0xf] %vm4144_vm0, %v4051_v20  ;;  %7479 = vmatprep.mubr.msk.bf16.mxu1 %vm11042_vm12, %v7616_v48  ;;  %4068 = vrot.lane.b32.xlu0 %v9768_v31, %s7701_s26 }
 0x29c   : > { %4801 = vst.msk [vmem:[#allocation5 + $0x10] sm:$0xf] %vm3178_vm1, %v9644_v0  ;;  %5354 = vrot.lane.b32.xlu1 %v9626_v24, %s7697_s16  ;;  %v4616_v0 = vpop.permute.xlu0 %4615  ;;  %v4407_v45 = vrot.slane %v4406_v41, 4  ;;  %v9922_v41 = vsel %vm7915_vm11, %v4417_v6, %v4421_v34  ;;  %v4202_v34 = vld [vmem:[#allocation3 + $0x64] sm:$0xf] }
 0x29d   : > { %4712 = vst.msk [vmem:[#allocation5] sm:$0xf] %vm4711_vm13, %v4616_v0 }
 0x29e   : > { %v3920_v23 = vpop.permute.xlu1 %3919  ;;  %v7619_v19 = vld [vmem:[#allocation4 + $0x78] sm:$0xff]   ;;  %v9916_v2 = vsel %vm7915_vm11, %v4407_v45, %v4411_v37  ;;  %v3772_v45 = vld [vmem:[#allocation3 + $0x80] sm:$0x1] }
 0x29f   : > { %4015 = vst.msk [vmem:[#allocation5 + $0xc] sm:$0xf] %vm4013_vm10, %v3920_v23  ;;  %v7469_v25 = vpop.f32.mrf.mxu1  ;;  %7480 = vmatmul.mubr.msk.bf16.gmra.mxu1 %vm11043_vm2, %v7619_v19  ;;  %3937 = vrot.lane.b32.xlu0 %v9549_v39, %s7703_s29  ;;  %v3230_v39 = vsel %vm8663_vm4, 0, %v3229_v9 }
 0x2a0   : > { %4070 = vrot.lane.b32.xlu1 %v9801_v42, %s7701_s26  ;;  %v3092_v33 = vadd.f32 %v9894_v50, %v7469_v25  ;;  %v4857_v56 = vpop.permute.xlu0 %4856  ;;  %3231 = vst [vmem:[#allocation3 + $0xa8] sm:$0x1] %v3230_v39 }
 0x2a1   : > { %v3083_v57 = vpop.f32.mrf.mxu1  ;;  %4952 = vst.msk [vmem:[#allocation5 + $0x4] sm:$0xf] %vm4013_vm10, %v4857_v56 }
 0x2a2   : > { %v4618_v52 = vpop.permute.xlu1 %4617  ;;  %v3164_v59 = vmax.f32 %v3092_v33, 0.0  ;;  %v3084_v3 = vadd.f32 %v9894_v50, %v3083_v57 }
 0x2a3   : > { %4713 = vst.msk [vmem:[#allocation5 + $0xc] sm:$0xf] %vm4711_vm13, %v4618_v52  ;;  %v7470_v5 = vpop.f32.mrf.mxu1  ;;  %4635 = vrot.lane.b32.xlu0 %v9775_v26, %s7697_s16 }
 0x2a4   : > { %3939 = vrot.lane.b32.xlu1 %v9571_v47, %s7703_s29  ;;  %v7131_v17 = vpack.c.bf16 %v3164_v59, %v3164_v59  ;;  %v3162_v16 = vmax.f32 %v3084_v3, 0.0  ;;  %v3095_v15 = vadd.f32 %v9894_v50, %v7470_v5  ;;  %v5199_v48 = vpop.permute.xlu0 %5198  ;;  %v3761_v59 = vld [vmem:[#allocation3 + $0x6c] sm:$0xf] }
 0x2a5   : > { %v3086_v44 = vpop.f32.mrf.mxu1  ;;  %5294 = vst.msk [vmem:[#allocation5] sm:$0xf] %vm4144_vm0, %v5199_v48 }
 0x2a6   : > { %v4859_v22 = vpop.permute.xlu1 %4858  ;;  %v3537_v47 = vshrl.u32 %v7131_v17, 16  ;;  %v7129_v4 = vpack.c.bf16 %v3162_v16, %v3162_v16  ;;  %v3165_v20 = vmax.f32 %v3095_v15, 0.0  ;;  %v3087_v8 = vadd.f32 %v9894_v50, %v3086_v44  ;;  %v3226_v44 = vld [vmem:[#allocation3 + $0x9c] sm:$0x1] }
 0x2a7   : > { %4953 = vst.msk [vmem:[#allocation5 + $0x10] sm:$0xf] %vm4013_vm10, %v4859_v22  ;;  %v3540_v13 = vshll.u32 %v7131_v17, 16  ;;  %4876 = vrot.lane.b32.xlu0 %v9916_v2, %s7703_s29  ;;  %v4424_v15 = vshrl.u32 %v4201_v38, 16  ;;  %v4427_v22 = vshll.u32 %v4201_v38, 16  ;;  %v3227_v48 = vsel %vm8663_vm4, 0, %v3226_v44 }
 0x2a8   : > { %4637 = vrot.lane.b32.xlu1 %v9788_v62, %s7697_s16  ;;  %v3539_v29 = vrot.slane %v3537_v47, 7  ;;  %v3520_v23 = vshrl.u32 %v7129_v4, 16  ;;  %v7132_v19 = vpack.c.bf16 %v3165_v20, %v3165_v20  ;;  %v3163_v0 = vmax.f32 %v3087_v8, 0.0  ;;  %3228 = vst [vmem:[#allocation3 + $0x9c] sm:$0x1] %v3227_v48 }
 0x2a9   : > { %v3523_v52 = vshll.u32 %v7129_v4, 16  ;;  %v5337_v37 = vpop.permute.xlu0 %5336  ;;  %v4437_v38 = vshrl.u32 %v4202_v34, 16 }
 0x2aa   : > { %v5201_v25 = vpop.permute.xlu1 %5200  ;;  %v3542_v33 = vor.u32 %v3540_v13, %v3539_v29  ;;  %v3522_v54 = vrot.slane %v3520_v23, 7  ;;  %v3545_v57 = vshrl.u32 %v7132_v19, 16  ;;  %v7130_v3 = vpack.c.bf16 %v3163_v0, %v3163_v0  ;;  %5432 = vst.msk [vmem:[#allocation5 + $0x4] sm:$0xf] %vm4711_vm13, %v5337_v37 }
 0x2ab   : > { %5295 = vst.msk [vmem:[#allocation5 + $0xc] sm:$0xf] %vm4144_vm0, %v5201_v25  ;;  %v3548_v49 = vshll.u32 %v7132_v19, 16  ;;  %5218 = vrot.lane.b32.xlu0 %v9610_v51, %s7701_s26  ;;  %v3543_v39 = vrot.slane %v3539_v29, 4  ;;  %v3278_v29 = vld [vmem:[#allocation3 + $0xb0] sm:$0x1] }
 0x2ac   : > { %4878 = vrot.lane.b32.xlu1 %v9922_v41, %s7703_s29  ;;  %v3769_v56 = vsel %vm9049_vm6, %v3542_v33, %v3768_v46  ;;  %v3525_v9 = vor.u32 %v3523_v52, %v3522_v54  ;;  %v3547_v5 = vrot.slane %v3545_v57, 7  ;;  %v3528_v17 = vshrl.u32 %v7130_v3, 16  ;;  %v3765_v19 = vld [vmem:[#allocation3 + $0x74] sm:$0x1]  ;;  %v3275_v57 = vld [vmem:[#allocation3 + $0xa4] sm:$0x1] }
 0x2ad   : > { %3770 = vst [vmem:[#allocation3 + $0x78] sm:$0xf] %v3769_v56  ;;  %v4053_v20 = vpop.permute.xlu0 %4052  ;;  %v3531_v8 = vshll.u32 %v7130_v3, 16  ;;  %v3526_v46 = vrot.slane %v3522_v54, 4  ;;  %v4426_v52 = vrot.slane %v4424_v15, 4  ;;  %v3276_v3 = vsel %vm8682_vm5, 0, %v3275_v57 }
 0x2ae   : > { %v5339_v16 = vpop.permute.xlu1 %5338  ;;  %v3762_v6 = vsel %vm9049_vm6, %v3525_v9, %v3761_v59  ;;  %v3550_v47 = vor.u32 %v3548_v49, %v3547_v5  ;;  %v3552_v4 = vrot.slane %v3547_v5, 4  ;;  %v3530_v51 = vrot.slane %v3528_v17, 7  ;;  %4147 = vst.msk [vmem:[#allocation5 + $0x1c] sm:$0xf] %vm4144_vm0, %v4053_v20  ;;  %3277 = vst [vmem:[#allocation3 + $0xa4] sm:$0x1] %v3276_v3 }
 0x2af   : > { %5433 = vst.msk [vmem:[#allocation5 + $0x10] sm:$0xf] %vm4711_vm13, %v5339_v16  ;;  %3763 = vst [vmem:[#allocation3 + $0x6c] sm:$0xf] %v3762_v6  ;;  %5356 = vrot.lane.b32.xlu0 %v9589_v40, %s7697_s16  ;;  %v4429_v59 = vrot.slane %v4427_v22, 5  ;;  %v4439_v16 = vrot.slane %v4437_v38, 4 }
 0x2b0   : > { %5220 = vrot.lane.b32.xlu1 %v9626_v24, %s7701_s26  ;;  %v3551_v13 = vsel %vm7807_vm7, %v3543_v39, %v3550_v47  ;;  %v3773_v23 = vsel %vm8663_vm4, %v3552_v4, %v3772_v45  ;;  %4802 = vst.msk [vmem:[#allocation5 + $0x1c] sm:$0xf] %vm3178_vm1, %v9507_v18  ;;  %v3279_v24 = vsel %vm8682_vm5, 0, %v3278_v29  ;;  %v3533_v0 = vor.u32 %v3531_v8, %v3530_v51  ;;  %v4203_v8 = vld [vmem:[#allocation3 + $0x68] sm:$0x1] }
 0x2b1   : > { %3771 = vst.msk [vmem:[#allocation3 + $0x7c] sm:$0xf] %vm3178_vm1, %v3551_v13  ;;  %3774 = vst [vmem:[#allocation3 + $0x80] sm:$0x1] %v3773_v23  ;;  %v3535_v25 = vrot.slane %v3530_v51, 4  ;;  %v3922_v37 = vpop.permute.xlu0 %3921  ;;  %v4433_v18 = vshll.u32 %v4202_v34, 16  ;;  %v4430_v15 = vor.u32 %v4429_v59, %v4426_v52 }
 0x2b2   : > { %v4055_v33 = vpop.permute.xlu1 %4054  ;;  %3280 = vst [vmem:[#allocation3 + $0xb0] sm:$0x1] %v3279_v24  ;;  %v3534_v54 = vsel %vm7807_vm7, %v3526_v46, %v3533_v0  ;;  %4016 = vst.msk [vmem:[#allocation5 + $0x18] sm:$0xf] %vm4013_vm10, %v3922_v37  ;;  %v7632_v49 = vld [vmem:[#allocation5] ss:$12 sps:$4 sm:$0xff]  }
 0x2b3   : > { %4148 = vst.msk [vmem:[#allocation5 + $0x28] sm:$0xf] %vm4144_vm0, %v4055_v33  ;;  %v3766_v56 = vsel %vm8663_vm4, %v3535_v25, %v3765_v19  ;;  %4072 = vrot.lane.b32.xlu0 %v9763_v11, %s7701_s26  ;;  %v4435_v17 = vrot.slane %v4433_v18, 5  ;;  %v4431_v13 = vrot.slane %v4430_v15, 4  ;;  %v4443_v33 = vshll.u32 %v4203_v8, 16 }
 0x2b4   : > { %4803 = vst.msk [vmem:[#allocation5 + $0x28] sm:$0xf] %vm3178_vm1, %v9530_v55  ;;  %5358 = vrot.lane.b32.xlu1 %v9600_v61, %s7697_s16  ;;  %3764 = vst.msk [vmem:[#allocation3 + $0x70] sm:$0xf] %vm3178_vm1, %v3534_v54  ;;  %v9966_v9 = vld [vmem:[#allocation3 + $0x78] sm:$0xf] }
 0x2b5   : > { %3767 = vst [vmem:[#allocation3 + $0x74] sm:$0x1] %v3766_v56  ;;  %3873 = vst.msk [vmem:[#allocation5 + $0xf0] sm:$0xf] %vm3178_vm1, %v9966_v9  ;;  %v5014_v55 = vld [vmem:[#allocation3 + $0x78] sm:$0xe]  ;;  %v4620_v39 = vpop.permute.xlu0 %4619  ;;  %v4440_v29 = vor.u32 %v4439_v16, %v4435_v17  ;;  %v10016_v54 = vsel %vm7915_vm11, %v4431_v13, %v4435_v17 }
 0x2b6   : > { %v3924_v5 = vpop.permute.xlu1 %3923  ;;  %v7634_v45 = vld [vmem:[#allocation5 + $0x4] ss:$12 sps:$4 sm:$0xff]   ;;  %v9971_v22 = vld [vmem:[#allocation3 + $0x6c] sm:$0xf]  ;;  %4714 = vst.msk [vmem:[#allocation5 + $0x18] sm:$0xf] %vm4711_vm13, %v4620_v39 }
 0x2b7   : > { %4017 = vst.msk [vmem:[#allocation5 + $0x24] sm:$0xf] %vm4013_vm10, %v3924_v5  ;;  %6074 = vmatprep.mubr.bf16.mxu1 %v7634_v45  ;;  %3941 = vrot.lane.b32.xlu0 %v9768_v31, %s7703_s29  ;;  %v6967_v4 = vrot.slane %v5014_v55, 9  ;;  %v5011_v20 = vld [vmem:[#allocation3 + $0x6c] sm:$0xe]  ;;  %v4441_v59 = vrot.slane %v4440_v29, 4 }
 0x2b8   : > { %4074 = vrot.lane.b32.xlu1 %v9781_v58, %s7701_s26  ;;  %3871 = vst.msk [vmem:[#allocation5 + $0xd8] sm:$0xf] %vm3178_vm1, %v9971_v22  ;;  %v5015_v44 = vld [vmem:[#allocation3 + $0x7c] sm:$0xf]  ;;  %v5016_v6 = vld [vmem:[#allocation3 + $0x80] sm:$0x1]  ;;  %6075 = vmatmul.mubr.bf16.vlgmr.msra.gmra.mxu1 %v7632_v49 }
 0x2b9   : > { %v9980_v47 = vld [vmem:[#allocation3 + $0x7c] sm:$0xf]  ;;  %v5158_v48 = vrot.slane %v5015_v44, 5  ;;  %v4861_v34 = vpop.permute.xlu0 %4860  ;;  %v5161_v19 = vrot.slane %v5016_v6, 5  ;;  %v6966_v0 = vrot.slane %v5011_v20, 9  ;;  %v4445_v56 = vrot.slane %v4443_v33, 5 }
 0x2ba   : > { %v4622_v51 = vpop.permute.xlu1 %4621  ;;  %3874 = vst.msk [vmem:[#allocation5 + $0xfc] sm:$0xf] %vm3178_vm1, %v9980_v47  ;;  %v4204_v39 = vld [vmem:[#allocation3 + $0x6c] sm:$0xf] }
 0x2bb   : > { %4715 = vst.msk [vmem:[#allocation5 + $0x24] sm:$0xf] %vm4711_vm13, %v4622_v51  ;;  %v5160_v23 = vrot.slane %v5158_v48, 4  ;;  %v5012_v24 = vld [vmem:[#allocation3 + $0x70] sm:$0xf]  ;;  %v9990_v31 = vsel %vm7997_vm14, %v6967_v4, %v5158_v48  ;;  %4639 = vrot.lane.b32.xlu0 %v9855_v35, %s7697_s16  ;;  %v10031_v45 = vsel %vm7915_vm11, %v4441_v59, %v4445_v56  ;;  %v4448_v44 = vshrl.u32 %v4204_v39, 16 }
 0x2bc   : > { %v5013_v46 = vld [vmem:[#allocation3 + $0x74] sm:$0x1]  ;;  %3943 = vrot.lane.b32.xlu1 %v9801_v42, %s7703_s29  ;;  %4954 = vst.msk [vmem:[#allocation5 + $0x1c] sm:$0xf] %vm4013_vm10, %v4861_v34  ;;  %v5151_v25 = vrot.slane %v5012_v24, 5  ;;  %v4451_v6 = vshll.u32 %v4204_v39, 16 }
 0x2bd   : > { %5522 = vst.msk [vmem:[#allocation5 + $0xc8] sm:$0xf] %vm3178_vm1, %v9990_v31  ;;  %v9996_v52 = vld [vmem:[#allocation3 + $0x70] sm:$0xf]  ;;  %v10000_v42 = vsel %vm7997_vm14, %v5160_v23, %v5161_v19  ;;  %v5154_v18 = vrot.slane %v5013_v46, 5  ;;  %v5203_v38 = vpop.permute.xlu0 %5202  ;;  %v4450_v8 = vrot.slane %v4448_v44, 4 }
 0x2be   : > { %v4863_v57 = vpop.permute.xlu1 %4862  ;;  %3872 = vst.msk [vmem:[#allocation5 + $0xe4] sm:$0xf] %vm3178_vm1, %v9996_v52  ;;  %v5153_v37 = vrot.slane %v5151_v25, 4  ;;  %v10007_v3 = vsel %vm7997_vm14, %v6966_v0, %v5151_v25  ;;  %5523 = vst.msk [vmem:[#allocation5 + $0xd4] sm:$0xf] %vm3178_vm1, %v10000_v42  ;;  %v4453_v34 = vrot.slane %v4451_v6, 5 }
 0x2bf   : > { %4955 = vst.msk [vmem:[#allocation5 + $0x28] sm:$0xf] %vm4013_vm10, %v4863_v57  ;;  %4880 = vrot.lane.b32.xlu0 %v10016_v54, %s7703_s29  ;;  %v4205_v15 = vld [vmem:[#allocation3 + $0x70] sm:$0xf]  ;;  %v4206_v33 = vld [vmem:[#allocation3 + $0x74] sm:$0x1] }
 0x2c0   : > { %4641 = vrot.lane.b32.xlu1 %v9862_v63, %s7697_s16  ;;  %5296 = vst.msk [vmem:[#allocation5 + $0x18] sm:$0xf] %vm4144_vm0, %v5203_v38  ;;  %v10024_v5 = vsel %vm7997_vm14, %v5153_v37, %v5154_v18  ;;  %v4461_v51 = vshrl.u32 %v4205_v15, 16  ;;  %v4454_v0 = vor.u32 %v4453_v34, %v4450_v8  ;;  %v4467_v38 = vshll.u32 %v4206_v33, 16  ;;  %v4208_v6 = vld [vmem:[#allocation3 + $0x7c] sm:$0xf] }
 0x2c1   : > { %5520 = vst.msk [vmem:[#allocation5 + $0xb0] sm:$0xf] %vm3178_vm1, %v10007_v3  ;;  %5521 = vst.msk [vmem:[#allocation5 + $0xbc] sm:$0xf] %vm3178_vm1, %v10024_v5  ;;  %v5341_v55 = vpop.permute.xlu0 %5340 }
 0x2c2   : > { %v5205_v49 = vpop.permute.xlu1 %5204  ;;  %5434 = vst.msk [vmem:[#allocation5 + $0x1c] sm:$0xf] %vm4711_vm13, %v5341_v55  ;;  %v4463_v46 = vrot.slane %v4461_v51, 4  ;;  %v4455_v18 = vrot.slane %v4454_v0, 4  ;;  %v4481_v51 = vshll.u32 %v4208_v6, 16 }
 0x2c3   : > { %5297 = vst.msk [vmem:[#allocation5 + $0x24] sm:$0xf] %vm4144_vm0, %v5205_v49  ;;  %5222 = vrot.lane.b32.xlu0 %v9589_v40, %s7701_s26  ;;  %v4469_v49 = vrot.slane %v4467_v38, 5 }
 0x2c4   : > { %4882 = vrot.lane.b32.xlu1 %v10031_v45, %s7703_s29 }
 0x2c5   : > { %v4057_v16 = vpop.permute.xlu0 %4056  ;;  %v7636_v20 = vld [vmem:[#allocation5 + $0xc8] ss:$12 sps:$4 sm:$0xff]  }
 0x2c6   : > { %v5343_v17 = vpop.permute.xlu1 %5342  ;;  %4149 = vst.msk [vmem:[#allocation5 + $0x34] sm:$0xf] %vm4144_vm0, %v4057_v16  ;;  %v4207_v16 = vld [vmem:[#allocation3 + $0x78] sm:$0xf] }
 0x2c7   : > { %5435 = vst.msk [vmem:[#allocation5 + $0x28] sm:$0xf] %vm4711_vm13, %v5343_v17  ;;  %5360 = vrot.lane.b32.xlu0 %v9812_v28, %s7697_s16 }
 0x2c8   : > { %5224 = vrot.lane.b32.xlu1 %v9600_v61, %s7701_s26  ;;  %4804 = vst.msk [vmem:[#allocation5 + $0x34] sm:$0xf] %vm3178_vm1, %v9651_v7  ;;  %v7635_v4 = vld [vmem:[#allocation5 + $0xb0] ss:$12 sps:$4 sm:$0xff]   ;;  %v4457_v61 = vshll.u32 %v4205_v15, 16 }
 0x2c9   : > { %7500 = vmatmul.mubr.msk.bf16.gmra.mxu0 %vm5993_vm15, %v7635_v4  ;;  %v3926_v48 = vpop.permute.xlu0 %3925  ;;  %v5542_v7 = vld [vmem:[#allocation5 + $0x18] sm:$0xff] }
 0x2ca   : > { %v4059_v40 = vpop.permute.xlu1 %4058  ;;  %7503 = vmatprep.mubr.msk.bf16.mxu0 %vm5993_vm15, %v7636_v20  ;;  %4018 = vst.msk [vmem:[#allocation5 + $0x30] sm:$0xf] %vm4013_vm10, %v3926_v48  ;;  %v4459_v24 = vrot.slane %v4457_v61, 5  ;;  %v4475_v20 = vshll.u32 %v4207_v16, 16 }
 0x2cb   : > { %4150 = vst.msk [vmem:[#allocation5 + $0x40] sm:$0xf] %vm4144_vm0, %v4059_v40  ;;  %4076 = vrot.lane.b32.xlu0 %v9971_v22, %s7701_s26  ;;  %v4472_v40 = vshrl.u32 %v4207_v16, 16 }
 0x2cc   : > { %4805 = vst.msk [vmem:[#allocation5 + $0x40] sm:$0xf] %vm3178_vm1, %v9659_v27  ;;  %5362 = vrot.lane.b32.xlu1 %v9825_v53, %s7697_s16  ;;  %v4464_v37 = vor.u32 %v4463_v46, %v4459_v24 }
 0x2cd   : > { %v4624_v19 = vpop.permute.xlu0 %4623 }
 0x2ce   : > { %v3928_v29 = vpop.permute.xlu1 %3927  ;;  %v5544_v13 = vld [vmem:[#allocation5 + $0x24] sm:$0xff]  ;;  %4716 = vst.msk [vmem:[#allocation5 + $0x30] sm:$0xf] %vm4711_vm13, %v4624_v19  ;;  %v4465_v56 = vrot.slane %v4464_v37, 4  ;;  %v4483_v37 = vrot.slane %v4481_v51, 5 }
 0x2cf   : > { %v7637_v23 = vld [vmem:[#allocation5 + $0x1c] ss:$12 sps:$4 sm:$0xff]   ;;  %4019 = vst.msk [vmem:[#allocation5 + $0x3c] sm:$0xf] %vm4013_vm10, %v3928_v29  ;;  %v6979_v27 = vcombine.low %v5542_v7, %v5544_v13  ;;  %3945 = vrot.lane.b32.xlu0 %v9763_v11, %s7703_s29  ;;  %v4485_v7 = vshrl.u32 %v4208_v6, 16  ;;  %v4474_v13 = vrot.slane %v4472_v40, 4 }
 0x2d0   : > { %4078 = vrot.lane.b32.xlu1 %v9996_v52, %s7701_s26  ;;  %6082 = vmatprep.mubr.bf16.mxu1 %v7637_v23  ;;  %v10081_v39 = vsel %vm7915_vm11, %v4465_v56, %v4469_v49  ;;  %v3235_v29 = vld [vmem:[#allocation3 + $0xc0] sm:$0x1]  ;;  %v4477_v23 = vrot.slane %v4475_v20, 5  ;;  %v3782_v40 = vld [vmem:[#allocation3 + $0x90] sm:$0xf] }
 0x2d1   : > { %6083 = vmatmul.mubr.bf16.gmra.mxu1 %v6979_v27  ;;  %v4865_v57 = vpop.permute.xlu0 %4864  ;;  %v3236_v19 = vsel %vm8663_vm4, 0, %v3235_v29 }
 0x2d2   : > { %v4626_v25 = vpop.permute.xlu1 %4625  ;;  %4956 = vst.msk [vmem:[#allocation5 + $0x34] sm:$0xf] %vm4013_vm10, %v4865_v57  ;;  %3237 = vst [vmem:[#allocation3 + $0xc0] sm:$0x1] %v3236_v19 }
 0x2d3   : > { %4717 = vst.msk [vmem:[#allocation5 + $0x3c] sm:$0xf] %vm4711_vm13, %v4626_v25  ;;  %4643 = vrot.lane.b32.xlu0 %v9916_v2, %s7697_s16 }
 0x2d4   : > { %3947 = vrot.lane.b32.xlu1 %v9781_v58, %s7703_s29  ;;  %v10074_v58 = vsel %vm7915_vm11, %v4455_v18, %v4459_v24  ;;  %v4487_v18 = vrot.slane %v4485_v7, 4 }
 0x2d5   : > { %v5207_v11 = vpop.permute.xlu0 %5206 }
 0x2d6   : > { %v4867_v59 = vpop.permute.xlu1 %4866  ;;  %5298 = vst.msk [vmem:[#allocation5 + $0x30] sm:$0xf] %vm4144_vm0, %v5207_v11 }
 0x2d7   : > { %4957 = vst.msk [vmem:[#allocation5 + $0x40] sm:$0xf] %vm4013_vm10, %v4867_v59  ;;  %4884 = vrot.lane.b32.xlu0 %v10074_v58, %s7703_s29 }
 0x2d8   : > { %4645 = vrot.lane.b32.xlu1 %v9922_v41, %s7697_s16 }
 0x2d9   : > { %v5345_v17 = vpop.permute.xlu0 %5344 }
 0x2da   : > { %v5209_v55 = vpop.permute.xlu1 %5208  ;;  %5436 = vst.msk [vmem:[#allocation5 + $0x34] sm:$0xf] %vm4711_vm13, %v5345_v17  ;;  %v4478_v17 = vor.u32 %v4477_v23, %v4474_v13 }
 0x2db   : > { %5299 = vst.msk [vmem:[#allocation5 + $0x3c] sm:$0xf] %vm4144_vm0, %v5209_v55  ;;  %5226 = vrot.lane.b32.xlu0 %v9812_v28, %s7701_s26 }
 0x2dc   : > { %4886 = vrot.lane.b32.xlu1 %v10081_v39, %s7703_s29  ;;  %v4479_v29 = vrot.slane %v4478_v17, 4 }
 0x2dd   : > { %v4061_v44 = vpop.permute.xlu0 %4060 }
 0x2de   : > { %v5347_v15 = vpop.permute.xlu1 %5346  ;;  %4151 = vst.msk [vmem:[#allocation5 + $0x4c] sm:$0xf] %vm4144_vm0, %v4061_v44 }
 0x2df   : > { %5437 = vst.msk [vmem:[#allocation5 + $0x40] sm:$0xf] %vm4711_vm13, %v5347_v15  ;;  %v7473_v4 = vpop.f32.mrf.mxu1  ;;  %5364 = vrot.lane.b32.xlu0 %v9795_v32, %s7697_s16 }
 0x2e0   : > { %5228 = vrot.lane.b32.xlu1 %v9825_v53, %s7701_s26  ;;  %v3108_v48 = vadd.f32 %v9894_v50, %v7473_v4  ;;  %4806 = vst.msk [vmem:[#allocation5 + $0x4c] sm:$0xf] %vm3178_vm1, %v9699_v12  ;;  %v4209_v4 = vld [vmem:[#allocation3 + $0x80] sm:$0x1] }
 0x2e1   : > { %v3099_v61 = vpop.f32.mrf.mxu1  ;;  %v3930_v34 = vpop.permute.xlu0 %3929  ;;  %v5546_v0 = vld [vmem:[#allocation5 + $0x30] sm:$0xff] }
 0x2e2   : > { %v4063_v28 = vpop.permute.xlu1 %4062  ;;  %v3168_v8 = vmax.f32 %v3108_v48, 0.0  ;;  %v3100_v53 = vadd.f32 %v9894_v50, %v3099_v61  ;;  %4020 = vst.msk [vmem:[#allocation5 + $0x48] sm:$0xf] %vm4013_vm10, %v3930_v34 }
 0x2e3   : > { %4152 = vst.msk [vmem:[#allocation5 + $0x58] sm:$0xf] %vm4144_vm0, %v4063_v28  ;;  %v7474_v12 = vpop.f32.mrf.mxu1  ;;  %4080 = vrot.lane.b32.xlu0 %v9966_v9, %s7701_s26 }
 0x2e4   : > { %4807 = vst.msk [vmem:[#allocation5 + $0x58] sm:$0xf] %vm3178_vm1, %v9708_v21  ;;  %5366 = vrot.lane.b32.xlu1 %v9805_v30, %s7697_s16  ;;  %v7135_v27 = vpack.c.bf16 %v3168_v8, %v3168_v8  ;;  %v3166_v24 = vmax.f32 %v3100_v53, 0.0  ;;  %v3111_v46 = vadd.f32 %v9894_v50, %v7474_v12  ;;  %v3775_v53 = vld [vmem:[#allocation3 + $0x84] sm:$0xf] }
 0x2e5   : > { %v3102_v25 = vpop.f32.mrf.mxu1  ;;  %v4628_v56 = vpop.permute.xlu0 %4627 }
 0x2e6   : > { %v3932_v21 = vpop.permute.xlu1 %3931  ;;  %v5548_v33 = vld [vmem:[#allocation5 + $0x3c] sm:$0xff]  ;;  %v3571_v38 = vshrl.u32 %v7135_v27, 16  ;;  %v7133_v59 = vpack.c.bf16 %v3166_v24, %v3166_v24  ;;  %v3169_v11 = vmax.f32 %v3111_v46, 0.0  ;;  %v3103_v49 = vadd.f32 %v9894_v50, %v3102_v25  ;;  %4718 = vst.msk [vmem:[#allocation5 + $0x48] sm:$0xf] %vm4711_vm13, %v4628_v56 }
 0x2e7   : > { %v7639_v57 = vld [vmem:[#allocation5 + $0x34] ss:$12 sps:$4 sm:$0xff]   ;;  %4021 = vst.msk [vmem:[#allocation5 + $0x54] sm:$0xf] %vm4013_vm10, %v3932_v21  ;;  %v6982_v55 = vcombine.low %v5546_v0, %v5548_v33  ;;  %v3574_v15 = vshll.u32 %v7135_v27, 16  ;;  %3949 = vrot.lane.b32.xlu0 %v9971_v22, %s7703_s29  ;;  %v4488_v50 = vor.u32 %v4487_v18, %v4483_v37  ;;  %v4491_v22 = vshll.u32 %v4209_v4, 16 }
 0x2e8   : > { %4082 = vrot.lane.b32.xlu1 %v9980_v47, %s7701_s26  ;;  %6090 = vmatprep.mubr.bf16.mxu1 %v7639_v57  ;;  %v3573_v16 = vrot.slane %v3571_v38, 7  ;;  %v3554_v44 = vshrl.u32 %v7133_v59, 16  ;;  %v7136_v6 = vpack.c.bf16 %v3169_v11, %v3169_v11  ;;  %v3167_v20 = vmax.f32 %v3103_v49, 0.0  ;;  %v3786_v27 = vld [vmem:[#allocation3 + $0x98] sm:$0x1] }
 0x2e9   : > { %6091 = vmatmul.mubr.bf16.gmra.mxu1 %v6982_v55  ;;  %v3557_v51 = vshll.u32 %v7133_v59, 16  ;;  %v4869_v8 = vpop.permute.xlu0 %4868  ;;  %v4489_v21 = vrot.slane %v4488_v50, 4  ;;  %v10134_v56 = vsel %vm7915_vm11, %v4479_v29, %v4483_v37  ;;  %v3284_v49 = vld [vmem:[#allocation3 + $0xc8] sm:$0x1] }
 0x2ea   : > { %v4630_v48 = vpop.permute.xlu1 %4629  ;;  %v3576_v28 = vor.u32 %v3574_v15, %v3573_v16  ;;  %v3556_v61 = vrot.slane %v3554_v44, 7  ;;  %v3579_v7 = vshrl.u32 %v7136_v6, 16  ;;  %v7134_v34 = vpack.c.bf16 %v3167_v20, %v3167_v20  ;;  %4958 = vst.msk [vmem:[#allocation5 + $0x4c] sm:$0xf] %vm4013_vm10, %v4869_v8  ;;  %v3281_v20 = vld [vmem:[#allocation3 + $0xbc] sm:$0x1] }
 0x2eb   : > { %4719 = vst.msk [vmem:[#allocation5 + $0x54] sm:$0xf] %vm4711_vm13, %v4630_v48  ;;  %v3582_v19 = vshll.u32 %v7136_v6, 16  ;;  %4647 = vrot.lane.b32.xlu0 %v10016_v54, %s7697_s16  ;;  %v3577_v24 = vrot.slane %v3573_v16, 4  ;;  %v3779_v16 = vld [vmem:[#allocation3 + $0x8c] sm:$0x1] }
 0x2ec   : > { %3951 = vrot.lane.b32.xlu1 %v9996_v52, %s7703_s29  ;;  %v3783_v12 = vsel %vm9049_vm6, %v3576_v28, %v3782_v40  ;;  %v3559_v13 = vor.u32 %v3557_v51, %v3556_v61  ;;  %v3581_v23 = vrot.slane %v3579_v7, 7  ;;  %v3562_v46 = vshrl.u32 %v7134_v34, 16  ;;  %v3232_v52 = vld [vmem:[#allocation3 + $0xb4] sm:$0x1] }
 0x2ed   : > { %3784 = vst [vmem:[#allocation3 + $0x90] sm:$0xf] %v3783_v12  ;;  %v5211_v18 = vpop.permute.xlu0 %5210  ;;  %v3233_v38 = vsel %vm8663_vm4, 0, %v3232_v52  ;;  %v3565_v11 = vshll.u32 %v7134_v34, 16  ;;  %v4493_v15 = vrot.slane %v4491_v22, 5  ;;  %v3285_v44 = vsel %vm8682_vm5, 0, %v3284_v49 }
 0x2ee   : > { %v4871_v0 = vpop.permute.xlu1 %4870  ;;  %v3776_v25 = vsel %vm9049_vm6, %v3559_v13, %v3775_v53  ;;  %v3584_v33 = vor.u32 %v3582_v19, %v3581_v23  ;;  %v3586_v57 = vrot.slane %v3581_v23, 4  ;;  %v3564_v59 = vrot.slane %v3562_v46, 7  ;;  %5300 = vst.msk [vmem:[#allocation5 + $0x48] sm:$0xf] %vm4144_vm0, %v5211_v18  ;;  %3234 = vst [vmem:[#allocation3 + $0xb4] sm:$0x1] %v3233_v38 }
 0x2ef   : > { %4959 = vst.msk [vmem:[#allocation5 + $0x58] sm:$0xf] %vm4013_vm10, %v4871_v0  ;;  %3777 = vst [vmem:[#allocation3 + $0x84] sm:$0xf] %v3776_v25  ;;  %4888 = vrot.lane.b32.xlu0 %v10134_v56, %s7703_s29  ;;  %v3560_v6 = vrot.slane %v3556_v61, 4  ;;  %v10148_v48 = vsel %vm7915_vm11, %v4489_v21, %v4493_v15  ;;  %v3282_v28 = vsel %vm8682_vm5, 0, %v3281_v20 }
 0x2f0   : > { %4649 = vrot.lane.b32.xlu1 %v10031_v45, %s7697_s16  ;;  %v3585_v55 = vsel %vm7807_vm7, %v3577_v24, %v3584_v33  ;;  %v3787_v17 = vsel %vm8663_vm4, %v3586_v57, %v3786_v27  ;;  %v3567_v37 = vor.u32 %v3565_v11, %v3564_v59  ;;  %v3569_v4 = vrot.slane %v3564_v59, 4  ;;  %3286 = vst [vmem:[#allocation3 + $0xc8] sm:$0x1] %v3285_v44 }
 0x2f1   : > { %3785 = vst.msk [vmem:[#allocation3 + $0x94] sm:$0xf] %vm3178_vm1, %v3585_v55  ;;  %3788 = vst [vmem:[#allocation3 + $0x98] sm:$0x1] %v3787_v17  ;;  %v5349_v50 = vpop.permute.xlu0 %5348 }
 0x2f2   : > { %v5213_v40 = vpop.permute.xlu1 %5212  ;;  %v3568_v61 = vsel %vm7807_vm7, %v3560_v6, %v3567_v37  ;;  %v3780_v51 = vsel %vm8663_vm4, %v3569_v4, %v3779_v16  ;;  %5438 = vst.msk [vmem:[#allocation5 + $0x4c] sm:$0xf] %vm4711_vm13, %v5349_v50  ;;  %3283 = vst [vmem:[#allocation3 + $0xbc] sm:$0x1] %v3282_v28 }
 0x2f3   : > { %5301 = vst.msk [vmem:[#allocation5 + $0x54] sm:$0xf] %vm4144_vm0, %v5213_v40  ;;  %3781 = vst [vmem:[#allocation3 + $0x8c] sm:$0x1] %v3780_v51  ;;  %5230 = vrot.lane.b32.xlu0 %v9795_v32, %s7701_s26 }
 0x2f4   : > { %4890 = vrot.lane.b32.xlu1 %v10148_v48, %s7703_s29  ;;  %3778 = vst.msk [vmem:[#allocation3 + $0x88] sm:$0xf] %vm3178_vm1, %v3568_v61  ;;  %v10162_v14 = vld [vmem:[#allocation3 + $0x90] sm:$0xf] }
 0x2f5   : > { %3877 = vst.msk [vmem:[#allocation5 + $0x120] sm:$0xf] %vm3178_vm1, %v10162_v14  ;;  %v5020_v8 = vld [vmem:[#allocation3 + $0x90] sm:$0xe]  ;;  %v4065_v53 = vpop.permute.xlu0 %4064 }
 0x2f6   : > { %v5351_v7 = vpop.permute.xlu1 %5350  ;;  %v10167_v34 = vld [vmem:[#allocation3 + $0x84] sm:$0xf]  ;;  %4153 = vst.msk [vmem:[#allocation5 + $0x64] sm:$0xf] %vm4144_vm0, %v4065_v53  ;;  %v6969_v19 = vrot.slane %v5020_v8, 9 }
 0x2f7   : > { %5439 = vst.msk [vmem:[#allocation5 + $0x58] sm:$0xf] %vm4711_vm13, %v5351_v7  ;;  %v4210_v22 = vld [vmem:[#allocation3 + $0x84] sm:$0xf]  ;;  %5368 = vrot.lane.b32.xlu0 %v10007_v3, %s7697_s16 }
 0x2f8   : > { %5232 = vrot.lane.b32.xlu1 %v9805_v30, %s7701_s26  ;;  %3875 = vst.msk [vmem:[#allocation5 + $0x108] sm:$0xf] %vm3178_vm1, %v10167_v34  ;;  %v4496_v32 = vshrl.u32 %v4210_v22, 16  ;;  %v4499_v29 = vshll.u32 %v4210_v22, 16  ;;  %v5021_v12 = vld [vmem:[#allocation3 + $0x94] sm:$0xf] }
 0x2f9   : > { %v5022_v13 = vld [vmem:[#allocation3 + $0x98] sm:$0x1]  ;;  %4808 = vst.msk [vmem:[#allocation5 + $0x64] sm:$0xf] %vm3178_vm1, %v9775_v26  ;;  %v10178_v23 = vld [vmem:[#allocation3 + $0x94] sm:$0xf]  ;;  %v3934_v0 = vpop.permute.xlu0 %3933 }
 0x2fa   : > { %v5017_v27 = vld [vmem:[#allocation3 + $0x84] sm:$0xe]  ;;  %v5172_v30 = vrot.slane %v5021_v12, 5  ;;  %v4067_v24 = vpop.permute.xlu1 %4066  ;;  %3878 = vst.msk [vmem:[#allocation5 + $0x12c] sm:$0xf] %vm3178_vm1, %v10178_v23  ;;  %v5175_v46 = vrot.slane %v5022_v13, 5 }
 0x2fb   : > { %4154 = vst.msk [vmem:[#allocation5 + $0x70] sm:$0xf] %vm4144_vm0, %v4067_v24  ;;  %v4498_v21 = vrot.slane %v4496_v32, 4  ;;  %v4501_v52 = vrot.slane %v4499_v29, 5  ;;  %v5018_v26 = vld [vmem:[#allocation3 + $0x88] sm:$0xf]  ;;  %4084 = vrot.lane.b32.xlu0 %v10167_v34, %s7701_s26 }
 0x2fc   : > { %v5174_v25 = vrot.slane %v5172_v30, 4  ;;  %v5019_v33 = vld [vmem:[#allocation3 + $0x8c] sm:$0x1]  ;;  %4809 = vst.msk [vmem:[#allocation5 + $0x70] sm:$0xf] %vm3178_vm1, %v9788_v62  ;;  %5370 = vrot.lane.b32.xlu1 %v10024_v5, %s7697_s16  ;;  %v5550_v57 = vld [vmem:[#allocation5 + $0x48] sm:$0xff]  ;;  %v10190_v18 = vsel %vm7997_vm14, %v6969_v19, %v5172_v30 }
 0x2fd   : > { %4022 = vst.msk [vmem:[#allocation5 + $0x60] sm:$0xf] %vm4013_vm10, %v3934_v0  ;;  %v6968_v38 = vrot.slane %v5017_v27, 9  ;;  %v5165_v59 = vrot.slane %v5018_v26, 5  ;;  %v10192_v11 = vld [vmem:[#allocation3 + $0x88] sm:$0xf]  ;;  %v4632_v37 = vpop.permute.xlu0 %4631  ;;  %v4502_v28 = vor.u32 %v4501_v52, %v4498_v21 }
 0x2fe   : > { %v4211_v49 = vld [vmem:[#allocation3 + $0x88] sm:$0xf]  ;;  %5526 = vst.msk [vmem:[#allocation5 + $0xf8] sm:$0xf] %vm3178_vm1, %v10190_v18  ;;  %v5168_v62 = vrot.slane %v5019_v33, 5  ;;  %v3936_v55 = vpop.permute.xlu1 %3935  ;;  %v5552_v17 = vld [vmem:[#allocation5 + $0x54] sm:$0xff]  ;;  %v10202_v44 = vsel %vm7997_vm14, %v5174_v25, %v5175_v46 }
 0x2ff   : > { %3876 = vst.msk [vmem:[#allocation5 + $0x114] sm:$0xf] %vm3178_vm1, %v10192_v11  ;;  %v7641_v16 = vld [vmem:[#allocation5 + $0x4c] ss:$12 sps:$4 sm:$0xff]   ;;  %v4505_v15 = vshll.u32 %v4211_v49, 16  ;;  %v5167_v6 = vrot.slane %v5165_v59, 4  ;;  %v6985_v4 = vcombine.low %v5550_v57, %v5552_v17  ;;  %v10207_v40 = vsel %vm7997_vm14, %v6968_v38, %v5165_v59  ;;  %3953 = vrot.lane.b32.xlu0 %v9966_v9, %s7703_s29 }
 0x300   : > { %4023 = vst.msk [vmem:[#allocation5 + $0x6c] sm:$0xf] %vm4013_vm10, %v3936_v55  ;;  %v4509_v20 = vshrl.u32 %v4211_v49, 16  ;;  %4086 = vrot.lane.b32.xlu1 %v10192_v11, %s7701_s26  ;;  %6098 = vmatprep.mubr.bf16.mxu1 %v7641_v16  ;;  %v4212_v8 = vld [vmem:[#allocation3 + $0x8c] sm:$0x1]  ;;  %v4503_v9 = vrot.slane %v4502_v28, 4 }
 0x301   : > { %5527 = vst.msk [vmem:[#allocation5 + $0x104] sm:$0xf] %vm3178_vm1, %v10202_v44  ;;  %5524 = vst.msk [vmem:[#allocation5 + $0xe0] sm:$0xf] %vm3178_vm1, %v10207_v40  ;;  %v4507_v50 = vrot.slane %v4505_v15, 5  ;;  %6099 = vmatmul.mubr.bf16.gmra.mxu1 %v6985_v4  ;;  %v10220_v61 = vsel %vm7997_vm14, %v5167_v6, %v5168_v62  ;;  %v4873_v53 = vpop.permute.xlu0 %4872  ;;  %v4515_v32 = vshll.u32 %v4212_v8, 16 }
 0x302   : > { %4720 = vst.msk [vmem:[#allocation5 + $0x60] sm:$0xf] %vm4711_vm13, %v4632_v37  ;;  %v4511_v51 = vrot.slane %v4509_v20, 4  ;;  %v4634_v7 = vpop.permute.xlu1 %4633  ;;  %v5036_v21 = vld [vmem:[#allocation3 + $0xd0] sm:$0xf] }
 0x303   : > { %5525 = vst.msk [vmem:[#allocation5 + $0xec] sm:$0xf] %vm3178_vm1, %v10220_v61  ;;  %4651 = vrot.lane.b32.xlu0 %v10074_v58, %s7697_s16  ;;  %v4517_v27 = vrot.slane %v4515_v32, 5  ;;  %v4213_v52 = vld [vmem:[#allocation3 + $0x90] sm:$0xf]  ;;  %v5469_v25 = vrot.slane %v5036_v21, 5 }
 0x304   : > { %4721 = vst.msk [vmem:[#allocation5 + $0x6c] sm:$0xf] %vm4711_vm13, %v4634_v7  ;;  %v4512_v22 = vor.u32 %v4511_v51, %v4507_v50  ;;  %3955 = vrot.lane.b32.xlu1 %v9980_v47, %s7703_s29  ;;  %v10236_v47 = vsel %vm7915_vm11, %v4503_v9, %v4507_v50  ;;  %v5035_v33 = vld [vmem:[#allocation3 + $0xcc] sm:$0xe]  ;;  %v5037_v57 = vld [vmem:[#allocation3 + $0xd4] sm:$0x1] }
 0x305   : > { %4960 = vst.msk [vmem:[#allocation5 + $0x64] sm:$0xf] %vm4013_vm10, %v4873_v53  ;;  %v5215_v12 = vpop.permute.xlu0 %5214  ;;  %v6974_v59 = vrot.slane %v5035_v33, 9  ;;  %v5471_v49 = vrot.slane %v5469_v25, 4  ;;  %v5472_v62 = vrot.slane %v5037_v57, 5  ;;  %v4520_v17 = vshrl.u32 %v4213_v52, 16 }
 0x306   : > { %v4875_v29 = vpop.permute.xlu1 %4874  ;;  %v4513_v13 = vrot.slane %v4512_v22, 4  ;;  %5302 = vst.msk [vmem:[#allocation5 + $0x60] sm:$0xf] %vm4144_vm0, %v5215_v12  ;;  %v4214_v55 = vld [vmem:[#allocation3 + $0x94] sm:$0xf]  ;;  %v4523_v16 = vshll.u32 %v4213_v52, 16 }
 0x307   : > { %4961 = vst.msk [vmem:[#allocation5 + $0x70] sm:$0xf] %vm4013_vm10, %v4875_v29  ;;  %4892 = vrot.lane.b32.xlu0 %v10236_v47, %s7703_s29  ;;  %v5473_v15 = vsel %vm7997_vm14, %v5471_v49, %v5472_v62  ;;  %v4529_v37 = vshll.u32 %v4214_v55, 16  ;;  %v4533_v4 = vshrl.u32 %v4214_v55, 16  ;;  %v4522_v20 = vrot.slane %v4520_v17, 4  ;;  %v7662_v21 = vld [vmem:[%s10917_s6 + $0x8] sm:$0xff]  }
 0x308   : > { %4653 = vrot.lane.b32.xlu1 %v10081_v39, %s7697_s16  ;;  %v7644_v24 = vld [vmem:[#allocation5 + $0xf8] ss:$12 sps:$4 sm:$0xff]   ;;  %v10244_v46 = vsel %vm7915_vm11, %v4513_v13, %v4517_v27  ;;  %5537 = vst.msk [vmem:[#allocation5 + $0x17c] sm:$0xf] %vm3178_vm1, %v5473_v15  ;;  %v4525_v50 = vrot.slane %v4523_v16, 5  ;;  %v7663_v52 = vld [vmem:[%s10917_s6] sm:$0xff]   ;;  %7519 = vmatprep.subr.bf16.mxu0 %v7662_v21 }
 0x309   : > { %v5353_v0 = vpop.permute.xlu0 %5352  ;;  %v4531_v22 = vrot.slane %v4529_v37, 5  ;;  %v4215_v29 = vld [vmem:[#allocation3 + $0x98] sm:$0x1]  ;;  %7520 = vmatpush3.bf16.msra.mxu0 %v7662_v21 }
 0x30a   : > { %v7643_v19 = vld [vmem:[#allocation5 + $0xe0] ss:$12 sps:$4 sm:$0xff]   ;;  %v5217_v30 = vpop.permute.xlu1 %5216  ;;  %5440 = vst.msk [vmem:[#allocation5 + $0x64] sm:$0xf] %vm4711_vm13, %v5353_v0  ;;  %v4526_v9 = vor.u32 %v4525_v50, %v4522_v20  ;;  %v4539_v27 = vshll.u32 %v4215_v29, 16  ;;  %7521 = vmatprep.subr.bf16.mxu0 %v7663_v52 }
 0x30b   : > { %5303 = vst.msk [vmem:[#allocation5 + $0x6c] sm:$0xf] %vm4144_vm0, %v5217_v30  ;;  %7504 = vmatmul.mubr.msk.bf16.gmra.mxu0 %vm5993_vm15, %v7643_v19  ;;  %5234 = vrot.lane.b32.xlu0 %v10007_v3, %s7701_s26  ;;  %v5470_v3 = vsel %vm7997_vm14, %v6974_v59, %v5469_v25  ;;  %v10303_v25 = vld [vmem:[%s10914_s3] ss:$0 sm:$0xff] }
 0x30c   : > { %4894 = vrot.lane.b32.xlu1 %v10244_v46, %s7703_s29  ;;  %7507 = vmatprep.mubr.msk.bf16.mxu0 %vm5993_vm15, %v7644_v24  ;;  %5536 = vst.msk [vmem:[#allocation5 + $0x170] sm:$0xf] %vm3178_vm1, %v5470_v3  ;;  %v4527_v19 = vrot.slane %v4526_v9, 4  ;;  %v4541_v33 = vrot.slane %v4539_v27, 5 }
 0x30d   : > { %v4069_v38 = vpop.permute.xlu0 %4068  ;;  %7522 = vmatpush3.bf16.msra.mxu0 %v7663_v52 }
 0x30e   : > { %v5355_v26 = vpop.permute.xlu1 %5354  ;;  %4155 = vst.msk [vmem:[#allocation5 + $0x7c] sm:$0xf] %vm4144_vm0, %v4069_v38 }
 0x30f   : > { %5441 = vst.msk [vmem:[#allocation5 + $0x70] sm:$0xf] %vm4711_vm13, %v5355_v26  ;;  %5372 = vrot.lane.b32.xlu0 %v9990_v31, %s7697_s16 }
 0x310   : > { %5236 = vrot.lane.b32.xlu1 %v10024_v5, %s7701_s26  ;;  %4810 = vst.msk [vmem:[#allocation5 + $0x7c] sm:$0xf] %vm3178_vm1, %v9855_v35 }
 0x311   : > { %v3938_v5 = vpop.permute.xlu0 %3937  ;;  %v5554_v35 = vld [vmem:[#allocation5 + $0x60] sm:$0xff] }
 0x312   : > { %v4071_v6 = vpop.permute.xlu1 %4070  ;;  %4024 = vst.msk [vmem:[#allocation5 + $0x78] sm:$0xf] %vm4013_vm10, %v3938_v5 }
 0x313   : > { %4156 = vst.msk [vmem:[#allocation5 + $0x88] sm:$0xf] %vm4144_vm0, %v4071_v6  ;;  %4088 = vrot.lane.b32.xlu0 %v10162_v14, %s7701_s26 }
 0x314   : > { %4811 = vst.msk [vmem:[#allocation5 + $0x88] sm:$0xf] %vm3178_vm1, %v9862_v63  ;;  %5374 = vrot.lane.b32.xlu1 %v10000_v42, %s7697_s16  ;;  %v4535_v63 = vrot.slane %v4533_v4, 4 }
 0x315   : > { %v4636_v8 = vpop.permute.xlu0 %4635 }
 0x316   : > { %v3940_v28 = vpop.permute.xlu1 %3939  ;;  %v5556_v51 = vld [vmem:[#allocation5 + $0x6c] sm:$0xff]  ;;  %4722 = vst.msk [vmem:[#allocation5 + $0x78] sm:$0xf] %vm4711_vm13, %v4636_v8  ;;  %v4536_v13 = vor.u32 %v4535_v63, %v4531_v22 }
 0x317   : > { %v7645_v7 = vld [vmem:[#allocation5 + $0x64] ss:$12 sps:$4 sm:$0xff]   ;;  %4025 = vst.msk [vmem:[#allocation5 + $0x84] sm:$0xf] %vm4013_vm10, %v3940_v28  ;;  %v6988_v53 = vcombine.low %v5554_v35, %v5556_v51  ;;  %3957 = vrot.lane.b32.xlu0 %v10167_v34, %s7703_s29 }
 0x318   : > { %4090 = vrot.lane.b32.xlu1 %v10178_v23, %s7701_s26  ;;  %6106 = vmatprep.mubr.bf16.mxu1 %v7645_v7  ;;  %v4537_v24 = vrot.slane %v4536_v13, 4  ;;  %v3796_v8 = vld [vmem:[#allocation3 + $0xa8] sm:$0xf] }
 0x319   : > { %6107 = vmatmul.mubr.bf16.gmra.mxu1 %v6988_v53  ;;  %v4877_v12 = vpop.permute.xlu0 %4876 }
 0x31a   : > { %v4638_v32 = vpop.permute.xlu1 %4637  ;;  %4962 = vst.msk [vmem:[#allocation5 + $0x7c] sm:$0xf] %vm4013_vm10, %v4877_v12  ;;  %v10312_v62 = vsel %vm7915_vm11, %v4537_v24, %v4541_v33  ;;  %v3789_v12 = vld [vmem:[#allocation3 + $0x9c] sm:$0xf]  ;;  %v3800_v24 = vld [vmem:[#allocation3 + $0xb0] sm:$0x1] }
 0x31b   : > { %4723 = vst.msk [vmem:[#allocation5 + $0x84] sm:$0xf] %vm4711_vm13, %v4638_v32  ;;  %4655 = vrot.lane.b32.xlu0 %v10134_v56, %s7697_s16 }
 0x31c   : > { %3959 = vrot.lane.b32.xlu1 %v10192_v11, %s7703_s29  ;;  %v10292_v11 = vsel %vm7915_vm11, %v4527_v19, %v4531_v22 }
 0x31d   : > { %v5219_v34 = vpop.permute.xlu0 %5218 }
 0x31e   : > { %v4879_v30 = vpop.permute.xlu1 %4878  ;;  %5304 = vst.msk [vmem:[#allocation5 + $0x78] sm:$0xf] %vm4144_vm0, %v5219_v34 }
 0x31f   : > { %4963 = vst.msk [vmem:[#allocation5 + $0x88] sm:$0xf] %vm4013_vm10, %v4879_v30  ;;  %v7477_v0 = vpop.f32.mrf.mxu1  ;;  %4896 = vrot.lane.b32.xlu0 %v10292_v11, %s7703_s29 }
 0x320   : > { %4657 = vrot.lane.b32.xlu1 %v10148_v48, %s7697_s16  ;;  %v3124_v26 = vadd.f32 %v10303_v25, %v7477_v0 }
 0x321   : > { %v3115_v38 = vpop.f32.mrf.mxu1  ;;  %v5357_v55 = vpop.permute.xlu0 %5356 }
 0x322   : > { %v5221_v57 = vpop.permute.xlu1 %5220  ;;  %v3172_v59 = vmax.f32 %v3124_v26, 0.0  ;;  %v3116_v49 = vadd.f32 %v10303_v25, %v3115_v38  ;;  %5442 = vst.msk [vmem:[#allocation5 + $0x7c] sm:$0xf] %vm4711_vm13, %v5357_v55 }
 0x323   : > { %5305 = vst.msk [vmem:[#allocation5 + $0x84] sm:$0xf] %vm4144_vm0, %v5221_v57  ;;  %v7478_v17 = vpop.f32.mrf.mxu1  ;;  %5238 = vrot.lane.b32.xlu0 %v9990_v31, %s7701_s26 }
 0x324   : > { %4898 = vrot.lane.b32.xlu1 %v10312_v62, %s7703_s29  ;;  %v7139_v16 = vpack.c.bf16 %v3172_v59, %v3172_v59  ;;  %v3170_v3 = vmax.f32 %v3116_v49, 0.0  ;;  %v3127_v15 = vadd.f32 %v10303_v25, %v7478_v17 }
 0x325   : > { %v3118_v5 = vpop.f32.mrf.mxu1  ;;  %v4073_v20 = vpop.permute.xlu0 %4072 }
 0x326   : > { %v5359_v6 = vpop.permute.xlu1 %5358  ;;  %v3605_v37 = vshrl.u32 %v7139_v16, 16  ;;  %v7137_v4 = vpack.c.bf16 %v3170_v3, %v3170_v3  ;;  %v3173_v35 = vmax.f32 %v3127_v15, 0.0  ;;  %v3119_v50 = vadd.f32 %v10303_v25, %v3118_v5  ;;  %4157 = vst.msk [vmem:[#allocation5 + $0x94] sm:$0xf] %vm4144_vm0, %v4073_v20  ;;  %v3793_v15 = vld [vmem:[#allocation3 + $0xa4] sm:$0x1] }
 0x327   : > { %5443 = vst.msk [vmem:[#allocation5 + $0x88] sm:$0xf] %vm4711_vm13, %v5359_v6  ;;  %v3608_v51 = vshll.u32 %v7139_v16, 16  ;;  %5376 = vrot.lane.b32.xlu0 %v10207_v40, %s7697_s16 }
 0x328   : > { %5240 = vrot.lane.b32.xlu1 %v10000_v42, %s7701_s26  ;;  %v3607_v28 = vrot.slane %v3605_v37, 7  ;;  %v3588_v7 = vshrl.u32 %v7137_v4, 16  ;;  %v7140_v31 = vpack.c.bf16 %v3173_v35, %v3173_v35  ;;  %4812 = vst.msk [vmem:[#allocation5 + $0x94] sm:$0xf] %vm3178_vm1, %v9916_v2  ;;  %v3171_v53 = vmax.f32 %v3119_v50, 0.0 }
 0x329   : > { %v3591_v32 = vshll.u32 %v7137_v4, 16  ;;  %v3942_v42 = vpop.permute.xlu0 %3941  ;;  %v5558_v2 = vld [vmem:[#allocation5 + $0x78] sm:$0xff] }
 0x32a   : > { %v4075_v22 = vpop.permute.xlu1 %4074  ;;  %v3610_v63 = vor.u32 %v3608_v51, %v3607_v28  ;;  %v3590_v9 = vrot.slane %v3588_v7, 7  ;;  %v3613_v29 = vshrl.u32 %v7140_v31, 16  ;;  %v7138_v13 = vpack.c.bf16 %v3171_v53, %v3171_v53  ;;  %4026 = vst.msk [vmem:[#allocation5 + $0x90] sm:$0xf] %vm4013_vm10, %v3942_v42 }
 0x32b   : > { %4158 = vst.msk [vmem:[#allocation5 + $0xa0] sm:$0xf] %vm4144_vm0, %v4075_v22  ;;  %v3616_v34 = vshll.u32 %v7140_v31, 16  ;;  %v3611_v0 = vrot.slane %v3607_v28, 4 }
 0x32c   : > { %4813 = vst.msk [vmem:[#allocation5 + $0xa0] sm:$0xf] %vm3178_vm1, %v9922_v41  ;;  %5378 = vrot.lane.b32.xlu1 %v10220_v61, %s7697_s16  ;;  %v3797_v19 = vsel %vm9049_vm6, %v3610_v63, %v3796_v8  ;;  %v3593_v27 = vor.u32 %v3591_v32, %v3590_v9  ;;  %v3615_v30 = vrot.slane %v3613_v29, 7  ;;  %v3596_v21 = vshrl.u32 %v7138_v13, 16 }
 0x32d   : > { %3798 = vst [vmem:[#allocation3 + $0xa8] sm:$0xf] %v3797_v19  ;;  %v4640_v59 = vpop.permute.xlu0 %4639  ;;  %v3599_v17 = vshll.u32 %v7138_v13, 16  ;;  %v3594_v6 = vrot.slane %v3590_v9, 4 }
 0x32e   : > { %v3944_v52 = vpop.permute.xlu1 %3943  ;;  %v5560_v26 = vld [vmem:[#allocation5 + $0x84] sm:$0xff]  ;;  %v3790_v41 = vsel %vm9049_vm6, %v3593_v27, %v3789_v12  ;;  %v3618_v57 = vor.u32 %v3616_v34, %v3615_v30  ;;  %v3620_v38 = vrot.slane %v3615_v30, 4  ;;  %v3598_v55 = vrot.slane %v3596_v21, 7  ;;  %4724 = vst.msk [vmem:[#allocation5 + $0x90] sm:$0xf] %vm4711_vm13, %v4640_v59 }
 0x32f   : > { %v7647_v33 = vld [vmem:[#allocation5 + $0x7c] ss:$12 sps:$4 sm:$0xff]   ;;  %4027 = vst.msk [vmem:[#allocation5 + $0x9c] sm:$0xf] %vm4013_vm10, %v3944_v52  ;;  %v6991_v49 = vcombine.low %v5558_v2, %v5560_v26  ;;  %3791 = vst [vmem:[#allocation3 + $0x9c] sm:$0xf] %v3790_v41 }
 0x330   : > { %6114 = vmatprep.mubr.bf16.mxu1 %v7647_v33  ;;  %v3619_v16 = vsel %vm7807_vm7, %v3611_v0, %v3618_v57  ;;  %v3801_v3 = vsel %vm8663_vm4, %v3620_v38, %v3800_v24  ;;  %v3601_v5 = vor.u32 %v3599_v17, %v3598_v55  ;;  %v3603_v37 = vrot.slane %v3598_v55, 4 }
 0x331   : > { %6115 = vmatmul.mubr.bf16.gmra.mxu1 %v6991_v49  ;;  %3799 = vst.msk [vmem:[#allocation3 + $0xac] sm:$0xf] %vm3178_vm1, %v3619_v16  ;;  %3802 = vst [vmem:[#allocation3 + $0xb0] sm:$0x1] %v3801_v3  ;;  %v4881_v35 = vpop.permute.xlu0 %4880 }
 0x332   : > { %v4642_v4 = vpop.permute.xlu1 %4641  ;;  %v3602_v20 = vsel %vm7807_vm7, %v3594_v6, %v3601_v5  ;;  %v3794_v50 = vsel %vm8663_vm4, %v3603_v37, %v3793_v15  ;;  %4964 = vst.msk [vmem:[#allocation5 + $0x94] sm:$0xf] %vm4013_vm10, %v4881_v35 }
 0x333   : > { %4725 = vst.msk [vmem:[#allocation5 + $0x9c] sm:$0xf] %vm4711_vm13, %v4642_v4  ;;  %3795 = vst [vmem:[#allocation3 + $0xa4] sm:$0x1] %v3794_v50 }
 0x334   : > { %3792 = vst.msk [vmem:[#allocation3 + $0xa0] sm:$0xf] %vm3178_vm1, %v3602_v20  ;;  %v10353_v28 = vld [vmem:[#allocation3 + $0xa8] sm:$0xf] }
 0x335   : > { %3881 = vst.msk [vmem:[#allocation5 + $0x150] sm:$0xf] %vm3178_vm1, %v10353_v28  ;;  %v5026_v7 = vld [vmem:[#allocation3 + $0xa8] sm:$0xe]  ;;  %v5223_v8 = vpop.permute.xlu0 %5222 }
 0x336   : > { %v4883_v51 = vpop.permute.xlu1 %4882  ;;  %v10358_v31 = vld [vmem:[#allocation3 + $0x9c] sm:$0xf]  ;;  %5306 = vst.msk [vmem:[#allocation5 + $0x90] sm:$0xf] %vm4144_vm0, %v5223_v8  ;;  %v6971_v42 = vrot.slane %v5026_v7, 9 }
 0x337   : > { %4965 = vst.msk [vmem:[#allocation5 + $0xa0] sm:$0xf] %vm4013_vm10, %v4883_v51  ;;  %v4216_v53 = vld [vmem:[#allocation3 + $0x9c] sm:$0xf]  ;;  %4092 = vrot.lane.b32.xlu0 %v10358_v31, %s7701_s26 }
 0x338   : > { %3879 = vst.msk [vmem:[#allocation5 + $0x138] sm:$0xf] %vm3178_vm1, %v10358_v31  ;;  %v4544_v22 = vshrl.u32 %v4216_v53, 16  ;;  %v4547_v63 = vshll.u32 %v4216_v53, 16  ;;  %v5027_v9 = vld [vmem:[#allocation3 + $0xac] sm:$0xf] }
 0x339   : > { %v5028_v32 = vld [vmem:[#allocation3 + $0xb0] sm:$0x1]  ;;  %v10365_v29 = vld [vmem:[#allocation3 + $0xac] sm:$0xf]  ;;  %v5023_v12 = vld [vmem:[#allocation3 + $0x9c] sm:$0xe]  ;;  %v5361_v30 = vpop.permute.xlu0 %5360 }
 0x33a   : > { %v5186_v13 = vrot.slane %v5027_v9, 5  ;;  %v5225_v2 = vpop.permute.xlu1 %5224  ;;  %v4546_v19 = vrot.slane %v4544_v22, 4  ;;  %v4549_v27 = vrot.slane %v4547_v63, 5  ;;  %3882 = vst.msk [vmem:[#allocation5 + $0x15c] sm:$0xf] %vm3178_vm1, %v10365_v29  ;;  %v5189_v24 = vrot.slane %v5028_v32, 5 }
 0x33b   : > { %5307 = vst.msk [vmem:[#allocation5 + $0x9c] sm:$0xf] %vm4144_vm0, %v5225_v2  ;;  %v5024_v0 = vld [vmem:[#allocation3 + $0xa0] sm:$0xf]  ;;  %v5025_v21 = vld [vmem:[#allocation3 + $0xa4] sm:$0x1]  ;;  %3961 = vrot.lane.b32.xlu0 %v10162_v14, %s7703_s29 }
 0x33c   : > { %v5188_v34 = vrot.slane %v5186_v13, 4  ;;  %5444 = vst.msk [vmem:[#allocation5 + $0x94] sm:$0xf] %vm4711_vm13, %v5361_v30  ;;  %v4550_v52 = vor.u32 %v4549_v27, %v4546_v19  ;;  %v10375_v26 = vsel %vm7997_vm14, %v6971_v42, %v5186_v13  ;;  %v6970_v33 = vrot.slane %v5023_v12, 9  ;;  %v10377_v57 = vld [vmem:[#allocation3 + $0xa0] sm:$0xf] }
 0x33d   : > { %v5179_v41 = vrot.slane %v5024_v0, 5  ;;  %v4217_v38 = vld [vmem:[#allocation3 + $0xa0] sm:$0xf]  ;;  %5530 = vst.msk [vmem:[#allocation5 + $0x128] sm:$0xf] %vm3178_vm1, %v10375_v26  ;;  %4094 = vrot.lane.b32.xlu1 %v10377_v57, %s7701_s26  ;;  %v5182_v16 = vrot.slane %v5025_v21, 5  ;;  %v4077_v3 = vpop.permute.xlu0 %4076 }
 0x33e   : > { %3880 = vst.msk [vmem:[#allocation5 + $0x144] sm:$0xf] %vm3178_vm1, %v10377_v57  ;;  %v5363_v14 = vpop.permute.xlu1 %5362  ;;  %v4553_v59 = vshll.u32 %v4217_v38, 16  ;;  %v4557_v49 = vshrl.u32 %v4217_v38, 16  ;;  %v10387_v55 = vsel %vm7997_vm14, %v5188_v34, %v5189_v24  ;;  %v4551_v15 = vrot.slane %v4550_v52, 4 }
 0x33f   : > { %v5181_v17 = vrot.slane %v5179_v41, 4  ;;  %5445 = vst.msk [vmem:[#allocation5 + $0xa0] sm:$0xf] %vm4711_vm13, %v5363_v14  ;;  %v10392_v6 = vsel %vm7997_vm14, %v6970_v33, %v5179_v41  ;;  %4659 = vrot.lane.b32.xlu0 %v10236_v47, %s7697_s16  ;;  %v4218_v37 = vld [vmem:[#allocation3 + $0xa4] sm:$0x1] }
 0x340   : > { %5531 = vst.msk [vmem:[#allocation5 + $0x134] sm:$0xf] %vm3178_vm1, %v10387_v55  ;;  %v4555_v5 = vrot.slane %v4553_v59, 5  ;;  %v4559_v4 = vrot.slane %v4557_v49, 4  ;;  %5528 = vst.msk [vmem:[#allocation5 + $0x110] sm:$0xf] %vm3178_vm1, %v10392_v6 }
 0x341   : > { %4159 = vst.msk [vmem:[#allocation5 + $0xac] sm:$0xf] %vm4144_vm0, %v4077_v3  ;;  %v10405_v35 = vsel %vm7997_vm14, %v5181_v17, %v5182_v16  ;;  %3963 = vrot.lane.b32.xlu1 %v10178_v23, %s7703_s29  ;;  %v3946_v7 = vpop.permute.xlu0 %3945  ;;  %v4220_v24 = vld [vmem:[#allocation3 + $0xac] sm:$0xf] }
 0x342   : > { %4814 = vst.msk [vmem:[#allocation5 + $0xac] sm:$0xf] %vm3178_vm1, %v10016_v54  ;;  %v4079_v20 = vpop.permute.xlu1 %4078  ;;  %v4560_v50 = vor.u32 %v4559_v4, %v4555_v5  ;;  %5529 = vst.msk [vmem:[#allocation5 + $0x11c] sm:$0xf] %vm3178_vm1, %v10405_v35  ;;  %v10414_v51 = vsel %vm7915_vm11, %v4551_v15, %v4555_v5  ;;  %v4563_v54 = vshll.u32 %v4218_v37, 16  ;;  %v4577_v33 = vshll.u32 %v4220_v24, 16 }
 0x343   : > { %4160 = vst.msk [vmem:[#allocation5 + $0xb8] sm:$0xf] %vm4144_vm0, %v4079_v20  ;;  %4900 = vrot.lane.b32.xlu0 %v10414_v51, %s7703_s29  ;;  %v5562_v23 = vld [vmem:[#allocation5 + $0x90] sm:$0xff]  ;;  %v4581_v41 = vshrl.u32 %v4220_v24, 16  ;;  %v4221_v15 = vld [vmem:[#allocation3 + $0xb0] sm:$0x1] }
 0x344   : > { %4815 = vst.msk [vmem:[#allocation5 + $0xb8] sm:$0xf] %vm3178_vm1, %v10031_v45  ;;  %v4561_v8 = vrot.slane %v4560_v50, 4  ;;  %v4565_v9 = vrot.slane %v4563_v54, 5  ;;  %v4219_v45 = vld [vmem:[#allocation3 + $0xa8] sm:$0xf] }
 0x345   : > { %4028 = vst.msk [vmem:[#allocation5 + $0xa8] sm:$0xf] %vm4013_vm10, %v3946_v7  ;;  %4661 = vrot.lane.b32.xlu1 %v10244_v46, %s7697_s16  ;;  %v4644_v32 = vpop.permute.xlu0 %4643  ;;  %v4568_v27 = vshrl.u32 %v4219_v45, 16  ;;  %v4571_v30 = vshll.u32 %v4219_v45, 16  ;;  %v4579_v59 = vrot.slane %v4577_v33, 5  ;;  %v4583_v49 = vrot.slane %v4581_v41, 4 }
 0x346   : > { %v3948_v53 = vpop.permute.xlu1 %3947  ;;  %v5564_v22 = vld [vmem:[#allocation5 + $0x9c] sm:$0xff]  ;;  %4726 = vst.msk [vmem:[#allocation5 + $0xa8] sm:$0xf] %vm4711_vm13, %v4644_v32  ;;  %v10429_v12 = vsel %vm7915_vm11, %v4561_v8, %v4565_v9  ;;  %v4587_v20 = vshll.u32 %v4221_v15, 16 }
 0x347   : > { %v7649_v63 = vld [vmem:[#allocation5 + $0x94] ss:$12 sps:$4 sm:$0xff]   ;;  %4029 = vst.msk [vmem:[#allocation5 + $0xb4] sm:$0xf] %vm4013_vm10, %v3948_v53  ;;  %v6994_v42 = vcombine.low %v5562_v23, %v5564_v22  ;;  %5242 = vrot.lane.b32.xlu0 %v10207_v40, %s7701_s26  ;;  %v4570_v21 = vrot.slane %v4568_v27, 4  ;;  %v4573_v52 = vrot.slane %v4571_v30, 5 }
 0x348   : > { %6122 = vmatprep.mubr.bf16.mxu1 %v7649_v63  ;;  %v7652_v19 = vld [vmem:[#allocation5 + $0x128] ss:$12 sps:$4 sm:$0xff]   ;;  %v4589_v23 = vrot.slane %v4587_v20, 5 }
 0x349   : > { %6123 = vmatmul.mubr.bf16.gmra.mxu1 %v6994_v42  ;;  %v7651_v13 = vld [vmem:[#allocation5 + $0x110] ss:$12 sps:$4 sm:$0xff]   ;;  %4902 = vrot.lane.b32.xlu1 %v10429_v12, %s7703_s29  ;;  %v4885_v40 = vpop.permute.xlu0 %4884  ;;  %v4574_v14 = vor.u32 %v4573_v52, %v4570_v21 }
 0x34a   : > { %v4646_v2 = vpop.permute.xlu1 %4645  ;;  %7508 = vmatmul.mubr.msk.bf16.gmra.mxu0 %vm5993_vm15, %v7651_v13  ;;  %4966 = vst.msk [vmem:[#allocation5 + $0xac] sm:$0xf] %vm4013_vm10, %v4885_v40 }
 0x34b   : > { %4727 = vst.msk [vmem:[#allocation5 + $0xb4] sm:$0xf] %vm4711_vm13, %v4646_v2  ;;  %7511 = vmatprep.mubr.msk.bf16.mxu0 %vm5993_vm15, %v7652_v19  ;;  %5380 = vrot.lane.b32.xlu0 %v10190_v18, %s7697_s16  ;;  %v4575_v3 = vrot.slane %v4574_v14, 4  ;;  %v3810_v14 = vld [vmem:[#allocation3 + $0xc0] sm:$0xf] }
 0x34d   : > { %5244 = vrot.lane.b32.xlu1 %v10220_v61, %s7701_s26  ;;  %v5227_v0 = vpop.permute.xlu0 %5226  ;;  %v10464_v37 = vsel %vm7915_vm11, %v4575_v3, %v4579_v59 }
 0x34e   : > { %v4887_v34 = vpop.permute.xlu1 %4886  ;;  %5308 = vst.msk [vmem:[#allocation5 + $0xa8] sm:$0xf] %vm4144_vm0, %v5227_v0 }
 0x34f   : > { %4967 = vst.msk [vmem:[#allocation5 + $0xb8] sm:$0xf] %vm4013_vm10, %v4887_v34  ;;  %4096 = vrot.lane.b32.xlu0 %v10353_v28, %s7701_s26 }
 0x351   : > { %5382 = vrot.lane.b32.xlu1 %v10202_v44, %s7697_s16  ;;  %v5365_v61 = vpop.permute.xlu0 %5364 }
 0x352   : > { %v5229_v38 = vpop.permute.xlu1 %5228  ;;  %5446 = vst.msk [vmem:[#allocation5 + $0xac] sm:$0xf] %vm4711_vm13, %v5365_v61 }
 0x353   : > { %5309 = vst.msk [vmem:[#allocation5 + $0xb4] sm:$0xf] %vm4144_vm0, %v5229_v38  ;;  %3965 = vrot.lane.b32.xlu0 %v10358_v31, %s7703_s29  ;;  %v4584_v31 = vor.u32 %v4583_v49, %v4579_v59 }
 0x355   : > { %4098 = vrot.lane.b32.xlu1 %v10365_v29, %s7701_s26  ;;  %v4081_v16 = vpop.permute.xlu0 %4080  ;;  %v4585_v50 = vrot.slane %v4584_v31, 4 }
 0x356   : > { %v5367_v17 = vpop.permute.xlu1 %5366  ;;  %4161 = vst.msk [vmem:[#allocation5 + $0xc4] sm:$0xf] %vm4144_vm0, %v4081_v16 }
 0x357   : > { %5447 = vst.msk [vmem:[#allocation5 + $0xb8] sm:$0xf] %vm4711_vm13, %v5367_v17  ;;  %4663 = vrot.lane.b32.xlu0 %v10292_v11, %s7697_s16  ;;  %v10480_v63 = vsel %vm7915_vm11, %v4585_v50, %v4589_v23  ;;  %v3814_v50 = vld [vmem:[#allocation3 + $0xc8] sm:$0x1] }
 0x358   : > { %4816 = vst.msk [vmem:[#allocation5 + $0xc4] sm:$0xf] %vm3178_vm1, %v10074_v58 }
 0x359   : > { %3967 = vrot.lane.b32.xlu1 %v10377_v57, %s7703_s29  ;;  %v3950_v4 = vpop.permute.xlu0 %3949  ;;  %v5566_v58 = vld [vmem:[#allocation5 + $0xa8] sm:$0xff] }
 0x35a   : > { %v4083_v5 = vpop.permute.xlu1 %4082  ;;  %4030 = vst.msk [vmem:[#allocation5 + $0xc0] sm:$0xf] %vm4013_vm10, %v3950_v4 }
 0x35b   : > { %4162 = vst.msk [vmem:[#allocation5 + $0xd0] sm:$0xf] %vm4144_vm0, %v4083_v5  ;;  %4904 = vrot.lane.b32.xlu0 %v10464_v37, %s7703_s29 }
 0x35c   : > { %4817 = vst.msk [vmem:[#allocation5 + $0xd0] sm:$0xf] %vm3178_vm1, %v10081_v39 }
 0x35d   : > { %4665 = vrot.lane.b32.xlu1 %v10312_v62, %s7697_s16  ;;  %v4648_v8 = vpop.permute.xlu0 %4647 }
 0x35e   : > { %v3952_v57 = vpop.permute.xlu1 %3951  ;;  %v5568_v7 = vld [vmem:[#allocation5 + $0xb4] sm:$0xff]  ;;  %4728 = vst.msk [vmem:[#allocation5 + $0xc0] sm:$0xf] %vm4711_vm13, %v4648_v8 }
 0x35f   : > { %v7653_v54 = vld [vmem:[#allocation5 + $0xac] ss:$12 sps:$4 sm:$0xff]   ;;  %4031 = vst.msk [vmem:[#allocation5 + $0xcc] sm:$0xf] %vm4013_vm10, %v3952_v57  ;;  %v6997_v53 = vcombine.low %v5566_v58, %v5568_v7  ;;  %v7481_v22 = vpop.f32.mrf.mxu1  ;;  %5246 = vrot.lane.b32.xlu0 %v10190_v18, %s7701_s26 }
 0x360   : > { %6130 = vmatprep.mubr.bf16.mxu1 %v7653_v54  ;;  %v3140_v39 = vadd.f32 %v10303_v25, %v7481_v22 }
 0x361   : > { %6131 = vmatmul.mubr.bf16.gmra.mxu1 %v6997_v53  ;;  %4906 = vrot.lane.b32.xlu1 %v10480_v63, %s7703_s29  ;;  %v3131_v32 = vpop.f32.mrf.mxu1  ;;  %v4889_v45 = vpop.permute.xlu0 %4888 }
 0x362   : > { %v4650_v9 = vpop.permute.xlu1 %4649  ;;  %v3176_v42 = vmax.f32 %v3140_v39, 0.0  ;;  %v3132_v18 = vadd.f32 %v10303_v25, %v3131_v32  ;;  %4968 = vst.msk [vmem:[#allocation5 + $0xc4] sm:$0xf] %vm4013_vm10, %v4889_v45 }
 0x363   : > { %4729 = vst.msk [vmem:[#allocation5 + $0xcc] sm:$0xf] %vm4711_vm13, %v4650_v9  ;;  %v7482_v13 = vpop.f32.mrf.mxu1  ;;  %5384 = vrot.lane.b32.xlu0 %v10392_v6, %s7697_s16 }
 0x364   : > { %v7143_v2 = vpack.c.bf16 %v3176_v42, %v3176_v42  ;;  %v3174_v19 = vmax.f32 %v3132_v18, 0.0  ;;  %v3143_v40 = vadd.f32 %v10303_v25, %v7482_v13  ;;  %v3807_v18 = vld [vmem:[#allocation3 + $0xbc] sm:$0x1] }
 0x365   : > { %5248 = vrot.lane.b32.xlu1 %v10202_v44, %s7701_s26  ;;  %v3134_v30 = vpop.f32.mrf.mxu1  ;;  %v5231_v21 = vpop.permute.xlu0 %5230 }
 0x366   : > { %v4891_v27 = vpop.permute.xlu1 %4890  ;;  %v3639_v34 = vshrl.u32 %v7143_v2, 16  ;;  %v7141_v24 = vpack.c.bf16 %v3174_v19, %v3174_v19  ;;  %v3177_v0 = vmax.f32 %v3143_v40, 0.0  ;;  %v3135_v52 = vadd.f32 %v10303_v25, %v3134_v30  ;;  %5310 = vst.msk [vmem:[#allocation5 + $0xc0] sm:$0xf] %vm4144_vm0, %v5231_v21  ;;  %v3803_v25 = vld [vmem:[#allocation3 + $0xb4] sm:$0xf] }
 0x367   : > { %4969 = vst.msk [vmem:[#allocation5 + $0xd0] sm:$0xf] %vm4013_vm10, %v4891_v27  ;;  %v3642_v41 = vshll.u32 %v7143_v2, 16 }
 0x368   : > { %v3641_v33 = vrot.slane %v3639_v34, 7  ;;  %v3622_v38 = vshrl.u32 %v7141_v24, 16  ;;  %v7144_v61 = vpack.c.bf16 %v3177_v0, %v3177_v0  ;;  %v3175_v59 = vmax.f32 %v3135_v52, 0.0 }
 0x369   : > { %5386 = vrot.lane.b32.xlu1 %v10405_v35, %s7697_s16  ;;  %v3625_v16 = vshll.u32 %v7141_v24, 16  ;;  %v5369_v15 = vpop.permute.xlu0 %5368 }
 0x36a   : > { %v5233_v44 = vpop.permute.xlu1 %5232  ;;  %v3644_v49 = vor.u32 %v3642_v41, %v3641_v33  ;;  %v3624_v17 = vrot.slane %v3622_v38, 7  ;;  %v3647_v3 = vshrl.u32 %v7144_v61, 16  ;;  %v7142_v31 = vpack.c.bf16 %v3175_v59, %v3175_v59  ;;  %5448 = vst.msk [vmem:[#allocation5 + $0xc4] sm:$0xf] %vm4711_vm13, %v5369_v15 }
 0x36b   : > { %5311 = vst.msk [vmem:[#allocation5 + $0xcc] sm:$0xf] %vm4144_vm0, %v5233_v44  ;;  %v3650_v58 = vshll.u32 %v7144_v61, 16  ;;  %v3645_v54 = vrot.slane %v3641_v33, 4 }
 0x36c   : > { %v3811_v5 = vsel %vm9049_vm6, %v3644_v49, %v3810_v14  ;;  %v3627_v4 = vor.u32 %v3625_v16, %v3624_v17  ;;  %v3649_v20 = vrot.slane %v3647_v3, 7  ;;  %v3630_v57 = vshrl.u32 %v7142_v31, 16 }
 0x36d   : > { %3812 = vst [vmem:[#allocation3 + $0xc0] sm:$0xf] %v3811_v5  ;;  %v4085_v22 = vpop.permute.xlu0 %4084  ;;  %v3633_v9 = vshll.u32 %v7142_v31, 16  ;;  %v3628_v60 = vrot.slane %v3624_v17, 4 }
 0x36e   : > { %v5371_v7 = vpop.permute.xlu1 %5370  ;;  %v3804_v23 = vsel %vm9049_vm6, %v3627_v4, %v3803_v25  ;;  %v3652_v8 = vor.u32 %v3650_v58, %v3649_v20  ;;  %v3654_v53 = vrot.slane %v3649_v20, 4  ;;  %v3632_v39 = vrot.slane %v3630_v57, 7  ;;  %4163 = vst.msk [vmem:[#allocation5 + $0xdc] sm:$0xf] %vm4144_vm0, %v4085_v22 }
 0x36f   : > { %5449 = vst.msk [vmem:[#allocation5 + $0xd0] sm:$0xf] %vm4711_vm13, %v5371_v7  ;;  %3805 = vst [vmem:[#allocation3 + $0xb4] sm:$0xf] %v3804_v23 }
 0x370   : > { %v3653_v32 = vsel %vm7807_vm7, %v3645_v54, %v3652_v8  ;;  %v3815_v42 = vsel %vm8663_vm4, %v3654_v53, %v3814_v50  ;;  %4818 = vst.msk [vmem:[#allocation5 + $0xdc] sm:$0xf] %vm3178_vm1, %v10134_v56  ;;  %v3635_v45 = vor.u32 %v3633_v9, %v3632_v39  ;;  %v3637_v13 = vrot.slane %v3632_v39, 4  ;;  %v10537_v50 = vpop.f32.mrf.mxu0 }
 0x371   : > { %3813 = vst.msk [vmem:[#allocation3 + $0xc4] sm:$0xf] %vm3178_vm1, %v3653_v32  ;;  %3816 = vst [vmem:[#allocation3 + $0xc8] sm:$0x1] %v3815_v42  ;;  %v3954_v19 = vpop.permute.xlu0 %3953  ;;  %v5570_v56 = vld [vmem:[#allocation5 + $0xc0] sm:$0xff] }
 0x372   : > { %v4087_v2 = vpop.permute.xlu1 %4086  ;;  %v3636_v40 = vsel %vm7807_vm7, %v3628_v60, %v3635_v45  ;;  %v3808_v27 = vsel %vm8663_vm4, %v3637_v13, %v3807_v18  ;;  %4032 = vst.msk [vmem:[#allocation5 + $0xd8] sm:$0xf] %vm4013_vm10, %v3954_v19 }
 0x373   : > { %4164 = vst.msk [vmem:[#allocation5 + $0xe8] sm:$0xf] %vm4144_vm0, %v4087_v2  ;;  %3809 = vst [vmem:[#allocation3 + $0xbc] sm:$0x1] %v3808_v27 }
 0x374   : > { %4819 = vst.msk [vmem:[#allocation5 + $0xe8] sm:$0xf] %vm3178_vm1, %v10148_v48  ;;  %3806 = vst.msk [vmem:[#allocation3 + $0xb8] sm:$0xf] %vm3178_vm1, %v3636_v40  ;;  %v5032_v0 = vld [vmem:[#allocation3 + $0xc0] sm:$0xe]  ;;  %v6237_v40 = vpop.f32.mrf.mxu0 }
 0x375   : > { %v4652_v21 = vpop.permute.xlu0 %4651  ;;  %v6973_v16 = vrot.slane %v5032_v0, 9 }
 0x376   : > { %v3956_v30 = vpop.permute.xlu1 %3955  ;;  %v5572_v34 = vld [vmem:[#allocation5 + $0xcc] sm:$0xff]  ;;  %v10522_v43 = vld [vmem:[#allocation3 + $0xb4] sm:$0xf]  ;;  %4730 = vst.msk [vmem:[#allocation5 + $0xd8] sm:$0xf] %vm4711_vm13, %v4652_v21 }
 0x377   : > { %v7655_v24 = vld [vmem:[#allocation5 + $0xc4] ss:$12 sps:$4 sm:$0xff]   ;;  %4033 = vst.msk [vmem:[#allocation5 + $0xe4] sm:$0xf] %vm4013_vm10, %v3956_v30  ;;  %v7000_v36 = vcombine.low %v5570_v56, %v5572_v34  ;;  %v4222_v52 = vld [vmem:[#allocation3 + $0xb4] sm:$0xf]  ;;  %4100 = vrot.lane.b32.xlu0 %v10522_v43, %s7701_s26 }
 0x378   : > { %3883 = vst.msk [vmem:[#allocation5 + $0x168] sm:$0xf] %vm3178_vm1, %v10522_v43  ;;  %6138 = vmatprep.mubr.bf16.mxu1 %v7655_v24  ;;  %v4592_v48 = vshrl.u32 %v4222_v52, 16  ;;  %v4595_v33 = vshll.u32 %v4222_v52, 16  ;;  %v5029_v41 = vld [vmem:[#allocation3 + $0xb4] sm:$0xe]  ;;  %v7309_v61 = vpop.f32.mrf.mxu1 }
 0x379   : > { %v5033_v38 = vld [vmem:[#allocation3 + $0xc4] sm:$0xf]  ;;  %6139 = vmatmul.mubr.bf16.gmra.mxu1 %v7000_v36  ;;  %v5034_v17 = vld [vmem:[#allocation3 + $0xc8] sm:$0x1]  ;;  %v4893_v15 = vpop.permute.xlu0 %4892  ;;  %v6972_v25 = vrot.slane %v5029_v41, 9 }
 0x37a   : > { %v5331_v14 = vrot.slane %v5033_v38, 5  ;;  %v4654_v59 = vpop.permute.xlu1 %4653  ;;  %v4594_v44 = vrot.slane %v4592_v48, 4  ;;  %v4597_v49 = vrot.slane %v4595_v33, 5  ;;  %v7310_v3 = vpop.f32.mrf.mxu1  ;;  %v5031_v4 = vld [vmem:[#allocation3 + $0xbc] sm:$0x1]  ;;  %v5334_v8 = vrot.slane %v5034_v17, 5 }
 0x37b   : > { %4731 = vst.msk [vmem:[#allocation5 + $0xe4] sm:$0xf] %vm4711_vm13, %v4654_v59  ;;  %v5030_v5 = vld [vmem:[#allocation3 + $0xb8] sm:$0xf]  ;;  %3969 = vrot.lane.b32.xlu0 %v10353_v28, %s7703_s29  ;;  %v5196_v53 = vrot.slane %v5031_v4, 5  ;;  %v7311_v1 = vadd.f32 %v7310_v3, %v7309_v61 }
 0x37c   : > { %v5333_v31 = vrot.slane %v5331_v14, 4  ;;  %4970 = vst.msk [vmem:[#allocation5 + $0xdc] sm:$0xf] %vm4013_vm10, %v4893_v15  ;;  %v4598_v20 = vor.u32 %v4597_v49, %v4594_v44  ;;  %v10535_v58 = vsel %vm7997_vm14, %v6973_v16, %v5331_v14  ;;  %v5193_v57 = vrot.slane %v5030_v5, 5  ;;  %v10539_v7 = vld [vmem:[#allocation3 + $0xb8] sm:$0xf]  ;;  %v7312_v54 = vpop.f32.mrf.mxu1 }
 0x37d   : > { %v4223_v23 = vld [vmem:[#allocation3 + $0xb8] sm:$0xf]  ;;  %5534 = vst.msk [vmem:[#allocation5 + $0x158] sm:$0xf] %vm3178_vm1, %v10535_v58  ;;  %4102 = vrot.lane.b32.xlu1 %v10539_v7, %s7701_s26  ;;  %3884 = vst.msk [vmem:[#allocation5 + $0x174] sm:$0xf] %vm3178_vm1, %v10539_v7  ;;  %v5235_v42 = vpop.permute.xlu0 %5234 }
 0x37e   : > { %v4895_v28 = vpop.permute.xlu1 %4894  ;;  %v4601_v22 = vshll.u32 %v4223_v23, 16  ;;  %v4605_v39 = vshrl.u32 %v4223_v23, 16  ;;  %v5195_v9 = vrot.slane %v5193_v57, 4  ;;  %v7313_v32 = vpop.f32.mrf.mxu1  ;;  %v4599_v18 = vrot.slane %v4598_v20, 4  ;;  %5312 = vst.msk [vmem:[#allocation5 + $0xd8] sm:$0xf] %vm4144_vm0, %v5235_v42 }
 0x37f   : > { %4971 = vst.msk [vmem:[#allocation5 + $0xe8] sm:$0xf] %vm4013_vm10, %v4895_v28  ;;  %v10550_v60 = vsel %vm7997_vm14, %v6972_v25, %v5193_v57  ;;  %v10554_v45 = vsel %vm7997_vm14, %v5333_v31, %v5334_v8  ;;  %4667 = vrot.lane.b32.xlu0 %v10414_v51, %s7697_s16  ;;  %v4224_v2 = vld [vmem:[#allocation3 + $0xbc] sm:$0x1]  ;;  %v7314_v56 = vadd.f32 %v7313_v32, %v7312_v54  ;;  %v10584_v36 = vld [vmem:[%s10916_s5] ss:$0 sm:$0xff] }
 0x380   : > { %v4603_v13 = vrot.slane %v4601_v22, 5  ;;  %v4607_v19 = vrot.slane %v4605_v39, 4  ;;  %5532 = vst.msk [vmem:[#allocation5 + $0x140] sm:$0xf] %vm3178_vm1, %v10550_v60  ;;  %5535 = vst.msk [vmem:[#allocation5 + $0x164] sm:$0xf] %vm3178_vm1, %v10554_v45  ;;  %v10565_v27 = vsel %vm7997_vm14, %v5195_v9, %v5196_v53  ;;  %v6077_v61 = vadd.f32 %v7311_v1, %v10584_v36 }
 0x381   : > { %3971 = vrot.lane.b32.xlu1 %v10365_v29, %s7703_s29  ;;  %5533 = vst.msk [vmem:[#allocation5 + $0x14c] sm:$0xf] %vm3178_vm1, %v10565_v27  ;;  %v5373_v0 = vpop.permute.xlu0 %5372  ;;  %v4611_v21 = vshll.u32 %v4224_v2, 16  ;;  %v10579_v29 = vpop.f32.mrf.mxu0  ;;  %v6080_v48 = vadd.f32 %v7314_v56, %v10584_v36  ;;  %v4225_v14 = vld [vmem:[#allocation3 + $0xc0] sm:$0xf] }
 0x382   : > { %v5237_v30 = vpop.permute.xlu1 %5236  ;;  %v4608_v34 = vor.u32 %v4607_v19, %v4603_v13  ;;  %v10574_v24 = vsel %vm7915_vm11, %v4599_v18, %v4603_v13  ;;  %5450 = vst.msk [vmem:[#allocation5 + $0xdc] sm:$0xf] %vm4711_vm13, %v5373_v0  ;;  %v4745_v15 = vshrl.u32 %v4225_v14, 16  ;;  %v4748_v25 = vshll.u32 %v4225_v14, 16  ;;  %v4226_v54 = vld [vmem:[#allocation3 + $0xc4] sm:$0xf] }
 0x383   : > { %5313 = vst.msk [vmem:[#allocation5 + $0xe4] sm:$0xf] %vm4144_vm0, %v5237_v30  ;;  %4908 = vrot.lane.b32.xlu0 %v10574_v24, %s7703_s29  ;;  %v4613_v41 = vrot.slane %v4611_v21, 5  ;;  %v6240_v59 = vpop.f32.mrf.mxu0  ;;  %v6238_v31 = vadd.f32 %v6237_v40, %v6077_v61  ;;  %v10613_v23 = vld [vmem:[#allocation3 + $0xc0] sm:$0xf]  ;;  %v4754_v9 = vshll.u32 %v4226_v54, 16 }
 0x384   : > { %v4609_v52 = vrot.slane %v4608_v34, 4  ;;  %v6241_v17 = vadd.f32 %v6240_v59, %v6080_v48  ;;  %v7661_v53 = vld [vmem:[#allocation5 + $0x170] ss:$12 sps:$4 sm:$0xff]   ;;  %v4747_v28 = vrot.slane %v4745_v15, 4  ;;  %v4750_v22 = vrot.slane %v4748_v25, 5 }
 0x385   : > { %4669 = vrot.lane.b32.xlu1 %v10429_v12, %s7697_s16  ;;  %v4089_v38 = vpop.permute.xlu0 %4088  ;;  %v6364_v39 = vmax.f32 %v6238_v31, 0.0  ;;  %v4758_v32 = vshrl.u32 %v4226_v54, 16  ;;  %v10626_v56 = vld [vmem:[#allocation3 + $0xc4] sm:$0xf]  ;;  %v4756_v34 = vrot.slane %v4754_v9, 5 }
 0x386   : > { %v5375_v33 = vpop.permute.xlu1 %5374  ;;  %4165 = vst.msk [vmem:[#allocation5 + $0xf4] sm:$0xf] %vm4144_vm0, %v4089_v38  ;;  %v10596_v44 = vsel %vm7915_vm11, %v4609_v52, %v4613_v41  ;;  %v6365_v5 = vmax.f32 %v6241_v17, 0.0  ;;  %v4751_v19 = vor.u32 %v4750_v22, %v4747_v28  ;;  %v4228_v25 = vld [vmem:[#allocation3 + $0xcc] sm:$0xf] }
 0x387   : > { %5451 = vst.msk [vmem:[#allocation5 + $0xe8] sm:$0xf] %vm4711_vm13, %v5375_v33  ;;  %5250 = vrot.lane.b32.xlu0 %v10392_v6, %s7701_s26  ;;  %v7658_v3 = vld [vmem:[#allocation5 + $0x158] ss:$12 sps:$4 sm:$0xff]   ;;  %v4760_v0 = vrot.slane %v4758_v32, 4 }
 0x388   : > { %4820 = vst.msk [vmem:[#allocation5 + $0xf4] sm:$0xf] %vm3178_vm1, %v10236_v47  ;;  %v7657_v49 = vld [vmem:[#allocation5 + $0x140] ss:$12 sps:$4 sm:$0xff]   ;;  %v6396_v42 = vpack.c.bf16 %v6365_v5, %v6364_v39  ;;  %v4752_v33 = vrot.slane %v4751_v19, 4  ;;  %v4833_v5 = vshrl.u32 %v4228_v25, 16 }
 0x389   : > { %4910 = vrot.lane.b32.xlu1 %v10596_v44, %s7703_s29  ;;  %7512 = vmatmul.mubr.msk.bf16.gmra.mxu0 %vm5993_vm15, %v7657_v49  ;;  %v3958_v6 = vpop.permute.xlu0 %3957  ;;  %v5574_v47 = vld [vmem:[#allocation5 + $0xd8] sm:$0xff]  ;;  %v4761_v38 = vor.u32 %v4760_v0, %v4756_v34 }
 0x38a   : > { %v4091_v16 = vpop.permute.xlu1 %4090  ;;  %7515 = vmatprep.mubr.msk.bf16.mxu0 %vm5993_vm15, %v7658_v3  ;;  %4034 = vst.msk [vmem:[#allocation5 + $0xf0] sm:$0xf] %vm4013_vm10, %v3958_v6  ;;  %v10642_v49 = vsel %vm7915_vm11, %v4752_v33, %v4756_v34  ;;  %v4835_v54 = vrot.slane %v4833_v5, 4 }
 0x38b   : > { %4166 = vst.msk [vmem:[#allocation5 + $0x100] sm:$0xf] %vm4144_vm0, %v4091_v16  ;;  %5388 = vrot.lane.b32.xlu0 %v10375_v26, %s7697_s16 }
 0x38c   : > { %4821 = vst.msk [vmem:[#allocation5 + $0x100] sm:$0xf] %vm3178_vm1, %v10244_v46 }
 0x38d   : > { %5252 = vrot.lane.b32.xlu1 %v10405_v35, %s7701_s26  ;;  %v4656_v46 = vpop.permute.xlu0 %4655 }
 0x38e   : > { %v3960_v4 = vpop.permute.xlu1 %3959  ;;  %v5576_v20 = vld [vmem:[#allocation5 + $0xe4] sm:$0xff]  ;;  %4732 = vst.msk [vmem:[#allocation5 + $0xf0] sm:$0xf] %vm4711_vm13, %v4656_v46 }
 0x38f   : > { %v7659_v57 = vld [vmem:[#allocation5 + $0xdc] ss:$12 sps:$4 sm:$0xff]   ;;  %4035 = vst.msk [vmem:[#allocation5 + $0xfc] sm:$0xf] %vm4013_vm10, %v3960_v4  ;;  %v7003_v8 = vcombine.low %v5574_v47, %v5576_v20  ;;  %4104 = vrot.lane.b32.xlu0 %v10613_v23, %s7701_s26  ;;  %v4836_v4 = vshll.u32 %v4228_v25, 16 }
 0x390   : > { %6146 = vmatprep.mubr.bf16.mxu1 %v7659_v57  ;;  %v4229_v20 = vld [vmem:[#allocation3 + $0xd0] sm:$0xf]  ;;  %v3851_v57 = vld [vmem:[#allocation3 + $0xcc] sm:$0xf] }
 0x391   : > { %v7315_v35 = vpop.f32.mrf.mxu1  ;;  %6147 = vmatmul.mubr.bf16.gmra.mxu1 %v7003_v8  ;;  %5390 = vrot.lane.b32.xlu1 %v10387_v55, %s7697_s16  ;;  %v4897_v2 = vpop.permute.xlu0 %4896  ;;  %v4838_v46 = vrot.slane %v4836_v4, 5  ;;  %v4842_v28 = vshll.u32 %v4229_v20, 16  ;;  %v4846_v22 = vshrl.u32 %v4229_v20, 16 }
 0x392   : > { %v4658_v18 = vpop.permute.xlu1 %4657  ;;  %7516 = vmatmul.mubr.msk.bf16.gmra.mxu0 %vm5993_vm15, %v7661_v53  ;;  %4972 = vst.msk [vmem:[#allocation5 + $0xf4] sm:$0xf] %vm4013_vm10, %v4897_v2  ;;  %v10664_v53 = vpop.f32.mrf.mxu0  ;;  %v4230_v2 = vld [vmem:[#allocation3 + $0xd4] sm:$0x1] }
 0x393   : > { %4733 = vst.msk [vmem:[#allocation5 + $0xfc] sm:$0xf] %vm4711_vm13, %v4658_v18  ;;  %v7316_v13 = vpop.f32.mrf.mxu1  ;;  %7523 = vmatprep.mubr.msk.bf16.mxu0 %vm5993_vm15, %v6396_v42  ;;  %3973 = vrot.lane.b32.xlu0 %v10522_v43, %s7703_s29  ;;  %v4227_v43 = vld [vmem:[#allocation3 + $0xc8] sm:$0x1]  ;;  %v4839_v39 = vor.u32 %v4838_v46, %v4835_v54  ;;  %v4844_v42 = vrot.slane %v4842_v28, 5  ;;  %v4848_v18 = vrot.slane %v4846_v22, 4 }
 0x394   : > { %v7317_v40 = vadd.f32 %v7316_v13, %v7315_v35  ;;  %v4764_v16 = vshll.u32 %v4227_v43, 16  ;;  %v6253_v32 = vpop.f32.mrf.mxu0 }
 0x395   : > { %v7318_v30 = vpop.f32.mrf.mxu1  ;;  %4106 = vrot.lane.b32.xlu1 %v10626_v56, %s7701_s26  ;;  %v5239_v48 = vpop.permute.xlu0 %5238 }
 0x396   : > { %v6085_v21 = vadd.f32 %v7317_v40, %v10584_v36  ;;  %v4899_v1 = vpop.permute.xlu1 %4898  ;;  %5314 = vst.msk [vmem:[#allocation5 + $0xf0] sm:$0xf] %vm4144_vm0, %v5239_v48  ;;  %v4766_v31 = vrot.slane %v4764_v16, 5  ;;  %v4840_v40 = vrot.slane %v4839_v39, 4  ;;  %v10675_v0 = vpop.f32.mrf.mxu0 }
 0x397   : > { %4973 = vst.msk [vmem:[#allocation5 + $0x100] sm:$0xf] %vm4013_vm10, %v4899_v1  ;;  %v7319_v52 = vpop.f32.mrf.mxu1  ;;  %4671 = vrot.lane.b32.xlu0 %v10464_v37, %s7697_s16  ;;  %v4849_v1 = vor.u32 %v4848_v18, %v4844_v42 }
 0x398   : > { %v7320_v41 = vadd.f32 %v7319_v52, %v7318_v30  ;;  %v6246_v61 = vadd.f32 %v10537_v50, %v6085_v21  ;;  %v4762_v50 = vrot.slane %v4761_v38, 4  ;;  %v4852_v52 = vshll.u32 %v4230_v2, 16 }
 0x399   : > { %3975 = vrot.lane.b32.xlu1 %v10539_v7, %s7703_s29  ;;  %v5377_v17 = vpop.permute.xlu0 %5376  ;;  %v4845_v33 = vsel %vm7915_vm11, %v4840_v40, %v4844_v42 }
 0x39a   : > { %v6088_v14 = vadd.f32 %v7320_v41, %v10584_v36  ;;  %v5241_v59 = vpop.permute.xlu1 %5240  ;;  %5452 = vst.msk [vmem:[#allocation5 + $0xf4] sm:$0xf] %vm4711_vm13, %v5377_v17  ;;  %v6366_v6 = vmax.f32 %v6246_v61, 0.0  ;;  %v4850_v61 = vrot.slane %v4849_v1, 4 }
 0x39b   : > { %5315 = vst.msk [vmem:[#allocation5 + $0xfc] sm:$0xf] %vm4144_vm0, %v5241_v59  ;;  %4912 = vrot.lane.b32.xlu0 %v10642_v49, %s7703_s29  ;;  %v6256_v59 = vpop.f32.mrf.mxu0 }
 0x39c   : > { %v6249_v3 = vadd.f32 %v10579_v29, %v6088_v14  ;;  %v10655_v29 = vsel %vm7915_vm11, %v4762_v50, %v4766_v31  ;;  %v4854_v14 = vrot.slane %v4852_v52, 5 }
 0x39d   : > { %4673 = vrot.lane.b32.xlu1 %v10480_v63, %s7697_s16  ;;  %v7497_v40 = vpop.f32.mrf.mxu0 }
 0x39e   : > { %v6367_v15 = vmax.f32 %v6249_v3, 0.0  ;;  %v5379_v7 = vpop.permute.xlu1 %5378  ;;  %v4855_v50 = vsel %vm7915_vm11, %v4850_v61, %v4854_v14 }
 0x39f   : > { %5453 = vst.msk [vmem:[#allocation5 + $0x100] sm:$0xf] %vm4711_vm13, %v5379_v7  ;;  %5254 = vrot.lane.b32.xlu0 %v10375_v26, %s7701_s26 }
 0x3a0   : > { %v6397_v47 = vpack.c.bf16 %v6367_v15, %v6366_v6 }
 0x3a1   : > { %4914 = vrot.lane.b32.xlu1 %v10655_v29, %s7703_s29 }
 0x3a2   : > { %7524 = vmatmul.mubr.msk.bf16.vlgmr.msra.gmra.mxu0 %vm5993_vm15, %v6397_v47  ;;  %v7666_v8 = vld [vmem:[#allocation5 + $0xf0] ss:$12 sps:$4 sm:$0xff]  }
 0x3a3   : > { %5392 = vrot.lane.b32.xlu0 %v10550_v60, %s7697_s16 }
 0x3a5   : > { %5256 = vrot.lane.b32.xlu1 %v10387_v55, %s7701_s26  ;;  %v3852_v55 = vld [vmem:[#allocation3 + $0xd0] sm:$0xf] }
 0x3a6   : > { %v7664_v26 = vld [vmem:[#allocation5 + $0xf4] ss:$12 sps:$4 sm:$0xff]  }
 0x3a7   : > { %4108 = vrot.lane.b32.xlu0 %v3851_v57, %s7701_s26  ;;  %6154 = vmatprep.mubr.bf16.mxu1 %v7664_v26 }
 0x3a8   : > { %6155 = vmatmul.mubr.bf16.gmra.mxu1 %v7666_v8 }
 0x3a9   : > { %5394 = vrot.lane.b32.xlu1 %v10565_v27, %s7697_s16  ;;  %v7321_v35 = vpop.f32.mrf.mxu1  ;;  %v4093_v9 = vpop.permute.xlu0 %4092 }
 0x3aa   : > { %4167 = vst.msk [vmem:[#allocation5 + $0x10c] sm:$0xf] %vm4144_vm0, %v4093_v9 }
 0x3ab   : > { %4822 = vst.msk [vmem:[#allocation5 + $0x10c] sm:$0xf] %vm3178_vm1, %v10292_v11  ;;  %v7322_v13 = vpop.f32.mrf.mxu1  ;;  %3977 = vrot.lane.b32.xlu0 %v10613_v23, %s7703_s29 }
 0x3ac   : > { %v7323_v19 = vadd.f32 %v7322_v13, %v7321_v35 }
 0x3ad   : > { %4110 = vrot.lane.b32.xlu1 %v3852_v55, %s7701_s26  ;;  %v7324_v30 = vpop.f32.mrf.mxu1  ;;  %v3962_v34 = vpop.permute.xlu0 %3961 }
 0x3ae   : > { %v6093_v21 = vadd.f32 %v7323_v19, %v10584_v36  ;;  %4036 = vst.msk [vmem:[#allocation5 + $0x108] sm:$0xf] %vm4013_vm10, %v3962_v34 }
 0x3af   : > { %v4095_v11 = vpop.permute.xlu1 %4094  ;;  %v7325_v48 = vpop.f32.mrf.mxu1  ;;  %4675 = vrot.lane.b32.xlu0 %v10574_v24, %s7697_s16 }
 0x3b0   : > { %4168 = vst.msk [vmem:[#allocation5 + $0x118] sm:$0xf] %vm4144_vm0, %v4095_v11  ;;  %v7326_v23 = vadd.f32 %v7325_v48, %v7324_v30  ;;  %v6254_v43 = vadd.f32 %v6253_v32, %v6093_v21 }
 0x3b1   : > { %4823 = vst.msk [vmem:[#allocation5 + $0x118] sm:$0xf] %vm3178_vm1, %v10312_v62  ;;  %3979 = vrot.lane.b32.xlu1 %v10626_v56, %s7703_s29  ;;  %v4660_v41 = vpop.permute.xlu0 %4659 }
 0x3b2   : > { %v6096_v38 = vadd.f32 %v7326_v23, %v10584_v36  ;;  %4734 = vst.msk [vmem:[#allocation5 + $0x108] sm:$0xf] %vm4711_vm13, %v4660_v41  ;;  %v6368_v56 = vmax.f32 %v6254_v43, 0.0 }
 0x3b3   : > { %v3964_v17 = vpop.permute.xlu1 %3963  ;;  %4916 = vrot.lane.b32.xlu0 %v4845_v33, %s7703_s29 }
 0x3b4   : > { %v6257_v16 = vadd.f32 %v6256_v59, %v6096_v38  ;;  %4037 = vst.msk [vmem:[#allocation5 + $0x114] sm:$0xf] %vm4013_vm10, %v3964_v17 }
 0x3b5   : > { %4677 = vrot.lane.b32.xlu1 %v10596_v44, %s7697_s16  ;;  %v4901_v62 = vpop.permute.xlu0 %4900 }
 0x3b6   : > { %v6369_v3 = vmax.f32 %v6257_v16, 0.0  ;;  %4974 = vst.msk [vmem:[#allocation5 + $0x10c] sm:$0xf] %vm4013_vm10, %v4901_v62 }
 0x3b7   : > { %v4662_v6 = vpop.permute.xlu1 %4661  ;;  %5258 = vrot.lane.b32.xlu0 %v10550_v60, %s7701_s26 }
 0x3b8   : > { %v6398_v15 = vpack.c.bf16 %v6369_v3, %v6368_v56  ;;  %4735 = vst.msk [vmem:[#allocation5 + $0x114] sm:$0xf] %vm4711_vm13, %v4662_v6 }
 0x3b9   : > { %4918 = vrot.lane.b32.xlu1 %v4855_v50, %s7703_s29  ;;  %v5243_v7 = vpop.permute.xlu0 %5242 }
 0x3ba   : > { %5316 = vst.msk [vmem:[#allocation5 + $0x108] sm:$0xf] %vm4144_vm0, %v5243_v7  ;;  %7527 = vmatprep.mubr.msk.bf16.mxu0 %vm5993_vm15, %v6398_v15 }
 0x3bb   : > { %v4903_v25 = vpop.permute.xlu1 %4902  ;;  %5396 = vrot.lane.b32.xlu0 %v10535_v58, %s7697_s16 }
 0x3bc   : > { %4975 = vst.msk [vmem:[#allocation5 + $0x118] sm:$0xf] %vm4013_vm10, %v4903_v25 }
 0x3bd   : > { %5260 = vrot.lane.b32.xlu1 %v10565_v27, %s7701_s26  ;;  %v5381_v10 = vpop.permute.xlu0 %5380 }
 0x3be   : > { %5454 = vst.msk [vmem:[#allocation5 + $0x10c] sm:$0xf] %vm4711_vm13, %v5381_v10 }
 0x3bf   : > { %v5245_v60 = vpop.permute.xlu1 %5244 }
 0x3c0   : > { %5317 = vst.msk [vmem:[#allocation5 + $0x114] sm:$0xf] %vm4144_vm0, %v5245_v60 }
 0x3c1   : > { %v7327_v31 = vpop.f32.mrf.mxu1  ;;  %5398 = vrot.lane.b32.xlu1 %v10554_v45, %s7697_s16  ;;  %v4097_v47 = vpop.permute.xlu0 %4096 }
 0x3c2   : > { %4169 = vst.msk [vmem:[#allocation5 + $0x124] sm:$0xf] %vm4144_vm0, %v4097_v47 }
 0x3c3   : > { %v7328_v5 = vpop.f32.mrf.mxu1  ;;  %v5383_v58 = vpop.permute.xlu1 %5382  ;;  %4824 = vst.msk [vmem:[#allocation5 + $0x124] sm:$0xf] %vm3178_vm1, %v10414_v51 }
 0x3c4   : > { %v7329_v4 = vadd.f32 %v7328_v5, %v7327_v31  ;;  %5455 = vst.msk [vmem:[#allocation5 + $0x118] sm:$0xf] %vm4711_vm13, %v5383_v58 }
 0x3c5   : > { %v7330_v27 = vpop.f32.mrf.mxu1  ;;  %v3966_v57 = vpop.permute.xlu0 %3965  ;;  %v5582_v39 = vld [vmem:[#allocation5 + $0x108] sm:$0xff] }
 0x3c6   : > { %v6101_v20 = vadd.f32 %v7329_v4, %v10584_v36  ;;  %4038 = vst.msk [vmem:[#allocation5 + $0x120] sm:$0xf] %vm4013_vm10, %v3966_v57 }
 0x3c7   : > { %v7331_v54 = vpop.f32.mrf.mxu1  ;;  %v4099_v46 = vpop.permute.xlu1 %4098 }
 0x3c8   : > { %v7332_v45 = vadd.f32 %v7331_v54, %v7330_v27  ;;  %4170 = vst.msk [vmem:[#allocation5 + $0x130] sm:$0xf] %vm4144_vm0, %v4099_v46  ;;  %v6262_v26 = vadd.f32 %v10664_v53, %v6101_v20 }
 0x3c9   : > { %4825 = vst.msk [vmem:[#allocation5 + $0x130] sm:$0xf] %vm3178_vm1, %v10429_v12  ;;  %v4664_v8 = vpop.permute.xlu0 %4663 }
 0x3ca   : > { %v6104_v51 = vadd.f32 %v7332_v45, %v10584_v36  ;;  %4736 = vst.msk [vmem:[#allocation5 + $0x120] sm:$0xf] %vm4711_vm13, %v4664_v8  ;;  %v6370_v55 = vmax.f32 %v6262_v26, 0.0 }
 0x3cb   : > { %v3968_v22 = vpop.permute.xlu1 %3967  ;;  %v5584_v35 = vld [vmem:[#allocation5 + $0x114] sm:$0xff] }
 0x3cc   : > { %v6265_v28 = vadd.f32 %v10675_v0, %v6104_v51  ;;  %v7667_v9 = vld [vmem:[#allocation5 + $0x10c] ss:$12 sps:$4 sm:$0xff]   ;;  %4039 = vst.msk [vmem:[#allocation5 + $0x12c] sm:$0xf] %vm4013_vm10, %v3968_v22  ;;  %v7009_v32 = vcombine.low %v5582_v39, %v5584_v35  ;;  %v6269_v0 = vpop.f32.mrf.mxu0 }
 0x3cd   : > { %6162 = vmatprep.mubr.bf16.mxu1 %v7667_v9  ;;  %v4905_v53 = vpop.permute.xlu0 %4904 }
 0x3ce   : > { %v6371_v42 = vmax.f32 %v6265_v28, 0.0  ;;  %4976 = vst.msk [vmem:[#allocation5 + $0x124] sm:$0xf] %vm4013_vm10, %v4905_v53  ;;  %6163 = vmatmul.mubr.bf16.gmra.mxu1 %v7009_v32  ;;  %v7498_v23 = vpop.f32.mrf.mxu0 }
 0x3cf   : > { %v4666_v18 = vpop.permute.xlu1 %4665 }
 0x3d0   : > { %v6399_v12 = vpack.c.bf16 %v6371_v42, %v6370_v55  ;;  %4737 = vst.msk [vmem:[#allocation5 + $0x12c] sm:$0xf] %vm4711_vm13, %v4666_v18  ;;  %v6272_v61 = vpop.f32.mrf.mxu0 }
 0x3d1   : > { %v5247_v13 = vpop.permute.xlu0 %5246 }
 0x3d2   : > { %7528 = vmatmul.mubr.msk.bf16.gmra.mxu0 %vm5993_vm15, %v6399_v12  ;;  %5318 = vst.msk [vmem:[#allocation5 + $0x120] sm:$0xf] %vm4144_vm0, %v5247_v13  ;;  %v10759_v35 = vpop.f32.mrf.mxu0 }
 0x3d3   : > { %v4907_v2 = vpop.permute.xlu1 %4906 }
 0x3d4   : > { %4977 = vst.msk [vmem:[#allocation5 + $0x130] sm:$0xf] %vm4013_vm10, %v4907_v2  ;;  %v6285_v42 = vpop.f32.mrf.mxu0 }
 0x3d5   : > { %v5385_v19 = vpop.permute.xlu0 %5384 }
 0x3d6   : > { %5456 = vst.msk [vmem:[#allocation5 + $0x124] sm:$0xf] %vm4711_vm13, %v5385_v19 }
 0x3d7   : > { %v5249_v30 = vpop.permute.xlu1 %5248 }
 0x3d8   : > { %5319 = vst.msk [vmem:[#allocation5 + $0x12c] sm:$0xf] %vm4144_vm0, %v5249_v30 }
 0x3d9   : > { %v7333_v34 = vpop.f32.mrf.mxu1 }
 0x3db   : > { %v7334_v21 = vpop.f32.mrf.mxu1  ;;  %v5387_v1 = vpop.permute.xlu1 %5386 }
 0x3dc   : > { %v7335_v52 = vadd.f32 %v7334_v21, %v7333_v34  ;;  %5457 = vst.msk [vmem:[#allocation5 + $0x130] sm:$0xf] %vm4711_vm13, %v5387_v1 }
 0x3dd   : > { %v7336_v11 = vpop.f32.mrf.mxu1 }
 0x3de   : > { %v6109_v48 = vadd.f32 %v7335_v52, %v10584_v36 }
 0x3df   : > { %v7337_v33 = vpop.f32.mrf.mxu1  ;;  %v7671_v17 = vld [vmem:[#allocation5 + $0x120] ss:$12 sps:$4 sm:$0xff]  }
 0x3e0   : > { %v7338_v41 = vadd.f32 %v7337_v33, %v7336_v11  ;;  %v6270_v43 = vadd.f32 %v6269_v0, %v6109_v48  ;;  %v7502_v0 = vpop.f32.mrf.mxu0 }
 0x3e2   : > { %v6112_v38 = vadd.f32 %v7338_v41, %v10584_v36  ;;  %v6372_v16 = vmax.f32 %v6270_v43, 0.0 }
 0x3e3   : > { %v7669_v59 = vld [vmem:[#allocation5 + $0x124] ss:$12 sps:$4 sm:$0xff]  }
 0x3e4   : > { %v6273_v14 = vadd.f32 %v6272_v61, %v6112_v38  ;;  %6170 = vmatprep.mubr.bf16.mxu1 %v7669_v59 }
 0x3e5   : > { %6171 = vmatmul.mubr.bf16.gmra.mxu1 %v7671_v17 }
 0x3e6   : > { %v6373_v62 = vmax.f32 %v6273_v14, 0.0 }
 0x3e8   : > { %v6400_v56 = vpack.c.bf16 %v6373_v62, %v6372_v16 }
 0x3e9   : > { %v4101_v3 = vpop.permute.xlu0 %4100 }
 0x3ea   : > { %7531 = vmatprep.mubr.msk.bf16.mxu0 %vm5993_vm15, %v6400_v56  ;;  %4171 = vst.msk [vmem:[#allocation5 + $0x13c] sm:$0xf] %vm4144_vm0, %v4101_v3 }
 0x3eb   : > { %4826 = vst.msk [vmem:[#allocation5 + $0x13c] sm:$0xf] %vm3178_vm1, %v10464_v37 }
 0x3ed   : > { %v3970_v50 = vpop.permute.xlu0 %3969 }
 0x3ee   : > { %4040 = vst.msk [vmem:[#allocation5 + $0x138] sm:$0xf] %vm4013_vm10, %v3970_v50 }
 0x3ef   : > { %v4103_v6 = vpop.permute.xlu1 %4102 }
 0x3f0   : > { %4172 = vst.msk [vmem:[#allocation5 + $0x148] sm:$0xf] %vm4144_vm0, %v4103_v6 }
 0x3f1   : > { %v7339_v15 = vpop.f32.mrf.mxu1  ;;  %4827 = vst.msk [vmem:[#allocation5 + $0x148] sm:$0xf] %vm3178_vm1, %v10480_v63  ;;  %v4668_v7 = vpop.permute.xlu0 %4667 }
 0x3f2   : > { %4738 = vst.msk [vmem:[#allocation5 + $0x138] sm:$0xf] %vm4711_vm13, %v4668_v7 }
 0x3f3   : > { %v7340_v25 = vpop.f32.mrf.mxu1  ;;  %v3972_v10 = vpop.permute.xlu1 %3971 }
 0x3f4   : > { %v7341_v60 = vadd.f32 %v7340_v25, %v7339_v15  ;;  %4041 = vst.msk [vmem:[#allocation5 + $0x144] sm:$0xf] %vm4013_vm10, %v3972_v10 }
 0x3f5   : > { %v7342_v31 = vpop.f32.mrf.mxu1  ;;  %v4909_v47 = vpop.permute.xlu0 %4908 }
 0x3f6   : > { %v6117_v37 = vadd.f32 %v7341_v60, %v10584_v36  ;;  %4978 = vst.msk [vmem:[#allocation5 + $0x13c] sm:$0xf] %vm4013_vm10, %v4909_v47 }
 0x3f7   : > { %v7343_v5 = vpop.f32.mrf.mxu1  ;;  %v4670_v58 = vpop.permute.xlu1 %4669 }
 0x3f8   : > { %v7344_v4 = vadd.f32 %v7343_v5, %v7342_v31  ;;  %4739 = vst.msk [vmem:[#allocation5 + $0x144] sm:$0xf] %vm4711_vm13, %v4670_v58  ;;  %v6278_v63 = vadd.f32 %v7497_v40, %v6117_v37 }
 0x3f9   : > { %v5251_v20 = vpop.permute.xlu0 %5250 }
 0x3fa   : > { %v6120_v27 = vadd.f32 %v7344_v4, %v10584_v36  ;;  %5320 = vst.msk [vmem:[#allocation5 + $0x138] sm:$0xf] %vm4144_vm0, %v5251_v20  ;;  %v6374_v46 = vmax.f32 %v6278_v63, 0.0 }
 0x3fb   : > { %v4911_v54 = vpop.permute.xlu1 %4910 }
 0x3fc   : > { %v6281_v57 = vadd.f32 %v7498_v23, %v6120_v27  ;;  %4979 = vst.msk [vmem:[#allocation5 + $0x148] sm:$0xf] %vm4013_vm10, %v4911_v54  ;;  %v6288_v23 = vpop.f32.mrf.mxu0 }
 0x3fd   : > { %v5389_v26 = vpop.permute.xlu0 %5388 }
 0x3fe   : > { %v6375_v45 = vmax.f32 %v6281_v57, 0.0  ;;  %5458 = vst.msk [vmem:[#allocation5 + $0x13c] sm:$0xf] %vm4711_vm13, %v5389_v26  ;;  %v7505_v26 = vpop.f32.mrf.mxu0 }
 0x3ff   : > { %v5253_v8 = vpop.permute.xlu1 %5252 }
 0x400   : > { %v6401_v51 = vpack.c.bf16 %v6375_v45, %v6374_v46  ;;  %5321 = vst.msk [vmem:[#allocation5 + $0x144] sm:$0xf] %vm4144_vm0, %v5253_v8 }
 0x401   : > { %v4105_v28 = vpop.permute.xlu0 %4104 }
 0x402   : > { %7532 = vmatmul.mubr.msk.bf16.gmra.mxu0 %vm5993_vm15, %v6401_v51  ;;  %4173 = vst.msk [vmem:[#allocation5 + $0x154] sm:$0xf] %vm4144_vm0, %v4105_v28  ;;  %v6301_v28 = vpop.f32.mrf.mxu0 }
 0x403   : > { %v5391_v22 = vpop.permute.xlu1 %5390  ;;  %4828 = vst.msk [vmem:[#allocation5 + $0x154] sm:$0xf] %vm3178_vm1, %v10574_v24 }
 0x404   : > { %5459 = vst.msk [vmem:[#allocation5 + $0x148] sm:$0xf] %vm4711_vm13, %v5391_v22 }
 0x405   : > { %v3974_v39 = vpop.permute.xlu0 %3973  ;;  %v5590_v18 = vld [vmem:[#allocation5 + $0x138] sm:$0xff] }
 0x406   : > { %4042 = vst.msk [vmem:[#allocation5 + $0x150] sm:$0xf] %vm4013_vm10, %v3974_v39  ;;  %v7506_v39 = vpop.f32.mrf.mxu0 }
 0x407   : > { %v4107_v9 = vpop.permute.xlu1 %4106 }
 0x408   : > { %4174 = vst.msk [vmem:[#allocation5 + $0x160] sm:$0xf] %vm4144_vm0, %v4107_v9  ;;  %v6304_v9 = vpop.f32.mrf.mxu0 }
 0x409   : > { %v7345_v32 = vpop.f32.mrf.mxu1  ;;  %4829 = vst.msk [vmem:[#allocation5 + $0x160] sm:$0xf] %vm3178_vm1, %v10596_v44  ;;  %v4672_v55 = vpop.permute.xlu0 %4671 }
 0x40a   : > { %4740 = vst.msk [vmem:[#allocation5 + $0x150] sm:$0xf] %vm4711_vm13, %v4672_v55 }
 0x40b   : > { %v7346_v53 = vpop.f32.mrf.mxu1  ;;  %v3976_v24 = vpop.permute.xlu1 %3975  ;;  %v5592_v13 = vld [vmem:[#allocation5 + $0x144] sm:$0xff] }
 0x40c   : > { %v7347_v12 = vadd.f32 %v7346_v53, %v7345_v32  ;;  %v7672_v2 = vld [vmem:[#allocation5 + $0x13c] ss:$12 sps:$4 sm:$0xff]   ;;  %4043 = vst.msk [vmem:[#allocation5 + $0x15c] sm:$0xf] %vm4013_vm10, %v3976_v24  ;;  %v7015_v40 = vcombine.low %v5590_v18, %v5592_v13  ;;  %v10797_v24 = vpop.f32.mrf.mxu0 }
 0x40d   : > { %v7348_v19 = vpop.f32.mrf.mxu1  ;;  %6178 = vmatprep.mubr.bf16.mxu1 %v7672_v2  ;;  %v4913_v34 = vpop.permute.xlu0 %4912 }
 0x40e   : > { %v6125_v30 = vadd.f32 %v7347_v12, %v10584_v36  ;;  %4980 = vst.msk [vmem:[#allocation5 + $0x154] sm:$0xf] %vm4013_vm10, %v4913_v34  ;;  %6179 = vmatmul.mubr.bf16.gmra.mxu1 %v7015_v40 }
 0x40f   : > { %v7349_v44 = vpop.f32.mrf.mxu1  ;;  %v4674_v21 = vpop.permute.xlu1 %4673 }
 0x410   : > { %v7350_v1 = vadd.f32 %v7349_v44, %v7348_v19  ;;  %4741 = vst.msk [vmem:[#allocation5 + $0x15c] sm:$0xf] %vm4711_vm13, %v4674_v21  ;;  %v6286_v52 = vadd.f32 %v6285_v42, %v6125_v30  ;;  %v6317_v19 = vpop.f32.mrf.mxu0 }
 0x411   : > { %v5255_v48 = vpop.permute.xlu0 %5254 }
 0x412   : > { %v6128_v11 = vadd.f32 %v7350_v1, %v10584_v36  ;;  %5322 = vst.msk [vmem:[#allocation5 + $0x150] sm:$0xf] %vm4144_vm0, %v5255_v48  ;;  %v6376_v43 = vmax.f32 %v6286_v52, 0.0 }
 0x413   : > { %v4915_v41 = vpop.permute.xlu1 %4914 }
 0x414   : > { %v6289_v33 = vadd.f32 %v6288_v23, %v6128_v11  ;;  %4981 = vst.msk [vmem:[#allocation5 + $0x160] sm:$0xf] %vm4013_vm10, %v4915_v41 }
 0x415   : > { %v5393_v61 = vpop.permute.xlu0 %5392 }
 0x416   : > { %v6377_v38 = vmax.f32 %v6289_v33, 0.0  ;;  %5460 = vst.msk [vmem:[#allocation5 + $0x154] sm:$0xf] %vm4711_vm13, %v5393_v61 }
 0x417   : > { %v5257_v59 = vpop.permute.xlu1 %5256 }
 0x418   : > { %v6402_v14 = vpack.c.bf16 %v6377_v38, %v6376_v43  ;;  %5323 = vst.msk [vmem:[#allocation5 + $0x15c] sm:$0xf] %vm4144_vm0, %v5257_v59 }
 0x419   : > { %v4109_v17 = vpop.permute.xlu0 %4108 }
 0x41a   : > { %7535 = vmatprep.mubr.msk.bf16.mxu0 %vm5993_vm15, %v6402_v14  ;;  %4175 = vst.msk [vmem:[#allocation5 + $0x16c] sm:$0xf] %vm4144_vm0, %v4109_v17 }
 0x41b   : > { %v5395_v16 = vpop.permute.xlu1 %5394  ;;  %4830 = vst.msk [vmem:[#allocation5 + $0x16c] sm:$0xf] %vm3178_vm1, %v10642_v49 }
 0x41c   : > { %5461 = vst.msk [vmem:[#allocation5 + $0x160] sm:$0xf] %vm4711_vm13, %v5395_v16 }
 0x41d   : > { %v3978_v62 = vpop.permute.xlu0 %3977  ;;  %v5594_v25 = vld [vmem:[#allocation5 + $0x150] sm:$0xff] }
 0x41e   : > { %4044 = vst.msk [vmem:[#allocation5 + $0x168] sm:$0xf] %vm4013_vm10, %v3978_v62 }
 0x41f   : > { %v4111_v56 = vpop.permute.xlu1 %4110 }
 0x420   : > { %4176 = vst.msk [vmem:[#allocation5 + $0x178] sm:$0xf] %vm4144_vm0, %v4111_v56 }
 0x421   : > { %v7351_v3 = vpop.f32.mrf.mxu1  ;;  %4831 = vst.msk [vmem:[#allocation5 + $0x178] sm:$0xf] %vm3178_vm1, %v10655_v29  ;;  %v4676_v50 = vpop.permute.xlu0 %4675 }
 0x422   : > { %4742 = vst.msk [vmem:[#allocation5 + $0x168] sm:$0xf] %vm4711_vm13, %v4676_v50 }
 0x423   : > { %v7352_v6 = vpop.f32.mrf.mxu1  ;;  %v3980_v15 = vpop.permute.xlu1 %3979  ;;  %v5596_v49 = vld [vmem:[#allocation5 + $0x15c] sm:$0xff] }
 0x424   : > { %v7353_v7 = vadd.f32 %v7352_v6, %v7351_v3  ;;  %v7674_v10 = vld [vmem:[#allocation5 + $0x154] ss:$12 sps:$4 sm:$0xff]   ;;  %4045 = vst.msk [vmem:[#allocation5 + $0x174] sm:$0xf] %vm4013_vm10, %v3980_v15  ;;  %v7018_v31 = vcombine.low %v5594_v25, %v5596_v49 }
 0x425   : > { %v7354_v60 = vpop.f32.mrf.mxu1  ;;  %6186 = vmatprep.mubr.bf16.mxu1 %v7674_v10  ;;  %v4917_v47 = vpop.permute.xlu0 %4916 }
 0x426   : > { %v6133_v37 = vadd.f32 %v7353_v7, %v10584_v36  ;;  %4982 = vst.msk [vmem:[#allocation5 + $0x16c] sm:$0xf] %vm4013_vm10, %v4917_v47  ;;  %6187 = vmatmul.mubr.bf16.gmra.mxu1 %v7018_v31 }
 0x427   : > { %v7355_v29 = vpop.f32.mrf.mxu1  ;;  %v4678_v5 = vpop.permute.xlu1 %4677 }
 0x428   : > { %v7356_v58 = vadd.f32 %v7355_v29, %v7354_v60  ;;  %4743 = vst.msk [vmem:[#allocation5 + $0x174] sm:$0xf] %vm4711_vm13, %v4678_v5  ;;  %v6294_v4 = vadd.f32 %v10759_v35, %v6133_v37  ;;  %v10826_v60 = vld [vmem:[%s10918_s7] ss:$0 sm:$0xff] }
 0x429   : > { %v5259_v27 = vpop.permute.xlu0 %5258 }
 0x42a   : > { %v6136_v63 = vadd.f32 %v7356_v58, %v10584_v36  ;;  %5324 = vst.msk [vmem:[#allocation5 + $0x168] sm:$0xf] %vm4144_vm0, %v5259_v27  ;;  %v6378_v54 = vmax.f32 %v6294_v4, 0.0 }
 0x42b   : > { %v4919_v57 = vpop.permute.xlu1 %4918 }
 0x42c   : > { %v6297_v20 = vadd.f32 %v7502_v0, %v6136_v63  ;;  %4983 = vst.msk [vmem:[#allocation5 + $0x178] sm:$0xf] %vm4013_vm10, %v4919_v57  ;;  %v10801_v0 = vpop.f32.mrf.mxu0 }
 0x42d   : > { %v5397_v45 = vpop.permute.xlu0 %5396 }
 0x42e   : > { %v6379_v46 = vmax.f32 %v6297_v20, 0.0  ;;  %5462 = vst.msk [vmem:[#allocation5 + $0x16c] sm:$0xf] %vm4711_vm13, %v5397_v45  ;;  %v6320_v52 = vpop.f32.mrf.mxu0 }
 0x42f   : > { %v5261_v8 = vpop.permute.xlu1 %5260 }
 0x430   : > { %v6403_v51 = vpack.c.bf16 %v6379_v46, %v6378_v54  ;;  %5325 = vst.msk [vmem:[#allocation5 + $0x174] sm:$0xf] %vm4144_vm0, %v5261_v8 }
 0x432   : > { %7536 = vmatmul.mubr.msk.bf16.gmra.mxu0 %vm5993_vm15, %v6403_v51 }
 0x433   : > { %v5399_v22 = vpop.permute.xlu1 %5398 }
 0x434   : > { %5463 = vst.msk [vmem:[#allocation5 + $0x178] sm:$0xf] %vm4711_vm13, %v5399_v22 }
 0x437   : > { %v7678_v53 = vld [vmem:[#allocation5 + $0x168] ss:$12 sps:$4 sm:$0xff]  }
 0x439   : > { %v7357_v35 = vpop.f32.mrf.mxu1 }
 0x43b   : > { %v7358_v32 = vpop.f32.mrf.mxu1  ;;  %v7676_v42 = vld [vmem:[#allocation5 + $0x16c] ss:$12 sps:$4 sm:$0xff]  }
 0x43c   : > { %v7359_v55 = vadd.f32 %v7358_v32, %v7357_v35  ;;  %6194 = vmatprep.mubr.bf16.mxu1 %v7676_v42 }
 0x43d   : > { %v7360_v12 = vpop.f32.mrf.mxu1  ;;  %6195 = vmatmul.mubr.bf16.gmra.mxu1 %v7678_v53 }
 0x43e   : > { %v6141_v18 = vadd.f32 %v7359_v55, %v10584_v36 }
 0x43f   : > { %v7361_v13 = vpop.f32.mrf.mxu1 }
 0x440   : > { %v7362_v2 = vadd.f32 %v7361_v13, %v7360_v12  ;;  %v6302_v40 = vadd.f32 %v6301_v28, %v6141_v18 }
 0x442   : > { %v6144_v30 = vadd.f32 %v7362_v2, %v10584_v36  ;;  %v6380_v44 = vmax.f32 %v6302_v40, 0.0 }
 0x444   : > { %v6305_v34 = vadd.f32 %v6304_v9, %v6144_v30 }
 0x446   : > { %v6381_v21 = vmax.f32 %v6305_v34, 0.0 }
 0x448   : > { %v6404_v1 = vpack.c.bf16 %v6381_v21, %v6380_v44 }
 0x449   : > { %v10804_v11 = vpop.f32.mrf.mxu0 }
 0x44a   : > { %7539 = vmatprep.mubr.msk.bf16.mxu0 %vm5993_vm15, %v6404_v1 }
 0x44b   : > { %v10806_v48 = vpop.f32.mrf.mxu0 }
 0x44d   : > { %v10808_v23 = vpop.f32.mrf.mxu0 }
 0x44f   : > { %v10810_v41 = vpop.f32.mrf.mxu0 }
 0x451   : > { %v7363_v33 = vpop.f32.mrf.mxu1 }
 0x452   : > { %v10812_v38 = vpop.f32.mrf.mxu0 }
 0x453   : > { %v7364_v43 = vpop.f32.mrf.mxu1 }
 0x454   : > { %v7365_v61 = vadd.f32 %v7364_v43, %v7363_v33  ;;  %v10815_v17 = vpop.f32.mrf.mxu0 }
 0x455   : > { %v7366_v14 = vpop.f32.mrf.mxu1 }
 0x456   : > { %v6149_v59 = vadd.f32 %v7365_v61, %v10584_v36  ;;  %v10818_v50 = vpop.f32.mrf.mxu0 }
 0x457   : > { %v7367_v16 = vpop.f32.mrf.mxu1 }
 0x458   : > { %v7368_v62 = vadd.f32 %v7367_v16, %v7366_v14  ;;  %v6310_v56 = vadd.f32 %v7505_v26, %v6149_v59  ;;  %v10820_v25 = vpop.f32.mrf.mxu0 }
 0x45a   : > { %v6152_v3 = vadd.f32 %v7368_v62, %v10584_v36  ;;  %v6382_v15 = vmax.f32 %v6310_v56, 0.0 }
 0x45c   : > { %v6313_v6 = vadd.f32 %v7506_v39, %v6152_v3 }
 0x45e   : > { %v6383_v7 = vmax.f32 %v6313_v6, 0.0 }
 0x460   : > { %v6405_v49 = vpack.c.bf16 %v6383_v7, %v6382_v15 }
 0x462   : > { %v7525_v10 = vpop.f32.mrf.mxu0  ;;  %7540 = vmatmul.mubr.msk.bf16.gmra.mxu0 %vm5993_vm15, %v6405_v49 }
 0x463   : > { %v6526_v47 = vadd.f32 %v7525_v10, %v10826_v60 }
 0x464   : > { %v6517_v31 = vpop.f32.mrf.mxu0 }
 0x465   : > { %v6518_v58 = vadd.f32 %v10826_v60, %v6517_v31 }
 0x466   : > { %v7526_v37 = vpop.f32.mrf.mxu0 }
 0x467   : > { %v6529_v29 = vadd.f32 %v7526_v37, %v10826_v60 }
 0x468   : > { %v6520_v5 = vpop.f32.mrf.mxu0  ;;  %v7369_v27 = vpop.f32.mrf.mxu1 }
 0x469   : > { %v7185_v4 = vpack.c.bf16 %v6529_v29, %v6526_v47  ;;  %v6521_v63 = vadd.f32 %v10826_v60, %v6520_v5 }
 0x46a   : > { %v7370_v57 = vpop.f32.mrf.mxu1 }
 0x46b   : > { %7257 = vst [vmem:[%s10835_s25 + $0x8] sm:$0xff] %v7185_v4   ;;  %v7180_v20 = vpack.c.bf16 %v6521_v63, %v6518_v58  ;;  %v7371_v54 = vadd.f32 %v7370_v57, %v7369_v27 }
 0x46c   : > { %v7372_v46 = vpop.f32.mrf.mxu1 }
 0x46d   : > { %7181 = vst [vmem:[%s10835_s25] sm:$0xff] %v7180_v20   ;;  %v6157_v45 = vadd.f32 %v7371_v54, %v10584_v36 }
 0x46e   : > { %v7373_v26 = vpop.f32.mrf.mxu1 }
 0x46f   : > { %v7374_v51 = vadd.f32 %v7373_v26, %v7372_v46  ;;  %v6318_v8 = vadd.f32 %v6317_v19, %v6157_v45 }
 0x471   : > { %v6160_v28 = vadd.f32 %v7374_v51, %v10584_v36  ;;  %v6384_v39 = vmax.f32 %v6318_v8, 0.0  ;;  %v7684_v51 = vld [vmem:[%s10916_s5] ss:$0 sm:$0xff] }
 0x473   : > { %v6321_v22 = vadd.f32 %v6320_v52, %v6160_v28 }
 0x475   : > { %v6385_v35 = vmax.f32 %v6321_v22, 0.0 }
 0x477   : > { %v6406_v9 = vpack.c.bf16 %v6385_v35, %v6384_v39 }
 0x479   : > { %7543 = vmatprep.mubr.msk.bf16.mxu0 %vm5993_vm15, %v6406_v9 }
 0x48e   : > { %v7375_v32 = vpop.f32.mrf.mxu1 }
 0x490   : > { %v7376_v55 = vpop.f32.mrf.mxu1 }
 0x491   : > { %v7377_v42 = vadd.f32 %v7376_v55, %v7375_v32 }
 0x492   : > { %v7529_v53 = vpop.f32.mrf.mxu0  ;;  %v7378_v12 = vpop.f32.mrf.mxu1 }
 0x493   : > { %v6165_v18 = vadd.f32 %v7377_v42, %v10584_v36  ;;  %v6542_v30 = vadd.f32 %v7529_v53, %v10826_v60 }
 0x494   : > { %v6533_v13 = vpop.f32.mrf.mxu0  ;;  %v7379_v2 = vpop.f32.mrf.mxu1 }
 0x495   : > { %v7380_v19 = vadd.f32 %v7379_v2, %v7378_v12  ;;  %v6326_v44 = vadd.f32 %v10797_v24, %v6165_v18  ;;  %v6534_v52 = vadd.f32 %v10826_v60, %v6533_v13 }
 0x496   : > { %v7530_v40 = vpop.f32.mrf.mxu0 }
 0x497   : > { %v6545_v34 = vadd.f32 %v7530_v40, %v10826_v60  ;;  %v6168_v21 = vadd.f32 %v7380_v19, %v10584_v36  ;;  %v6386_v59 = vmax.f32 %v6326_v44, 0.0 }
 0x498   : > { %v6536_v1 = vpop.f32.mrf.mxu0 }
 0x499   : > { %v7195_v33 = vpack.c.bf16 %v6545_v34, %v6542_v30  ;;  %v6537_v43 = vadd.f32 %v10826_v60, %v6536_v1  ;;  %v6329_v61 = vadd.f32 %v10801_v0, %v6168_v21 }
 0x49b   : > { %7259 = vst [vmem:[%s10835_s25 + $0x18] sm:$0xff] %v7195_v33   ;;  %v7190_v14 = vpack.c.bf16 %v6537_v43, %v6534_v52  ;;  %v6387_v16 = vmax.f32 %v6329_v61, 0.0 }
 0x49d   : > { %7258 = vst [vmem:[%s10835_s25 + $0x10] sm:$0xff] %v7190_v14   ;;  %v6407_v62 = vpack.c.bf16 %v6387_v16, %v6386_v59 }
 0x49f   : > { %7544 = vmatmul.mubr.msk.bf16.gmra.mxu0 %vm5993_vm15, %v6407_v62 }
 0x4a5   : > { %v7381_v56 = vpop.f32.mrf.mxu1 }
 0x4a7   : > { %v7382_v24 = vpop.f32.mrf.mxu1 }
 0x4a8   : > { %v7383_v3 = vadd.f32 %v7382_v24, %v7381_v56 }
 0x4a9   : > { %v7384_v6 = vpop.f32.mrf.mxu1 }
 0x4aa   : > { %v6173_v15 = vadd.f32 %v7383_v3, %v10584_v36 }
 0x4ab   : > { %v7385_v7 = vpop.f32.mrf.mxu1 }
 0x4ac   : > { %v7386_v49 = vadd.f32 %v7385_v7, %v7384_v6  ;;  %v6334_v10 = vadd.f32 %v10806_v48, %v6173_v15 }
 0x4ae   : > { %v6176_v0 = vadd.f32 %v7386_v49, %v10584_v36  ;;  %v6388_v37 = vmax.f32 %v6334_v10, 0.0 }
 0x4b0   : > { %v6337_v31 = vadd.f32 %v10810_v41, %v6176_v0 }
 0x4b2   : > { %v6389_v47 = vmax.f32 %v6337_v31, 0.0 }
 0x4b4   : > { %v6408_v29 = vpack.c.bf16 %v6389_v47, %v6388_v37 }
 0x4b6   : > { %7547 = vmatprep.mubr.msk.bf16.mxu0 %vm5993_vm15, %v6408_v29 }
 0x4c2   : > { %v7533_v5 = vpop.f32.mrf.mxu0 }
 0x4c3   : > { %v6558_v63 = vadd.f32 %v7533_v5, %v10826_v60 }
 0x4c4   : > { %v6549_v58 = vpop.f32.mrf.mxu0 }
 0x4c5   : > { %v6550_v48 = vadd.f32 %v10826_v60, %v6549_v58 }
 0x4c6   : > { %v7534_v4 = vpop.f32.mrf.mxu0 }
 0x4c7   : > { %v6561_v27 = vadd.f32 %v7534_v4, %v10826_v60 }
 0x4c8   : > { %v6552_v20 = vpop.f32.mrf.mxu0 }
 0x4c9   : > { %v7205_v57 = vpack.c.bf16 %v6561_v27, %v6558_v63  ;;  %v6553_v36 = vadd.f32 %v10826_v60, %v6552_v20 }
 0x4cb   : > { %7261 = vst [vmem:[%s10835_s25 + $0x28] sm:$0xff] %v7205_v57   ;;  %v7200_v41 = vpack.c.bf16 %v6553_v36, %v6550_v48 }
 0x4cd   : > { %7260 = vst [vmem:[%s10835_s25 + $0x20] sm:$0xff] %v7200_v41  }
 0x4ce   : > { %v7387_v54 = vpop.f32.mrf.mxu1 }
 0x4d0   : > { %v7388_v46 = vpop.f32.mrf.mxu1 }
 0x4d1   : > { %v7389_v45 = vadd.f32 %v7388_v46, %v7387_v54 }
 0x4d2   : > { %v7390_v26 = vpop.f32.mrf.mxu1 }
 0x4d3   : > { %v6181_v8 = vadd.f32 %v7684_v51, %v7389_v45 }
 0x4d4   : > { %v7391_v28 = vpop.f32.mrf.mxu1 }
 0x4d5   : > { %v7392_v22 = vadd.f32 %v7391_v28, %v7390_v26  ;;  %v6342_v39 = vadd.f32 %v10804_v11, %v6181_v8 }
 0x4d7   : > { %v6184_v35 = vadd.f32 %v7684_v51, %v7392_v22  ;;  %v6390_v32 = vmax.f32 %v6342_v39, 0.0 }
 0x4d9   : > { %v6345_v9 = vadd.f32 %v10808_v23, %v6184_v35 }
 0x4db   : > { %v6391_v55 = vmax.f32 %v6345_v9, 0.0 }
 0x4dd   : > { %v6409_v42 = vpack.c.bf16 %v6391_v55, %v6390_v32 }
 0x4df   : > { %7548 = vmatmul.mubr.msk.bf16.gmra.mxu0 %vm5993_vm15, %v6409_v42 }
 0x4e6   : > { %v7393_v53 = vpop.f32.mrf.mxu1 }
 0x4e8   : > { %v7394_v12 = vpop.f32.mrf.mxu1 }
 0x4e9   : > { %v7395_v18 = vadd.f32 %v7394_v12, %v7393_v53 }
 0x4ea   : > { %v7396_v13 = vpop.f32.mrf.mxu1 }
 0x4eb   : > { %v6189_v2 = vadd.f32 %v7684_v51, %v7395_v18 }
 0x4ec   : > { %v7397_v19 = vpop.f32.mrf.mxu1 }
 0x4ed   : > { %v7398_v40 = vadd.f32 %v7397_v19, %v7396_v13  ;;  %v6350_v30 = vadd.f32 %v10815_v17, %v6189_v2 }
 0x4ef   : > { %v6192_v34 = vadd.f32 %v7684_v51, %v7398_v40  ;;  %v6392_v44 = vmax.f32 %v6350_v30, 0.0 }
 0x4f1   : > { %v6353_v11 = vadd.f32 %v10820_v25, %v6192_v34 }
 0x4f2   : > { %v7537_v23 = vpop.f32.mrf.mxu0 }
 0x4f3   : > { %v6393_v21 = vmax.f32 %v6353_v11, 0.0  ;;  %v6574_v43 = vadd.f32 %v7537_v23, %v10826_v60 }
 0x4f4   : > { %v6565_v1 = vpop.f32.mrf.mxu0 }
 0x4f5   : > { %v6410_v52 = vpack.c.bf16 %v6393_v21, %v6392_v44  ;;  %v6566_v17 = vadd.f32 %v10826_v60, %v6565_v1 }
 0x4f6   : > { %v7538_v33 = vpop.f32.mrf.mxu0 }
 0x4f7   : > { %v6577_v61 = vadd.f32 %v7538_v33, %v10826_v60  ;;  %7551 = vmatprep.mubr.msk.bf16.mxu0 %vm5993_vm15, %v6410_v52 }
 0x4f8   : > { %v6568_v14 = vpop.f32.mrf.mxu0 }
 0x4f9   : > { %v7215_v59 = vpack.c.bf16 %v6577_v61, %v6574_v43  ;;  %v6569_v16 = vadd.f32 %v10826_v60, %v6568_v14 }
 0x4fb   : > { %7263 = vst [vmem:[%s10835_s25 + $0x38] sm:$0xff] %v7215_v59   ;;  %v7210_v25 = vpack.c.bf16 %v6569_v16, %v6566_v17 }
 0x4fd   : > { %7262 = vst [vmem:[%s10835_s25 + $0x30] sm:$0xff] %v7210_v25   ;;  %v7399_v62 = vpop.f32.mrf.mxu1 }
 0x4ff   : > { %v7400_v56 = vpop.f32.mrf.mxu1 }
 0x500   : > { %v7401_v24 = vadd.f32 %v7400_v56, %v7399_v62 }
 0x501   : > { %v7402_v3 = vpop.f32.mrf.mxu1 }
 0x502   : > { %v6197_v6 = vadd.f32 %v7684_v51, %v7401_v24 }
 0x503   : > { %v7403_v15 = vpop.f32.mrf.mxu1 }
 0x504   : > { %v7404_v7 = vadd.f32 %v7403_v15, %v7402_v3  ;;  %v6358_v49 = vadd.f32 %v10812_v38, %v6197_v6 }
 0x506   : > { %v6200_v10 = vadd.f32 %v7684_v51, %v7404_v7  ;;  %v6394_v31 = vmax.f32 %v6358_v49, 0.0 }
 0x508   : > { %v6361_v0 = vadd.f32 %v10818_v50, %v6200_v10 }
 0x50a   : > { %v6395_v37 = vmax.f32 %v6361_v0, 0.0 }
 0x50c   : > { %v6411_v47 = vpack.c.bf16 %v6395_v37, %v6394_v31 }
 0x50e   : > { %7552 = vmatmul.mubr.msk.bf16.gmra.mxu0 %vm5993_vm15, %v6411_v47 }
 0x522   : > { %v7541_v29 = vpop.f32.mrf.mxu0 }
 0x523   : > { %v6590_v4 = vadd.f32 %v7541_v29, %v10826_v60 }
 0x524   : > { %v6581_v5 = vpop.f32.mrf.mxu0 }
 0x525   : > { %v6582_v38 = vadd.f32 %v10826_v60, %v6581_v5 }
 0x526   : > { %v7542_v58 = vpop.f32.mrf.mxu0 }
 0x527   : > { %v6593_v63 = vadd.f32 %v7542_v58, %v10826_v60 }
 0x528   : > { %v6584_v27 = vpop.f32.mrf.mxu0 }
 0x529   : > { %v7225_v20 = vpack.c.bf16 %v6593_v63, %v6590_v4  ;;  %v6585_v50 = vadd.f32 %v10826_v60, %v6584_v27 }
 0x52b   : > { %7265 = vst [vmem:[%s10835_s25 + $0x48] sm:$0xff] %v7225_v20   ;;  %v7220_v48 = vpack.c.bf16 %v6585_v50, %v6582_v38 }
 0x52d   : > { %7264 = vst [vmem:[%s10835_s25 + $0x40] sm:$0xff] %v7220_v48  }
 0x55f   : > { %v7545_v57 = vpop.f32.mrf.mxu0 }
 0x560   : > { %v6606_v54 = vadd.f32 %v7545_v57, %v10826_v60 }
 0x561   : > { %v6597_v36 = vpop.f32.mrf.mxu0 }
 0x562   : > { %v6598_v26 = vadd.f32 %v10826_v60, %v6597_v36 }
 0x563   : > { %v7546_v41 = vpop.f32.mrf.mxu0 }
 0x564   : > { %v6609_v46 = vadd.f32 %v7546_v41, %v10826_v60 }
 0x565   : > { %v6600_v45 = vpop.f32.mrf.mxu0 }
 0x566   : > { %v7235_v51 = vpack.c.bf16 %v6609_v46, %v6606_v54  ;;  %v6601_v8 = vadd.f32 %v10826_v60, %v6600_v45 }
 0x568   : > { %7267 = vst [vmem:[%s10835_s25 + $0x58] sm:$0xff] %v7235_v51   ;;  %v7230_v28 = vpack.c.bf16 %v6601_v8, %v6598_v26 }
 0x56a   : > { %7266 = vst [vmem:[%s10835_s25 + $0x50] sm:$0xff] %v7230_v28  }
 0x59f   : > { %v7549_v22 = vpop.f32.mrf.mxu0 }
 0x5a0   : > { %v6622_v9 = vadd.f32 %v7549_v22, %v10826_v60 }
 0x5a1   : > { %v6613_v39 = vpop.f32.mrf.mxu0 }
 0x5a2   : > { %v6614_v42 = vadd.f32 %v10826_v60, %v6613_v39 }
 0x5a3   : > { %v7550_v35 = vpop.f32.mrf.mxu0 }
 0x5a4   : > { %v6625_v32 = vadd.f32 %v7550_v35, %v10826_v60 }
 0x5a5   : > { %v6616_v55 = vpop.f32.mrf.mxu0 }
 0x5a6   : > { %v7245_v53 = vpack.c.bf16 %v6625_v32, %v6622_v9  ;;  %v6617_v12 = vadd.f32 %v10826_v60, %v6616_v55 }
 0x5a8   : > { %7269 = vst [vmem:[%s10835_s25 + $0x68] sm:$0xff] %v7245_v53   ;;  %v7240_v18 = vpack.c.bf16 %v6617_v12, %v6614_v42 }
 0x5aa   : > { %7268 = vst [vmem:[%s10835_s25 + $0x60] sm:$0xff] %v7240_v18  }
 0x5ce   : > { %v7553_v13 = vpop.f32.mrf.mxu0 }
 0x5cf   : > { %v6638_v40 = vadd.f32 %v7553_v13, %v10826_v60 }
 0x5d0   : > { %v6629_v2 = vpop.f32.mrf.mxu0 }
 0x5d1   : > { %v6630_v11 = vadd.f32 %v10826_v60, %v6629_v2 }
 0x5d2   : > { %v7554_v19 = vpop.f32.mrf.mxu0 }
 0x5d3   : > { %v6641_v30 = vadd.f32 %v7554_v19, %v10826_v60 }
 0x5d4   : > { %v6632_v34 = vpop.f32.mrf.mxu0 }
 0x5d5   : > { %v7255_v23 = vpack.c.bf16 %v6641_v30, %v6638_v40  ;;  %v6633_v44 = vadd.f32 %v10826_v60, %v6632_v34 }
 0x5d7   : > { %7271 = vst [vmem:[%s10835_s25 + $0x78] sm:$0xff] %v7255_v23   ;;  %v7250_v21 = vpack.c.bf16 %v6633_v44, %v6630_v11 }
 0x5d9   : > { %7270 = vst [vmem:[%s10835_s25 + $0x70] sm:$0xff] %v7250_v21  }
 0x5da PF: > { %s18_s27 = sadd.s32 1, %s7691_s27  }
 0x5db   : > { %p15_p4 = scmp.ge.s32.totalorder %s18_s27, 4  }
 0x5dd   :  { %17 = sbr.rel (!%p15_p4) target bundleno = 1 (0x1), region = 86 }

</bundles_post_ra>
